<compile_context>
chip_gen: v7x
topology: tpu7x:2x2x1
jax: 0.10.0
libtpu: 0.0.40
codegen_flags: <defaults>
</compile_context>

<pallas_src>
import numpy as np

import jax
import jax.numpy as jnp
from jax.experimental import pallas as pl
from jax.experimental.pallas import tpu as pltpu

EPS = 1e-5                      # PyTorch InstanceNorm2d default eps
_VMEM_LIMIT = 32 * 1024 * 1024  # explicit scoped-VMEM limit (>= v5e's 16 MiB default)


# ----------------------------- Pallas kernels ------------------------------

def _conv_in_relu_kernel(p_ref, w_ref, g_ref, b_ref, o_ref):
    """Per-sample fused (im2col patches @ W) + InstanceNorm(affine) + ReLU.

    p_ref: (HW, K) bf16, w_ref: (K, Cout) bf16, g/b_ref: (1, Cout) f32,
    o_ref: (HW, Cout) bf16.
    """
    acc = jnp.dot(p_ref[...], w_ref[...], preferred_element_type=jnp.float32)
    mean = jnp.mean(acc, axis=0, keepdims=True)
    xc = acc - mean
    var = jnp.mean(xc * xc, axis=0, keepdims=True)      # centered -> never < 0
    y = xc * jax.lax.rsqrt(var + EPS) * g_ref[...] + b_ref[...]
    o_ref[...] = jnp.maximum(y, 0.0).astype(o_ref.dtype)


def _fused_tail_kernel(p2_ref, w2_ref, g2_ref, b2_ref, s_ref, a_ref,
                       rw1_ref, rg1_ref, rb1_ref, rw2_ref, rg2_ref, rb2_ref,
                       o_ref):
    """Layer 2 (conv k4 s2 + IN + ReLU) + 4 residual blocks, fully in VMEM.

    All samples are batched into M = B*HW rows.  s_ref holds 9 block-diagonal
    (M, M) shift matrices (in-kernel im2col for the 3x3 pad-1 convs); a_ref is
    the block-diagonal per-sample row-averaging matrix used for InstanceNorm
    statistics (mean / variance via MXU matmuls, no cross-sample leakage).
    """
    avg = a_ref[...]                                     # (M, M) f32

    def inorm(acc, g, b):                                # acc: (M, D) f32
        mean = jnp.dot(avg, acc, preferred_element_type=jnp.float32)
        xc = acc - mean
        var = jnp.dot(avg, xc * xc, preferred_element_type=jnp.float32)
        return xc * jax.lax.rsqrt(var + EPS) * g + b

    def conv3x3(h, w_slab):                              # h: (M, D) f32, w: (9D, D) bf16
        d_out = w_slab.shape[1]
        hb = h.astype(jnp.bfloat16)
        acc = jnp.zeros((h.shape[0], d_out), jnp.float32)
        for k in range(9):                               # static unroll over taps
            shifted = jnp.dot(s_ref[k], hb,
                              preferred_element_type=jnp.float32)
            acc = acc + jnp.dot(shifted.astype(jnp.bfloat16),
                                w_slab[k * d_out:(k + 1) * d_out, :],
                                preferred_element_type=jnp.float32)
        return acc

    # Layer 2: Conv(2c->4c, k4 s2 p1) + IN + ReLU (patches precomputed outside).
    acc = jnp.dot(p2_ref[...], w2_ref[...], preferred_element_type=jnp.float32)
    h = jnp.maximum(inorm(acc, g2_ref[...], b2_ref[...]), 0.0)

    # Residual blocks: x + IN(conv(ReLU(IN(conv(x))))) -- h stays resident.
    for r in range(rw1_ref.shape[0]):
        t = conv3x3(h, rw1_ref[r])
        t = jnp.maximum(inorm(t, rg1_ref[r], rb1_ref[r]), 0.0)
        t = conv3x3(t, rw2_ref[r])
        h = h + inorm(t, rg2_ref[r], rb2_ref[r])

    o_ref[...] = h


# --------------------------- plain-JAX glue (fused by jit) ------------------

def im2col(x, k, stride, pad):
    """x: (B,H,W,C) -> patches (B, Ho*Wo, k*k*C) bf16, ordered (kh, kw, cin)."""
    B, H, W, C = x.shape
    xp = jnp.pad(x, ((0, 0), (pad, pad), (pad, pad), (0, 0)))
    Ho = (H + 2 * pad - k) // stride + 1
    Wo = (W + 2 * pad - k) // stride + 1
    cols = []
    for kh in range(k):
        for kw in range(k):
            cols.append(xp[:, kh:kh + stride * Ho:stride,
                           kw:kw + stride * Wo:stride, :])
    patches = jnp.concatenate(cols, axis=-1)             # (B, Ho, Wo, k*k*C)
    return patches.reshape(B, Ho * Wo, k * k * C).astype(jnp.bfloat16), (B, Ho, Wo)


def _shift_matrices(b, ho, wo):
    """Block-diagonal 0/1 matrices S[k] (M, M), M=b*ho*wo: S[k] @ h gives the
    spatially shifted activation for tap k of a 3x3 stride-1 pad-1 conv
    (zeros outside the image), with no cross-sample mixing."""
    hw = ho * wo
    m = b * hw
    s = np.zeros((9, m, m), np.float32)
    for kh in range(3):
        for kw in range(3):
            k = kh * 3 + kw
            for i in range(ho):
                ii = i + kh - 1
                if not (0 <= ii < ho):
                    continue
                for j in range(wo):
                    jj = j + kw - 1
                    if not (0 <= jj < wo):
                        continue
                    for bb in range(b):
                        s[k, bb * hw + i * wo + j, bb * hw + ii * wo + jj] = 1.0
    return jnp.asarray(s, jnp.bfloat16)


def _avg_matrix(b, hw):
    """Block-diagonal (M, M) f32 matrix averaging rows within each sample."""
    m = b * hw
    a = np.zeros((m, m), np.float32)
    for bb in range(b):
        a[bb * hw:(bb + 1) * hw, bb * hw:(bb + 1) * hw] = 1.0 / hw
    return jnp.asarray(a)


def _full_spec(shape):
    zeros = (0,) * len(shape)
    return pl.BlockSpec(shape, lambda i, zeros=zeros: zeros)


# ------------------------------ layer wrappers -------------------------------

def conv_in_relu(patches, w, gamma, beta):
    """One fused Conv2d(bias=False) + InstanceNorm(affine) + ReLU, grid=(B,)."""
    B, HW, K = patches.shape
    Cout = w.shape[1]
    return pl.pallas_call(
        _conv_in_relu_kernel,
        out_shape=jax.ShapeDtypeStruct((B, HW, Cout), jnp.bfloat16),
        grid=(B,),
        in_specs=[pl.BlockSpec((None, HW, K), lambda b: (b, 0, 0)),
                  pl.BlockSpec((K, Cout), lambda b: (0, 0)),
                  pl.BlockSpec((1, Cout), lambda b: (0, 0)),
                  pl.BlockSpec((1, Cout), lambda b: (0, 0))],
        out_specs=pl.BlockSpec((None, HW, Cout), lambda b: (b, 0, 0)),
        compiler_params=pltpu.CompilerParams(
            dimension_semantics=("parallel",),
            vmem_limit_bytes=_VMEM_LIMIT),
    )(patches, w, gamma, beta)


def fused_tail(p2, shift_mats, avg_mat, params):
    """Layer 2 + all residual blocks in a single pallas_call.  p2: (M, K2) bf16."""
    M, K2 = p2.shape
    d = params["w2"].shape[1]
    R, nine_d, _ = params["rw1"].shape
    return pl.pallas_call(
        _fused_tail_kernel,
        out_shape=jax.ShapeDtypeStruct((M, d), jnp.float32),
        grid=(1,),
        in_specs=[_full_spec((M, K2)), _full_spec((K2, d)),
                  _full_spec((1, d)), _full_spec((1, d)),
                  _full_spec((9, M, M)), _full_spec((M, M)),
                  _full_spec((R, nine_d, d)), _full_spec((R, 1, d)),
                  _full_spec((R, 1, d)),
                  _full_spec((R, nine_d, d)), _full_spec((R, 1, d)),
                  _full_spec((R, 1, d))],
        out_specs=_full_spec((M, d)),
        compiler_params=pltpu.CompilerParams(
            dimension_semantics=("arbitrary",),
            vmem_limit_bytes=_VMEM_LIMIT),
    )(p2, params["w2"], params["g2"], params["b2"], shift_mats, avg_mat,
      params["rw1"], params["rg1"], params["rb1"],
      params["rw2"], params["rg2"], params["rb2"])


# ------------------------------- parameters --------------------------------

def init_params(key, conv_dim=16, repeat_num=4):
    c = conv_dim
    d = 4 * c
    keys = iter(jax.random.split(key, 3 + 2 * repeat_num))

    def conv_w(k, kk, cin, cout):
        # im2col ordering (kh, kw, cin) -> cout; equivalent to the PyTorch
        # weight.permute(2, 3, 1, 0).reshape(kk*kk*cin, cout).
        m = 0.1 * jax.random.normal(k, (kk * kk * cin, cout), jnp.float32)
        return m.astype(jnp.bfloat16)

    def affine(cout):  # PyTorch affine defaults: gamma=1, beta=0 (true size, no pad)
        return (jnp.ones((1, cout), jnp.float32), jnp.zeros((1, cout), jnp.float32))

    p = {}
    p["w0"] = conv_w(next(keys), 7, 3, c)
    p["g0"], p["b0"] = affine(c)
    p["w1"] = conv_w(next(keys), 4, c, 2 * c)
    p["g1"], p["b1"] = affine(2 * c)
    p["w2"] = conv_w(next(keys), 4, 2 * c, d)
    p["g2"], p["b2"] = affine(d)
    rw1, rw2 = [], []
    for _ in range(repeat_num):
        rw1.append(conv_w(next(keys), 3, d, d))
        rw2.append(conv_w(next(keys), 3, d, d))
    p["rw1"] = jnp.stack(rw1)                       # (R, 9d, d) bf16
    p["rw2"] = jnp.stack(rw2)
    p["rg1"] = jnp.ones((repeat_num, 1, d), jnp.float32)
    p["rb1"] = jnp.zeros((repeat_num, 1, d), jnp.float32)
    p["rg2"] = jnp.ones((repeat_num, 1, d), jnp.float32)
    p["rb2"] = jnp.zeros((repeat_num, 1, d), jnp.float32)
    return p


# ------------------------------- forward pass -------------------------------

def stargan_encoder_forward(params, x_nchw, *, conv_dim=16):
    """StarganEncoder.forward.  x_nchw: (B,3,H,W) f32 -> (B, 4*conv_dim, H/4, W/4)."""
    c = conv_dim
    d = 4 * c
    x = jnp.transpose(x_nchw, (0, 2, 3, 1))              # NCHW -> NHWC

    # Layer 0: Conv(3->c, k7 s1 p3) + IN + ReLU   (Dropout2d: identity at inference)
    p0, (B, H0, W0) = im2col(x, 7, 1, 3)
    h0 = conv_in_relu(p0, params["w0"], params["g0"], params["b0"])
    h0 = h0.reshape(B, H0, W0, c)                        # bf16, true channel count

    # Layer 1: Conv(c->2c, k4 s2 p1) + IN + ReLU
    p1, (_, H1, W1) = im2col(h0, 4, 2, 1)
    h1 = conv_in_relu(p1, params["w1"], params["g1"], params["b1"])
    h1 = h1.reshape(B, H1, W1, 2 * c)

    # Layer 2 + 4 residual blocks: ONE fused pallas_call, batched over B*HW rows.
    p2, (_, H2, W2) = im2col(h1, 4, 2, 1)
    hw2 = H2 * W2
    p2 = p2.reshape(B * hw2, 4 * 4 * 2 * c)
    shift_mats = _shift_matrices(B, H2, W2)              # trace-time constants
    avg_mat = _avg_matrix(B, hw2)
    out = fused_tail(p2, shift_mats, avg_mat, params)    # (B*hw2, d) f32
    out = out.reshape(B, H2, W2, d)
    return jnp.transpose(out, (0, 3, 1, 2))              # back to NCHW


encoder_jit = jax.jit(stargan_encoder_forward, static_argnames=("conv_dim",))


# ----------------------------------- main -----------------------------------

if __name__ == "__main__":
    key = jax.random.PRNGKey(0)
    pkey, ikey = jax.random.split(key)

    BATCH, IMAGE_SIZE, CONV_DIM, REPEAT_NUM = 2, 16, 16, 4

    params = init_params(pkey, conv_dim=CONV_DIM, repeat_num=REPEAT_NUM)
    img = jax.random.normal(ikey, (BATCH, 3, IMAGE_SIZE, IMAGE_SIZE), jnp.float32)

    out = encoder_jit(params, img, conv_dim=CONV_DIM)
    jax.block_until_ready(out)

    assert out.shape == (BATCH, 4 * CONV_DIM, IMAGE_SIZE // 4, IMAGE_SIZE // 4)
    assert bool(jnp.all(jnp.isfinite(out)))
    print("KERNEL_OK")
</pallas_src>

<mosaic_0001>
module attributes {stable_mosaic.version = 11 : i64} {
  func.func @_conv_in_relu_kernel(%arg0: i32, %arg1: memref<1x256x147xbf16, #tpu.memory_space<vmem>>, %arg2: memref<147x16xbf16, #tpu.memory_space<vmem>>, %arg3: memref<1x16xf32, #tpu.memory_space<vmem>>, %arg4: memref<1x16xf32, #tpu.memory_space<vmem>>, %arg5: memref<1x256x16xbf16, #tpu.memory_space<vmem>>) attributes {dimension_semantics = [#tpu.dimension_semantics<parallel>], iteration_bounds = array<i64: 2>, scalar_prefetch = 0 : i64, scratch_operands = 0 : i64, tpu.core_type = #tpu.core_type<tc>, window_params = [{transform_indices = @transform_0, window_bounds = array<i64: 1, 256, 147>}, {pipeline_mode = #tpu.pipeline_mode<synchronous>, transform_indices = @transform_1, window_bounds = array<i64: 147, 16>}, {pipeline_mode = #tpu.pipeline_mode<synchronous>, transform_indices = @transform_2, window_bounds = array<i64: 1, 16>}, {pipeline_mode = #tpu.pipeline_mode<synchronous>, transform_indices = @transform_3, window_bounds = array<i64: 1, 16>}, {transform_indices = @transform_4, window_bounds = array<i64: 1, 256, 16>}]} {
    %c0 = arith.constant 0 : index
    %c0_0 = arith.constant 0 : index
    %c0_1 = arith.constant 0 : index
    %0 = vector.load %arg1[%c0, %c0_0, %c0_1] : memref<1x256x147xbf16, #tpu.memory_space<vmem>>, vector<1x256x147xbf16>
    %1 = vector.shape_cast %0 : vector<1x256x147xbf16> to vector<256x147xbf16>
    %c0_2 = arith.constant 0 : index
    %c0_3 = arith.constant 0 : index
    %2 = vector.load %arg2[%c0_2, %c0_3] : memref<147x16xbf16, #tpu.memory_space<vmem>>, vector<147x16xbf16>
    %cst = arith.constant dense<0.000000e+00> : vector<256x16xf32>
    %3 = tpu.matmul %1, %2, %cst {dimension_numbers = #tpu.dot_dimension_numbers<[1], [0], [0], [1], [0, 0, 1, 1], [], []>} : vector<256x147xbf16>, vector<147x16xbf16>, vector<256x16xf32> -> vector<256x16xf32>
    %cst_4 = arith.constant dense<0.000000e+00> : vector<16xf32>
    %4 = vector.multi_reduction <add>, %3, %cst_4 [0] : vector<256x16xf32> to vector<16xf32>
    %5 = vector.shape_cast %4 : vector<16xf32> to vector<1x16xf32>
    %cst_5 = arith.constant 2.560000e+02 : f32
    %6 = vector.broadcast %cst_5 : f32 to vector<1x16xf32>
    %7 = arith.divf %5, %6 : vector<1x16xf32>
    %8 = vector.broadcast %7 : vector<1x16xf32> to vector<256x16xf32>
    %9 = arith.subf %3, %8 : vector<256x16xf32>
    %10 = arith.mulf %9, %9 : vector<256x16xf32>
    %cst_6 = arith.constant dense<0.000000e+00> : vector<16xf32>
    %11 = vector.multi_reduction <add>, %10, %cst_6 [0] : vector<256x16xf32> to vector<16xf32>
    %12 = vector.shape_cast %11 : vector<16xf32> to vector<1x16xf32>
    %cst_7 = arith.constant 2.560000e+02 : f32
    %13 = vector.broadcast %cst_7 : f32 to vector<1x16xf32>
    %14 = arith.divf %12, %13 : vector<1x16xf32>
    %cst_8 = arith.constant 9.99999974E-6 : f32
    %15 = vector.broadcast %cst_8 : f32 to vector<1x16xf32>
    %16 = arith.addf %14, %15 : vector<1x16xf32>
    %17 = math.rsqrt %16 : vector<1x16xf32>
    %18 = vector.broadcast %17 : vector<1x16xf32> to vector<256x16xf32>
    %19 = arith.mulf %9, %18 : vector<256x16xf32>
    %c0_9 = arith.constant 0 : index
    %c0_10 = arith.constant 0 : index
    %20 = vector.load %arg3[%c0_9, %c0_10] : memref<1x16xf32, #tpu.memory_space<vmem>>, vector<1x16xf32>
    %21 = vector.broadcast %20 : vector<1x16xf32> to vector<256x16xf32>
    %22 = arith.mulf %19, %21 : vector<256x16xf32>
    %c0_11 = arith.constant 0 : index
    %c0_12 = arith.constant 0 : index
    %23 = vector.load %arg4[%c0_11, %c0_12] : memref<1x16xf32, #tpu.memory_space<vmem>>, vector<1x16xf32>
    %24 = vector.broadcast %23 : vector<1x16xf32> to vector<256x16xf32>
    %25 = arith.addf %22, %24 : vector<256x16xf32>
    %cst_13 = arith.constant 0.000000e+00 : f32
    %26 = vector.broadcast %cst_13 : f32 to vector<256x16xf32>
    %27 = arith.maximumf %25, %26 : vector<256x16xf32>
    %28 = arith.truncf %27 : vector<256x16xf32> to vector<256x16xbf16>
    %c0_14 = arith.constant 0 : index
    %c0_15 = arith.constant 0 : index
    %c0_16 = arith.constant 0 : index
    %29 = vector.load %arg5[%c0_14, %c0_15, %c0_16] : memref<1x256x16xbf16, #tpu.memory_space<vmem>>, vector<1x256x16xbf16>
    %30 = vector.shape_cast %29 : vector<1x256x16xbf16> to vector<256x16xbf16>
    %31 = vector.shape_cast %28 : vector<256x16xbf16> to vector<1x256x16xbf16>
    tpu.vector_store %arg5[%c0_14, %c0_15, %c0_16], %31 {strides = array<i32>} : memref<1x256x16xbf16, #tpu.memory_space<vmem>>, vector<1x256x16xbf16>,
    return
  }
  func.func @transform_0(%arg0: i32) -> (i32, i32, i32) {
    %c0_i32 = arith.constant 0 : i32
    %c0_i32_0 = arith.constant 0 : i32
    %c0_i32_1 = arith.constant 0 : i32
    return %arg0, %c0_i32, %c0_i32_0 : i32, i32, i32
  }
  func.func @transform_1(%arg0: i32) -> (i32, i32) {
    %c0_i32 = arith.constant 0 : i32
    %c0_i32_0 = arith.constant 0 : i32
    %c0_i32_1 = arith.constant 0 : i32
    return %c0_i32, %c0_i32_0 : i32, i32
  }
  func.func @transform_2(%arg0: i32) -> (i32, i32) {
    %c0_i32 = arith.constant 0 : i32
    %c0_i32_0 = arith.constant 0 : i32
    %c0_i32_1 = arith.constant 0 : i32
    return %c0_i32, %c0_i32_0 : i32, i32
  }
  func.func @transform_3(%arg0: i32) -> (i32, i32) {
    %c0_i32 = arith.constant 0 : i32
    %c0_i32_0 = arith.constant 0 : i32
    %c0_i32_1 = arith.constant 0 : i32
    return %c0_i32, %c0_i32_0 : i32, i32
  }
  func.func @transform_4(%arg0: i32) -> (i32, i32, i32) {
    %c0_i32 = arith.constant 0 : i32
    %c0_i32_0 = arith.constant 0 : i32
    %c0_i32_1 = arith.constant 0 : i32
    return %arg0, %c0_i32, %c0_i32_0 : i32, i32, i32
  }
}

module attributes {stable_mosaic.version = 11 : i64} {
  func.func @_conv_in_relu_kernel(%arg0: i32, %arg1: memref<1x64x256xbf16, #tpu.memory_space<vmem>>, %arg2: memref<256x32xbf16, #tpu.memory_space<vmem>>, %arg3: memref<1x32xf32, #tpu.memory_space<vmem>>, %arg4: memref<1x32xf32, #tpu.memory_space<vmem>>, %arg5: memref<1x64x32xbf16, #tpu.memory_space<vmem>>) attributes {dimension_semantics = [#tpu.dimension_semantics<parallel>], iteration_bounds = array<i64: 2>, scalar_prefetch = 0 : i64, scratch_operands = 0 : i64, tpu.core_type = #tpu.core_type<tc>, window_params = [{transform_indices = @transform_0, window_bounds = array<i64: 1, 64, 256>}, {pipeline_mode = #tpu.pipeline_mode<synchronous>, transform_indices = @transform_1, window_bounds = array<i64: 256, 32>}, {pipeline_mode = #tpu.pipeline_mode<synchronous>, transform_indices = @transform_2, window_bounds = array<i64: 1, 32>}, {pipeline_mode = #tpu.pipeline_mode<synchronous>, transform_indices = @transform_3, window_bounds = array<i64: 1, 32>}, {transform_indices = @transform_4, window_bounds = array<i64: 1, 64, 32>}]} {
    %c0 = arith.constant 0 : index
    %c0_0 = arith.constant 0 : index
    %c0_1 = arith.constant 0 : index
    %0 = vector.load %arg1[%c0, %c0_0, %c0_1] : memref<1x64x256xbf16, #tpu.memory_space<vmem>>, vector<1x64x256xbf16>
    %1 = vector.shape_cast %0 : vector<1x64x256xbf16> to vector<64x256xbf16>
    %c0_2 = arith.constant 0 : index
    %c0_3 = arith.constant 0 : index
    %2 = vector.load %arg2[%c0_2, %c0_3] : memref<256x32xbf16, #tpu.memory_space<vmem>>, vector<256x32xbf16>
    %cst = arith.constant dense<0.000000e+00> : vector<64x32xf32>
    %3 = tpu.matmul %1, %2, %cst {dimension_numbers = #tpu.dot_dimension_numbers<[1], [0], [0], [1], [0, 0, 1, 1], [], []>} : vector<64x256xbf16>, vector<256x32xbf16>, vector<64x32xf32> -> vector<64x32xf32>
    %cst_4 = arith.constant dense<0.000000e+00> : vector<32xf32>
    %4 = vector.multi_reduction <add>, %3, %cst_4 [0] : vector<64x32xf32> to vector<32xf32>
    %5 = vector.shape_cast %4 : vector<32xf32> to vector<1x32xf32>
    %cst_5 = arith.constant 6.400000e+01 : f32
    %6 = vector.broadcast %cst_5 : f32 to vector<1x32xf32>
    %7 = arith.divf %5, %6 : vector<1x32xf32>
    %8 = vector.broadcast %7 : vector<1x32xf32> to vector<64x32xf32>
    %9 = arith.subf %3, %8 : vector<64x32xf32>
    %10 = arith.mulf %9, %9 : vector<64x32xf32>
    %cst_6 = arith.constant dense<0.000000e+00> : vector<32xf32>
    %11 = vector.multi_reduction <add>, %10, %cst_6 [0] : vector<64x32xf32> to vector<32xf32>
    %12 = vector.shape_cast %11 : vector<32xf32> to vector<1x32xf32>
    %cst_7 = arith.constant 6.400000e+01 : f32
    %13 = vector.broadcast %cst_7 : f32 to vector<1x32xf32>
    %14 = arith.divf %12, %13 : vector<1x32xf32>
    %cst_8 = arith.constant 9.99999974E-6 : f32
    %15 = vector.broadcast %cst_8 : f32 to vector<1x32xf32>
    %16 = arith.addf %14, %15 : vector<1x32xf32>
    %17 = math.rsqrt %16 : vector<1x32xf32>
    %18 = vector.broadcast %17 : vector<1x32xf32> to vector<64x32xf32>
    %19 = arith.mulf %9, %18 : vector<64x32xf32>
    %c0_9 = arith.constant 0 : index
    %c0_10 = arith.constant 0 : index
    %20 = vector.load %arg3[%c0_9, %c0_10] : memref<1x32xf32, #tpu.memory_space<vmem>>, vector<1x32xf32>
    %21 = vector.broadcast %20 : vector<1x32xf32> to vector<64x32xf32>
    %22 = arith.mulf %19, %21 : vector<64x32xf32>
    %c0_11 = arith.constant 0 : index
    %c0_12 = arith.constant 0 : index
    %23 = vector.load %arg4[%c0_11, %c0_12] : memref<1x32xf32, #tpu.memory_space<vmem>>, vector<1x32xf32>
    %24 = vector.broadcast %23 : vector<1x32xf32> to vector<64x32xf32>
    %25 = arith.addf %22, %24 : vector<64x32xf32>
    %cst_13 = arith.constant 0.000000e+00 : f32
    %26 = vector.broadcast %cst_13 : f32 to vector<64x32xf32>
    %27 = arith.maximumf %25, %26 : vector<64x32xf32>
    %28 = arith.truncf %27 : vector<64x32xf32> to vector<64x32xbf16>
    %c0_14 = arith.constant 0 : index
    %c0_15 = arith.constant 0 : index
    %c0_16 = arith.constant 0 : index
    %29 = vector.load %arg5[%c0_14, %c0_15, %c0_16] : memref<1x64x32xbf16, #tpu.memory_space<vmem>>, vector<1x64x32xbf16>
    %30 = vector.shape_cast %29 : vector<1x64x32xbf16> to vector<64x32xbf16>
    %31 = vector.shape_cast %28 : vector<64x32xbf16> to vector<1x64x32xbf16>
    tpu.vector_store %arg5[%c0_14, %c0_15, %c0_16], %31 {strides = array<i32>} : memref<1x64x32xbf16, #tpu.memory_space<vmem>>, vector<1x64x32xbf16>,
    return
  }
  func.func @transform_0(%arg0: i32) -> (i32, i32, i32) {
    %c0_i32 = arith.constant 0 : i32
    %c0_i32_0 = arith.constant 0 : i32
    %c0_i32_1 = arith.constant 0 : i32
    return %arg0, %c0_i32, %c0_i32_0 : i32, i32, i32
  }
  func.func @transform_1(%arg0: i32) -> (i32, i32) {
    %c0_i32 = arith.constant 0 : i32
    %c0_i32_0 = arith.constant 0 : i32
    %c0_i32_1 = arith.constant 0 : i32
    return %c0_i32, %c0_i32_0 : i32, i32
  }
  func.func @transform_2(%arg0: i32) -> (i32, i32) {
    %c0_i32 = arith.constant 0 : i32
    %c0_i32_0 = arith.constant 0 : i32
    %c0_i32_1 = arith.constant 0 : i32
    return %c0_i32, %c0_i32_0 : i32, i32
  }
  func.func @transform_3(%arg0: i32) -> (i32, i32) {
    %c0_i32 = arith.constant 0 : i32
    %c0_i32_0 = arith.constant 0 : i32
    %c0_i32_1 = arith.constant 0 : i32
    return %c0_i32, %c0_i32_0 : i32, i32
  }
  func.func @transform_4(%arg0: i32) -> (i32, i32, i32) {
    %c0_i32 = arith.constant 0 : i32
    %c0_i32_0 = arith.constant 0 : i32
    %c0_i32_1 = arith.constant 0 : i32
    return %arg0, %c0_i32, %c0_i32_0 : i32, i32, i32
  }
}

module attributes {stable_mosaic.version = 11 : i64} {
  func.func @_fused_tail_kernel(%arg0: i32, %arg1: memref<32x512xbf16, #tpu.memory_space<vmem>>, %arg2: memref<512x64xbf16, #tpu.memory_space<vmem>>, %arg3: memref<1x64xf32, #tpu.memory_space<vmem>>, %arg4: memref<1x64xf32, #tpu.memory_space<vmem>>, %arg5: memref<9x32x32xbf16, #tpu.memory_space<vmem>>, %arg6: memref<32x32xf32, #tpu.memory_space<vmem>>, %arg7: memref<4x576x64xbf16, #tpu.memory_space<vmem>>, %arg8: memref<4x1x64xf32, #tpu.memory_space<vmem>>, %arg9: memref<4x1x64xf32, #tpu.memory_space<vmem>>, %arg10: memref<4x576x64xbf16, #tpu.memory_space<vmem>>, %arg11: memref<4x1x64xf32, #tpu.memory_space<vmem>>, %arg12: memref<4x1x64xf32, #tpu.memory_space<vmem>>, %arg13: memref<32x64xf32, #tpu.memory_space<vmem>>) attributes {dimension_semantics = [#tpu.dimension_semantics<arbitrary>], iteration_bounds = array<i64: 1>, scalar_prefetch = 0 : i64, scratch_operands = 0 : i64, tpu.core_type = #tpu.core_type<tc>, window_params = [{pipeline_mode = #tpu.pipeline_mode<synchronous>, transform_indices = @transform_0, window_bounds = array<i64: 32, 512>}, {pipeline_mode = #tpu.pipeline_mode<synchronous>, transform_indices = @transform_1, window_bounds = array<i64: 512, 64>}, {pipeline_mode = #tpu.pipeline_mode<synchronous>, transform_indices = @transform_2, window_bounds = array<i64: 1, 64>}, {pipeline_mode = #tpu.pipeline_mode<synchronous>, transform_indices = @transform_3, window_bounds = array<i64: 1, 64>}, {pipeline_mode = #tpu.pipeline_mode<synchronous>, transform_indices = @transform_4, window_bounds = array<i64: 9, 32, 32>}, {pipeline_mode = #tpu.pipeline_mode<synchronous>, transform_indices = @transform_5, window_bounds = array<i64: 32, 32>}, {pipeline_mode = #tpu.pipeline_mode<synchronous>, transform_indices = @transform_6, window_bounds = array<i64: 4, 576, 64>}, {pipeline_mode = #tpu.pipeline_mode<synchronous>, transform_indices = @transform_7, window_bounds = array<i64: 4, 1, 64>}, {pipeline_mode = #tpu.pipeline_mode<synchronous>, transform_indices = @transform_8, window_bounds = array<i64: 4, 1, 64>}, {pipeline_mode = #tpu.pipeline_mode<synchronous>, transform_indices = @transform_9, window_bounds = array<i64: 4, 576, 64>}, {pipeline_mode = #tpu.pipeline_mode<synchronous>, transform_indices = @transform_10, window_bounds = array<i64: 4, 1, 64>}, {pipeline_mode = #tpu.pipeline_mode<synchronous>, transform_indices = @transform_11, window_bounds = array<i64: 4, 1, 64>}, {pipeline_mode = #tpu.pipeline_mode<synchronous>, transform_indices = @transform_12, window_bounds = array<i64: 32, 64>}]} {
    %c0 = arith.constant 0 : index
    %c0_0 = arith.constant 0 : index
    %0 = vector.load %arg6[%c0, %c0_0] : memref<32x32xf32, #tpu.memory_space<vmem>>, vector<32x32xf32>
    %c0_1 = arith.constant 0 : index
    %c0_2 = arith.constant 0 : index
    %1 = vector.load %arg1[%c0_1, %c0_2] : memref<32x512xbf16, #tpu.memory_space<vmem>>, vector<32x512xbf16>
    %c0_3 = arith.constant 0 : index
    %c0_4 = arith.constant 0 : index
    %2 = vector.load %arg2[%c0_3, %c0_4] : memref<512x64xbf16, #tpu.memory_space<vmem>>, vector<512x64xbf16>
    %cst = arith.constant dense<0.000000e+00> : vector<32x64xf32>
    %3 = tpu.matmul %1, %2, %cst {dimension_numbers = #tpu.dot_dimension_numbers<[1], [0], [0], [1], [0, 0, 1, 1], [], []>} : vector<32x512xbf16>, vector<512x64xbf16>, vector<32x64xf32> -> vector<32x64xf32>
    %c0_5 = arith.constant 0 : index
    %c0_6 = arith.constant 0 : index
    %4 = vector.load %arg3[%c0_5, %c0_6] : memref<1x64xf32, #tpu.memory_space<vmem>>, vector<1x64xf32>
    %c0_7 = arith.constant 0 : index
    %c0_8 = arith.constant 0 : index
    %5 = vector.load %arg4[%c0_7, %c0_8] : memref<1x64xf32, #tpu.memory_space<vmem>>, vector<1x64xf32>
    %cst_9 = arith.constant dense<0.000000e+00> : vector<32x64xf32>
    %6 = tpu.matmul %0, %3, %cst_9 {dimension_numbers = #tpu.dot_dimension_numbers<[1], [0], [0], [1], [0, 0, 1, 1], [], []>} : vector<32x32xf32>, vector<32x64xf32>, vector<32x64xf32> -> vector<32x64xf32>
    %7 = arith.subf %3, %6 : vector<32x64xf32>
    %8 = arith.mulf %7, %7 : vector<32x64xf32>
    %cst_10 = arith.constant dense<0.000000e+00> : vector<32x64xf32>
    %9 = tpu.matmul %0, %8, %cst_10 {dimension_numbers = #tpu.dot_dimension_numbers<[1], [0], [0], [1], [0, 0, 1, 1], [], []>} : vector<32x32xf32>, vector<32x64xf32>, vector<32x64xf32> -> vector<32x64xf32>
    %cst_11 = arith.constant 9.99999974E-6 : f32
    %10 = vector.broadcast %cst_11 : f32 to vector<32x64xf32>
    %11 = arith.addf %9, %10 : vector<32x64xf32>
    %12 = math.rsqrt %11 : vector<32x64xf32>
    %13 = arith.mulf %7, %12 : vector<32x64xf32>
    %14 = vector.broadcast %4 : vector<1x64xf32> to vector<32x64xf32>
    %15 = arith.mulf %13, %14 : vector<32x64xf32>
    %16 = vector.broadcast %5 : vector<1x64xf32> to vector<32x64xf32>
    %17 = arith.addf %15, %16 : vector<32x64xf32>
    %cst_12 = arith.constant 0.000000e+00 : f32
    %18 = vector.broadcast %cst_12 : f32 to vector<32x64xf32>
    %19 = arith.maximumf %17, %18 : vector<32x64xf32>
    %c0_13 = arith.constant 0 : index
    %c0_14 = arith.constant 0 : index
    %c0_15 = arith.constant 0 : index
    %20 = vector.load %arg7[%c0_13, %c0_14, %c0_15] : memref<4x576x64xbf16, #tpu.memory_space<vmem>>, vector<1x576x64xbf16>
    %21 = vector.shape_cast %20 : vector<1x576x64xbf16> to vector<576x64xbf16>
    %22 = arith.truncf %19 : vector<32x64xf32> to vector<32x64xbf16>
    %cst_16 = arith.constant 0.000000e+00 : f32
    %23 = vector.broadcast %cst_16 : f32 to vector<32x64xf32>
    %c0_17 = arith.constant 0 : index
    %c0_18 = arith.constant 0 : index
    %c0_19 = arith.constant 0 : index
    %24 = vector.load %arg5[%c0_17, %c0_18, %c0_19] : memref<9x32x32xbf16, #tpu.memory_space<vmem>>, vector<1x32x32xbf16>
    %25 = vector.shape_cast %24 : vector<1x32x32xbf16> to vector<32x32xbf16>
    %cst_20 = arith.constant dense<0.000000e+00> : vector<32x64xf32>
    %26 = tpu.matmul %25, %22, %cst_20 {dimension_numbers = #tpu.dot_dimension_numbers<[1], [0], [0], [1], [0, 0, 1, 1], [], []>} : vector<32x32xbf16>, vector<32x64xbf16>, vector<32x64xf32> -> vector<32x64xf32>
    %27 = arith.truncf %26 : vector<32x64xf32> to vector<32x64xbf16>
    %28 = vector.extract_strided_slice %21 {offsets = [0, 0], sizes = [64, 64], strides = [1, 1]} : vector<576x64xbf16> to vector<64x64xbf16>
    %cst_21 = arith.constant dense<0.000000e+00> : vector<32x64xf32>
    %29 = tpu.matmul %27, %28, %cst_21 {dimension_numbers = #tpu.dot_dimension_numbers<[1], [0], [0], [1], [0, 0, 1, 1], [], []>} : vector<32x64xbf16>, vector<64x64xbf16>, vector<32x64xf32> -> vector<32x64xf32>
    %30 = arith.addf %23, %29 : vector<32x64xf32>
    %c1 = arith.constant 1 : index
    %c0_22 = arith.constant 0 : index
    %c0_23 = arith.constant 0 : index
    %31 = vector.load %arg5[%c1, %c0_22, %c0_23] : memref<9x32x32xbf16, #tpu.memory_space<vmem>>, vector<1x32x32xbf16>
    %32 = vector.shape_cast %31 : vector<1x32x32xbf16> to vector<32x32xbf16>
    %cst_24 = arith.constant dense<0.000000e+00> : vector<32x64xf32>
    %33 = tpu.matmul %32, %22, %cst_24 {dimension_numbers = #tpu.dot_dimension_numbers<[1], [0], [0], [1], [0, 0, 1, 1], [], []>} : vector<32x32xbf16>, vector<32x64xbf16>, vector<32x64xf32> -> vector<32x64xf32>
    %34 = arith.truncf %33 : vector<32x64xf32> to vector<32x64xbf16>
    %35 = vector.extract_strided_slice %21 {offsets = [64, 0], sizes = [64, 64], strides = [1, 1]} : vector<576x64xbf16> to vector<64x64xbf16>
    %cst_25 = arith.constant dense<0.000000e+00> : vector<32x64xf32>
    %36 = tpu.matmul %34, %35, %cst_25 {dimension_numbers = #tpu.dot_dimension_numbers<[1], [0], [0], [1], [0, 0, 1, 1], [], []>} : vector<32x64xbf16>, vector<64x64xbf16>, vector<32x64xf32> -> vector<32x64xf32>
    %37 = arith.addf %30, %36 : vector<32x64xf32>
    %c2 = arith.constant 2 : index
    %c0_26 = arith.constant 0 : index
    %c0_27 = arith.constant 0 : index
    %38 = vector.load %arg5[%c2, %c0_26, %c0_27] : memref<9x32x32xbf16, #tpu.memory_space<vmem>>, vector<1x32x32xbf16>
    %39 = vector.shape_cast %38 : vector<1x32x32xbf16> to vector<32x32xbf16>
    %cst_28 = arith.constant dense<0.000000e+00> : vector<32x64xf32>
    %40 = tpu.matmul %39, %22, %cst_28 {dimension_numbers = #tpu.dot_dimension_numbers<[1], [0], [0], [1], [0, 0, 1, 1], [], []>} : vector<32x32xbf16>, vector<32x64xbf16>, vector<32x64xf32> -> vector<32x64xf32>
    %41 = arith.truncf %40 : vector<32x64xf32> to vector<32x64xbf16>
    %42 = vector.extract_strided_slice %21 {offsets = [128, 0], sizes = [64, 64], strides = [1, 1]} : vector<576x64xbf16> to vector<64x64xbf16>
    %cst_29 = arith.constant dense<0.000000e+00> : vector<32x64xf32>
    %43 = tpu.matmul %41, %42, %cst_29 {dimension_numbers = #tpu.dot_dimension_numbers<[1], [0], [0], [1], [0, 0, 1, 1], [], []>} : vector<32x64xbf16>, vector<64x64xbf16>, vector<32x64xf32> -> vector<32x64xf32>
    %44 = arith.addf %37, %43 : vector<32x64xf32>
    %c3 = arith.constant 3 : index
    %c0_30 = arith.constant 0 : index
    %c0_31 = arith.constant 0 : index
    %45 = vector.load %arg5[%c3, %c0_30, %c0_31] : memref<9x32x32xbf16, #tpu.memory_space<vmem>>, vector<1x32x32xbf16>
    %46 = vector.shape_cast %45 : vector<1x32x32xbf16> to vector<32x32xbf16>
    %cst_32 = arith.constant dense<0.000000e+00> : vector<32x64xf32>
    %47 = tpu.matmul %46, %22, %cst_32 {dimension_numbers = #tpu.dot_dimension_numbers<[1], [0], [0], [1], [0, 0, 1, 1], [], []>} : vector<32x32xbf16>, vector<32x64xbf16>, vector<32x64xf32> -> vector<32x64xf32>
    %48 = arith.truncf %47 : vector<32x64xf32> to vector<32x64xbf16>
    %49 = vector.extract_strided_slice %21 {offsets = [192, 0], sizes = [64, 64], strides = [1, 1]} : vector<576x64xbf16> to vector<64x64xbf16>
    %cst_33 = arith.constant dense<0.000000e+00> : vector<32x64xf32>
    %50 = tpu.matmul %48, %49, %cst_33 {dimension_numbers = #tpu.dot_dimension_numbers<[1], [0], [0], [1], [0, 0, 1, 1], [], []>} : vector<32x64xbf16>, vector<64x64xbf16>, vector<32x64xf32> -> vector<32x64xf32>
    %51 = arith.addf %44, %50 : vector<32x64xf32>
    %c4 = arith.constant 4 : index
    %c0_34 = arith.constant 0 : index
    %c0_35 = arith.constant 0 : index
    %52 = vector.load %arg5[%c4, %c0_34, %c0_35] : memref<9x32x32xbf16, #tpu.memory_space<vmem>>, vector<1x32x32xbf16>
    %53 = vector.shape_cast %52 : vector<1x32x32xbf16> to vector<32x32xbf16>
    %cst_36 = arith.constant dense<0.000000e+00> : vector<32x64xf32>
    %54 = tpu.matmul %53, %22, %cst_36 {dimension_numbers = #tpu.dot_dimension_numbers<[1], [0], [0], [1], [0, 0, 1, 1], [], []>} : vector<32x32xbf16>, vector<32x64xbf16>, vector<32x64xf32> -> vector<32x64xf32>
    %55 = arith.truncf %54 : vector<32x64xf32> to vector<32x64xbf16>
    %56 = vector.extract_strided_slice %21 {offsets = [256, 0], sizes = [64, 64], strides = [1, 1]} : vector<576x64xbf16> to vector<64x64xbf16>
    %cst_37 = arith.constant dense<0.000000e+00> : vector<32x64xf32>
    %57 = tpu.matmul %55, %56, %cst_37 {dimension_numbers = #tpu.dot_dimension_numbers<[1], [0], [0], [1], [0, 0, 1, 1], [], []>} : vector<32x64xbf16>, vector<64x64xbf16>, vector<32x64xf32> -> vector<32x64xf32>
    %58 = arith.addf %51, %57 : vector<32x64xf32>
    %c5 = arith.constant 5 : index
    %c0_38 = arith.constant 0 : index
    %c0_39 = arith.constant 0 : index
    %59 = vector.load %arg5[%c5, %c0_38, %c0_39] : memref<9x32x32xbf16, #tpu.memory_space<vmem>>, vector<1x32x32xbf16>
    %60 = vector.shape_cast %59 : vector<1x32x32xbf16> to vector<32x32xbf16>
    %cst_40 = arith.constant dense<0.000000e+00> : vector<32x64xf32>
    %61 = tpu.matmul %60, %22, %cst_40 {dimension_numbers = #tpu.dot_dimension_numbers<[1], [0], [0], [1], [0, 0, 1, 1], [], []>} : vector<32x32xbf16>, vector<32x64xbf16>, vector<32x64xf32> -> vector<32x64xf32>
    %62 = arith.truncf %61 : vector<32x64xf32> to vector<32x64xbf16>
    %63 = vector.extract_strided_slice %21 {offsets = [320, 0], sizes = [64, 64], strides = [1, 1]} : vector<576x64xbf16> to vector<64x64xbf16>
    %cst_41 = arith.constant dense<0.000000e+00> : vector<32x64xf32>
    %64 = tpu.matmul %62, %63, %cst_41 {dimension_numbers = #tpu.dot_dimension_numbers<[1], [0], [0], [1], [0, 0, 1, 1], [], []>} : vector<32x64xbf16>, vector<64x64xbf16>, vector<32x64xf32> -> vector<32x64xf32>
    %65 = arith.addf %58, %64 : vector<32x64xf32>
    %c6 = arith.constant 6 : index
    %c0_42 = arith.constant 0 : index
    %c0_43 = arith.constant 0 : index
    %66 = vector.load %arg5[%c6, %c0_42, %c0_43] : memref<9x32x32xbf16, #tpu.memory_space<vmem>>, vector<1x32x32xbf16>
    %67 = vector.shape_cast %66 : vector<1x32x32xbf16> to vector<32x32xbf16>
    %cst_44 = arith.constant dense<0.000000e+00> : vector<32x64xf32>
    %68 = tpu.matmul %67, %22, %cst_44 {dimension_numbers = #tpu.dot_dimension_numbers<[1], [0], [0], [1], [0, 0, 1, 1], [], []>} : vector<32x32xbf16>, vector<32x64xbf16>, vector<32x64xf32> -> vector<32x64xf32>
    %69 = arith.truncf %68 : vector<32x64xf32> to vector<32x64xbf16>
    %70 = vector.extract_strided_slice %21 {offsets = [384, 0], sizes = [64, 64], strides = [1, 1]} : vector<576x64xbf16> to vector<64x64xbf16>
    %cst_45 = arith.constant dense<0.000000e+00> : vector<32x64xf32>
    %71 = tpu.matmul %69, %70, %cst_45 {dimension_numbers = #tpu.dot_dimension_numbers<[1], [0], [0], [1], [0, 0, 1, 1], [], []>} : vector<32x64xbf16>, vector<64x64xbf16>, vector<32x64xf32> -> vector<32x64xf32>
    %72 = arith.addf %65, %71 : vector<32x64xf32>
    %c7 = arith.constant 7 : index
    %c0_46 = arith.constant 0 : index
    %c0_47 = arith.constant 0 : index
    %73 = vector.load %arg5[%c7, %c0_46, %c0_47] : memref<9x32x32xbf16, #tpu.memory_space<vmem>>, vector<1x32x32xbf16>
    %74 = vector.shape_cast %73 : vector<1x32x32xbf16> to vector<32x32xbf16>
    %cst_48 = arith.constant dense<0.000000e+00> : vector<32x64xf32>
    %75 = tpu.matmul %74, %22, %cst_48 {dimension_numbers = #tpu.dot_dimension_numbers<[1], [0], [0], [1], [0, 0, 1, 1], [], []>} : vector<32x32xbf16>, vector<32x64xbf16>, vector<32x64xf32> -> vector<32x64xf32>
    %76 = arith.truncf %75 : vector<32x64xf32> to vector<32x64xbf16>
    %77 = vector.extract_strided_slice %21 {offsets = [448, 0], sizes = [64, 64], strides = [1, 1]} : vector<576x64xbf16> to vector<64x64xbf16>
    %cst_49 = arith.constant dense<0.000000e+00> : vector<32x64xf32>
    %78 = tpu.matmul %76, %77, %cst_49 {dimension_numbers = #tpu.dot_dimension_numbers<[1], [0], [0], [1], [0, 0, 1, 1], [], []>} : vector<32x64xbf16>, vector<64x64xbf16>, vector<32x64xf32> -> vector<32x64xf32>
    %79 = arith.addf %72, %78 : vector<32x64xf32>
    %c8 = arith.constant 8 : index
    %c0_50 = arith.constant 0 : index
    %c0_51 = arith.constant 0 : index
    %80 = vector.load %arg5[%c8, %c0_50, %c0_51] : memref<9x32x32xbf16, #tpu.memory_space<vmem>>, vector<1x32x32xbf16>
    %81 = vector.shape_cast %80 : vector<1x32x32xbf16> to vector<32x32xbf16>
    %cst_52 = arith.constant dense<0.000000e+00> : vector<32x64xf32>
    %82 = tpu.matmul %81, %22, %cst_52 {dimension_numbers = #tpu.dot_dimension_numbers<[1], [0], [0], [1], [0, 0, 1, 1], [], []>} : vector<32x32xbf16>, vector<32x64xbf16>, vector<32x64xf32> -> vector<32x64xf32>
    %83 = arith.truncf %82 : vector<32x64xf32> to vector<32x64xbf16>
    %84 = vector.extract_strided_slice %21 {offsets = [512, 0], sizes = [64, 64], strides = [1, 1]} : vector<576x64xbf16> to vector<64x64xbf16>
    %cst_53 = arith.constant dense<0.000000e+00> : vector<32x64xf32>
    %85 = tpu.matmul %83, %84, %cst_53 {dimension_numbers = #tpu.dot_dimension_numbers<[1], [0], [0], [1], [0, 0, 1, 1], [], []>} : vector<32x64xbf16>, vector<64x64xbf16>, vector<32x64xf32> -> vector<32x64xf32>
    %86 = arith.addf %79, %85 : vector<32x64xf32>
    %c0_54 = arith.constant 0 : index
    %c0_55 = arith.constant 0 : index
    %c0_56 = arith.constant 0 : index
    %87 = vector.load %arg8[%c0_54, %c0_55, %c0_56] : memref<4x1x64xf32, #tpu.memory_space<vmem>>, vector<1x1x64xf32>
    %88 = vector.shape_cast %87 : vector<1x1x64xf32> to vector<1x64xf32>
    %c0_57 = arith.constant 0 : index
    %c0_58 = arith.constant 0 : index
    %c0_59 = arith.constant 0 : index
    %89 = vector.load %arg9[%c0_57, %c0_58, %c0_59] : memref<4x1x64xf32, #tpu.memory_space<vmem>>, vector<1x1x64xf32>
    %90 = vector.shape_cast %89 : vector<1x1x64xf32> to vector<1x64xf32>
    %cst_60 = arith.constant dense<0.000000e+00> : vector<32x64xf32>
    %91 = tpu.matmul %0, %86, %cst_60 {dimension_numbers = #tpu.dot_dimension_numbers<[1], [0], [0], [1], [0, 0, 1, 1], [], []>} : vector<32x32xf32>, vector<32x64xf32>, vector<32x64xf32> -> vector<32x64xf32>
    %92 = arith.subf %86, %91 : vector<32x64xf32>
    %93 = arith.mulf %92, %92 : vector<32x64xf32>
    %cst_61 = arith.constant dense<0.000000e+00> : vector<32x64xf32>
    %94 = tpu.matmul %0, %93, %cst_61 {dimension_numbers = #tpu.dot_dimension_numbers<[1], [0], [0], [1], [0, 0, 1, 1], [], []>} : vector<32x32xf32>, vector<32x64xf32>, vector<32x64xf32> -> vector<32x64xf32>
    %cst_62 = arith.constant 9.99999974E-6 : f32
    %95 = vector.broadcast %cst_62 : f32 to vector<32x64xf32>
    %96 = arith.addf %94, %95 : vector<32x64xf32>
    %97 = math.rsqrt %96 : vector<32x64xf32>
    %98 = arith.mulf %92, %97 : vector<32x64xf32>
    %99 = vector.broadcast %88 : vector<1x64xf32> to vector<32x64xf32>
    %100 = arith.mulf %98, %99 : vector<32x64xf32>
    %101 = vector.broadcast %90 : vector<1x64xf32> to vector<32x64xf32>
    %102 = arith.addf %100, %101 : vector<32x64xf32>
    %cst_63 = arith.constant 0.000000e+00 : f32
    %103 = vector.broadcast %cst_63 : f32 to vector<32x64xf32>
    %104 = arith.maximumf %102, %103 : vector<32x64xf32>
    %c0_64 = arith.constant 0 : index
    %c0_65 = arith.constant 0 : index
    %c0_66 = arith.constant 0 : index
    %105 = vector.load %arg10[%c0_64, %c0_65, %c0_66] : memref<4x576x64xbf16, #tpu.memory_space<vmem>>, vector<1x576x64xbf16>
    %106 = vector.shape_cast %105 : vector<1x576x64xbf16> to vector<576x64xbf16>
    %107 = arith.truncf %104 : vector<32x64xf32> to vector<32x64xbf16>
    %cst_67 = arith.constant 0.000000e+00 : f32
    %108 = vector.broadcast %cst_67 : f32 to vector<32x64xf32>
    %c0_68 = arith.constant 0 : index
    %c0_69 = arith.constant 0 : index
    %c0_70 = arith.constant 0 : index
    %109 = vector.load %arg5[%c0_68, %c0_69, %c0_70] : memref<9x32x32xbf16, #tpu.memory_space<vmem>>, vector<1x32x32xbf16>
    %110 = vector.shape_cast %109 : vector<1x32x32xbf16> to vector<32x32xbf16>
    %cst_71 = arith.constant dense<0.000000e+00> : vector<32x64xf32>
    %111 = tpu.matmul %110, %107, %cst_71 {dimension_numbers = #tpu.dot_dimension_numbers<[1], [0], [0], [1], [0, 0, 1, 1], [], []>} : vector<32x32xbf16>, vector<32x64xbf16>, vector<32x64xf32> -> vector<32x64xf32>
    %112 = arith.truncf %111 : vector<32x64xf32> to vector<32x64xbf16>
    %113 = vector.extract_strided_slice %106 {offsets = [0, 0], sizes = [64, 64], strides = [1, 1]} : vector<576x64xbf16> to vector<64x64xbf16>
    %cst_72 = arith.constant dense<0.000000e+00> : vector<32x64xf32>
    %114 = tpu.matmul %112, %113, %cst_72 {dimension_numbers = #tpu.dot_dimension_numbers<[1], [0], [0], [1], [0, 0, 1, 1], [], []>} : vector<32x64xbf16>, vector<64x64xbf16>, vector<32x64xf32> -> vector<32x64xf32>
    %115 = arith.addf %108, %114 : vector<32x64xf32>
    %c1_73 = arith.constant 1 : index
    %c0_74 = arith.constant 0 : index
    %c0_75 = arith.constant 0 : index
    %116 = vector.load %arg5[%c1_73, %c0_74, %c0_75] : memref<9x32x32xbf16, #tpu.memory_space<vmem>>, vector<1x32x32xbf16>
    %117 = vector.shape_cast %116 : vector<1x32x32xbf16> to vector<32x32xbf16>
    %cst_76 = arith.constant dense<0.000000e+00> : vector<32x64xf32>
    %118 = tpu.matmul %117, %107, %cst_76 {dimension_numbers = #tpu.dot_dimension_numbers<[1], [0], [0], [1], [0, 0, 1, 1], [], []>} : vector<32x32xbf16>, vector<32x64xbf16>, vector<32x64xf32> -> vector<32x64xf32>
    %119 = arith.truncf %118 : vector<32x64xf32> to vector<32x64xbf16>
    %120 = vector.extract_strided_slice %106 {offsets = [64, 0], sizes = [64, 64], strides = [1, 1]} : vector<576x64xbf16> to vector<64x64xbf16>
    %cst_77 = arith.constant dense<0.000000e+00> : vector<32x64xf32>
    %121 = tpu.matmul %119, %120, %cst_77 {dimension_numbers = #tpu.dot_dimension_numbers<[1], [0], [0], [1], [0, 0, 1, 1], [], []>} : vector<32x64xbf16>, vector<64x64xbf16>, vector<32x64xf32> -> vector<32x64xf32>
    %122 = arith.addf %115, %121 : vector<32x64xf32>
    %c2_78 = arith.constant 2 : index
    %c0_79 = arith.constant 0 : index
    %c0_80 = arith.constant 0 : index
    %123 = vector.load %arg5[%c2_78, %c0_79, %c0_80] : memref<9x32x32xbf16, #tpu.memory_space<vmem>>, vector<1x32x32xbf16>
    %124 = vector.shape_cast %123 : vector<1x32x32xbf16> to vector<32x32xbf16>
    %cst_81 = arith.constant dense<0.000000e+00> : vector<32x64xf32>
    %125 = tpu.matmul %124, %107, %cst_81 {dimension_numbers = #tpu.dot_dimension_numbers<[1], [0], [0], [1], [0, 0, 1, 1], [], []>} : vector<32x32xbf16>, vector<32x64xbf16>, vector<32x64xf32> -> vector<32x64xf32>
    %126 = arith.truncf %125 : vector<32x64xf32> to vector<32x64xbf16>
    %127 = vector.extract_strided_slice %106 {offsets = [128, 0], sizes = [64, 64], strides = [1, 1]} : vector<576x64xbf16> to vector<64x64xbf16>
    %cst_82 = arith.constant dense<0.000000e+00> : vector<32x64xf32>
    %128 = tpu.matmul %126, %127, %cst_82 {dimension_numbers = #tpu.dot_dimension_numbers<[1], [0], [0], [1], [0, 0, 1, 1], [], []>} : vector<32x64xbf16>, vector<64x64xbf16>, vector<32x64xf32> -> vector<32x64xf32>
    %129 = arith.addf %122, %128 : vector<32x64xf32>
    %c3_83 = arith.constant 3 : index
    %c0_84 = arith.constant 0 : index
    %c0_85 = arith.constant 0 : index
    %130 = vector.load %arg5[%c3_83, %c0_84, %c0_85] : memref<9x32x32xbf16, #tpu.memory_space<vmem>>, vector<1x32x32xbf16>
    %131 = vector.shape_cast %130 : vector<1x32x32xbf16> to vector<32x32xbf16>
    %cst_86 = arith.constant dense<0.000000e+00> : vector<32x64xf32>
    %132 = tpu.matmul %131, %107, %cst_86 {dimension_numbers = #tpu.dot_dimension_numbers<[1], [0], [0], [1], [0, 0, 1, 1], [], []>} : vector<32x32xbf16>, vector<32x64xbf16>, vector<32x64xf32> -> vector<32x64xf32>
    %133 = arith.truncf %132 : vector<32x64xf32> to vector<32x64xbf16>
    %134 = vector.extract_strided_slice %106 {offsets = [192, 0], sizes = [64, 64], strides = [1, 1]} : vector<576x64xbf16> to vector<64x64xbf16>
    %cst_87 = arith.constant dense<0.000000e+00> : vector<32x64xf32>
    %135 = tpu.matmul %133, %134, %cst_87 {dimension_numbers = #tpu.dot_dimension_numbers<[1], [0], [0], [1], [0, 0, 1, 1], [], []>} : vector<32x64xbf16>, vector<64x64xbf16>, vector<32x64xf32> -> vector<32x64xf32>
    %136 = arith.addf %129, %135 : vector<32x64xf32>
    %c4_88 = arith.constant 4 : index
    %c0_89 = arith.constant 0 : index
    %c0_90 = arith.constant 0 : index
    %137 = vector.load %arg5[%c4_88, %c0_89, %c0_90] : memref<9x32x32xbf16, #tpu.memory_space<vmem>>, vector<1x32x32xbf16>
    %138 = vector.shape_cast %137 : vector<1x32x32xbf16> to vector<32x32xbf16>
    %cst_91 = arith.constant dense<0.000000e+00> : vector<32x64xf32>
    %139 = tpu.matmul %138, %107, %cst_91 {dimension_numbers = #tpu.dot_dimension_numbers<[1], [0], [0], [1], [0, 0, 1, 1], [], []>} : vector<32x32xbf16>, vector<32x64xbf16>, vector<32x64xf32> -> vector<32x64xf32>
    %140 = arith.truncf %139 : vector<32x64xf32> to vector<32x64xbf16>
    %141 = vector.extract_strided_slice %106 {offsets = [256, 0], sizes = [64, 64], strides = [1, 1]} : vector<576x64xbf16> to vector<64x64xbf16>
    %cst_92 = arith.constant dense<0.000000e+00> : vector<32x64xf32>
    %142 = tpu.matmul %140, %141, %cst_92 {dimension_numbers = #tpu.dot_dimension_numbers<[1], [0], [0], [1], [0, 0, 1, 1], [], []>} : vector<32x64xbf16>, vector<64x64xbf16>, vector<32x64xf32> -> vector<32x64xf32>
    %143 = arith.addf %136, %142 : vector<32x64xf32>
    %c5_93 = arith.constant 5 : index
    %c0_94 = arith.constant 0 : index
    %c0_95 = arith.constant 0 : index
    %144 = vector.load %arg5[%c5_93, %c0_94, %c0_95] : memref<9x32x32xbf16, #tpu.memory_space<vmem>>, vector<1x32x32xbf16>
    %145 = vector.shape_cast %144 : vector<1x32x32xbf16> to vector<32x32xbf16>
    %cst_96 = arith.constant dense<0.000000e+00> : vector<32x64xf32>
    %146 = tpu.matmul %145, %107, %cst_96 {dimension_numbers = #tpu.dot_dimension_numbers<[1], [0], [0], [1], [0, 0, 1, 1], [], []>} : vector<32x32xbf16>, vector<32x64xbf16>, vector<32x64xf32> -> vector<32x64xf32>
    %147 = arith.truncf %146 : vector<32x64xf32> to vector<32x64xbf16>
    %148 = vector.extract_strided_slice %106 {offsets = [320, 0], sizes = [64, 64], strides = [1, 1]} : vector<576x64xbf16> to vector<64x64xbf16>
    %cst_97 = arith.constant dense<0.000000e+00> : vector<32x64xf32>
    %149 = tpu.matmul %147, %148, %cst_97 {dimension_numbers = #tpu.dot_dimension_numbers<[1], [0], [0], [1], [0, 0, 1, 1], [], []>} : vector<32x64xbf16>, vector<64x64xbf16>, vector<32x64xf32> -> vector<32x64xf32>
    %150 = arith.addf %143, %149 : vector<32x64xf32>
    %c6_98 = arith.constant 6 : index
    %c0_99 = arith.constant 0 : index
    %c0_100 = arith.constant 0 : index
    %151 = vector.load %arg5[%c6_98, %c0_99, %c0_100] : memref<9x32x32xbf16, #tpu.memory_space<vmem>>, vector<1x32x32xbf16>
    %152 = vector.shape_cast %151 : vector<1x32x32xbf16> to vector<32x32xbf16>
    %cst_101 = arith.constant dense<0.000000e+00> : vector<32x64xf32>
    %153 = tpu.matmul %152, %107, %cst_101 {dimension_numbers = #tpu.dot_dimension_numbers<[1], [0], [0], [1], [0, 0, 1, 1], [], []>} : vector<32x32xbf16>, vector<32x64xbf16>, vector<32x64xf32> -> vector<32x64xf32>
    %154 = arith.truncf %153 : vector<32x64xf32> to vector<32x64xbf16>
    %155 = vector.extract_strided_slice %106 {offsets = [384, 0], sizes = [64, 64], strides = [1, 1]} : vector<576x64xbf16> to vector<64x64xbf16>
    %cst_102 = arith.constant dense<0.000000e+00> : vector<32x64xf32>
    %156 = tpu.matmul %154, %155, %cst_102 {dimension_numbers = #tpu.dot_dimension_numbers<[1], [0], [0], [1], [0, 0, 1, 1], [], []>} : vector<32x64xbf16>, vector<64x64xbf16>, vector<32x64xf32> -> vector<32x64xf32>
    %157 = arith.addf %150, %156 : vector<32x64xf32>
    %c7_103 = arith.constant 7 : index
    %c0_104 = arith.constant 0 : index
    %c0_105 = arith.constant 0 : index
    %158 = vector.load %arg5[%c7_103, %c0_104, %c0_105] : memref<9x32x32xbf16, #tpu.memory_space<vmem>>, vector<1x32x32xbf16>
    %159 = vector.shape_cast %158 : vector<1x32x32xbf16> to vector<32x32xbf16>
    %cst_106 = arith.constant dense<0.000000e+00> : vector<32x64xf32>
    %160 = tpu.matmul %159, %107, %cst_106 {dimension_numbers = #tpu.dot_dimension_numbers<[1], [0], [0], [1], [0, 0, 1, 1], [], []>} : vector<32x32xbf16>, vector<32x64xbf16>, vector<32x64xf32> -> vector<32x64xf32>
    %161 = arith.truncf %160 : vector<32x64xf32> to vector<32x64xbf16>
    %162 = vector.extract_strided_slice %106 {offsets = [448, 0], sizes = [64, 64], strides = [1, 1]} : vector<576x64xbf16> to vector<64x64xbf16>
    %cst_107 = arith.constant dense<0.000000e+00> : vector<32x64xf32>
    %163 = tpu.matmul %161, %162, %cst_107 {dimension_numbers = #tpu.dot_dimension_numbers<[1], [0], [0], [1], [0, 0, 1, 1], [], []>} : vector<32x64xbf16>, vector<64x64xbf16>, vector<32x64xf32> -> vector<32x64xf32>
    %164 = arith.addf %157, %163 : vector<32x64xf32>
    %c8_108 = arith.constant 8 : index
    %c0_109 = arith.constant 0 : index
    %c0_110 = arith.constant 0 : index
    %165 = vector.load %arg5[%c8_108, %c0_109, %c0_110] : memref<9x32x32xbf16, #tpu.memory_space<vmem>>, vector<1x32x32xbf16>
    %166 = vector.shape_cast %165 : vector<1x32x32xbf16> to vector<32x32xbf16>
    %cst_111 = arith.constant dense<0.000000e+00> : vector<32x64xf32>
    %167 = tpu.matmul %166, %107, %cst_111 {dimension_numbers = #tpu.dot_dimension_numbers<[1], [0], [0], [1], [0, 0, 1, 1], [], []>} : vector<32x32xbf16>, vector<32x64xbf16>, vector<32x64xf32> -> vector<32x64xf32>
    %168 = arith.truncf %167 : vector<32x64xf32> to vector<32x64xbf16>
    %169 = vector.extract_strided_slice %106 {offsets = [512, 0], sizes = [64, 64], strides = [1, 1]} : vector<576x64xbf16> to vector<64x64xbf16>
    %cst_112 = arith.constant dense<0.000000e+00> : vector<32x64xf32>
    %170 = tpu.matmul %168, %169, %cst_112 {dimension_numbers = #tpu.dot_dimension_numbers<[1], [0], [0], [1], [0, 0, 1, 1], [], []>} : vector<32x64xbf16>, vector<64x64xbf16>, vector<32x64xf32> -> vector<32x64xf32>
    %171 = arith.addf %164, %170 : vector<32x64xf32>
    %c0_113 = arith.constant 0 : index
    %c0_114 = arith.constant 0 : index
    %c0_115 = arith.constant 0 : index
    %172 = vector.load %arg11[%c0_113, %c0_114, %c0_115] : memref<4x1x64xf32, #tpu.memory_space<vmem>>, vector<1x1x64xf32>
    %173 = vector.shape_cast %172 : vector<1x1x64xf32> to vector<1x64xf32>
    %c0_116 = arith.constant 0 : index
    %c0_117 = arith.constant 0 : index
    %c0_118 = arith.constant 0 : index
    %174 = vector.load %arg12[%c0_116, %c0_117, %c0_118] : memref<4x1x64xf32, #tpu.memory_space<vmem>>, vector<1x1x64xf32>
    %175 = vector.shape_cast %174 : vector<1x1x64xf32> to vector<1x64xf32>
    %cst_119 = arith.constant dense<0.000000e+00> : vector<32x64xf32>
    %176 = tpu.matmul %0, %171, %cst_119 {dimension_numbers = #tpu.dot_dimension_numbers<[1], [0], [0], [1], [0, 0, 1, 1], [], []>} : vector<32x32xf32>, vector<32x64xf32>, vector<32x64xf32> -> vector<32x64xf32>
    %177 = arith.subf %171, %176 : vector<32x64xf32>
    %178 = arith.mulf %177, %177 : vector<32x64xf32>
    %cst_120 = arith.constant dense<0.000000e+00> : vector<32x64xf32>
    %179 = tpu.matmul %0, %178, %cst_120 {dimension_numbers = #tpu.dot_dimension_numbers<[1], [0], [0], [1], [0, 0, 1, 1], [], []>} : vector<32x32xf32>, vector<32x64xf32>, vector<32x64xf32> -> vector<32x64xf32>
    %cst_121 = arith.constant 9.99999974E-6 : f32
    %180 = vector.broadcast %cst_121 : f32 to vector<32x64xf32>
    %181 = arith.addf %179, %180 : vector<32x64xf32>
    %182 = math.rsqrt %181 : vector<32x64xf32>
    %183 = arith.mulf %177, %182 : vector<32x64xf32>
    %184 = vector.broadcast %173 : vector<1x64xf32> to vector<32x64xf32>
    %185 = arith.mulf %183, %184 : vector<32x64xf32>
    %186 = vector.broadcast %175 : vector<1x64xf32> to vector<32x64xf32>
    %187 = arith.addf %185, %186 : vector<32x64xf32>
    %188 = arith.addf %19, %187 : vector<32x64xf32>
    %c1_122 = arith.constant 1 : index
    %c0_123 = arith.constant 0 : index
    %c0_124 = arith.constant 0 : index
    %189 = vector.load %arg7[%c1_122, %c0_123, %c0_124] : memref<4x576x64xbf16, #tpu.memory_space<vmem>>, vector<1x576x64xbf16>
    %190 = vector.shape_cast %189 : vector<1x576x64xbf16> to vector<576x64xbf16>
    %191 = arith.truncf %188 : vector<32x64xf32> to vector<32x64xbf16>
    %cst_125 = arith.constant 0.000000e+00 : f32
    %192 = vector.broadcast %cst_125 : f32 to vector<32x64xf32>
    %c0_126 = arith.constant 0 : index
    %c0_127 = arith.constant 0 : index
    %c0_128 = arith.constant 0 : index
    %193 = vector.load %arg5[%c0_126, %c0_127, %c0_128] : memref<9x32x32xbf16, #tpu.memory_space<vmem>>, vector<1x32x32xbf16>
    %194 = vector.shape_cast %193 : vector<1x32x32xbf16> to vector<32x32xbf16>
    %cst_129 = arith.constant dense<0.000000e+00> : vector<32x64xf32>
    %195 = tpu.matmul %194, %191, %cst_129 {dimension_numbers = #tpu.dot_dimension_numbers<[1], [0], [0], [1], [0, 0, 1, 1], [], []>} : vector<32x32xbf16>, vector<32x64xbf16>, vector<32x64xf32> -> vector<32x64xf32>
    %196 = arith.truncf %195 : vector<32x64xf32> to vector<32x64xbf16>
    %197 = vector.extract_strided_slice %190 {offsets = [0, 0], sizes = [64, 64], strides = [1, 1]} : vector<576x64xbf16> to vector<64x64xbf16>
    %cst_130 = arith.constant dense<0.000000e+00> : vector<32x64xf32>
    %198 = tpu.matmul %196, %197, %cst_130 {dimension_numbers = #tpu.dot_dimension_numbers<[1], [0], [0], [1], [0, 0, 1, 1], [], []>} : vector<32x64xbf16>, vector<64x64xbf16>, vector<32x64xf32> -> vector<32x64xf32>
    %199 = arith.addf %192, %198 : vector<32x64xf32>
    %c1_131 = arith.constant 1 : index
    %c0_132 = arith.constant 0 : index
    %c0_133 = arith.constant 0 : index
    %200 = vector.load %arg5[%c1_131, %c0_132, %c0_133] : memref<9x32x32xbf16, #tpu.memory_space<vmem>>, vector<1x32x32xbf16>
    %201 = vector.shape_cast %200 : vector<1x32x32xbf16> to vector<32x32xbf16>
    %cst_134 = arith.constant dense<0.000000e+00> : vector<32x64xf32>
    %202 = tpu.matmul %201, %191, %cst_134 {dimension_numbers = #tpu.dot_dimension_numbers<[1], [0], [0], [1], [0, 0, 1, 1], [], []>} : vector<32x32xbf16>, vector<32x64xbf16>, vector<32x64xf32> -> vector<32x64xf32>
    %203 = arith.truncf %202 : vector<32x64xf32> to vector<32x64xbf16>
    %204 = vector.extract_strided_slice %190 {offsets = [64, 0], sizes = [64, 64], strides = [1, 1]} : vector<576x64xbf16> to vector<64x64xbf16>
    %cst_135 = arith.constant dense<0.000000e+00> : vector<32x64xf32>
    %205 = tpu.matmul %203, %204, %cst_135 {dimension_numbers = #tpu.dot_dimension_numbers<[1], [0], [0], [1], [0, 0, 1, 1], [], []>} : vector<32x64xbf16>, vector<64x64xbf16>, vector<32x64xf32> -> vector<32x64xf32>
    %206 = arith.addf %199, %205 : vector<32x64xf32>
    %c2_136 = arith.constant 2 : index
    %c0_137 = arith.constant 0 : index
    %c0_138 = arith.constant 0 : index
    %207 = vector.load %arg5[%c2_136, %c0_137, %c0_138] : memref<9x32x32xbf16, #tpu.memory_space<vmem>>, vector<1x32x32xbf16>
    %208 = vector.shape_cast %207 : vector<1x32x32xbf16> to vector<32x32xbf16>
    %cst_139 = arith.constant dense<0.000000e+00> : vector<32x64xf32>
    %209 = tpu.matmul %208, %191, %cst_139 {dimension_numbers = #tpu.dot_dimension_numbers<[1], [0], [0], [1], [0, 0, 1, 1], [], []>} : vector<32x32xbf16>, vector<32x64xbf16>, vector<32x64xf32> -> vector<32x64xf32>
    %210 = arith.truncf %209 : vector<32x64xf32> to vector<32x64xbf16>
    %211 = vector.extract_strided_slice %190 {offsets = [128, 0], sizes = [64, 64], strides = [1, 1]} : vector<576x64xbf16> to vector<64x64xbf16>
    %cst_140 = arith.constant dense<0.000000e+00> : vector<32x64xf32>
    %212 = tpu.matmul %210, %211, %cst_140 {dimension_numbers = #tpu.dot_dimension_numbers<[1], [0], [0], [1], [0, 0, 1, 1], [], []>} : vector<32x64xbf16>, vector<64x64xbf16>, vector<32x64xf32> -> vector<32x64xf32>
    %213 = arith.addf %206, %212 : vector<32x64xf32>
    %c3_141 = arith.constant 3 : index
    %c0_142 = arith.constant 0 : index
    %c0_143 = arith.constant 0 : index
    %214 = vector.load %arg5[%c3_141, %c0_142, %c0_143] : memref<9x32x32xbf16, #tpu.memory_space<vmem>>, vector<1x32x32xbf16>
    %215 = vector.shape_cast %214 : vector<1x32x32xbf16> to vector<32x32xbf16>
    %cst_144 = arith.constant dense<0.000000e+00> : vector<32x64xf32>
    %216 = tpu.matmul %215, %191, %cst_144 {dimension_numbers = #tpu.dot_dimension_numbers<[1], [0], [0], [1], [0, 0, 1, 1], [], []>} : vector<32x32xbf16>, vector<32x64xbf16>, vector<32x64xf32> -> vector<32x64xf32>
    %217 = arith.truncf %216 : vector<32x64xf32> to vector<32x64xbf16>
    %218 = vector.extract_strided_slice %190 {offsets = [192, 0], sizes = [64, 64], strides = [1, 1]} : vector<576x64xbf16> to vector<64x64xbf16>
    %cst_145 = arith.constant dense<0.000000e+00> : vector<32x64xf32>
    %219 = tpu.matmul %217, %218, %cst_145 {dimension_numbers = #tpu.dot_dimension_numbers<[1], [0], [0], [1], [0, 0, 1, 1], [], []>} : vector<32x64xbf16>, vector<64x64xbf16>, vector<32x64xf32> -> vector<32x64xf32>
    %220 = arith.addf %213, %219 : vector<32x64xf32>
    %c4_146 = arith.constant 4 : index
    %c0_147 = arith.constant 0 : index
    %c0_148 = arith.constant 0 : index
    %221 = vector.load %arg5[%c4_146, %c0_147, %c0_148] : memref<9x32x32xbf16, #tpu.memory_space<vmem>>, vector<1x32x32xbf16>
    %222 = vector.shape_cast %221 : vector<1x32x32xbf16> to vector<32x32xbf16>
    %cst_149 = arith.constant dense<0.000000e+00> : vector<32x64xf32>
    %223 = tpu.matmul %222, %191, %cst_149 {dimension_numbers = #tpu.dot_dimension_numbers<[1], [0], [0], [1], [0, 0, 1, 1], [], []>} : vector<32x32xbf16>, vector<32x64xbf16>, vector<32x64xf32> -> vector<32x64xf32>
    %224 = arith.truncf %223 : vector<32x64xf32> to vector<32x64xbf16>
    %225 = vector.extract_strided_slice %190 {offsets = [256, 0], sizes = [64, 64], strides = [1, 1]} : vector<576x64xbf16> to vector<64x64xbf16>
    %cst_150 = arith.constant dense<0.000000e+00> : vector<32x64xf32>
    %226 = tpu.matmul %224, %225, %cst_150 {dimension_numbers = #tpu.dot_dimension_numbers<[1], [0], [0], [1], [0, 0, 1, 1], [], []>} : vector<32x64xbf16>, vector<64x64xbf16>, vector<32x64xf32> -> vector<32x64xf32>
    %227 = arith.addf %220, %226 : vector<32x64xf32>
    %c5_151 = arith.constant 5 : index
    %c0_152 = arith.constant 0 : index
    %c0_153 = arith.constant 0 : index
    %228 = vector.load %arg5[%c5_151, %c0_152, %c0_153] : memref<9x32x32xbf16, #tpu.memory_space<vmem>>, vector<1x32x32xbf16>
    %229 = vector.shape_cast %228 : vector<1x32x32xbf16> to vector<32x32xbf16>
    %cst_154 = arith.constant dense<0.000000e+00> : vector<32x64xf32>
    %230 = tpu.matmul %229, %191, %cst_154 {dimension_numbers = #tpu.dot_dimension_numbers<[1], [0], [0], [1], [0, 0, 1, 1], [], []>} : vector<32x32xbf16>, vector<32x64xbf16>, vector<32x64xf32> -> vector<32x64xf32>
    %231 = arith.truncf %230 : vector<32x64xf32> to vector<32x64xbf16>
    %232 = vector.extract_strided_slice %190 {offsets = [320, 0], sizes = [64, 64], strides = [1, 1]} : vector<576x64xbf16> to vector<64x64xbf16>
    %cst_155 = arith.constant dense<0.000000e+00> : vector<32x64xf32>
    %233 = tpu.matmul %231, %232, %cst_155 {dimension_numbers = #tpu.dot_dimension_numbers<[1], [0], [0], [1], [0, 0, 1, 1], [], []>} : vector<32x64xbf16>, vector<64x64xbf16>, vector<32x64xf32> -> vector<32x64xf32>
    %234 = arith.addf %227, %233 : vector<32x64xf32>
    %c6_156 = arith.constant 6 : index
    %c0_157 = arith.constant 0 : index
    %c0_158 = arith.constant 0 : index
    %235 = vector.load %arg5[%c6_156, %c0_157, %c0_158] : memref<9x32x32xbf16, #tpu.memory_space<vmem>>, vector<1x32x32xbf16>
    %236 = vector.shape_cast %235 : vector<1x32x32xbf16> to vector<32x32xbf16>
    %cst_159 = arith.constant dense<0.000000e+00> : vector<32x64xf32>
    %237 = tpu.matmul %236, %191, %cst_159 {dimension_numbers = #tpu.dot_dimension_numbers<[1], [0], [0], [1], [0, 0, 1, 1], [], []>} : vector<32x32xbf16>, vector<32x64xbf16>, vector<32x64xf32> -> vector<32x64xf32>
    %238 = arith.truncf %237 : vector<32x64xf32> to vector<32x64xbf16>
    %239 = vector.extract_strided_slice %190 {offsets = [384, 0], sizes = [64, 64], strides = [1, 1]} : vector<576x64xbf16> to vector<64x64xbf16>
    %cst_160 = arith.constant dense<0.000000e+00> : vector<32x64xf32>
    %240 = tpu.matmul %238, %239, %cst_160 {dimension_numbers = #tpu.dot_dimension_numbers<[1], [0], [0], [1], [0, 0, 1, 1], [], []>} : vector<32x64xbf16>, vector<64x64xbf16>, vector<32x64xf32> -> vector<32x64xf32>
    %241 = arith.addf %234, %240 : vector<32x64xf32>
    %c7_161 = arith.constant 7 : index
    %c0_162 = arith.constant 0 : index
    %c0_163 = arith.constant 0 : index
    %242 = vector.load %arg5[%c7_161, %c0_162, %c0_163] : memref<9x32x32xbf16, #tpu.memory_space<vmem>>, vector<1x32x32xbf16>
    %243 = vector.shape_cast %242 : vector<1x32x32xbf16> to vector<32x32xbf16>
    %cst_164 = arith.constant dense<0.000000e+00> : vector<32x64xf32>
    %244 = tpu.matmul %243, %191, %cst_164 {dimension_numbers = #tpu.dot_dimension_numbers<[1], [0], [0], [1], [0, 0, 1, 1], [], []>} : vector<32x32xbf16>, vector<32x64xbf16>, vector<32x64xf32> -> vector<32x64xf32>
    %245 = arith.truncf %244 : vector<32x64xf32> to vector<32x64xbf16>
    %246 = vector.extract_strided_slice %190 {offsets = [448, 0], sizes = [64, 64], strides = [1, 1]} : vector<576x64xbf16> to vector<64x64xbf16>
    %cst_165 = arith.constant dense<0.000000e+00> : vector<32x64xf32>
    %247 = tpu.matmul %245, %246, %cst_165 {dimension_numbers = #tpu.dot_dimension_numbers<[1], [0], [0], [1], [0, 0, 1, 1], [], []>} : vector<32x64xbf16>, vector<64x64xbf16>, vector<32x64xf32> -> vector<32x64xf32>
    %248 = arith.addf %241, %247 : vector<32x64xf32>
    %c8_166 = arith.constant 8 : index
    %c0_167 = arith.constant 0 : index
    %c0_168 = arith.constant 0 : index
    %249 = vector.load %arg5[%c8_166, %c0_167, %c0_168] : memref<9x32x32xbf16, #tpu.memory_space<vmem>>, vector<1x32x32xbf16>
    %250 = vector.shape_cast %249 : vector<1x32x32xbf16> to vector<32x32xbf16>
    %cst_169 = arith.constant dense<0.000000e+00> : vector<32x64xf32>
    %251 = tpu.matmul %250, %191, %cst_169 {dimension_numbers = #tpu.dot_dimension_numbers<[1], [0], [0], [1], [0, 0, 1, 1], [], []>} : vector<32x32xbf16>, vector<32x64xbf16>, vector<32x64xf32> -> vector<32x64xf32>
    %252 = arith.truncf %251 : vector<32x64xf32> to vector<32x64xbf16>
    %253 = vector.extract_strided_slice %190 {offsets = [512, 0], sizes = [64, 64], strides = [1, 1]} : vector<576x64xbf16> to vector<64x64xbf16>
    %cst_170 = arith.constant dense<0.000000e+00> : vector<32x64xf32>
    %254 = tpu.matmul %252, %253, %cst_170 {dimension_numbers = #tpu.dot_dimension_numbers<[1], [0], [0], [1], [0, 0, 1, 1], [], []>} : vector<32x64xbf16>, vector<64x64xbf16>, vector<32x64xf32> -> vector<32x64xf32>
    %255 = arith.addf %248, %254 : vector<32x64xf32>
    %c1_171 = arith.constant 1 : index
    %c0_172 = arith.constant 0 : index
    %c0_173 = arith.constant 0 : index
    %256 = vector.load %arg8[%c1_171, %c0_172, %c0_173] : memref<4x1x64xf32, #tpu.memory_space<vmem>>, vector<1x1x64xf32>
    %257 = vector.shape_cast %256 : vector<1x1x64xf32> to vector<1x64xf32>
    %c1_174 = arith.constant 1 : index
    %c0_175 = arith.constant 0 : index
    %c0_176 = arith.constant 0 : index
    %258 = vector.load %arg9[%c1_174, %c0_175, %c0_176] : memref<4x1x64xf32, #tpu.memory_space<vmem>>, vector<1x1x64xf32>
    %259 = vector.shape_cast %258 : vector<1x1x64xf32> to vector<1x64xf32>
    %cst_177 = arith.constant dense<0.000000e+00> : vector<32x64xf32>
    %260 = tpu.matmul %0, %255, %cst_177 {dimension_numbers = #tpu.dot_dimension_numbers<[1], [0], [0], [1], [0, 0, 1, 1], [], []>} : vector<32x32xf32>, vector<32x64xf32>, vector<32x64xf32> -> vector<32x64xf32>
    %261 = arith.subf %255, %260 : vector<32x64xf32>
    %262 = arith.mulf %261, %261 : vector<32x64xf32>
    %cst_178 = arith.constant dense<0.000000e+00> : vector<32x64xf32>
    %263 = tpu.matmul %0, %262, %cst_178 {dimension_numbers = #tpu.dot_dimension_numbers<[1], [0], [0], [1], [0, 0, 1, 1], [], []>} : vector<32x32xf32>, vector<32x64xf32>, vector<32x64xf32> -> vector<32x64xf32>
    %cst_179 = arith.constant 9.99999974E-6 : f32
    %264 = vector.broadcast %cst_179 : f32 to vector<32x64xf32>
    %265 = arith.addf %263, %264 : vector<32x64xf32>
    %266 = math.rsqrt %265 : vector<32x64xf32>
    %267 = arith.mulf %261, %266 : vector<32x64xf32>
    %268 = vector.broadcast %257 : vector<1x64xf32> to vector<32x64xf32>
    %269 = arith.mulf %267, %268 : vector<32x64xf32>
    %270 = vector.broadcast %259 : vector<1x64xf32> to vector<32x64xf32>
    %271 = arith.addf %269, %270 : vector<32x64xf32>
    %cst_180 = arith.constant 0.000000e+00 : f32
    %272 = vector.broadcast %cst_180 : f32 to vector<32x64xf32>
    %273 = arith.maximumf %271, %272 : vector<32x64xf32>
    %c1_181 = arith.constant 1 : index
    %c0_182 = arith.constant 0 : index
    %c0_183 = arith.constant 0 : index
    %274 = vector.load %arg10[%c1_181, %c0_182, %c0_183] : memref<4x576x64xbf16, #tpu.memory_space<vmem>>, vector<1x576x64xbf16>
    %275 = vector.shape_cast %274 : vector<1x576x64xbf16> to vector<576x64xbf16>
    %276 = arith.truncf %273 : vector<32x64xf32> to vector<32x64xbf16>
    %cst_184 = arith.constant 0.000000e+00 : f32
    %277 = vector.broadcast %cst_184 : f32 to vector<32x64xf32>
    %c0_185 = arith.constant 0 : index
    %c0_186 = arith.constant 0 : index
    %c0_187 = arith.constant 0 : index
    %278 = vector.load %arg5[%c0_185, %c0_186, %c0_187] : memref<9x32x32xbf16, #tpu.memory_space<vmem>>, vector<1x32x32xbf16>
    %279 = vector.shape_cast %278 : vector<1x32x32xbf16> to vector<32x32xbf16>
    %cst_188 = arith.constant dense<0.000000e+00> : vector<32x64xf32>
    %280 = tpu.matmul %279, %276, %cst_188 {dimension_numbers = #tpu.dot_dimension_numbers<[1], [0], [0], [1], [0, 0, 1, 1], [], []>} : vector<32x32xbf16>, vector<32x64xbf16>, vector<32x64xf32> -> vector<32x64xf32>
    %281 = arith.truncf %280 : vector<32x64xf32> to vector<32x64xbf16>
    %282 = vector.extract_strided_slice %275 {offsets = [0, 0], sizes = [64, 64], strides = [1, 1]} : vector<576x64xbf16> to vector<64x64xbf16>
    %cst_189 = arith.constant dense<0.000000e+00> : vector<32x64xf32>
    %283 = tpu.matmul %281, %282, %cst_189 {dimension_numbers = #tpu.dot_dimension_numbers<[1], [0], [0], [1], [0, 0, 1, 1], [], []>} : vector<32x64xbf16>, vector<64x64xbf16>, vector<32x64xf32> -> vector<32x64xf32>
    %284 = arith.addf %277, %283 : vector<32x64xf32>
    %c1_190 = arith.constant 1 : index
    %c0_191 = arith.constant 0 : index
    %c0_192 = arith.constant 0 : index
    %285 = vector.load %arg5[%c1_190, %c0_191, %c0_192] : memref<9x32x32xbf16, #tpu.memory_space<vmem>>, vector<1x32x32xbf16>
    %286 = vector.shape_cast %285 : vector<1x32x32xbf16> to vector<32x32xbf16>
    %cst_193 = arith.constant dense<0.000000e+00> : vector<32x64xf32>
    %287 = tpu.matmul %286, %276, %cst_193 {dimension_numbers = #tpu.dot_dimension_numbers<[1], [0], [0], [1], [0, 0, 1, 1], [], []>} : vector<32x32xbf16>, vector<32x64xbf16>, vector<32x64xf32> -> vector<32x64xf32>
    %288 = arith.truncf %287 : vector<32x64xf32> to vector<32x64xbf16>
    %289 = vector.extract_strided_slice %275 {offsets = [64, 0], sizes = [64, 64], strides = [1, 1]} : vector<576x64xbf16> to vector<64x64xbf16>
    %cst_194 = arith.constant dense<0.000000e+00> : vector<32x64xf32>
    %290 = tpu.matmul %288, %289, %cst_194 {dimension_numbers = #tpu.dot_dimension_numbers<[1], [0], [0], [1], [0, 0, 1, 1], [], []>} : vector<32x64xbf16>, vector<64x64xbf16>, vector<32x64xf32> -> vector<32x64xf32>
    %291 = arith.addf %284, %290 : vector<32x64xf32>
    %c2_195 = arith.constant 2 : index
    %c0_196 = arith.constant 0 : index
    %c0_197 = arith.constant 0 : index
    %292 = vector.load %arg5[%c2_195, %c0_196, %c0_197] : memref<9x32x32xbf16, #tpu.memory_space<vmem>>, vector<1x32x32xbf16>
    %293 = vector.shape_cast %292 : vector<1x32x32xbf16> to vector<32x32xbf16>
    %cst_198 = arith.constant dense<0.000000e+00> : vector<32x64xf32>
    %294 = tpu.matmul %293, %276, %cst_198 {dimension_numbers = #tpu.dot_dimension_numbers<[1], [0], [0], [1], [0, 0, 1, 1], [], []>} : vector<32x32xbf16>, vector<32x64xbf16>, vector<32x64xf32> -> vector<32x64xf32>
    %295 = arith.truncf %294 : vector<32x64xf32> to vector<32x64xbf16>
    %296 = vector.extract_strided_slice %275 {offsets = [128, 0], sizes = [64, 64], strides = [1, 1]} : vector<576x64xbf16> to vector<64x64xbf16>
    %cst_199 = arith.constant dense<0.000000e+00> : vector<32x64xf32>
    %297 = tpu.matmul %295, %296, %cst_199 {dimension_numbers = #tpu.dot_dimension_numbers<[1], [0], [0], [1], [0, 0, 1, 1], [], []>} : vector<32x64xbf16>, vector<64x64xbf16>, vector<32x64xf32> -> vector<32x64xf32>
    %298 = arith.addf %291, %297 : vector<32x64xf32>
    %c3_200 = arith.constant 3 : index
    %c0_201 = arith.constant 0 : index
    %c0_202 = arith.constant 0 : index
    %299 = vector.load %arg5[%c3_200, %c0_201, %c0_202] : memref<9x32x32xbf16, #tpu.memory_space<vmem>>, vector<1x32x32xbf16>
    %300 = vector.shape_cast %299 : vector<1x32x32xbf16> to vector<32x32xbf16>
    %cst_203 = arith.constant dense<0.000000e+00> : vector<32x64xf32>
    %301 = tpu.matmul %300, %276, %cst_203 {dimension_numbers = #tpu.dot_dimension_numbers<[1], [0], [0], [1], [0, 0, 1, 1], [], []>} : vector<32x32xbf16>, vector<32x64xbf16>, vector<32x64xf32> -> vector<32x64xf32>
    %302 = arith.truncf %301 : vector<32x64xf32> to vector<32x64xbf16>
    %303 = vector.extract_strided_slice %275 {offsets = [192, 0], sizes = [64, 64], strides = [1, 1]} : vector<576x64xbf16> to vector<64x64xbf16>
    %cst_204 = arith.constant dense<0.000000e+00> : vector<32x64xf32>
    %304 = tpu.matmul %302, %303, %cst_204 {dimension_numbers = #tpu.dot_dimension_numbers<[1], [0], [0], [1], [0, 0, 1, 1], [], []>} : vector<32x64xbf16>, vector<64x64xbf16>, vector<32x64xf32> -> vector<32x64xf32>
    %305 = arith.addf %298, %304 : vector<32x64xf32>
    %c4_205 = arith.constant 4 : index
    %c0_206 = arith.constant 0 : index
    %c0_207 = arith.constant 0 : index
    %306 = vector.load %arg5[%c4_205, %c0_206, %c0_207] : memref<9x32x32xbf16, #tpu.memory_space<vmem>>, vector<1x32x32xbf16>
    %307 = vector.shape_cast %306 : vector<1x32x32xbf16> to vector<32x32xbf16>
    %cst_208 = arith.constant dense<0.000000e+00> : vector<32x64xf32>
    %308 = tpu.matmul %307, %276, %cst_208 {dimension_numbers = #tpu.dot_dimension_numbers<[1], [0], [0], [1], [0, 0, 1, 1], [], []>} : vector<32x32xbf16>, vector<32x64xbf16>, vector<32x64xf32> -> vector<32x64xf32>
    %309 = arith.truncf %308 : vector<32x64xf32> to vector<32x64xbf16>
    %310 = vector.extract_strided_slice %275 {offsets = [256, 0], sizes = [64, 64], strides = [1, 1]} : vector<576x64xbf16> to vector<64x64xbf16>
    %cst_209 = arith.constant dense<0.000000e+00> : vector<32x64xf32>
    %311 = tpu.matmul %309, %310, %cst_209 {dimension_numbers = #tpu.dot_dimension_numbers<[1], [0], [0], [1], [0, 0, 1, 1], [], []>} : vector<32x64xbf16>, vector<64x64xbf16>, vector<32x64xf32> -> vector<32x64xf32>
    %312 = arith.addf %305, %311 : vector<32x64xf32>
    %c5_210 = arith.constant 5 : index
    %c0_211 = arith.constant 0 : index
    %c0_212 = arith.constant 0 : index
    %313 = vector.load %arg5[%c5_210, %c0_211, %c0_212] : memref<9x32x32xbf16, #tpu.memory_space<vmem>>, vector<1x32x32xbf16>
    %314 = vector.shape_cast %313 : vector<1x32x32xbf16> to vector<32x32xbf16>
    %cst_213 = arith.constant dense<0.000000e+00> : vector<32x64xf32>
    %315 = tpu.matmul %314, %276, %cst_213 {dimension_numbers = #tpu.dot_dimension_numbers<[1], [0], [0], [1], [0, 0, 1, 1], [], []>} : vector<32x32xbf16>, vector<32x64xbf16>, vector<32x64xf32> -> vector<32x64xf32>
    %316 = arith.truncf %315 : vector<32x64xf32> to vector<32x64xbf16>
    %317 = vector.extract_strided_slice %275 {offsets = [320, 0], sizes = [64, 64], strides = [1, 1]} : vector<576x64xbf16> to vector<64x64xbf16>
    %cst_214 = arith.constant dense<0.000000e+00> : vector<32x64xf32>
    %318 = tpu.matmul %316, %317, %cst_214 {dimension_numbers = #tpu.dot_dimension_numbers<[1], [0], [0], [1], [0, 0, 1, 1], [], []>} : vector<32x64xbf16>, vector<64x64xbf16>, vector<32x64xf32> -> vector<32x64xf32>
    %319 = arith.addf %312, %318 : vector<32x64xf32>
    %c6_215 = arith.constant 6 : index
    %c0_216 = arith.constant 0 : index
    %c0_217 = arith.constant 0 : index
    %320 = vector.load %arg5[%c6_215, %c0_216, %c0_217] : memref<9x32x32xbf16, #tpu.memory_space<vmem>>, vector<1x32x32xbf16>
    %321 = vector.shape_cast %320 : vector<1x32x32xbf16> to vector<32x32xbf16>
    %cst_218 = arith.constant dense<0.000000e+00> : vector<32x64xf32>
    %322 = tpu.matmul %321, %276, %cst_218 {dimension_numbers = #tpu.dot_dimension_numbers<[1], [0], [0], [1], [0, 0, 1, 1], [], []>} : vector<32x32xbf16>, vector<32x64xbf16>, vector<32x64xf32> -> vector<32x64xf32>
    %323 = arith.truncf %322 : vector<32x64xf32> to vector<32x64xbf16>
    %324 = vector.extract_strided_slice %275 {offsets = [384, 0], sizes = [64, 64], strides = [1, 1]} : vector<576x64xbf16> to vector<64x64xbf16>
    %cst_219 = arith.constant dense<0.000000e+00> : vector<32x64xf32>
    %325 = tpu.matmul %323, %324, %cst_219 {dimension_numbers = #tpu.dot_dimension_numbers<[1], [0], [0], [1], [0, 0, 1, 1], [], []>} : vector<32x64xbf16>, vector<64x64xbf16>, vector<32x64xf32> -> vector<32x64xf32>
    %326 = arith.addf %319, %325 : vector<32x64xf32>
    %c7_220 = arith.constant 7 : index
    %c0_221 = arith.constant 0 : index
    %c0_222 = arith.constant 0 : index
    %327 = vector.load %arg5[%c7_220, %c0_221, %c0_222] : memref<9x32x32xbf16, #tpu.memory_space<vmem>>, vector<1x32x32xbf16>
    %328 = vector.shape_cast %327 : vector<1x32x32xbf16> to vector<32x32xbf16>
    %cst_223 = arith.constant dense<0.000000e+00> : vector<32x64xf32>
    %329 = tpu.matmul %328, %276, %cst_223 {dimension_numbers = #tpu.dot_dimension_numbers<[1], [0], [0], [1], [0, 0, 1, 1], [], []>} : vector<32x32xbf16>, vector<32x64xbf16>, vector<32x64xf32> -> vector<32x64xf32>
    %330 = arith.truncf %329 : vector<32x64xf32> to vector<32x64xbf16>
    %331 = vector.extract_strided_slice %275 {offsets = [448, 0], sizes = [64, 64], strides = [1, 1]} : vector<576x64xbf16> to vector<64x64xbf16>
    %cst_224 = arith.constant dense<0.000000e+00> : vector<32x64xf32>
    %332 = tpu.matmul %330, %331, %cst_224 {dimension_numbers = #tpu.dot_dimension_numbers<[1], [0], [0], [1], [0, 0, 1, 1], [], []>} : vector<32x64xbf16>, vector<64x64xbf16>, vector<32x64xf32> -> vector<32x64xf32>
    %333 = arith.addf %326, %332 : vector<32x64xf32>
    %c8_225 = arith.constant 8 : index
    %c0_226 = arith.constant 0 : index
    %c0_227 = arith.constant 0 : index
    %334 = vector.load %arg5[%c8_225, %c0_226, %c0_227] : memref<9x32x32xbf16, #tpu.memory_space<vmem>>, vector<1x32x32xbf16>
    %335 = vector.shape_cast %334 : vector<1x32x32xbf16> to vector<32x32xbf16>
    %cst_228 = arith.constant dense<0.000000e+00> : vector<32x64xf32>
    %336 = tpu.matmul %335, %276, %cst_228 {dimension_numbers = #tpu.dot_dimension_numbers<[1], [0], [0], [1], [0, 0, 1, 1], [], []>} : vector<32x32xbf16>, vector<32x64xbf16>, vector<32x64xf32> -> vector<32x64xf32>
    %337 = arith.truncf %336 : vector<32x64xf32> to vector<32x64xbf16>
    %338 = vector.extract_strided_slice %275 {offsets = [512, 0], sizes = [64, 64], strides = [1, 1]} : vector<576x64xbf16> to vector<64x64xbf16>
    %cst_229 = arith.constant dense<0.000000e+00> : vector<32x64xf32>
    %339 = tpu.matmul %337, %338, %cst_229 {dimension_numbers = #tpu.dot_dimension_numbers<[1], [0], [0], [1], [0, 0, 1, 1], [], []>} : vector<32x64xbf16>, vector<64x64xbf16>, vector<32x64xf32> -> vector<32x64xf32>
    %340 = arith.addf %333, %339 : vector<32x64xf32>
    %c1_230 = arith.constant 1 : index
    %c0_231 = arith.constant 0 : index
    %c0_232 = arith.constant 0 : index
    %341 = vector.load %arg11[%c1_230, %c0_231, %c0_232] : memref<4x1x64xf32, #tpu.memory_space<vmem>>, vector<1x1x64xf32>
    %342 = vector.shape_cast %341 : vector<1x1x64xf32> to vector<1x64xf32>
    %c1_233 = arith.constant 1 : index
    %c0_234 = arith.constant 0 : index
    %c0_235 = arith.constant 0 : index
    %343 = vector.load %arg12[%c1_233, %c0_234, %c0_235] : memref<4x1x64xf32, #tpu.memory_space<vmem>>, vector<1x1x64xf32>
    %344 = vector.shape_cast %343 : vector<1x1x64xf32> to vector<1x64xf32>
    %cst_236 = arith.constant dense<0.000000e+00> : vector<32x64xf32>
    %345 = tpu.matmul %0, %340, %cst_236 {dimension_numbers = #tpu.dot_dimension_numbers<[1], [0], [0], [1], [0, 0, 1, 1], [], []>} : vector<32x32xf32>, vector<32x64xf32>, vector<32x64xf32> -> vector<32x64xf32>
    %346 = arith.subf %340, %345 : vector<32x64xf32>
    %347 = arith.mulf %346, %346 : vector<32x64xf32>
    %cst_237 = arith.constant dense<0.000000e+00> : vector<32x64xf32>
    %348 = tpu.matmul %0, %347, %cst_237 {dimension_numbers = #tpu.dot_dimension_numbers<[1], [0], [0], [1], [0, 0, 1, 1], [], []>} : vector<32x32xf32>, vector<32x64xf32>, vector<32x64xf32> -> vector<32x64xf32>
    %cst_238 = arith.constant 9.99999974E-6 : f32
    %349 = vector.broadcast %cst_238 : f32 to vector<32x64xf32>
    %350 = arith.addf %348, %349 : vector<32x64xf32>
    %351 = math.rsqrt %350 : vector<32x64xf32>
    %352 = arith.mulf %346, %351 : vector<32x64xf32>
    %353 = vector.broadcast %342 : vector<1x64xf32> to vector<32x64xf32>
    %354 = arith.mulf %352, %353 : vector<32x64xf32>
    %355 = vector.broadcast %344 : vector<1x64xf32> to vector<32x64xf32>
    %356 = arith.addf %354, %355 : vector<32x64xf32>
    %357 = arith.addf %188, %356 : vector<32x64xf32>
    %c2_239 = arith.constant 2 : index
    %c0_240 = arith.constant 0 : index
    %c0_241 = arith.constant 0 : index
    %358 = vector.load %arg7[%c2_239, %c0_240, %c0_241] : memref<4x576x64xbf16, #tpu.memory_space<vmem>>, vector<1x576x64xbf16>
    %359 = vector.shape_cast %358 : vector<1x576x64xbf16> to vector<576x64xbf16>
    %360 = arith.truncf %357 : vector<32x64xf32> to vector<32x64xbf16>
    %cst_242 = arith.constant 0.000000e+00 : f32
    %361 = vector.broadcast %cst_242 : f32 to vector<32x64xf32>
    %c0_243 = arith.constant 0 : index
    %c0_244 = arith.constant 0 : index
    %c0_245 = arith.constant 0 : index
    %362 = vector.load %arg5[%c0_243, %c0_244, %c0_245] : memref<9x32x32xbf16, #tpu.memory_space<vmem>>, vector<1x32x32xbf16>
    %363 = vector.shape_cast %362 : vector<1x32x32xbf16> to vector<32x32xbf16>
    %cst_246 = arith.constant dense<0.000000e+00> : vector<32x64xf32>
    %364 = tpu.matmul %363, %360, %cst_246 {dimension_numbers = #tpu.dot_dimension_numbers<[1], [0], [0], [1], [0, 0, 1, 1], [], []>} : vector<32x32xbf16>, vector<32x64xbf16>, vector<32x64xf32> -> vector<32x64xf32>
    %365 = arith.truncf %364 : vector<32x64xf32> to vector<32x64xbf16>
    %366 = vector.extract_strided_slice %359 {offsets = [0, 0], sizes = [64, 64], strides = [1, 1]} : vector<576x64xbf16> to vector<64x64xbf16>
    %cst_247 = arith.constant dense<0.000000e+00> : vector<32x64xf32>
    %367 = tpu.matmul %365, %366, %cst_247 {dimension_numbers = #tpu.dot_dimension_numbers<[1], [0], [0], [1], [0, 0, 1, 1], [], []>} : vector<32x64xbf16>, vector<64x64xbf16>, vector<32x64xf32> -> vector<32x64xf32>
    %368 = arith.addf %361, %367 : vector<32x64xf32>
    %c1_248 = arith.constant 1 : index
    %c0_249 = arith.constant 0 : index
    %c0_250 = arith.constant 0 : index
    %369 = vector.load %arg5[%c1_248, %c0_249, %c0_250] : memref<9x32x32xbf16, #tpu.memory_space<vmem>>, vector<1x32x32xbf16>
    %370 = vector.shape_cast %369 : vector<1x32x32xbf16> to vector<32x32xbf16>
    %cst_251 = arith.constant dense<0.000000e+00> : vector<32x64xf32>
    %371 = tpu.matmul %370, %360, %cst_251 {dimension_numbers = #tpu.dot_dimension_numbers<[1], [0], [0], [1], [0, 0, 1, 1], [], []>} : vector<32x32xbf16>, vector<32x64xbf16>, vector<32x64xf32> -> vector<32x64xf32>
    %372 = arith.truncf %371 : vector<32x64xf32> to vector<32x64xbf16>
    %373 = vector.extract_strided_slice %359 {offsets = [64, 0], sizes = [64, 64], strides = [1, 1]} : vector<576x64xbf16> to vector<64x64xbf16>
    %cst_252 = arith.constant dense<0.000000e+00> : vector<32x64xf32>
    %374 = tpu.matmul %372, %373, %cst_252 {dimension_numbers = #tpu.dot_dimension_numbers<[1], [0], [0], [1], [0, 0, 1, 1], [], []>} : vector<32x64xbf16>, vector<64x64xbf16>, vector<32x64xf32> -> vector<32x64xf32>
    %375 = arith.addf %368, %374 : vector<32x64xf32>
    %c2_253 = arith.constant 2 : index
    %c0_254 = arith.constant 0 : index
    %c0_255 = arith.constant 0 : index
    %376 = vector.load %arg5[%c2_253, %c0_254, %c0_255] : memref<9x32x32xbf16, #tpu.memory_space<vmem>>, vector<1x32x32xbf16>
    %377 = vector.shape_cast %376 : vector<1x32x32xbf16> to vector<32x32xbf16>
    %cst_256 = arith.constant dense<0.000000e+00> : vector<32x64xf32>
    %378 = tpu.matmul %377, %360, %cst_256 {dimension_numbers = #tpu.dot_dimension_numbers<[1], [0], [0], [1], [0, 0, 1, 1], [], []>} : vector<32x32xbf16>, vector<32x64xbf16>, vector<32x64xf32> -> vector<32x64xf32>
    %379 = arith.truncf %378 : vector<32x64xf32> to vector<32x64xbf16>
    %380 = vector.extract_strided_slice %359 {offsets = [128, 0], sizes = [64, 64], strides = [1, 1]} : vector<576x64xbf16> to vector<64x64xbf16>
    %cst_257 = arith.constant dense<0.000000e+00> : vector<32x64xf32>
    %381 = tpu.matmul %379, %380, %cst_257 {dimension_numbers = #tpu.dot_dimension_numbers<[1], [0], [0], [1], [0, 0, 1, 1], [], []>} : vector<32x64xbf16>, vector<64x64xbf16>, vector<32x64xf32> -> vector<32x64xf32>
    %382 = arith.addf %375, %381 : vector<32x64xf32>
    %c3_258 = arith.constant 3 : index
    %c0_259 = arith.constant 0 : index
    %c0_260 = arith.constant 0 : index
    %383 = vector.load %arg5[%c3_258, %c0_259, %c0_260] : memref<9x32x32xbf16, #tpu.memory_space<vmem>>, vector<1x32x32xbf16>
    %384 = vector.shape_cast %383 : vector<1x32x32xbf16> to vector<32x32xbf16>
    %cst_261 = arith.constant dense<0.000000e+00> : vector<32x64xf32>
    %385 = tpu.matmul %384, %360, %cst_261 {dimension_numbers = #tpu.dot_dimension_numbers<[1], [0], [0], [1], [0, 0, 1, 1], [], []>} : vector<32x32xbf16>, vector<32x64xbf16>, vector<32x64xf32> -> vector<32x64xf32>
    %386 = arith.truncf %385 : vector<32x64xf32> to vector<32x64xbf16>
    %387 = vector.extract_strided_slice %359 {offsets = [192, 0], sizes = [64, 64], strides = [1, 1]} : vector<576x64xbf16> to vector<64x64xbf16>
    %cst_262 = arith.constant dense<0.000000e+00> : vector<32x64xf32>
    %388 = tpu.matmul %386, %387, %cst_262 {dimension_numbers = #tpu.dot_dimension_numbers<[1], [0], [0], [1], [0, 0, 1, 1], [], []>} : vector<32x64xbf16>, vector<64x64xbf16>, vector<32x64xf32> -> vector<32x64xf32>
    %389 = arith.addf %382, %388 : vector<32x64xf32>
    %c4_263 = arith.constant 4 : index
    %c0_264 = arith.constant 0 : index
    %c0_265 = arith.constant 0 : index
    %390 = vector.load %arg5[%c4_263, %c0_264, %c0_265] : memref<9x32x32xbf16, #tpu.memory_space<vmem>>, vector<1x32x32xbf16>
    %391 = vector.shape_cast %390 : vector<1x32x32xbf16> to vector<32x32xbf16>
    %cst_266 = arith.constant dense<0.000000e+00> : vector<32x64xf32>
    %392 = tpu.matmul %391, %360, %cst_266 {dimension_numbers = #tpu.dot_dimension_numbers<[1], [0], [0], [1], [0, 0, 1, 1], [], []>} : vector<32x32xbf16>, vector<32x64xbf16>, vector<32x64xf32> -> vector<32x64xf32>
    %393 = arith.truncf %392 : vector<32x64xf32> to vector<32x64xbf16>
    %394 = vector.extract_strided_slice %359 {offsets = [256, 0], sizes = [64, 64], strides = [1, 1]} : vector<576x64xbf16> to vector<64x64xbf16>
    %cst_267 = arith.constant dense<0.000000e+00> : vector<32x64xf32>
    %395 = tpu.matmul %393, %394, %cst_267 {dimension_numbers = #tpu.dot_dimension_numbers<[1], [0], [0], [1], [0, 0, 1, 1], [], []>} : vector<32x64xbf16>, vector<64x64xbf16>, vector<32x64xf32> -> vector<32x64xf32>
    %396 = arith.addf %389, %395 : vector<32x64xf32>
    %c5_268 = arith.constant 5 : index
    %c0_269 = arith.constant 0 : index
    %c0_270 = arith.constant 0 : index
    %397 = vector.load %arg5[%c5_268, %c0_269, %c0_270] : memref<9x32x32xbf16, #tpu.memory_space<vmem>>, vector<1x32x32xbf16>
    %398 = vector.shape_cast %397 : vector<1x32x32xbf16> to vector<32x32xbf16>
    %cst_271 = arith.constant dense<0.000000e+00> : vector<32x64xf32>
    %399 = tpu.matmul %398, %360, %cst_271 {dimension_numbers = #tpu.dot_dimension_numbers<[1], [0], [0], [1], [0, 0, 1, 1], [], []>} : vector<32x32xbf16>, vector<32x64xbf16>, vector<32x64xf32> -> vector<32x64xf32>
    %400 = arith.truncf %399 : vector<32x64xf32> to vector<32x64xbf16>
    %401 = vector.extract_strided_slice %359 {offsets = [320, 0], sizes = [64, 64], strides = [1, 1]} : vector<576x64xbf16> to vector<64x64xbf16>
    %cst_272 = arith.constant dense<0.000000e+00> : vector<32x64xf32>
    %402 = tpu.matmul %400, %401, %cst_272 {dimension_numbers = #tpu.dot_dimension_numbers<[1], [0], [0], [1], [0, 0, 1, 1], [], []>} : vector<32x64xbf16>, vector<64x64xbf16>, vector<32x64xf32> -> vector<32x64xf32>
    %403 = arith.addf %396, %402 : vector<32x64xf32>
    %c6_273 = arith.constant 6 : index
    %c0_274 = arith.constant 0 : index
    %c0_275 = arith.constant 0 : index
    %404 = vector.load %arg5[%c6_273, %c0_274, %c0_275] : memref<9x32x32xbf16, #tpu.memory_space<vmem>>, vector<1x32x32xbf16>
    %405 = vector.shape_cast %404 : vector<1x32x32xbf16> to vector<32x32xbf16>
    %cst_276 = arith.constant dense<0.000000e+00> : vector<32x64xf32>
    %406 = tpu.matmul %405, %360, %cst_276 {dimension_numbers = #tpu.dot_dimension_numbers<[1], [0], [0], [1], [0, 0, 1, 1], [], []>} : vector<32x32xbf16>, vector<32x64xbf16>, vector<32x64xf32> -> vector<32x64xf32>
    %407 = arith.truncf %406 : vector<32x64xf32> to vector<32x64xbf16>
    %408 = vector.extract_strided_slice %359 {offsets = [384, 0], sizes = [64, 64], strides = [1, 1]} : vector<576x64xbf16> to vector<64x64xbf16>
    %cst_277 = arith.constant dense<0.000000e+00> : vector<32x64xf32>
    %409 = tpu.matmul %407, %408, %cst_277 {dimension_numbers = #tpu.dot_dimension_numbers<[1], [0], [0], [1], [0, 0, 1, 1], [], []>} : vector<32x64xbf16>, vector<64x64xbf16>, vector<32x64xf32> -> vector<32x64xf32>
    %410 = arith.addf %403, %409 : vector<32x64xf32>
    %c7_278 = arith.constant 7 : index
    %c0_279 = arith.constant 0 : index
    %c0_280 = arith.constant 0 : index
    %411 = vector.load %arg5[%c7_278, %c0_279, %c0_280] : memref<9x32x32xbf16, #tpu.memory_space<vmem>>, vector<1x32x32xbf16>
    %412 = vector.shape_cast %411 : vector<1x32x32xbf16> to vector<32x32xbf16>
    %cst_281 = arith.constant dense<0.000000e+00> : vector<32x64xf32>
    %413 = tpu.matmul %412, %360, %cst_281 {dimension_numbers = #tpu.dot_dimension_numbers<[1], [0], [0], [1], [0, 0, 1, 1], [], []>} : vector<32x32xbf16>, vector<32x64xbf16>, vector<32x64xf32> -> vector<32x64xf32>
    %414 = arith.truncf %413 : vector<32x64xf32> to vector<32x64xbf16>
    %415 = vector.extract_strided_slice %359 {offsets = [448, 0], sizes = [64, 64], strides = [1, 1]} : vector<576x64xbf16> to vector<64x64xbf16>
    %cst_282 = arith.constant dense<0.000000e+00> : vector<32x64xf32>
    %416 = tpu.matmul %414, %415, %cst_282 {dimension_numbers = #tpu.dot_dimension_numbers<[1], [0], [0], [1], [0, 0, 1, 1], [], []>} : vector<32x64xbf16>, vector<64x64xbf16>, vector<32x64xf32> -> vector<32x64xf32>
    %417 = arith.addf %410, %416 : vector<32x64xf32>
    %c8_283 = arith.constant 8 : index
    %c0_284 = arith.constant 0 : index
    %c0_285 = arith.constant 0 : index
    %418 = vector.load %arg5[%c8_283, %c0_284, %c0_285] : memref<9x32x32xbf16, #tpu.memory_space<vmem>>, vector<1x32x32xbf16>
    %419 = vector.shape_cast %418 : vector<1x32x32xbf16> to vector<32x32xbf16>
    %cst_286 = arith.constant dense<0.000000e+00> : vector<32x64xf32>
    %420 = tpu.matmul %419, %360, %cst_286 {dimension_numbers = #tpu.dot_dimension_numbers<[1], [0], [0], [1], [0, 0, 1, 1], [], []>} : vector<32x32xbf16>, vector<32x64xbf16>, vector<32x64xf32> -> vector<32x64xf32>
    %421 = arith.truncf %420 : vector<32x64xf32> to vector<32x64xbf16>
    %422 = vector.extract_strided_slice %359 {offsets = [512, 0], sizes = [64, 64], strides = [1, 1]} : vector<576x64xbf16> to vector<64x64xbf16>
    %cst_287 = arith.constant dense<0.000000e+00> : vector<32x64xf32>
    %423 = tpu.matmul %421, %422, %cst_287 {dimension_numbers = #tpu.dot_dimension_numbers<[1], [0], [0], [1], [0, 0, 1, 1], [], []>} : vector<32x64xbf16>, vector<64x64xbf16>, vector<32x64xf32> -> vector<32x64xf32>
    %424 = arith.addf %417, %423 : vector<32x64xf32>
    %c2_288 = arith.constant 2 : index
    %c0_289 = arith.constant 0 : index
    %c0_290 = arith.constant 0 : index
    %425 = vector.load %arg8[%c2_288, %c0_289, %c0_290] : memref<4x1x64xf32, #tpu.memory_space<vmem>>, vector<1x1x64xf32>
    %426 = vector.shape_cast %425 : vector<1x1x64xf32> to vector<1x64xf32>
    %c2_291 = arith.constant 2 : index
    %c0_292 = arith.constant 0 : index
    %c0_293 = arith.constant 0 : index
    %427 = vector.load %arg9[%c2_291, %c0_292, %c0_293] : memref<4x1x64xf32, #tpu.memory_space<vmem>>, vector<1x1x64xf32>
    %428 = vector.shape_cast %427 : vector<1x1x64xf32> to vector<1x64xf32>
    %cst_294 = arith.constant dense<0.000000e+00> : vector<32x64xf32>
    %429 = tpu.matmul %0, %424, %cst_294 {dimension_numbers = #tpu.dot_dimension_numbers<[1], [0], [0], [1], [0, 0, 1, 1], [], []>} : vector<32x32xf32>, vector<32x64xf32>, vector<32x64xf32> -> vector<32x64xf32>
    %430 = arith.subf %424, %429 : vector<32x64xf32>
    %431 = arith.mulf %430, %430 : vector<32x64xf32>
    %cst_295 = arith.constant dense<0.000000e+00> : vector<32x64xf32>
    %432 = tpu.matmul %0, %431, %cst_295 {dimension_numbers = #tpu.dot_dimension_numbers<[1], [0], [0], [1], [0, 0, 1, 1], [], []>} : vector<32x32xf32>, vector<32x64xf32>, vector<32x64xf32> -> vector<32x64xf32>
    %cst_296 = arith.constant 9.99999974E-6 : f32
    %433 = vector.broadcast %cst_296 : f32 to vector<32x64xf32>
    %434 = arith.addf %432, %433 : vector<32x64xf32>
    %435 = math.rsqrt %434 : vector<32x64xf32>
    %436 = arith.mulf %430, %435 : vector<32x64xf32>
    %437 = vector.broadcast %426 : vector<1x64xf32> to vector<32x64xf32>
    %438 = arith.mulf %436, %437 : vector<32x64xf32>
    %439 = vector.broadcast %428 : vector<1x64xf32> to vector<32x64xf32>
    %440 = arith.addf %438, %439 : vector<32x64xf32>
    %cst_297 = arith.constant 0.000000e+00 : f32
    %441 = vector.broadcast %cst_297 : f32 to vector<32x64xf32>
    %442 = arith.maximumf %440, %441 : vector<32x64xf32>
    %c2_298 = arith.constant 2 : index
    %c0_299 = arith.constant 0 : index
    %c0_300 = arith.constant 0 : index
    %443 = vector.load %arg10[%c2_298, %c0_299, %c0_300] : memref<4x576x64xbf16, #tpu.memory_space<vmem>>, vector<1x576x64xbf16>
    %444 = vector.shape_cast %443 : vector<1x576x64xbf16> to vector<576x64xbf16>
    %445 = arith.truncf %442 : vector<32x64xf32> to vector<32x64xbf16>
    %cst_301 = arith.constant 0.000000e+00 : f32
    %446 = vector.broadcast %cst_301 : f32 to vector<32x64xf32>
    %c0_302 = arith.constant 0 : index
    %c0_303 = arith.constant 0 : index
    %c0_304 = arith.constant 0 : index
    %447 = vector.load %arg5[%c0_302, %c0_303, %c0_304] : memref<9x32x32xbf16, #tpu.memory_space<vmem>>, vector<1x32x32xbf16>
    %448 = vector.shape_cast %447 : vector<1x32x32xbf16> to vector<32x32xbf16>
    %cst_305 = arith.constant dense<0.000000e+00> : vector<32x64xf32>
    %449 = tpu.matmul %448, %445, %cst_305 {dimension_numbers = #tpu.dot_dimension_numbers<[1], [0], [0], [1], [0, 0, 1, 1], [], []>} : vector<32x32xbf16>, vector<32x64xbf16>, vector<32x64xf32> -> vector<32x64xf32>
    %450 = arith.truncf %449 : vector<32x64xf32> to vector<32x64xbf16>
    %451 = vector.extract_strided_slice %444 {offsets = [0, 0], sizes = [64, 64], strides = [1, 1]} : vector<576x64xbf16> to vector<64x64xbf16>
    %cst_306 = arith.constant dense<0.000000e+00> : vector<32x64xf32>
    %452 = tpu.matmul %450, %451, %cst_306 {dimension_numbers = #tpu.dot_dimension_numbers<[1], [0], [0], [1], [0, 0, 1, 1], [], []>} : vector<32x64xbf16>, vector<64x64xbf16>, vector<32x64xf32> -> vector<32x64xf32>
    %453 = arith.addf %446, %452 : vector<32x64xf32>
    %c1_307 = arith.constant 1 : index
    %c0_308 = arith.constant 0 : index
    %c0_309 = arith.constant 0 : index
    %454 = vector.load %arg5[%c1_307, %c0_308, %c0_309] : memref<9x32x32xbf16, #tpu.memory_space<vmem>>, vector<1x32x32xbf16>
    %455 = vector.shape_cast %454 : vector<1x32x32xbf16> to vector<32x32xbf16>
    %cst_310 = arith.constant dense<0.000000e+00> : vector<32x64xf32>
    %456 = tpu.matmul %455, %445, %cst_310 {dimension_numbers = #tpu.dot_dimension_numbers<[1], [0], [0], [1], [0, 0, 1, 1], [], []>} : vector<32x32xbf16>, vector<32x64xbf16>, vector<32x64xf32> -> vector<32x64xf32>
    %457 = arith.truncf %456 : vector<32x64xf32> to vector<32x64xbf16>
    %458 = vector.extract_strided_slice %444 {offsets = [64, 0], sizes = [64, 64], strides = [1, 1]} : vector<576x64xbf16> to vector<64x64xbf16>
    %cst_311 = arith.constant dense<0.000000e+00> : vector<32x64xf32>
    %459 = tpu.matmul %457, %458, %cst_311 {dimension_numbers = #tpu.dot_dimension_numbers<[1], [0], [0], [1], [0, 0, 1, 1], [], []>} : vector<32x64xbf16>, vector<64x64xbf16>, vector<32x64xf32> -> vector<32x64xf32>
    %460 = arith.addf %453, %459 : vector<32x64xf32>
    %c2_312 = arith.constant 2 : index
    %c0_313 = arith.constant 0 : index
    %c0_314 = arith.constant 0 : index
    %461 = vector.load %arg5[%c2_312, %c0_313, %c0_314] : memref<9x32x32xbf16, #tpu.memory_space<vmem>>, vector<1x32x32xbf16>
    %462 = vector.shape_cast %461 : vector<1x32x32xbf16> to vector<32x32xbf16>
    %cst_315 = arith.constant dense<0.000000e+00> : vector<32x64xf32>
    %463 = tpu.matmul %462, %445, %cst_315 {dimension_numbers = #tpu.dot_dimension_numbers<[1], [0], [0], [1], [0, 0, 1, 1], [], []>} : vector<32x32xbf16>, vector<32x64xbf16>, vector<32x64xf32> -> vector<32x64xf32>
    %464 = arith.truncf %463 : vector<32x64xf32> to vector<32x64xbf16>
    %465 = vector.extract_strided_slice %444 {offsets = [128, 0], sizes = [64, 64], strides = [1, 1]} : vector<576x64xbf16> to vector<64x64xbf16>
    %cst_316 = arith.constant dense<0.000000e+00> : vector<32x64xf32>
    %466 = tpu.matmul %464, %465, %cst_316 {dimension_numbers = #tpu.dot_dimension_numbers<[1], [0], [0], [1], [0, 0, 1, 1], [], []>} : vector<32x64xbf16>, vector<64x64xbf16>, vector<32x64xf32> -> vector<32x64xf32>
    %467 = arith.addf %460, %466 : vector<32x64xf32>
    %c3_317 = arith.constant 3 : index
    %c0_318 = arith.constant 0 : index
    %c0_319 = arith.constant 0 : index
    %468 = vector.load %arg5[%c3_317, %c0_318, %c0_319] : memref<9x32x32xbf16, #tpu.memory_space<vmem>>, vector<1x32x32xbf16>
    %469 = vector.shape_cast %468 : vector<1x32x32xbf16> to vector<32x32xbf16>
    %cst_320 = arith.constant dense<0.000000e+00> : vector<32x64xf32>
    %470 = tpu.matmul %469, %445, %cst_320 {dimension_numbers = #tpu.dot_dimension_numbers<[1], [0], [0], [1], [0, 0, 1, 1], [], []>} : vector<32x32xbf16>, vector<32x64xbf16>, vector<32x64xf32> -> vector<32x64xf32>
    %471 = arith.truncf %470 : vector<32x64xf32> to vector<32x64xbf16>
    %472 = vector.extract_strided_slice %444 {offsets = [192, 0], sizes = [64, 64], strides = [1, 1]} : vector<576x64xbf16> to vector<64x64xbf16>
    %cst_321 = arith.constant dense<0.000000e+00> : vector<32x64xf32>
    %473 = tpu.matmul %471, %472, %cst_321 {dimension_numbers = #tpu.dot_dimension_numbers<[1], [0], [0], [1], [0, 0, 1, 1], [], []>} : vector<32x64xbf16>, vector<64x64xbf16>, vector<32x64xf32> -> vector<32x64xf32>
    %474 = arith.addf %467, %473 : vector<32x64xf32>
    %c4_322 = arith.constant 4 : index
    %c0_323 = arith.constant 0 : index
    %c0_324 = arith.constant 0 : index
    %475 = vector.load %arg5[%c4_322, %c0_323, %c0_324] : memref<9x32x32xbf16, #tpu.memory_space<vmem>>, vector<1x32x32xbf16>
    %476 = vector.shape_cast %475 : vector<1x32x32xbf16> to vector<32x32xbf16>
    %cst_325 = arith.constant dense<0.000000e+00> : vector<32x64xf32>
    %477 = tpu.matmul %476, %445, %cst_325 {dimension_numbers = #tpu.dot_dimension_numbers<[1], [0], [0], [1], [0, 0, 1, 1], [], []>} : vector<32x32xbf16>, vector<32x64xbf16>, vector<32x64xf32> -> vector<32x64xf32>
    %478 = arith.truncf %477 : vector<32x64xf32> to vector<32x64xbf16>
    %479 = vector.extract_strided_slice %444 {offsets = [256, 0], sizes = [64, 64], strides = [1, 1]} : vector<576x64xbf16> to vector<64x64xbf16>
    %cst_326 = arith.constant dense<0.000000e+00> : vector<32x64xf32>
    %480 = tpu.matmul %478, %479, %cst_326 {dimension_numbers = #tpu.dot_dimension_numbers<[1], [0], [0], [1], [0, 0, 1, 1], [], []>} : vector<32x64xbf16>, vector<64x64xbf16>, vector<32x64xf32> -> vector<32x64xf32>
    %481 = arith.addf %474, %480 : vector<32x64xf32>
    %c5_327 = arith.constant 5 : index
    %c0_328 = arith.constant 0 : index
    %c0_329 = arith.constant 0 : index
    %482 = vector.load %arg5[%c5_327, %c0_328, %c0_329] : memref<9x32x32xbf16, #tpu.memory_space<vmem>>, vector<1x32x32xbf16>
    %483 = vector.shape_cast %482 : vector<1x32x32xbf16> to vector<32x32xbf16>
    %cst_330 = arith.constant dense<0.000000e+00> : vector<32x64xf32>
    %484 = tpu.matmul %483, %445, %cst_330 {dimension_numbers = #tpu.dot_dimension_numbers<[1], [0], [0], [1], [0, 0, 1, 1], [], []>} : vector<32x32xbf16>, vector<32x64xbf16>, vector<32x64xf32> -> vector<32x64xf32>
    %485 = arith.truncf %484 : vector<32x64xf32> to vector<32x64xbf16>
    %486 = vector.extract_strided_slice %444 {offsets = [320, 0], sizes = [64, 64], strides = [1, 1]} : vector<576x64xbf16> to vector<64x64xbf16>
    %cst_331 = arith.constant dense<0.000000e+00> : vector<32x64xf32>
    %487 = tpu.matmul %485, %486, %cst_331 {dimension_numbers = #tpu.dot_dimension_numbers<[1], [0], [0], [1], [0, 0, 1, 1], [], []>} : vector<32x64xbf16>, vector<64x64xbf16>, vector<32x64xf32> -> vector<32x64xf32>
    %488 = arith.addf %481, %487 : vector<32x64xf32>
    %c6_332 = arith.constant 6 : index
    %c0_333 = arith.constant 0 : index
    %c0_334 = arith.constant 0 : index
    %489 = vector.load %arg5[%c6_332, %c0_333, %c0_334] : memref<9x32x32xbf16, #tpu.memory_space<vmem>>, vector<1x32x32xbf16>
    %490 = vector.shape_cast %489 : vector<1x32x32xbf16> to vector<32x32xbf16>
    %cst_335 = arith.constant dense<0.000000e+00> : vector<32x64xf32>
    %491 = tpu.matmul %490, %445, %cst_335 {dimension_numbers = #tpu.dot_dimension_numbers<[1], [0], [0], [1], [0, 0, 1, 1], [], []>} : vector<32x32xbf16>, vector<32x64xbf16>, vector<32x64xf32> -> vector<32x64xf32>
    %492 = arith.truncf %491 : vector<32x64xf32> to vector<32x64xbf16>
    %493 = vector.extract_strided_slice %444 {offsets = [384, 0], sizes = [64, 64], strides = [1, 1]} : vector<576x64xbf16> to vector<64x64xbf16>
    %cst_336 = arith.constant dense<0.000000e+00> : vector<32x64xf32>
    %494 = tpu.matmul %492, %493, %cst_336 {dimension_numbers = #tpu.dot_dimension_numbers<[1], [0], [0], [1], [0, 0, 1, 1], [], []>} : vector<32x64xbf16>, vector<64x64xbf16>, vector<32x64xf32> -> vector<32x64xf32>
    %495 = arith.addf %488, %494 : vector<32x64xf32>
    %c7_337 = arith.constant 7 : index
    %c0_338 = arith.constant 0 : index
    %c0_339 = arith.constant 0 : index
    %496 = vector.load %arg5[%c7_337, %c0_338, %c0_339] : memref<9x32x32xbf16, #tpu.memory_space<vmem>>, vector<1x32x32xbf16>
    %497 = vector.shape_cast %496 : vector<1x32x32xbf16> to vector<32x32xbf16>
    %cst_340 = arith.constant dense<0.000000e+00> : vector<32x64xf32>
    %498 = tpu.matmul %497, %445, %cst_340 {dimension_numbers = #tpu.dot_dimension_numbers<[1], [0], [0], [1], [0, 0, 1, 1], [], []>} : vector<32x32xbf16>, vector<32x64xbf16>, vector<32x64xf32> -> vector<32x64xf32>
    %499 = arith.truncf %498 : vector<32x64xf32> to vector<32x64xbf16>
    %500 = vector.extract_strided_slice %444 {offsets = [448, 0], sizes = [64, 64], strides = [1, 1]} : vector<576x64xbf16> to vector<64x64xbf16>
    %cst_341 = arith.constant dense<0.000000e+00> : vector<32x64xf32>
    %501 = tpu.matmul %499, %500, %cst_341 {dimension_numbers = #tpu.dot_dimension_numbers<[1], [0], [0], [1], [0, 0, 1, 1], [], []>} : vector<32x64xbf16>, vector<64x64xbf16>, vector<32x64xf32> -> vector<32x64xf32>
    %502 = arith.addf %495, %501 : vector<32x64xf32>
    %c8_342 = arith.constant 8 : index
    %c0_343 = arith.constant 0 : index
    %c0_344 = arith.constant 0 : index
    %503 = vector.load %arg5[%c8_342, %c0_343, %c0_344] : memref<9x32x32xbf16, #tpu.memory_space<vmem>>, vector<1x32x32xbf16>
    %504 = vector.shape_cast %503 : vector<1x32x32xbf16> to vector<32x32xbf16>
    %cst_345 = arith.constant dense<0.000000e+00> : vector<32x64xf32>
    %505 = tpu.matmul %504, %445, %cst_345 {dimension_numbers = #tpu.dot_dimension_numbers<[1], [0], [0], [1], [0, 0, 1, 1], [], []>} : vector<32x32xbf16>, vector<32x64xbf16>, vector<32x64xf32> -> vector<32x64xf32>
    %506 = arith.truncf %505 : vector<32x64xf32> to vector<32x64xbf16>
    %507 = vector.extract_strided_slice %444 {offsets = [512, 0], sizes = [64, 64], strides = [1, 1]} : vector<576x64xbf16> to vector<64x64xbf16>
    %cst_346 = arith.constant dense<0.000000e+00> : vector<32x64xf32>
    %508 = tpu.matmul %506, %507, %cst_346 {dimension_numbers = #tpu.dot_dimension_numbers<[1], [0], [0], [1], [0, 0, 1, 1], [], []>} : vector<32x64xbf16>, vector<64x64xbf16>, vector<32x64xf32> -> vector<32x64xf32>
    %509 = arith.addf %502, %508 : vector<32x64xf32>
    %c2_347 = arith.constant 2 : index
    %c0_348 = arith.constant 0 : index
    %c0_349 = arith.constant 0 : index
    %510 = vector.load %arg11[%c2_347, %c0_348, %c0_349] : memref<4x1x64xf32, #tpu.memory_space<vmem>>, vector<1x1x64xf32>
    %511 = vector.shape_cast %510 : vector<1x1x64xf32> to vector<1x64xf32>
    %c2_350 = arith.constant 2 : index
    %c0_351 = arith.constant 0 : index
    %c0_352 = arith.constant 0 : index
    %512 = vector.load %arg12[%c2_350, %c0_351, %c0_352] : memref<4x1x64xf32, #tpu.memory_space<vmem>>, vector<1x1x64xf32>
    %513 = vector.shape_cast %512 : vector<1x1x64xf32> to vector<1x64xf32>
    %cst_353 = arith.constant dense<0.000000e+00> : vector<32x64xf32>
    %514 = tpu.matmul %0, %509, %cst_353 {dimension_numbers = #tpu.dot_dimension_numbers<[1], [0], [0], [1], [0, 0, 1, 1], [], []>} : vector<32x32xf32>, vector<32x64xf32>, vector<32x64xf32> -> vector<32x64xf32>
    %515 = arith.subf %509, %514 : vector<32x64xf32>
    %516 = arith.mulf %515, %515 : vector<32x64xf32>
    %cst_354 = arith.constant dense<0.000000e+00> : vector<32x64xf32>
    %517 = tpu.matmul %0, %516, %cst_354 {dimension_numbers = #tpu.dot_dimension_numbers<[1], [0], [0], [1], [0, 0, 1, 1], [], []>} : vector<32x32xf32>, vector<32x64xf32>, vector<32x64xf32> -> vector<32x64xf32>
    %cst_355 = arith.constant 9.99999974E-6 : f32
    %518 = vector.broadcast %cst_355 : f32 to vector<32x64xf32>
    %519 = arith.addf %517, %518 : vector<32x64xf32>
    %520 = math.rsqrt %519 : vector<32x64xf32>
    %521 = arith.mulf %515, %520 : vector<32x64xf32>
    %522 = vector.broadcast %511 : vector<1x64xf32> to vector<32x64xf32>
    %523 = arith.mulf %521, %522 : vector<32x64xf32>
    %524 = vector.broadcast %513 : vector<1x64xf32> to vector<32x64xf32>
    %525 = arith.addf %523, %524 : vector<32x64xf32>
    %526 = arith.addf %357, %525 : vector<32x64xf32>
    %c3_356 = arith.constant 3 : index
    %c0_357 = arith.constant 0 : index
    %c0_358 = arith.constant 0 : index
    %527 = vector.load %arg7[%c3_356, %c0_357, %c0_358] : memref<4x576x64xbf16, #tpu.memory_space<vmem>>, vector<1x576x64xbf16>
    %528 = vector.shape_cast %527 : vector<1x576x64xbf16> to vector<576x64xbf16>
    %529 = arith.truncf %526 : vector<32x64xf32> to vector<32x64xbf16>
    %cst_359 = arith.constant 0.000000e+00 : f32
    %530 = vector.broadcast %cst_359 : f32 to vector<32x64xf32>
    %c0_360 = arith.constant 0 : index
    %c0_361 = arith.constant 0 : index
    %c0_362 = arith.constant 0 : index
    %531 = vector.load %arg5[%c0_360, %c0_361, %c0_362] : memref<9x32x32xbf16, #tpu.memory_space<vmem>>, vector<1x32x32xbf16>
    %532 = vector.shape_cast %531 : vector<1x32x32xbf16> to vector<32x32xbf16>
    %cst_363 = arith.constant dense<0.000000e+00> : vector<32x64xf32>
    %533 = tpu.matmul %532, %529, %cst_363 {dimension_numbers = #tpu.dot_dimension_numbers<[1], [0], [0], [1], [0, 0, 1, 1], [], []>} : vector<32x32xbf16>, vector<32x64xbf16>, vector<32x64xf32> -> vector<32x64xf32>
    %534 = arith.truncf %533 : vector<32x64xf32> to vector<32x64xbf16>
    %535 = vector.extract_strided_slice %528 {offsets = [0, 0], sizes = [64, 64], strides = [1, 1]} : vector<576x64xbf16> to vector<64x64xbf16>
    %cst_364 = arith.constant dense<0.000000e+00> : vector<32x64xf32>
    %536 = tpu.matmul %534, %535, %cst_364 {dimension_numbers = #tpu.dot_dimension_numbers<[1], [0], [0], [1], [0, 0, 1, 1], [], []>} : vector<32x64xbf16>, vector<64x64xbf16>, vector<32x64xf32> -> vector<32x64xf32>
    %537 = arith.addf %530, %536 : vector<32x64xf32>
    %c1_365 = arith.constant 1 : index
    %c0_366 = arith.constant 0 : index
    %c0_367 = arith.constant 0 : index
    %538 = vector.load %arg5[%c1_365, %c0_366, %c0_367] : memref<9x32x32xbf16, #tpu.memory_space<vmem>>, vector<1x32x32xbf16>
    %539 = vector.shape_cast %538 : vector<1x32x32xbf16> to vector<32x32xbf16>
    %cst_368 = arith.constant dense<0.000000e+00> : vector<32x64xf32>
    %540 = tpu.matmul %539, %529, %cst_368 {dimension_numbers = #tpu.dot_dimension_numbers<[1], [0], [0], [1], [0, 0, 1, 1], [], []>} : vector<32x32xbf16>, vector<32x64xbf16>, vector<32x64xf32> -> vector<32x64xf32>
    %541 = arith.truncf %540 : vector<32x64xf32> to vector<32x64xbf16>
    %542 = vector.extract_strided_slice %528 {offsets = [64, 0], sizes = [64, 64], strides = [1, 1]} : vector<576x64xbf16> to vector<64x64xbf16>
    %cst_369 = arith.constant dense<0.000000e+00> : vector<32x64xf32>
    %543 = tpu.matmul %541, %542, %cst_369 {dimension_numbers = #tpu.dot_dimension_numbers<[1], [0], [0], [1], [0, 0, 1, 1], [], []>} : vector<32x64xbf16>, vector<64x64xbf16>, vector<32x64xf32> -> vector<32x64xf32>
    %544 = arith.addf %537, %543 : vector<32x64xf32>
    %c2_370 = arith.constant 2 : index
    %c0_371 = arith.constant 0 : index
    %c0_372 = arith.constant 0 : index
    %545 = vector.load %arg5[%c2_370, %c0_371, %c0_372] : memref<9x32x32xbf16, #tpu.memory_space<vmem>>, vector<1x32x32xbf16>
    %546 = vector.shape_cast %545 : vector<1x32x32xbf16> to vector<32x32xbf16>
    %cst_373 = arith.constant dense<0.000000e+00> : vector<32x64xf32>
    %547 = tpu.matmul %546, %529, %cst_373 {dimension_numbers = #tpu.dot_dimension_numbers<[1], [0], [0], [1], [0, 0, 1, 1], [], []>} : vector<32x32xbf16>, vector<32x64xbf16>, vector<32x64xf32> -> vector<32x64xf32>
    %548 = arith.truncf %547 : vector<32x64xf32> to vector<32x64xbf16>
    %549 = vector.extract_strided_slice %528 {offsets = [128, 0], sizes = [64, 64], strides = [1, 1]} : vector<576x64xbf16> to vector<64x64xbf16>
    %cst_374 = arith.constant dense<0.000000e+00> : vector<32x64xf32>
    %550 = tpu.matmul %548, %549, %cst_374 {dimension_numbers = #tpu.dot_dimension_numbers<[1], [0], [0], [1], [0, 0, 1, 1], [], []>} : vector<32x64xbf16>, vector<64x64xbf16>, vector<32x64xf32> -> vector<32x64xf32>
    %551 = arith.addf %544, %550 : vector<32x64xf32>
    %c3_375 = arith.constant 3 : index
    %c0_376 = arith.constant 0 : index
    %c0_377 = arith.constant 0 : index
    %552 = vector.load %arg5[%c3_375, %c0_376, %c0_377] : memref<9x32x32xbf16, #tpu.memory_space<vmem>>, vector<1x32x32xbf16>
    %553 = vector.shape_cast %552 : vector<1x32x32xbf16> to vector<32x32xbf16>
    %cst_378 = arith.constant dense<0.000000e+00> : vector<32x64xf32>
    %554 = tpu.matmul %553, %529, %cst_378 {dimension_numbers = #tpu.dot_dimension_numbers<[1], [0], [0], [1], [0, 0, 1, 1], [], []>} : vector<32x32xbf16>, vector<32x64xbf16>, vector<32x64xf32> -> vector<32x64xf32>
    %555 = arith.truncf %554 : vector<32x64xf32> to vector<32x64xbf16>
    %556 = vector.extract_strided_slice %528 {offsets = [192, 0], sizes = [64, 64], strides = [1, 1]} : vector<576x64xbf16> to vector<64x64xbf16>
    %cst_379 = arith.constant dense<0.000000e+00> : vector<32x64xf32>
    %557 = tpu.matmul %555, %556, %cst_379 {dimension_numbers = #tpu.dot_dimension_numbers<[1], [0], [0], [1], [0, 0, 1, 1], [], []>} : vector<32x64xbf16>, vector<64x64xbf16>, vector<32x64xf32> -> vector<32x64xf32>
    %558 = arith.addf %551, %557 : vector<32x64xf32>
    %c4_380 = arith.constant 4 : index
    %c0_381 = arith.constant 0 : index
    %c0_382 = arith.constant 0 : index
    %559 = vector.load %arg5[%c4_380, %c0_381, %c0_382] : memref<9x32x32xbf16, #tpu.memory_space<vmem>>, vector<1x32x32xbf16>
    %560 = vector.shape_cast %559 : vector<1x32x32xbf16> to vector<32x32xbf16>
    %cst_383 = arith.constant dense<0.000000e+00> : vector<32x64xf32>
    %561 = tpu.matmul %560, %529, %cst_383 {dimension_numbers = #tpu.dot_dimension_numbers<[1], [0], [0], [1], [0, 0, 1, 1], [], []>} : vector<32x32xbf16>, vector<32x64xbf16>, vector<32x64xf32> -> vector<32x64xf32>
    %562 = arith.truncf %561 : vector<32x64xf32> to vector<32x64xbf16>
    %563 = vector.extract_strided_slice %528 {offsets = [256, 0], sizes = [64, 64], strides = [1, 1]} : vector<576x64xbf16> to vector<64x64xbf16>
    %cst_384 = arith.constant dense<0.000000e+00> : vector<32x64xf32>
    %564 = tpu.matmul %562, %563, %cst_384 {dimension_numbers = #tpu.dot_dimension_numbers<[1], [0], [0], [1], [0, 0, 1, 1], [], []>} : vector<32x64xbf16>, vector<64x64xbf16>, vector<32x64xf32> -> vector<32x64xf32>
    %565 = arith.addf %558, %564 : vector<32x64xf32>
    %c5_385 = arith.constant 5 : index
    %c0_386 = arith.constant 0 : index
    %c0_387 = arith.constant 0 : index
    %566 = vector.load %arg5[%c5_385, %c0_386, %c0_387] : memref<9x32x32xbf16, #tpu.memory_space<vmem>>, vector<1x32x32xbf16>
    %567 = vector.shape_cast %566 : vector<1x32x32xbf16> to vector<32x32xbf16>
    %cst_388 = arith.constant dense<0.000000e+00> : vector<32x64xf32>
    %568 = tpu.matmul %567, %529, %cst_388 {dimension_numbers = #tpu.dot_dimension_numbers<[1], [0], [0], [1], [0, 0, 1, 1], [], []>} : vector<32x32xbf16>, vector<32x64xbf16>, vector<32x64xf32> -> vector<32x64xf32>
    %569 = arith.truncf %568 : vector<32x64xf32> to vector<32x64xbf16>
    %570 = vector.extract_strided_slice %528 {offsets = [320, 0], sizes = [64, 64], strides = [1, 1]} : vector<576x64xbf16> to vector<64x64xbf16>
    %cst_389 = arith.constant dense<0.000000e+00> : vector<32x64xf32>
    %571 = tpu.matmul %569, %570, %cst_389 {dimension_numbers = #tpu.dot_dimension_numbers<[1], [0], [0], [1], [0, 0, 1, 1], [], []>} : vector<32x64xbf16>, vector<64x64xbf16>, vector<32x64xf32> -> vector<32x64xf32>
    %572 = arith.addf %565, %571 : vector<32x64xf32>
    %c6_390 = arith.constant 6 : index
    %c0_391 = arith.constant 0 : index
    %c0_392 = arith.constant 0 : index
    %573 = vector.load %arg5[%c6_390, %c0_391, %c0_392] : memref<9x32x32xbf16, #tpu.memory_space<vmem>>, vector<1x32x32xbf16>
    %574 = vector.shape_cast %573 : vector<1x32x32xbf16> to vector<32x32xbf16>
    %cst_393 = arith.constant dense<0.000000e+00> : vector<32x64xf32>
    %575 = tpu.matmul %574, %529, %cst_393 {dimension_numbers = #tpu.dot_dimension_numbers<[1], [0], [0], [1], [0, 0, 1, 1], [], []>} : vector<32x32xbf16>, vector<32x64xbf16>, vector<32x64xf32> -> vector<32x64xf32>
    %576 = arith.truncf %575 : vector<32x64xf32> to vector<32x64xbf16>
    %577 = vector.extract_strided_slice %528 {offsets = [384, 0], sizes = [64, 64], strides = [1, 1]} : vector<576x64xbf16> to vector<64x64xbf16>
    %cst_394 = arith.constant dense<0.000000e+00> : vector<32x64xf32>
    %578 = tpu.matmul %576, %577, %cst_394 {dimension_numbers = #tpu.dot_dimension_numbers<[1], [0], [0], [1], [0, 0, 1, 1], [], []>} : vector<32x64xbf16>, vector<64x64xbf16>, vector<32x64xf32> -> vector<32x64xf32>
    %579 = arith.addf %572, %578 : vector<32x64xf32>
    %c7_395 = arith.constant 7 : index
    %c0_396 = arith.constant 0 : index
    %c0_397 = arith.constant 0 : index
    %580 = vector.load %arg5[%c7_395, %c0_396, %c0_397] : memref<9x32x32xbf16, #tpu.memory_space<vmem>>, vector<1x32x32xbf16>
    %581 = vector.shape_cast %580 : vector<1x32x32xbf16> to vector<32x32xbf16>
    %cst_398 = arith.constant dense<0.000000e+00> : vector<32x64xf32>
    %582 = tpu.matmul %581, %529, %cst_398 {dimension_numbers = #tpu.dot_dimension_numbers<[1], [0], [0], [1], [0, 0, 1, 1], [], []>} : vector<32x32xbf16>, vector<32x64xbf16>, vector<32x64xf32> -> vector<32x64xf32>
    %583 = arith.truncf %582 : vector<32x64xf32> to vector<32x64xbf16>
    %584 = vector.extract_strided_slice %528 {offsets = [448, 0], sizes = [64, 64], strides = [1, 1]} : vector<576x64xbf16> to vector<64x64xbf16>
    %cst_399 = arith.constant dense<0.000000e+00> : vector<32x64xf32>
    %585 = tpu.matmul %583, %584, %cst_399 {dimension_numbers = #tpu.dot_dimension_numbers<[1], [0], [0], [1], [0, 0, 1, 1], [], []>} : vector<32x64xbf16>, vector<64x64xbf16>, vector<32x64xf32> -> vector<32x64xf32>
    %586 = arith.addf %579, %585 : vector<32x64xf32>
    %c8_400 = arith.constant 8 : index
    %c0_401 = arith.constant 0 : index
    %c0_402 = arith.constant 0 : index
    %587 = vector.load %arg5[%c8_400, %c0_401, %c0_402] : memref<9x32x32xbf16, #tpu.memory_space<vmem>>, vector<1x32x32xbf16>
    %588 = vector.shape_cast %587 : vector<1x32x32xbf16> to vector<32x32xbf16>
    %cst_403 = arith.constant dense<0.000000e+00> : vector<32x64xf32>
    %589 = tpu.matmul %588, %529, %cst_403 {dimension_numbers = #tpu.dot_dimension_numbers<[1], [0], [0], [1], [0, 0, 1, 1], [], []>} : vector<32x32xbf16>, vector<32x64xbf16>, vector<32x64xf32> -> vector<32x64xf32>
    %590 = arith.truncf %589 : vector<32x64xf32> to vector<32x64xbf16>
    %591 = vector.extract_strided_slice %528 {offsets = [512, 0], sizes = [64, 64], strides = [1, 1]} : vector<576x64xbf16> to vector<64x64xbf16>
    %cst_404 = arith.constant dense<0.000000e+00> : vector<32x64xf32>
    %592 = tpu.matmul %590, %591, %cst_404 {dimension_numbers = #tpu.dot_dimension_numbers<[1], [0], [0], [1], [0, 0, 1, 1], [], []>} : vector<32x64xbf16>, vector<64x64xbf16>, vector<32x64xf32> -> vector<32x64xf32>
    %593 = arith.addf %586, %592 : vector<32x64xf32>
    %c3_405 = arith.constant 3 : index
    %c0_406 = arith.constant 0 : index
    %c0_407 = arith.constant 0 : index
    %594 = vector.load %arg8[%c3_405, %c0_406, %c0_407] : memref<4x1x64xf32, #tpu.memory_space<vmem>>, vector<1x1x64xf32>
    %595 = vector.shape_cast %594 : vector<1x1x64xf32> to vector<1x64xf32>
    %c3_408 = arith.constant 3 : index
    %c0_409 = arith.constant 0 : index
    %c0_410 = arith.constant 0 : index
    %596 = vector.load %arg9[%c3_408, %c0_409, %c0_410] : memref<4x1x64xf32, #tpu.memory_space<vmem>>, vector<1x1x64xf32>
    %597 = vector.shape_cast %596 : vector<1x1x64xf32> to vector<1x64xf32>
    %cst_411 = arith.constant dense<0.000000e+00> : vector<32x64xf32>
    %598 = tpu.matmul %0, %593, %cst_411 {dimension_numbers = #tpu.dot_dimension_numbers<[1], [0], [0], [1], [0, 0, 1, 1], [], []>} : vector<32x32xf32>, vector<32x64xf32>, vector<32x64xf32> -> vector<32x64xf32>
    %599 = arith.subf %593, %598 : vector<32x64xf32>
    %600 = arith.mulf %599, %599 : vector<32x64xf32>
    %cst_412 = arith.constant dense<0.000000e+00> : vector<32x64xf32>
    %601 = tpu.matmul %0, %600, %cst_412 {dimension_numbers = #tpu.dot_dimension_numbers<[1], [0], [0], [1], [0, 0, 1, 1], [], []>} : vector<32x32xf32>, vector<32x64xf32>, vector<32x64xf32> -> vector<32x64xf32>
    %cst_413 = arith.constant 9.99999974E-6 : f32
    %602 = vector.broadcast %cst_413 : f32 to vector<32x64xf32>
    %603 = arith.addf %601, %602 : vector<32x64xf32>
    %604 = math.rsqrt %603 : vector<32x64xf32>
    %605 = arith.mulf %599, %604 : vector<32x64xf32>
    %606 = vector.broadcast %595 : vector<1x64xf32> to vector<32x64xf32>
    %607 = arith.mulf %605, %606 : vector<32x64xf32>
    %608 = vector.broadcast %597 : vector<1x64xf32> to vector<32x64xf32>
    %609 = arith.addf %607, %608 : vector<32x64xf32>
    %cst_414 = arith.constant 0.000000e+00 : f32
    %610 = vector.broadcast %cst_414 : f32 to vector<32x64xf32>
    %611 = arith.maximumf %609, %610 : vector<32x64xf32>
    %c3_415 = arith.constant 3 : index
    %c0_416 = arith.constant 0 : index
    %c0_417 = arith.constant 0 : index
    %612 = vector.load %arg10[%c3_415, %c0_416, %c0_417] : memref<4x576x64xbf16, #tpu.memory_space<vmem>>, vector<1x576x64xbf16>
    %613 = vector.shape_cast %612 : vector<1x576x64xbf16> to vector<576x64xbf16>
    %614 = arith.truncf %611 : vector<32x64xf32> to vector<32x64xbf16>
    %cst_418 = arith.constant 0.000000e+00 : f32
    %615 = vector.broadcast %cst_418 : f32 to vector<32x64xf32>
    %c0_419 = arith.constant 0 : index
    %c0_420 = arith.constant 0 : index
    %c0_421 = arith.constant 0 : index
    %616 = vector.load %arg5[%c0_419, %c0_420, %c0_421] : memref<9x32x32xbf16, #tpu.memory_space<vmem>>, vector<1x32x32xbf16>
    %617 = vector.shape_cast %616 : vector<1x32x32xbf16> to vector<32x32xbf16>
    %cst_422 = arith.constant dense<0.000000e+00> : vector<32x64xf32>
    %618 = tpu.matmul %617, %614, %cst_422 {dimension_numbers = #tpu.dot_dimension_numbers<[1], [0], [0], [1], [0, 0, 1, 1], [], []>} : vector<32x32xbf16>, vector<32x64xbf16>, vector<32x64xf32> -> vector<32x64xf32>
    %619 = arith.truncf %618 : vector<32x64xf32> to vector<32x64xbf16>
    %620 = vector.extract_strided_slice %613 {offsets = [0, 0], sizes = [64, 64], strides = [1, 1]} : vector<576x64xbf16> to vector<64x64xbf16>
    %cst_423 = arith.constant dense<0.000000e+00> : vector<32x64xf32>
    %621 = tpu.matmul %619, %620, %cst_423 {dimension_numbers = #tpu.dot_dimension_numbers<[1], [0], [0], [1], [0, 0, 1, 1], [], []>} : vector<32x64xbf16>, vector<64x64xbf16>, vector<32x64xf32> -> vector<32x64xf32>
    %622 = arith.addf %615, %621 : vector<32x64xf32>
    %c1_424 = arith.constant 1 : index
    %c0_425 = arith.constant 0 : index
    %c0_426 = arith.constant 0 : index
    %623 = vector.load %arg5[%c1_424, %c0_425, %c0_426] : memref<9x32x32xbf16, #tpu.memory_space<vmem>>, vector<1x32x32xbf16>
    %624 = vector.shape_cast %623 : vector<1x32x32xbf16> to vector<32x32xbf16>
    %cst_427 = arith.constant dense<0.000000e+00> : vector<32x64xf32>
    %625 = tpu.matmul %624, %614, %cst_427 {dimension_numbers = #tpu.dot_dimension_numbers<[1], [0], [0], [1], [0, 0, 1, 1], [], []>} : vector<32x32xbf16>, vector<32x64xbf16>, vector<32x64xf32> -> vector<32x64xf32>
    %626 = arith.truncf %625 : vector<32x64xf32> to vector<32x64xbf16>
    %627 = vector.extract_strided_slice %613 {offsets = [64, 0], sizes = [64, 64], strides = [1, 1]} : vector<576x64xbf16> to vector<64x64xbf16>
    %cst_428 = arith.constant dense<0.000000e+00> : vector<32x64xf32>
    %628 = tpu.matmul %626, %627, %cst_428 {dimension_numbers = #tpu.dot_dimension_numbers<[1], [0], [0], [1], [0, 0, 1, 1], [], []>} : vector<32x64xbf16>, vector<64x64xbf16>, vector<32x64xf32> -> vector<32x64xf32>
    %629 = arith.addf %622, %628 : vector<32x64xf32>
    %c2_429 = arith.constant 2 : index
    %c0_430 = arith.constant 0 : index
    %c0_431 = arith.constant 0 : index
    %630 = vector.load %arg5[%c2_429, %c0_430, %c0_431] : memref<9x32x32xbf16, #tpu.memory_space<vmem>>, vector<1x32x32xbf16>
    %631 = vector.shape_cast %630 : vector<1x32x32xbf16> to vector<32x32xbf16>
    %cst_432 = arith.constant dense<0.000000e+00> : vector<32x64xf32>
    %632 = tpu.matmul %631, %614, %cst_432 {dimension_numbers = #tpu.dot_dimension_numbers<[1], [0], [0], [1], [0, 0, 1, 1], [], []>} : vector<32x32xbf16>, vector<32x64xbf16>, vector<32x64xf32> -> vector<32x64xf32>
    %633 = arith.truncf %632 : vector<32x64xf32> to vector<32x64xbf16>
    %634 = vector.extract_strided_slice %613 {offsets = [128, 0], sizes = [64, 64], strides = [1, 1]} : vector<576x64xbf16> to vector<64x64xbf16>
    %cst_433 = arith.constant dense<0.000000e+00> : vector<32x64xf32>
    %635 = tpu.matmul %633, %634, %cst_433 {dimension_numbers = #tpu.dot_dimension_numbers<[1], [0], [0], [1], [0, 0, 1, 1], [], []>} : vector<32x64xbf16>, vector<64x64xbf16>, vector<32x64xf32> -> vector<32x64xf32>
    %636 = arith.addf %629, %635 : vector<32x64xf32>
    %c3_434 = arith.constant 3 : index
    %c0_435 = arith.constant 0 : index
    %c0_436 = arith.constant 0 : index
    %637 = vector.load %arg5[%c3_434, %c0_435, %c0_436] : memref<9x32x32xbf16, #tpu.memory_space<vmem>>, vector<1x32x32xbf16>
    %638 = vector.shape_cast %637 : vector<1x32x32xbf16> to vector<32x32xbf16>
    %cst_437 = arith.constant dense<0.000000e+00> : vector<32x64xf32>
    %639 = tpu.matmul %638, %614, %cst_437 {dimension_numbers = #tpu.dot_dimension_numbers<[1], [0], [0], [1], [0, 0, 1, 1], [], []>} : vector<32x32xbf16>, vector<32x64xbf16>, vector<32x64xf32> -> vector<32x64xf32>
    %640 = arith.truncf %639 : vector<32x64xf32> to vector<32x64xbf16>
    %641 = vector.extract_strided_slice %613 {offsets = [192, 0], sizes = [64, 64], strides = [1, 1]} : vector<576x64xbf16> to vector<64x64xbf16>
    %cst_438 = arith.constant dense<0.000000e+00> : vector<32x64xf32>
    %642 = tpu.matmul %640, %641, %cst_438 {dimension_numbers = #tpu.dot_dimension_numbers<[1], [0], [0], [1], [0, 0, 1, 1], [], []>} : vector<32x64xbf16>, vector<64x64xbf16>, vector<32x64xf32> -> vector<32x64xf32>
    %643 = arith.addf %636, %642 : vector<32x64xf32>
    %c4_439 = arith.constant 4 : index
    %c0_440 = arith.constant 0 : index
    %c0_441 = arith.constant 0 : index
    %644 = vector.load %arg5[%c4_439, %c0_440, %c0_441] : memref<9x32x32xbf16, #tpu.memory_space<vmem>>, vector<1x32x32xbf16>
    %645 = vector.shape_cast %644 : vector<1x32x32xbf16> to vector<32x32xbf16>
    %cst_442 = arith.constant dense<0.000000e+00> : vector<32x64xf32>
    %646 = tpu.matmul %645, %614, %cst_442 {dimension_numbers = #tpu.dot_dimension_numbers<[1], [0], [0], [1], [0, 0, 1, 1], [], []>} : vector<32x32xbf16>, vector<32x64xbf16>, vector<32x64xf32> -> vector<32x64xf32>
    %647 = arith.truncf %646 : vector<32x64xf32> to vector<32x64xbf16>
    %648 = vector.extract_strided_slice %613 {offsets = [256, 0], sizes = [64, 64], strides = [1, 1]} : vector<576x64xbf16> to vector<64x64xbf16>
    %cst_443 = arith.constant dense<0.000000e+00> : vector<32x64xf32>
    %649 = tpu.matmul %647, %648, %cst_443 {dimension_numbers = #tpu.dot_dimension_numbers<[1], [0], [0], [1], [0, 0, 1, 1], [], []>} : vector<32x64xbf16>, vector<64x64xbf16>, vector<32x64xf32> -> vector<32x64xf32>
    %650 = arith.addf %643, %649 : vector<32x64xf32>
    %c5_444 = arith.constant 5 : index
    %c0_445 = arith.constant 0 : index
    %c0_446 = arith.constant 0 : index
    %651 = vector.load %arg5[%c5_444, %c0_445, %c0_446] : memref<9x32x32xbf16, #tpu.memory_space<vmem>>, vector<1x32x32xbf16>
    %652 = vector.shape_cast %651 : vector<1x32x32xbf16> to vector<32x32xbf16>
    %cst_447 = arith.constant dense<0.000000e+00> : vector<32x64xf32>
    %653 = tpu.matmul %652, %614, %cst_447 {dimension_numbers = #tpu.dot_dimension_numbers<[1], [0], [0], [1], [0, 0, 1, 1], [], []>} : vector<32x32xbf16>, vector<32x64xbf16>, vector<32x64xf32> -> vector<32x64xf32>
    %654 = arith.truncf %653 : vector<32x64xf32> to vector<32x64xbf16>
    %655 = vector.extract_strided_slice %613 {offsets = [320, 0], sizes = [64, 64], strides = [1, 1]} : vector<576x64xbf16> to vector<64x64xbf16>
    %cst_448 = arith.constant dense<0.000000e+00> : vector<32x64xf32>
    %656 = tpu.matmul %654, %655, %cst_448 {dimension_numbers = #tpu.dot_dimension_numbers<[1], [0], [0], [1], [0, 0, 1, 1], [], []>} : vector<32x64xbf16>, vector<64x64xbf16>, vector<32x64xf32> -> vector<32x64xf32>
    %657 = arith.addf %650, %656 : vector<32x64xf32>
    %c6_449 = arith.constant 6 : index
    %c0_450 = arith.constant 0 : index
    %c0_451 = arith.constant 0 : index
    %658 = vector.load %arg5[%c6_449, %c0_450, %c0_451] : memref<9x32x32xbf16, #tpu.memory_space<vmem>>, vector<1x32x32xbf16>
    %659 = vector.shape_cast %658 : vector<1x32x32xbf16> to vector<32x32xbf16>
    %cst_452 = arith.constant dense<0.000000e+00> : vector<32x64xf32>
    %660 = tpu.matmul %659, %614, %cst_452 {dimension_numbers = #tpu.dot_dimension_numbers<[1], [0], [0], [1], [0, 0, 1, 1], [], []>} : vector<32x32xbf16>, vector<32x64xbf16>, vector<32x64xf32> -> vector<32x64xf32>
    %661 = arith.truncf %660 : vector<32x64xf32> to vector<32x64xbf16>
    %662 = vector.extract_strided_slice %613 {offsets = [384, 0], sizes = [64, 64], strides = [1, 1]} : vector<576x64xbf16> to vector<64x64xbf16>
    %cst_453 = arith.constant dense<0.000000e+00> : vector<32x64xf32>
    %663 = tpu.matmul %661, %662, %cst_453 {dimension_numbers = #tpu.dot_dimension_numbers<[1], [0], [0], [1], [0, 0, 1, 1], [], []>} : vector<32x64xbf16>, vector<64x64xbf16>, vector<32x64xf32> -> vector<32x64xf32>
    %664 = arith.addf %657, %663 : vector<32x64xf32>
    %c7_454 = arith.constant 7 : index
    %c0_455 = arith.constant 0 : index
    %c0_456 = arith.constant 0 : index
    %665 = vector.load %arg5[%c7_454, %c0_455, %c0_456] : memref<9x32x32xbf16, #tpu.memory_space<vmem>>, vector<1x32x32xbf16>
    %666 = vector.shape_cast %665 : vector<1x32x32xbf16> to vector<32x32xbf16>
    %cst_457 = arith.constant dense<0.000000e+00> : vector<32x64xf32>
    %667 = tpu.matmul %666, %614, %cst_457 {dimension_numbers = #tpu.dot_dimension_numbers<[1], [0], [0], [1], [0, 0, 1, 1], [], []>} : vector<32x32xbf16>, vector<32x64xbf16>, vector<32x64xf32> -> vector<32x64xf32>
    %668 = arith.truncf %667 : vector<32x64xf32> to vector<32x64xbf16>
    %669 = vector.extract_strided_slice %613 {offsets = [448, 0], sizes = [64, 64], strides = [1, 1]} : vector<576x64xbf16> to vector<64x64xbf16>
    %cst_458 = arith.constant dense<0.000000e+00> : vector<32x64xf32>
    %670 = tpu.matmul %668, %669, %cst_458 {dimension_numbers = #tpu.dot_dimension_numbers<[1], [0], [0], [1], [0, 0, 1, 1], [], []>} : vector<32x64xbf16>, vector<64x64xbf16>, vector<32x64xf32> -> vector<32x64xf32>
    %671 = arith.addf %664, %670 : vector<32x64xf32>
    %c8_459 = arith.constant 8 : index
    %c0_460 = arith.constant 0 : index
    %c0_461 = arith.constant 0 : index
    %672 = vector.load %arg5[%c8_459, %c0_460, %c0_461] : memref<9x32x32xbf16, #tpu.memory_space<vmem>>, vector<1x32x32xbf16>
    %673 = vector.shape_cast %672 : vector<1x32x32xbf16> to vector<32x32xbf16>
    %cst_462 = arith.constant dense<0.000000e+00> : vector<32x64xf32>
    %674 = tpu.matmul %673, %614, %cst_462 {dimension_numbers = #tpu.dot_dimension_numbers<[1], [0], [0], [1], [0, 0, 1, 1], [], []>} : vector<32x32xbf16>, vector<32x64xbf16>, vector<32x64xf32> -> vector<32x64xf32>
    %675 = arith.truncf %674 : vector<32x64xf32> to vector<32x64xbf16>
    %676 = vector.extract_strided_slice %613 {offsets = [512, 0], sizes = [64, 64], strides = [1, 1]} : vector<576x64xbf16> to vector<64x64xbf16>
    %cst_463 = arith.constant dense<0.000000e+00> : vector<32x64xf32>
    %677 = tpu.matmul %675, %676, %cst_463 {dimension_numbers = #tpu.dot_dimension_numbers<[1], [0], [0], [1], [0, 0, 1, 1], [], []>} : vector<32x64xbf16>, vector<64x64xbf16>, vector<32x64xf32> -> vector<32x64xf32>
    %678 = arith.addf %671, %677 : vector<32x64xf32>
    %c3_464 = arith.constant 3 : index
    %c0_465 = arith.constant 0 : index
    %c0_466 = arith.constant 0 : index
    %679 = vector.load %arg11[%c3_464, %c0_465, %c0_466] : memref<4x1x64xf32, #tpu.memory_space<vmem>>, vector<1x1x64xf32>
    %680 = vector.shape_cast %679 : vector<1x1x64xf32> to vector<1x64xf32>
    %c3_467 = arith.constant 3 : index
    %c0_468 = arith.constant 0 : index
    %c0_469 = arith.constant 0 : index
    %681 = vector.load %arg12[%c3_467, %c0_468, %c0_469] : memref<4x1x64xf32, #tpu.memory_space<vmem>>, vector<1x1x64xf32>
    %682 = vector.shape_cast %681 : vector<1x1x64xf32> to vector<1x64xf32>
    %cst_470 = arith.constant dense<0.000000e+00> : vector<32x64xf32>
    %683 = tpu.matmul %0, %678, %cst_470 {dimension_numbers = #tpu.dot_dimension_numbers<[1], [0], [0], [1], [0, 0, 1, 1], [], []>} : vector<32x32xf32>, vector<32x64xf32>, vector<32x64xf32> -> vector<32x64xf32>
    %684 = arith.subf %678, %683 : vector<32x64xf32>
    %685 = arith.mulf %684, %684 : vector<32x64xf32>
    %cst_471 = arith.constant dense<0.000000e+00> : vector<32x64xf32>
    %686 = tpu.matmul %0, %685, %cst_471 {dimension_numbers = #tpu.dot_dimension_numbers<[1], [0], [0], [1], [0, 0, 1, 1], [], []>} : vector<32x32xf32>, vector<32x64xf32>, vector<32x64xf32> -> vector<32x64xf32>
    %cst_472 = arith.constant 9.99999974E-6 : f32
    %687 = vector.broadcast %cst_472 : f32 to vector<32x64xf32>
    %688 = arith.addf %686, %687 : vector<32x64xf32>
    %689 = math.rsqrt %688 : vector<32x64xf32>
    %690 = arith.mulf %684, %689 : vector<32x64xf32>
    %691 = vector.broadcast %680 : vector<1x64xf32> to vector<32x64xf32>
    %692 = arith.mulf %690, %691 : vector<32x64xf32>
    %693 = vector.broadcast %682 : vector<1x64xf32> to vector<32x64xf32>
    %694 = arith.addf %692, %693 : vector<32x64xf32>
    %695 = arith.addf %526, %694 : vector<32x64xf32>
    %c0_473 = arith.constant 0 : index
    %c0_474 = arith.constant 0 : index
    %696 = vector.load %arg13[%c0_473, %c0_474] : memref<32x64xf32, #tpu.memory_space<vmem>>, vector<32x64xf32>
    tpu.vector_store %arg13[%c0_473, %c0_474], %695 {strides = array<i32>} : memref<32x64xf32, #tpu.memory_space<vmem>>, vector<32x64xf32>,
    return
  }
  func.func @transform_0(%arg0: i32) -> (i32, i32) {
    %c0_i32 = arith.constant 0 : i32
    %c0_i32_0 = arith.constant 0 : i32
    %c0_i32_1 = arith.constant 0 : i32
    return %c0_i32, %c0_i32_0 : i32, i32
  }
  func.func @transform_1(%arg0: i32) -> (i32, i32) {
    %c0_i32 = arith.constant 0 : i32
    %c0_i32_0 = arith.constant 0 : i32
    %c0_i32_1 = arith.constant 0 : i32
    return %c0_i32, %c0_i32_0 : i32, i32
  }
  func.func @transform_2(%arg0: i32) -> (i32, i32) {
    %c0_i32 = arith.constant 0 : i32
    %c0_i32_0 = arith.constant 0 : i32
    %c0_i32_1 = arith.constant 0 : i32
    return %c0_i32, %c0_i32_0 : i32, i32
  }
  func.func @transform_3(%arg0: i32) -> (i32, i32) {
    %c0_i32 = arith.constant 0 : i32
    %c0_i32_0 = arith.constant 0 : i32
    %c0_i32_1 = arith.constant 0 : i32
    return %c0_i32, %c0_i32_0 : i32, i32
  }
  func.func @transform_4(%arg0: i32) -> (i32, i32, i32) {
    %c0_i32 = arith.constant 0 : i32
    %c0_i32_0 = arith.constant 0 : i32
    %c0_i32_1 = arith.constant 0 : i32
    %c0_i32_2 = arith.constant 0 : i32
    return %c0_i32, %c0_i32_0, %c0_i32_1 : i32, i32, i32
  }
  func.func @transform_5(%arg0: i32) -> (i32, i32) {
    %c0_i32 = arith.constant 0 : i32
    %c0_i32_0 = arith.constant 0 : i32
    %c0_i32_1 = arith.constant 0 : i32
    return %c0_i32, %c0_i32_0 : i32, i32
  }
  func.func @transform_6(%arg0: i32) -> (i32, i32, i32) {
    %c0_i32 = arith.constant 0 : i32
    %c0_i32_0 = arith.constant 0 : i32
    %c0_i32_1 = arith.constant 0 : i32
    %c0_i32_2 = arith.constant 0 : i32
    return %c0_i32, %c0_i32_0, %c0_i32_1 : i32, i32, i32
  }
  func.func @transform_7(%arg0: i32) -> (i32, i32, i32) {
    %c0_i32 = arith.constant 0 : i32
    %c0_i32_0 = arith.constant 0 : i32
    %c0_i32_1 = arith.constant 0 : i32
    %c0_i32_2 = arith.constant 0 : i32
    return %c0_i32, %c0_i32_0, %c0_i32_1 : i32, i32, i32
  }
  func.func @transform_8(%arg0: i32) -> (i32, i32, i32) {
    %c0_i32 = arith.constant 0 : i32
    %c0_i32_0 = arith.constant 0 : i32
    %c0_i32_1 = arith.constant 0 : i32
    %c0_i32_2 = arith.constant 0 : i32
    return %c0_i32, %c0_i32_0, %c0_i32_1 : i32, i32, i32
  }
  func.func @transform_9(%arg0: i32) -> (i32, i32, i32) {
    %c0_i32 = arith.constant 0 : i32
    %c0_i32_0 = arith.constant 0 : i32
    %c0_i32_1 = arith.constant 0 : i32
    %c0_i32_2 = arith.constant 0 : i32
    return %c0_i32, %c0_i32_0, %c0_i32_1 : i32, i32, i32
  }
  func.func @transform_10(%arg0: i32) -> (i32, i32, i32) {
    %c0_i32 = arith.constant 0 : i32
    %c0_i32_0 = arith.constant 0 : i32
    %c0_i32_1 = arith.constant 0 : i32
    %c0_i32_2 = arith.constant 0 : i32
    return %c0_i32, %c0_i32_0, %c0_i32_1 : i32, i32, i32
  }
  func.func @transform_11(%arg0: i32) -> (i32, i32, i32) {
    %c0_i32 = arith.constant 0 : i32
    %c0_i32_0 = arith.constant 0 : i32
    %c0_i32_1 = arith.constant 0 : i32
    %c0_i32_2 = arith.constant 0 : i32
    return %c0_i32, %c0_i32_0, %c0_i32_1 : i32, i32, i32
  }
  func.func @transform_12(%arg0: i32) -> (i32, i32) {
    %c0_i32 = arith.constant 0 : i32
    %c0_i32_0 = arith.constant 0 : i32
    %c0_i32_1 = arith.constant 0 : i32
    return %c0_i32, %c0_i32_0 : i32, i32
  }
}

</mosaic_0001>

<bundles_post_ra>
// kernel: stargan_encoder_forward.3
= control target key start
LH: loop header
LB: loop body
LE: loop exit
PB: predicated region body
PF: predicated region fallthrough
CT: control target
= control target key end

     0   :  { %s1496_s15 = smov 0   ;;  %s2113_s0 = inlined_call_operand.vmem [shape: bf16[2,256,147], index: 0, kind: input, shape index: {}]   ;;  %s2114_s1 = inlined_call_operand.vmem [shape: bf16[147,16], index: 1, kind: input, shape index: {}]   ;;  %s2115_s2 = inlined_call_operand.vmem [shape: f32[1,16], index: 2, kind: input, shape index: {}]   ;;  %s2116_s3 = inlined_call_operand.vmem [shape: f32[1,16], index: 3, kind: input, shape index: {}]   ;;  %s2117_s4 = inlined_call_operand.vmem [shape: bf16[2,256,16], index: 4, kind: output, shape index: {}]  }
   0x1 LB: > { %s1234_s16 = sadd.s32 4294967295, %s1467_s15   ;;  %p1238_p0 = scmp.ge.s32.totalorder %s1467_s15, 1  ;;  %s1467_s15 = sphi %s1496_s15, %s14_s15  }
   0x2   : > { %p162_p1 = scmp.lt.s32.totalorder %s1467_s15, 3 }
   0x4   : > { %p163_p2 = pnand %p1238_p0, %p162_p1 }
   0x5   : > { %v1401_v0 = vld [vmem:[%s2114_s1] sm:$0xff] (!%p163_p2)   ;;  %v1469_v1 = vmov (!%p163_p2), 0   ;;  %v1402_v2 = vld [vmem:[%s2114_s1 + $0x8] sm:$0xff] (!%p163_p2)   ;;  %v1403_v3 = vld [vmem:[%s2114_s1 + $0x10] sm:$0xff] (!%p163_p2)   ;;  %p188_p3 = scmp.lt.s32.totalorder (!%p163_p2), %s1234_s16, 1  ;;  %vm451_vm0 = vcmask (!%p163_p2), 154624  }
   0x6   : > { %166 = sbr.rel (%p163_p2) target bundleno = 516 (0x204), region = 36  ;;  %507 = vmatprep.subr.bf16.mxu0 (!%p163_p2), %v1469_v1  ;;  %1371 = vmatprep.subr.bf16.mxu1 (!%p163_p2), %v1469_v1  ;;  %v1404_v4 = vld [vmem:[%s2114_s1 + $0x18] sm:$0xff] (!%p163_p2)   ;;  %v1405_v6 = vld [vmem:[%s2114_s1 + $0x20] sm:$0xff] (!%p163_p2)   ;;  %v1406_v7 = vld [vmem:[%s2114_s1 + $0x28] sm:$0xff] (!%p163_p2)   ;;  %vm500_vm1 = vcmask (!%p163_p2), 1040384   ;;  %vm501_vm2 = vcmask (!%p163_p2), 1041408  }
   0x7   : > { %508 = vmatpush1.bf16.msra.mxu0 (!%p163_p2), %v1401_v0  ;;  %1381 = vmatpush1.bf16.msra.mxu1 (!%p163_p2), %v1401_v0  ;;  %v1407_v9 = vld [vmem:[%s2114_s1 + $0x30] sm:$0xff] (!%p163_p2)   ;;  %v1408_v10 = vld [vmem:[%s2114_s1 + $0x38] sm:$0xff] (!%p163_p2)   ;;  %v1470_v11 = vmov (!%p163_p2), 65535   ;;  %v1409_v13 = vld [vmem:[%s2114_s1 + $0x40] sm:$0xff] (!%p163_p2)   ;;  %vm668_vm3 = vcmask (!%p163_p2), 130048   ;;  %vm1146_vm4 = vcmask (!%p163_p2), 125952  }
   0x8   : > { %509 = vmatprep.subr.bf16.mxu0 (!%p163_p2), %v1469_v1  ;;  %1372 = vmatprep.subr.bf16.mxu1 (!%p163_p2), %v1469_v1  ;;  %v502_v12 = vsel (!%p163_p2), %vm500_vm1, 4294967295, %v1470_v11  ;;  %v1410_v14 = vld [vmem:[%s2114_s1 + $0x48] ss:$0 sps:$4 sm:$0x33] (!%p163_p2)  }
   0x9   : > { %v503_v15 = vsel (!%p163_p2), %vm501_vm2, %v502_v12, 0 }
   0xa   : > { %v505_v16 = vand.u32 (!%p163_p2), %v1410_v14, %v503_v15 }
   0xb   : > { %510 = vmatpush1.bf16.msra.mxu0 (!%p163_p2), %v1402_v2  ;;  %1382 = vmatpush1.bf16.msra.mxu1 (!%p163_p2), %v1402_v2 }
   0xc   : > { %511 = vmatprep.subr.bf16.mxu0 (!%p163_p2), %v1469_v1  ;;  %1373 = vmatprep.subr.bf16.mxu1 (!%p163_p2), %v1469_v1 }
   0xd   : > { %s2119_s16 = smov (!%p188_p3, %s1234_s16), 1 }
   0xe   : > { %s1337_s25 = sshll.u32 %s2119_s16, 8  ;;  %s1338_s21 = sshll.u32 %s2119_s16, 7 }
   0xf   : > { %512 = vmatpush1.bf16.msra.mxu0 %v1403_v3  ;;  %1383 = vmatpush1.bf16.msra.mxu1 %v1403_v3  ;;  %s1522_s28 = scalar_lea.vmem %s2113_s0, %s1337_s25  ;;  %s2040_s23 = scalar_lea.vmem %s2117_s4, %s1338_s21 }
  0x10   : > { %513 = vmatprep.subr.bf16.mxu0 %v1469_v1  ;;  %1374 = vmatprep.subr.bf16.mxu1 %v1469_v1  ;;  %v1413_v5 = vld [vmem:[%s1522_s28 + $0x4] ss:$8 sps:$4 sm:$0xff]   ;;  %v1411_v17 = vld [vmem:[%s1522_s28] ss:$8 sps:$4 sm:$0xff]   ;;  %v1414_v19 = vld [vmem:[%s1522_s28 + $0x14] ss:$8 sps:$4 sm:$0xff]  }
  0x11   : > { %1285 = vmatprep.mubr.msk.bf16.mxu0 %vm451_vm0, %v1413_v5  ;;  %v1425_v8 = vld [vmem:[%s1522_s28 + $0x84] ss:$8 sps:$4 sm:$0xff]   ;;  %v1423_v18 = vld [vmem:[%s1522_s28 + $0x80] ss:$8 sps:$4 sm:$0xff]   ;;  %v1429_v20 = vld [vmem:[%s1522_s28 + $0x94] ss:$8 sps:$4 sm:$0xff]  }
  0x12   : > { %1293 = vmatprep.mubr.msk.bf16.mxu1 %vm451_vm0, %v1425_v8  ;;  %v1416_v21 = vld [vmem:[%s1522_s28 + $0x10] ss:$8 sps:$4 sm:$0xff]   ;;  %v1417_v23 = vld [vmem:[%s1522_s28 + $0x24] ss:$8 sps:$4 sm:$0xff]   ;;  %v1419_v25 = vld [vmem:[%s1522_s28 + $0x20] ss:$8 sps:$4 sm:$0xff]  }
  0x13   : > { %514 = vmatpush1.bf16.msra.mxu0 %v1404_v4  ;;  %1384 = vmatpush1.bf16.msra.mxu1 %v1404_v4  ;;  %v1431_v22 = vld [vmem:[%s1522_s28 + $0x90] ss:$8 sps:$4 sm:$0xff]   ;;  %v1435_v24 = vld [vmem:[%s1522_s28 + $0xa4] ss:$8 sps:$4 sm:$0xff]   ;;  %v1437_v26 = vld [vmem:[%s1522_s28 + $0xa0] ss:$8 sps:$4 sm:$0xff]  }
  0x14   : > { %515 = vmatprep.subr.bf16.mxu0 %v1469_v1  ;;  %1375 = vmatprep.subr.bf16.mxu1 %v1469_v1  ;;  %v1420_v27 = vld [vmem:[%s1522_s28 + $0x34] ss:$8 sps:$4 sm:$0xff]   ;;  %v1422_v29 = vld [vmem:[%s1522_s28 + $0x30] ss:$8 sps:$4 sm:$0xff]   ;;  %v1426_v31 = vld [vmem:[%s1522_s28 + $0x44] ss:$8 sps:$4 sm:$0xff]  }
  0x15   : > { %v1441_v28 = vld [vmem:[%s1522_s28 + $0xb4] ss:$8 sps:$4 sm:$0xff]   ;;  %v1443_v30 = vld [vmem:[%s1522_s28 + $0xb0] ss:$8 sps:$4 sm:$0xff]   ;;  %v1447_v32 = vld [vmem:[%s1522_s28 + $0xc4] ss:$8 sps:$4 sm:$0xff]  }
  0x16   : > { %v1428_v33 = vld [vmem:[%s1522_s28 + $0x40] ss:$8 sps:$4 sm:$0xff]   ;;  %v1432_v35 = vld [vmem:[%s1522_s28 + $0x54] ss:$8 sps:$4 sm:$0xff]   ;;  %v1434_v37 = vld [vmem:[%s1522_s28 + $0x50] ss:$8 sps:$4 sm:$0xff]  }
  0x17   : > { %516 = vmatpush1.bf16.msra.mxu0 %v1405_v6  ;;  %1385 = vmatpush1.bf16.msra.mxu1 %v1405_v6  ;;  %v1449_v34 = vld [vmem:[%s1522_s28 + $0xc0] ss:$8 sps:$4 sm:$0xff]   ;;  %v1450_v36 = vld [vmem:[%s1522_s28 + $0xd4] ss:$8 sps:$4 sm:$0xff]   ;;  %v1452_v38 = vld [vmem:[%s1522_s28 + $0xd0] ss:$8 sps:$4 sm:$0xff]  }
  0x18   : > { %517 = vmatprep.subr.bf16.mxu0 %v1469_v1  ;;  %1376 = vmatprep.subr.bf16.mxu1 %v1469_v1  ;;  %v1438_v39 = vld [vmem:[%s1522_s28 + $0x64] ss:$8 sps:$4 sm:$0xff]   ;;  %v1440_v41 = vld [vmem:[%s1522_s28 + $0x60] ss:$8 sps:$4 sm:$0xff]   ;;  %v1444_v43 = vld [vmem:[%s1522_s28 + $0x74] ss:$8 sps:$4 sm:$0xff]  }
  0x19   : > { %v1453_v40 = vld [vmem:[%s1522_s28 + $0xe4] ss:$8 sps:$4 sm:$0xff]   ;;  %v1455_v42 = vld [vmem:[%s1522_s28 + $0xe0] ss:$8 sps:$4 sm:$0xff]   ;;  %v1456_v44 = vld [vmem:[%s1522_s28 + $0xf4] ss:$8 sps:$4 sm:$0xff]  }
  0x1a   : > { %v1446_v45 = vld [vmem:[%s1522_s28 + $0x70] ss:$8 sps:$4 sm:$0xff]  }
  0x1b   : > { %518 = vmatpush1.bf16.msra.mxu0 %v1406_v7  ;;  %1386 = vmatpush1.bf16.msra.mxu1 %v1406_v7  ;;  %v1458_v46 = vld [vmem:[%s1522_s28 + $0xf0] ss:$8 sps:$4 sm:$0xff]  }
  0x1c   : > { %519 = vmatprep.subr.bf16.mxu0 %v1469_v1  ;;  %1377 = vmatprep.subr.bf16.mxu1 %v1469_v1 }
  0x1f   : > { %520 = vmatpush1.bf16.msra.mxu0 %v1407_v9  ;;  %1387 = vmatpush1.bf16.msra.mxu1 %v1407_v9 }
  0x20   : > { %521 = vmatprep.subr.bf16.mxu0 %v1469_v1  ;;  %1378 = vmatprep.subr.bf16.mxu1 %v1469_v1 }
  0x23   : > { %522 = vmatpush1.bf16.msra.mxu0 %v1408_v10  ;;  %1388 = vmatpush1.bf16.msra.mxu1 %v1408_v10 }
  0x24   : > { %523 = vmatprep.subr.bf16.mxu0 %v1469_v1  ;;  %1379 = vmatprep.subr.bf16.mxu1 %v1469_v1 }
  0x27   : > { %524 = vmatpush1.bf16.msra.mxu0 %v1409_v13  ;;  %1389 = vmatpush1.bf16.msra.mxu1 %v1409_v13 }
  0x28   : > { %525 = vmatprep.subr.bf16.mxu0 %v1469_v1  ;;  %1380 = vmatprep.subr.bf16.mxu1 %v1469_v1 }
  0x2b   : > { %526 = vmatpush1.bf16.msra.mxu0 %v505_v16  ;;  %1390 = vmatpush1.bf16.msra.mxu1 %v505_v16 }
  0x2e   : > { %540 = vmatmul.mubr.bf16.vlgmr.msra.gmra.mrb[0].mxu0 %v1411_v17  ;;  %604 = vmatmul.mubr.bf16.vlgmr.msra.gmra.mrb[0].mxu1 %v1423_v18 }
  0x2f   : > { %1286 = vmatprep.mubr.msk.bf16.mxu0 %vm451_vm0, %v1414_v19  ;;  %1294 = vmatprep.mubr.msk.bf16.mxu1 %vm451_vm0, %v1429_v20 }
  0x36   : > { %548 = vmatmul.mubr.bf16.gmra.mrb[4].mxu0 %v1416_v21  ;;  %612 = vmatmul.mubr.bf16.gmra.mrb[4].mxu1 %v1431_v22 }
  0x37   : > { %1287 = vmatprep.mubr.msk.bf16.mxu0 %vm451_vm0, %v1417_v23  ;;  %1295 = vmatprep.mubr.msk.bf16.mxu1 %vm451_vm0, %v1435_v24 }
  0x3e   : > { %556 = vmatmul.mubr.bf16.gmra.mrb[8].mxu0 %v1419_v25  ;;  %620 = vmatmul.mubr.bf16.gmra.mrb[8].mxu1 %v1437_v26 }
  0x3f   : > { %1288 = vmatprep.mubr.msk.bf16.mxu0 %vm451_vm0, %v1420_v27  ;;  %1296 = vmatprep.mubr.msk.bf16.mxu1 %vm451_vm0, %v1441_v28 }
  0x46   : > { %564 = vmatmul.mubr.bf16.gmra.mrb[12].mxu0 %v1422_v29  ;;  %628 = vmatmul.mubr.bf16.gmra.mrb[12].mxu1 %v1443_v30 }
  0x47   : > { %1289 = vmatprep.mubr.msk.bf16.mxu0 %vm451_vm0, %v1426_v31  ;;  %1297 = vmatprep.mubr.msk.bf16.mxu1 %vm451_vm0, %v1447_v32 }
  0x4e   : > { %572 = vmatmul.mubr.bf16.gmra.mrb[16].mxu0 %v1428_v33  ;;  %636 = vmatmul.mubr.bf16.gmra.mrb[16].mxu1 %v1449_v34 }
  0x4f   : > { %1290 = vmatprep.mubr.msk.bf16.mxu0 %vm451_vm0, %v1432_v35  ;;  %1298 = vmatprep.mubr.msk.bf16.mxu1 %vm451_vm0, %v1450_v36 }
  0x56   : > { %580 = vmatmul.mubr.bf16.gmra.mrb[20].mxu0 %v1434_v37  ;;  %644 = vmatmul.mubr.bf16.gmra.mrb[20].mxu1 %v1452_v38 }
  0x57   : > { %1291 = vmatprep.mubr.msk.bf16.mxu0 %vm451_vm0, %v1438_v39  ;;  %1299 = vmatprep.mubr.msk.bf16.mxu1 %vm451_vm0, %v1453_v40 }
  0x5e   : > { %588 = vmatmul.mubr.bf16.gmra.mrb[24].mxu0 %v1440_v41  ;;  %652 = vmatmul.mubr.bf16.gmra.mrb[24].mxu1 %v1455_v42 }
  0x5f   : > { %1292 = vmatprep.mubr.msk.bf16.mxu0 %vm451_vm0, %v1444_v43  ;;  %1300 = vmatprep.mubr.msk.bf16.mxu1 %vm451_vm0, %v1456_v44 }
  0x66   : > { %596 = vmatmul.mubr.bf16.gmra.mrb[28].mxu0 %v1446_v45  ;;  %660 = vmatmul.mubr.bf16.gmra.mrb[28].mxu1 %v1458_v46 }
 0x101   : > { %v1590_v47 = vpop.f32.mrb[0].mxu0  ;;  %v1592_v48 = vpop.f32.mrb[0].mxu1 }
 0x102   : > { %v543_v49 = vpop.f32.mrb[1].mxu0  ;;  %v607_v50 = vpop.f32.mrb[1].mxu1  ;;  %v669_v53 = vsel %vm668_vm3, %v1590_v47, 0.0 }
 0x103   : > { %v1594_v51 = vpop.f32.mrb[2].mxu0  ;;  %v1596_v52 = vpop.f32.mrb[2].mxu1 }
 0x104   : > { %v670_v54 = vsel %vm668_vm3, %v1594_v51, 0.0  ;;  %v546_v55 = vpop.f32.mrb[3].mxu0  ;;  %v610_v56 = vpop.f32.mrb[3].mxu1 }
 0x105   : > { %v671_v57 = vadd.f32 %v670_v54, %v669_v53 }
 0x109   : > { %v1602_v58 = vpop.f32.mrb[4].mxu0  ;;  %v1604_v59 = vpop.f32.mrb[4].mxu1 }
 0x10a   : > { %v672_v60 = vsel %vm668_vm3, %v1602_v58, 0.0  ;;  %v551_v61 = vpop.f32.mrb[5].mxu0  ;;  %v615_v62 = vpop.f32.mrb[5].mxu1 }
 0x10b   : > { %v673_v63 = vadd.f32 %v672_v60, %v671_v57  ;;  %v1608_v0 = vpop.f32.mrb[6].mxu0  ;;  %v1610_v1 = vpop.f32.mrb[6].mxu1 }
 0x10c   : > { %v674_v2 = vsel %vm668_vm3, %v1608_v0, 0.0  ;;  %v554_v3 = vpop.f32.mrb[7].mxu0  ;;  %v618_v4 = vpop.f32.mrb[7].mxu1 }
 0x10d   : > { %v675_v5 = vadd.f32 %v674_v2, %v673_v63 }
 0x111   : > { %v1614_v6 = vpop.f32.mrb[8].mxu0  ;;  %v1616_v7 = vpop.f32.mrb[8].mxu1 }
 0x112   : > { %v676_v8 = vsel %vm668_vm3, %v1614_v6, 0.0  ;;  %v559_v9 = vpop.f32.mrb[9].mxu0  ;;  %v623_v10 = vpop.f32.mrb[9].mxu1 }
 0x113   : > { %v677_v11 = vadd.f32 %v676_v8, %v675_v5  ;;  %v1620_v12 = vpop.f32.mrb[10].mxu0  ;;  %v1622_v13 = vpop.f32.mrb[10].mxu1 }
 0x114   : > { %v678_v14 = vsel %vm668_vm3, %v1620_v12, 0.0  ;;  %v562_v15 = vpop.f32.mrb[11].mxu0  ;;  %v626_v16 = vpop.f32.mrb[11].mxu1 }
 0x115   : > { %v679_v17 = vadd.f32 %v678_v14, %v677_v11 }
 0x119   : > { %v1626_v18 = vpop.f32.mrb[12].mxu0  ;;  %v1628_v19 = vpop.f32.mrb[12].mxu1 }
 0x11a   : > { %v680_v20 = vsel %vm668_vm3, %v1626_v18, 0.0  ;;  %v567_v21 = vpop.f32.mrb[13].mxu0  ;;  %v631_v22 = vpop.f32.mrb[13].mxu1 }
 0x11b   : > { %v681_v23 = vadd.f32 %v680_v20, %v679_v17  ;;  %v1632_v24 = vpop.f32.mrb[14].mxu0  ;;  %v1634_v25 = vpop.f32.mrb[14].mxu1 }
 0x11c   : > { %v682_v26 = vsel %vm668_vm3, %v1632_v24, 0.0  ;;  %v570_v27 = vpop.f32.mrb[15].mxu0  ;;  %v634_v28 = vpop.f32.mrb[15].mxu1 }
 0x11d   : > { %v683_v29 = vadd.f32 %v682_v26, %v681_v23 }
 0x121   : > { %v1638_v30 = vpop.f32.mrb[16].mxu0  ;;  %v1640_v31 = vpop.f32.mrb[16].mxu1 }
 0x122   : > { %v684_v32 = vsel %vm668_vm3, %v1638_v30, 0.0  ;;  %v575_v33 = vpop.f32.mrb[17].mxu0  ;;  %v639_v34 = vpop.f32.mrb[17].mxu1 }
 0x123   : > { %v685_v35 = vadd.f32 %v684_v32, %v683_v29  ;;  %v1644_v36 = vpop.f32.mrb[18].mxu0  ;;  %v1646_v37 = vpop.f32.mrb[18].mxu1  ;;  %v700_v32 = vsel %vm668_vm3, %v1592_v48, 0.0  ;;  %v702_v34 = vsel %vm668_vm3, %v1596_v52, 0.0 }
 0x124   : > { %v686_v38 = vsel %vm668_vm3, %v1644_v36, 0.0  ;;  %v578_v39 = vpop.f32.mrb[19].mxu0  ;;  %v642_v40 = vpop.f32.mrb[19].mxu1 }
 0x125   : > { %v687_v41 = vadd.f32 %v686_v38, %v685_v35  ;;  %v704_v38 = vsel %vm668_vm3, %v1604_v59, 0.0  ;;  %v706_v40 = vsel %vm668_vm3, %v1610_v1, 0.0 }
 0x129   : > { %v1650_v42 = vpop.f32.mrb[20].mxu0  ;;  %v1652_v43 = vpop.f32.mrb[20].mxu1 }
 0x12a   : > { %v688_v44 = vsel %vm668_vm3, %v1650_v42, 0.0  ;;  %v583_v45 = vpop.f32.mrb[21].mxu0  ;;  %v647_v46 = vpop.f32.mrb[21].mxu1 }
 0x12b   : > { %v689_v49 = vadd.f32 %v688_v44, %v687_v41  ;;  %v1656_v50 = vpop.f32.mrb[22].mxu0  ;;  %v1658_v53 = vpop.f32.mrb[22].mxu1  ;;  %v708_v44 = vsel %vm668_vm3, %v1616_v7, 0.0  ;;  %v710_v46 = vsel %vm668_vm3, %v1622_v13, 0.0 }
 0x12c   : > { %v690_v54 = vsel %vm668_vm3, %v1656_v50, 0.0  ;;  %v586_v55 = vpop.f32.mrb[23].mxu0  ;;  %v650_v56 = vpop.f32.mrb[23].mxu1 }
 0x12d   : > { %v691_v57 = vadd.f32 %v690_v54, %v689_v49  ;;  %v712_v54 = vsel %vm668_vm3, %v1628_v19, 0.0  ;;  %v714_v56 = vsel %vm668_vm3, %v1634_v25, 0.0 }
 0x131   : > { %v1662_v60 = vpop.f32.mrb[24].mxu0  ;;  %v1664_v61 = vpop.f32.mrb[24].mxu1 }
 0x132   : > { %v692_v62 = vsel %vm668_vm3, %v1662_v60, 0.0  ;;  %v591_v63 = vpop.f32.mrb[25].mxu0  ;;  %v655_v2 = vpop.f32.mrb[25].mxu1 }
 0x133   : > { %v693_v3 = vadd.f32 %v692_v62, %v691_v57  ;;  %v1668_v4 = vpop.f32.mrb[26].mxu0  ;;  %v1670_v5 = vpop.f32.mrb[26].mxu1  ;;  %v716_v62 = vsel %vm668_vm3, %v1640_v31, 0.0  ;;  %v718_v2 = vsel %vm668_vm3, %v1646_v37, 0.0 }
 0x134   : > { %v694_v8 = vsel %vm668_vm3, %v1668_v4, 0.0  ;;  %v594_v9 = vpop.f32.mrb[27].mxu0  ;;  %v658_v10 = vpop.f32.mrb[27].mxu1 }
 0x135   : > { %v695_v11 = vadd.f32 %v694_v8, %v693_v3  ;;  %v720_v8 = vsel %vm668_vm3, %v1652_v43, 0.0  ;;  %v722_v10 = vsel %vm668_vm3, %v1658_v53, 0.0 }
 0x139   : > { %v1674_v14 = vpop.f32.mrb[28].mxu0  ;;  %v1676_v15 = vpop.f32.mrb[28].mxu1 }
 0x13a   : > { %v696_v16 = vsel %vm668_vm3, %v1674_v14, 0.0  ;;  %v599_v17 = vpop.f32.mrb[29].mxu0  ;;  %v663_v20 = vpop.f32.mrb[29].mxu1 }
 0x13b   : > { %v697_v21 = vadd.f32 %v696_v16, %v695_v11  ;;  %v600_v22 = vpop.f32.mrb[30].mxu0  ;;  %v1680_v23 = vpop.f32.mrb[30].mxu1  ;;  %v724_v16 = vsel %vm668_vm3, %v1664_v61, 0.0  ;;  %v726_v20 = vsel %vm668_vm3, %v1670_v5, 0.0 }
 0x13c   : > { %v698_v26 = vsel %vm668_vm3, %v600_v22, 0.0  ;;  %v602_v27 = vpop.f32.mrb[31].mxu0  ;;  %v666_v28 = vpop.f32.mrb[31].mxu1 }
 0x13d   : > { %v699_v29 = vadd.f32 %v698_v26, %v697_v21  ;;  %v728_v21 = vsel %vm668_vm3, %v1676_v15, 0.0  ;;  %v730_v28 = vsel %vm668_vm3, %v1680_v23, 0.0 }
 0x13f   : > { %v701_v33 = vadd.f32 %v700_v32, %v699_v29 }
 0x141   : > { %v703_v35 = vadd.f32 %v702_v34, %v701_v33 }
 0x143   : > { %v705_v39 = vadd.f32 %v704_v38, %v703_v35 }
 0x145   : > { %v707_v41 = vadd.f32 %v706_v40, %v705_v39 }
 0x147   : > { %v709_v45 = vadd.f32 %v708_v44, %v707_v41 }
 0x149   : > { %v711_v49 = vadd.f32 %v710_v46, %v709_v45 }
 0x14b   : > { %v713_v55 = vadd.f32 %v712_v54, %v711_v49 }
 0x14d   : > { %v715_v57 = vadd.f32 %v714_v56, %v713_v55 }
 0x14f   : > { %v717_v63 = vadd.f32 %v716_v62, %v715_v57 }
 0x151   : > { %v719_v3 = vadd.f32 %v718_v2, %v717_v63 }
 0x153   : > { %v721_v9 = vadd.f32 %v720_v8, %v719_v3 }
 0x155   : > { %v723_v11 = vadd.f32 %v722_v10, %v721_v9 }
 0x157   : > { %v725_v17 = vadd.f32 %v724_v16, %v723_v11 }
 0x159   : > { %v727_v26 = vadd.f32 %v726_v20, %v725_v17 }
 0x15b   : > { %v729_v27 = vadd.f32 %v728_v21, %v727_v26 }
 0x15d   : > { %v731_v29 = vadd.f32 %v730_v28, %v729_v27 }
 0x15f   : > { %v732_v32 = vrot.slane %v731_v29, 4 }
 0x161   : > { %v733_v33 = vadd.f32 %v732_v32, %v731_v29 }
 0x163   : > { %v734_v34 = vrot.slane %v733_v33, 2 }
 0x165   : > { %v735_v35 = vadd.f32 %v734_v34, %v733_v33 }
 0x167   : > { %v736_v38 = vrot.slane %v735_v35, 1 }
 0x169   : > { %v737_v39 = vadd.f32 %v736_v38, %v735_v35 }
 0x16b   : > { %v739_v40 = vmul.f32 0.00390625, %v737_v39 }
 0x16d   : > { %v1716_v41 = vsub.f32 %v1590_v47, %v739_v40  ;;  %v1719_v44 = vsub.f32 %v1594_v51, %v739_v40  ;;  %v1722_v45 = vsub.f32 %v1602_v58, %v739_v40  ;;  %v1725_v46 = vsub.f32 %v1608_v0, %v739_v40 }
 0x16e   : > { %v1728_v49 = vsub.f32 %v1614_v6, %v739_v40  ;;  %v1731_v54 = vsub.f32 %v1620_v12, %v739_v40  ;;  %v1734_v55 = vsub.f32 %v1626_v18, %v739_v40  ;;  %v1737_v47 = vsub.f32 %v1632_v24, %v739_v40 }
 0x16f   : > { %v1740_v51 = vsub.f32 %v1638_v30, %v739_v40  ;;  %v1743_v58 = vsub.f32 %v1644_v36, %v739_v40  ;;  %v1746_v0 = vsub.f32 %v1650_v42, %v739_v40  ;;  %v1749_v6 = vsub.f32 %v1656_v50, %v739_v40 }
 0x170   : > { %v1752_v12 = vsub.f32 %v1662_v60, %v739_v40  ;;  %v1755_v18 = vsub.f32 %v1668_v4, %v739_v40  ;;  %v1758_v24 = vsub.f32 %v1674_v14, %v739_v40  ;;  %v1760_v30 = vsub.f32 %v600_v22, %v739_v40 }
 0x171   : > { %v1763_v36 = vsub.f32 %v1592_v48, %v739_v40  ;;  %v1766_v42 = vsub.f32 %v1596_v52, %v739_v40  ;;  %v1769_v50 = vsub.f32 %v1604_v59, %v739_v40  ;;  %v1772_v60 = vsub.f32 %v1610_v1, %v739_v40 }
 0x172   : > { %v1775_v4 = vsub.f32 %v1616_v7, %v739_v40  ;;  %v1778_v14 = vsub.f32 %v1622_v13, %v739_v40  ;;  %v1781_v22 = vsub.f32 %v1628_v19, %v739_v40  ;;  %v1784_v48 = vsub.f32 %v1634_v25, %v739_v40 }
 0x173   : > { %v1787_v52 = vsub.f32 %v1640_v31, %v739_v40  ;;  %v1790_v59 = vsub.f32 %v1646_v37, %v739_v40  ;;  %v1793_v1 = vsub.f32 %v1652_v43, %v739_v40  ;;  %v1796_v7 = vsub.f32 %v1658_v53, %v739_v40 }
 0x174   : > { %v1799_v13 = vsub.f32 %v1664_v61, %v739_v40  ;;  %v1802_v19 = vsub.f32 %v1670_v5, %v739_v40  ;;  %v1805_v25 = vsub.f32 %v1676_v15, %v739_v40  ;;  %v1808_v31 = vsub.f32 %v1680_v23, %v739_v40 }
 0x175   : > { %v772_v37 = vmul.f32 %v1716_v41, %v1716_v41  ;;  %v773_v43 = vmul.f32 %v1719_v44, %v1719_v44  ;;  %v774_v53 = vmul.f32 %v1722_v45, %v1722_v45  ;;  %v775_v61 = vmul.f32 %v1725_v46, %v1725_v46 }
 0x176   : > { %v776_v23 = vmul.f32 %v1728_v49, %v1728_v49  ;;  %v777_v63 = vmul.f32 %v1731_v54, %v1731_v54  ;;  %v778_v8 = vmul.f32 %v1734_v55, %v1734_v55  ;;  %v779_v11 = vmul.f32 %v1737_v47, %v1737_v47 }
 0x177   : > { %v804_v5 = vsel %vm668_vm3, %v772_v37, 0.0  ;;  %v805_v15 = vsel %vm668_vm3, %v773_v43, 0.0  ;;  %v807_v57 = vsel %vm668_vm3, %v774_v53, 0.0  ;;  %v809_v2 = vsel %vm668_vm3, %v775_v61, 0.0 }
 0x178   : > { %v806_v56 = vadd.f32 %v805_v15, %v804_v5  ;;  %v811_v9 = vsel %vm668_vm3, %v776_v23, 0.0  ;;  %v813_v16 = vsel %vm668_vm3, %v777_v63, 0.0  ;;  %v780_v20 = vmul.f32 %v1740_v51, %v1740_v51 }
 0x179   : > { %v815_v21 = vsel %vm668_vm3, %v778_v8, 0.0  ;;  %v781_v27 = vmul.f32 %v1743_v58, %v1743_v58  ;;  %v817_v28 = vsel %vm668_vm3, %v779_v11, 0.0  ;;  %v782_v32 = vmul.f32 %v1746_v0, %v1746_v0 }
 0x17a   : > { %v808_v62 = vadd.f32 %v807_v57, %v806_v56  ;;  %v819_v33 = vsel %vm668_vm3, %v780_v20, 0.0  ;;  %v783_v35 = vmul.f32 %v1749_v6, %v1749_v6  ;;  %v784_v40 = vmul.f32 %v1752_v12, %v1752_v12 }
 0x17b   : > { %v821_v38 = vsel %vm668_vm3, %v781_v27, 0.0  ;;  %v823_v37 = vsel %vm668_vm3, %v782_v32, 0.0  ;;  %v785_v53 = vmul.f32 %v1755_v18, %v1755_v18  ;;  %v786_v15 = vmul.f32 %v1758_v24, %v1758_v24 }
 0x17c   : > { %v810_v3 = vadd.f32 %v809_v2, %v808_v62  ;;  %v825_v61 = vsel %vm668_vm3, %v783_v35, 0.0  ;;  %v827_v56 = vsel %vm668_vm3, %v784_v40, 0.0  ;;  %v787_v57 = vmul.f32 %v1760_v30, %v1760_v30 }
 0x17d   : > { %v829_v62 = vsel %vm668_vm3, %v785_v53, 0.0  ;;  %v788_v2 = vmul.f32 %v1763_v36, %v1763_v36 }
 0x17e   : > { %v812_v10 = vadd.f32 %v811_v9, %v810_v3  ;;  %v831_v3 = vsel %vm668_vm3, %v786_v15, 0.0  ;;  %v789_v9 = vmul.f32 %v1766_v42, %v1766_v42 }
 0x180   : > { %v814_v17 = vadd.f32 %v813_v16, %v812_v10  ;;  %v833_v10 = vsel %vm668_vm3, %v787_v57, 0.0  ;;  %v790_v16 = vmul.f32 %v1769_v50, %v1769_v50 }
 0x182   : > { %v816_v26 = vadd.f32 %v815_v21, %v814_v17  ;;  %v835_v17 = vsel %vm668_vm3, %v788_v2, 0.0  ;;  %v791_v21 = vmul.f32 %v1772_v60, %v1772_v60 }
 0x184   : > { %v818_v29 = vadd.f32 %v817_v28, %v816_v26  ;;  %v837_v26 = vsel %vm668_vm3, %v789_v9, 0.0  ;;  %v792_v28 = vmul.f32 %v1775_v4, %v1775_v4 }
 0x186   : > { %v820_v34 = vadd.f32 %v819_v33, %v818_v29  ;;  %v839_v29 = vsel %vm668_vm3, %v790_v16, 0.0  ;;  %v793_v33 = vmul.f32 %v1778_v14, %v1778_v14 }
 0x188   : > { %v822_v39 = vadd.f32 %v821_v38, %v820_v34  ;;  %v841_v34 = vsel %vm668_vm3, %v791_v21, 0.0  ;;  %v794_v38 = vmul.f32 %v1781_v22, %v1781_v22 }
 0x18a   : > { %v824_v43 = vadd.f32 %v823_v37, %v822_v39  ;;  %v843_v39 = vsel %vm668_vm3, %v792_v28, 0.0  ;;  %v795_v37 = vmul.f32 %v1784_v48, %v1784_v48 }
 0x18c   : > { %v826_v5 = vadd.f32 %v825_v61, %v824_v43  ;;  %v845_v43 = vsel %vm668_vm3, %v793_v33, 0.0  ;;  %v796_v61 = vmul.f32 %v1787_v52, %v1787_v52 }
 0x18e   : > { %v828_v23 = vadd.f32 %v827_v56, %v826_v5  ;;  %v847_v5 = vsel %vm668_vm3, %v794_v38, 0.0  ;;  %v797_v56 = vmul.f32 %v1790_v59, %v1790_v59 }
 0x190   : > { %v830_v63 = vadd.f32 %v829_v62, %v828_v23  ;;  %v849_v23 = vsel %vm668_vm3, %v795_v37, 0.0  ;;  %v798_v62 = vmul.f32 %v1793_v1, %v1793_v1 }
 0x192   : > { %v832_v8 = vadd.f32 %v831_v3, %v830_v63  ;;  %v851_v63 = vsel %vm668_vm3, %v796_v61, 0.0  ;;  %v799_v3 = vmul.f32 %v1796_v7, %v1796_v7 }
 0x194   : > { %v834_v11 = vadd.f32 %v833_v10, %v832_v8  ;;  %v853_v8 = vsel %vm668_vm3, %v797_v56, 0.0  ;;  %v800_v10 = vmul.f32 %v1799_v13, %v1799_v13 }
 0x196   : > { %v836_v20 = vadd.f32 %v835_v17, %v834_v11  ;;  %v855_v11 = vsel %vm668_vm3, %v798_v62, 0.0  ;;  %v801_v17 = vmul.f32 %v1802_v19, %v1802_v19 }
 0x198   : > { %v838_v27 = vadd.f32 %v837_v26, %v836_v20  ;;  %v857_v20 = vsel %vm668_vm3, %v799_v3, 0.0  ;;  %v802_v26 = vmul.f32 %v1805_v25, %v1805_v25 }
 0x19a   : > { %v840_v32 = vadd.f32 %v839_v29, %v838_v27  ;;  %v859_v27 = vsel %vm668_vm3, %v800_v10, 0.0  ;;  %v803_v29 = vmul.f32 %v1808_v31, %v1808_v31 }
 0x19c   : > { %v842_v35 = vadd.f32 %v841_v34, %v840_v32  ;;  %v861_v32 = vsel %vm668_vm3, %v801_v17, 0.0  ;;  %v863_v34 = vsel %vm668_vm3, %v802_v26, 0.0  ;;  %v865_v38 = vsel %vm668_vm3, %v803_v29, 0.0 }
 0x19e   : > { %v844_v40 = vadd.f32 %v843_v39, %v842_v35 }
 0x1a0   : > { %v846_v53 = vadd.f32 %v845_v43, %v844_v40 }
 0x1a2   : > { %v848_v15 = vadd.f32 %v847_v5, %v846_v53 }
 0x1a4   : > { %v850_v57 = vadd.f32 %v849_v23, %v848_v15 }
 0x1a6   : > { %v852_v2 = vadd.f32 %v851_v63, %v850_v57 }
 0x1a8   : > { %v854_v9 = vadd.f32 %v853_v8, %v852_v2 }
 0x1aa   : > { %v856_v16 = vadd.f32 %v855_v11, %v854_v9 }
 0x1ac   : > { %v858_v21 = vadd.f32 %v857_v20, %v856_v16 }
 0x1ae   : > { %v860_v28 = vadd.f32 %v859_v27, %v858_v21 }
 0x1b0   : > { %v862_v33 = vadd.f32 %v861_v32, %v860_v28 }
 0x1b2   : > { %v864_v35 = vadd.f32 %v863_v34, %v862_v33 }
 0x1b4   : > { %v866_v39 = vadd.f32 %v865_v38, %v864_v35 }
 0x1b6   : > { %v867_v40 = vrot.slane %v866_v39, 4 }
 0x1b8   : > { %v868_v37 = vadd.f32 %v867_v40, %v866_v39 }
 0x1ba   : > { %v869_v43 = vrot.slane %v868_v37, 2 }
 0x1bc   : > { %v870_v53 = vadd.f32 %v869_v43, %v868_v37  ;;  %v1302_v43 = vld [vmem:[%s2116_s3] ss:$0 sm:$0xff] }
 0x1be   : > { %v871_v61 = vrot.slane %v870_v53, 1 }
 0x1c0   : > { %v872_v5 = vadd.f32 %v871_v61, %v870_v53 }
 0x1c2   : > { %v873_v15 = vmul.f32 0.00390625, %v872_v5 }
 0x1c4   : > { %v874_v56 = vadd.f32 1e-05, %v873_v15 }
 0x1c6   : > { %1459 = vrsqrt.f32 %v874_v56 }
 0x1d0   : > { %v1460_v23 = vpop.eup %1459 }
 0x1d1   : > { %v876_v57 = vmul.f32 %v1460_v23, %v1716_v41  ;;  %v877_v62 = vmul.f32 %v1460_v23, %v1719_v44  ;;  %v878_v63 = vmul.f32 %v1460_v23, %v1722_v45  ;;  %v879_v2 = vmul.f32 %v1460_v23, %v1725_v46 }
 0x1d2   : > { %v880_v3 = vmul.f32 %v1460_v23, %v1728_v49  ;;  %v881_v8 = vmul.f32 %v1460_v23, %v1731_v54  ;;  %v882_v9 = vmul.f32 %v1460_v23, %v1734_v55  ;;  %v883_v10 = vmul.f32 %v1460_v23, %v1737_v47 }
 0x1d3   : > { %v884_v11 = vmul.f32 %v1460_v23, %v1740_v51  ;;  %v885_v16 = vmul.f32 %v1460_v23, %v1743_v58  ;;  %v886_v41 = vmul.f32 %v1460_v23, %v1746_v0  ;;  %v887_v44 = vmul.f32 %v1460_v23, %v1749_v6 }
 0x1d4   : > { %v888_v45 = vmul.f32 %v1460_v23, %v1752_v12  ;;  %v889_v46 = vmul.f32 %v1460_v23, %v1755_v18  ;;  %v890_v49 = vmul.f32 %v1460_v23, %v1758_v24  ;;  %v891_v54 = vmul.f32 %v1460_v23, %v1760_v30  ;;  %v1301_v24 = vld [vmem:[%s2115_s2] ss:$0 sm:$0xff] }
 0x1d5   : > { %v892_v55 = vmul.f32 %v1460_v23, %v1763_v36  ;;  %v893_v47 = vmul.f32 %v1460_v23, %v1766_v42  ;;  %v894_v51 = vmul.f32 %v1460_v23, %v1769_v50  ;;  %v895_v58 = vmul.f32 %v1460_v23, %v1772_v60 }
 0x1d6   : > { %v896_v0 = vmul.f32 %v1460_v23, %v1775_v4  ;;  %v897_v6 = vmul.f32 %v1460_v23, %v1778_v14  ;;  %v898_v12 = vmul.f32 %v1460_v23, %v1781_v22  ;;  %v899_v18 = vmul.f32 %v1460_v23, %v1784_v48 }
 0x1d7   : > { %v900_v30 = vmul.f32 %v1460_v23, %v1787_v52  ;;  %v901_v36 = vmul.f32 %v1460_v23, %v1790_v59  ;;  %v902_v42 = vmul.f32 %v1460_v23, %v1793_v1  ;;  %v903_v50 = vmul.f32 %v1460_v23, %v1796_v7 }
 0x1d8   : > { %v904_v60 = vmul.f32 %v1460_v23, %v1799_v13  ;;  %v905_v4 = vmul.f32 %v1460_v23, %v1802_v19  ;;  %v906_v14 = vmul.f32 %v1460_v23, %v1805_v25  ;;  %v907_v22 = vmul.f32 %v1460_v23, %v1808_v31 }
 0x1d9   : > { %v915_v48 = vmul.f32 %v1301_v24, %v876_v57  ;;  %v916_v17 = vmul.f32 %v1301_v24, %v877_v62  ;;  %v917_v20 = vmul.f32 %v1301_v24, %v878_v63  ;;  %v918_v21 = vmul.f32 %v1301_v24, %v879_v2 }
 0x1da   : > { %v919_v26 = vmul.f32 %v1301_v24, %v880_v3  ;;  %v920_v52 = vmul.f32 %v1301_v24, %v881_v8  ;;  %v921_v27 = vmul.f32 %v1301_v24, %v882_v9  ;;  %v922_v59 = vmul.f32 %v1301_v24, %v883_v10 }
 0x1db   : > { %v923_v28 = vmul.f32 %v1301_v24, %v884_v11  ;;  %v924_v1 = vmul.f32 %v1301_v24, %v885_v16  ;;  %v925_v29 = vmul.f32 %v1301_v24, %v886_v41  ;;  %v926_v7 = vmul.f32 %v1301_v24, %v887_v44 }
 0x1dc   : > { %v927_v32 = vmul.f32 %v1301_v24, %v888_v45  ;;  %v928_v13 = vmul.f32 %v1301_v24, %v889_v46  ;;  %v929_v33 = vmul.f32 %v1301_v24, %v890_v49  ;;  %v930_v19 = vmul.f32 %v1301_v24, %v891_v54 }
 0x1dd   : > { %v931_v34 = vmul.f32 %v1301_v24, %v892_v55  ;;  %v932_v25 = vmul.f32 %v1301_v24, %v893_v47  ;;  %v933_v35 = vmul.f32 %v1301_v24, %v894_v51  ;;  %v934_v31 = vmul.f32 %v1301_v24, %v895_v58 }
 0x1de   : > { %v935_v38 = vmul.f32 %v1301_v24, %v896_v0  ;;  %v936_v39 = vmul.f32 %v1301_v24, %v897_v6  ;;  %v937_v40 = vmul.f32 %v1301_v24, %v898_v12  ;;  %v938_v37 = vmul.f32 %v1301_v24, %v899_v18 }
 0x1df   : > { %v939_v53 = vmul.f32 %v1301_v24, %v900_v30  ;;  %v940_v61 = vmul.f32 %v1301_v24, %v901_v36  ;;  %v941_v5 = vmul.f32 %v1301_v24, %v902_v42  ;;  %v942_v15 = vmul.f32 %v1301_v24, %v903_v50 }
 0x1e0   : > { %v943_v56 = vmul.f32 %v1301_v24, %v904_v60  ;;  %v944_v23 = vmul.f32 %v1301_v24, %v905_v4  ;;  %v945_v57 = vmul.f32 %v1301_v24, %v906_v14  ;;  %v946_v62 = vmul.f32 %v1301_v24, %v907_v22 }
 0x1e1   : > { %v1944_v63 = vadd.f32 %v1302_v43, %v915_v48  ;;  %v1946_v2 = vadd.f32 %v1302_v43, %v916_v17  ;;  %v1948_v3 = vadd.f32 %v1302_v43, %v917_v20  ;;  %v1950_v8 = vadd.f32 %v1302_v43, %v918_v21 }
 0x1e2   : > { %v1952_v9 = vadd.f32 %v1302_v43, %v919_v26  ;;  %v1954_v10 = vadd.f32 %v1302_v43, %v920_v52  ;;  %v1956_v11 = vadd.f32 %v1302_v43, %v921_v27  ;;  %v1958_v16 = vadd.f32 %v1302_v43, %v922_v59 }
 0x1e3   : > { %v1960_v41 = vadd.f32 %v1302_v43, %v923_v28  ;;  %v1962_v44 = vadd.f32 %v1302_v43, %v924_v1  ;;  %v1964_v45 = vadd.f32 %v1302_v43, %v925_v29  ;;  %v1966_v46 = vadd.f32 %v1302_v43, %v926_v7 }
 0x1e4   : > { %v1968_v49 = vadd.f32 %v1302_v43, %v927_v32  ;;  %v1970_v54 = vadd.f32 %v1302_v43, %v928_v13  ;;  %v1972_v55 = vadd.f32 %v1302_v43, %v929_v33  ;;  %v1974_v47 = vadd.f32 %v1302_v43, %v930_v19 }
 0x1e5   : > { %v1976_v51 = vadd.f32 %v1302_v43, %v931_v34  ;;  %v1978_v58 = vadd.f32 %v1302_v43, %v932_v25  ;;  %v1980_v0 = vadd.f32 %v1302_v43, %v933_v35  ;;  %v1982_v6 = vadd.f32 %v1302_v43, %v934_v31 }
 0x1e6   : > { %v1984_v12 = vadd.f32 %v1302_v43, %v935_v38  ;;  %v1986_v18 = vadd.f32 %v1302_v43, %v936_v39  ;;  %v1988_v24 = vadd.f32 %v1302_v43, %v937_v40  ;;  %v1990_v30 = vadd.f32 %v1302_v43, %v938_v37 }
 0x1e7   : > { %v1992_v36 = vadd.f32 %v1302_v43, %v939_v53  ;;  %v1994_v42 = vadd.f32 %v1302_v43, %v940_v61  ;;  %v1996_v50 = vadd.f32 %v1302_v43, %v941_v5  ;;  %v1998_v60 = vadd.f32 %v1302_v43, %v942_v15 }
 0x1e8   : > { %v2000_v4 = vadd.f32 %v1302_v43, %v943_v56  ;;  %v2002_v14 = vadd.f32 %v1302_v43, %v944_v23  ;;  %v2004_v22 = vadd.f32 %v1302_v43, %v945_v57  ;;  %v2006_v48 = vadd.f32 %v1302_v43, %v946_v62 }
 0x1e9   : > { %v986_v17 = vmax.f32 %v1944_v63, 0.0  ;;  %v987_v20 = vmax.f32 %v1946_v2, 0.0  ;;  %v988_v21 = vmax.f32 %v1948_v3, 0.0  ;;  %v989_v26 = vmax.f32 %v1950_v8, 0.0 }
 0x1ea   : > { %v990_v52 = vmax.f32 %v1952_v9, 0.0  ;;  %v991_v27 = vmax.f32 %v1954_v10, 0.0  ;;  %v992_v59 = vmax.f32 %v1956_v11, 0.0  ;;  %v993_v28 = vmax.f32 %v1958_v16, 0.0 }
 0x1eb   : > { %v994_v1 = vmax.f32 %v1960_v41, 0.0  ;;  %v995_v29 = vmax.f32 %v1962_v44, 0.0  ;;  %v996_v7 = vmax.f32 %v1964_v45, 0.0  ;;  %v997_v32 = vmax.f32 %v1966_v46, 0.0 }
 0x1ec   : > { %v998_v13 = vmax.f32 %v1968_v49, 0.0  ;;  %v999_v33 = vmax.f32 %v1970_v54, 0.0  ;;  %v1000_v19 = vmax.f32 %v1972_v55, 0.0  ;;  %v1001_v34 = vmax.f32 %v1974_v47, 0.0 }
 0x1ed   : > { %v1002_v25 = vmax.f32 %v1976_v51, 0.0  ;;  %v1003_v35 = vmax.f32 %v1978_v58, 0.0  ;;  %v1004_v31 = vmax.f32 %v1980_v0, 0.0  ;;  %v1005_v38 = vmax.f32 %v1982_v6, 0.0 }
 0x1ee   : > { %v1006_v39 = vmax.f32 %v1984_v12, 0.0  ;;  %v1007_v40 = vmax.f32 %v1986_v18, 0.0  ;;  %v1008_v37 = vmax.f32 %v1988_v24, 0.0  ;;  %v1009_v43 = vmax.f32 %v1990_v30, 0.0 }
 0x1ef   : > { %v1010_v53 = vmax.f32 %v1992_v36, 0.0  ;;  %v1011_v61 = vmax.f32 %v1994_v42, 0.0  ;;  %v1012_v5 = vmax.f32 %v1996_v50, 0.0  ;;  %v1013_v15 = vmax.f32 %v1998_v60, 0.0 }
 0x1f0   : > { %v1014_v56 = vmax.f32 %v2000_v4, 0.0  ;;  %v1015_v23 = vmax.f32 %v2002_v14, 0.0  ;;  %v1016_v57 = vmax.f32 %v2004_v22, 0.0  ;;  %v1017_v62 = vmax.f32 %v2006_v48, 0.0 }
 0x1f1   : > { %v1339_v63 = vpack.c.bf16 %v986_v17, %v986_v17  ;;  %v1340_v2 = vpack.c.bf16 %v987_v20, %v987_v20  ;;  %v1341_v3 = vpack.c.bf16 %v988_v21, %v988_v21  ;;  %v1342_v8 = vpack.c.bf16 %v989_v26, %v989_v26 }
 0x1f2   : > { %v1343_v9 = vpack.c.bf16 %v990_v52, %v990_v52  ;;  %v1344_v10 = vpack.c.bf16 %v991_v27, %v991_v27  ;;  %v1345_v11 = vpack.c.bf16 %v992_v59, %v992_v59  ;;  %v1346_v16 = vpack.c.bf16 %v993_v28, %v993_v28 }
 0x1f3   : > { %v1347_v41 = vpack.c.bf16 %v994_v1, %v994_v1  ;;  %v1348_v44 = vpack.c.bf16 %v995_v29, %v995_v29  ;;  %v1349_v45 = vpack.c.bf16 %v996_v7, %v996_v7  ;;  %v1350_v46 = vpack.c.bf16 %v997_v32, %v997_v32  ;;  %1147 = vst.msk [vmem:[%s2040_s23] sm:$0xf] %vm1146_vm4, %v1339_v63 }
 0x1f4   : > { %1148 = vst.msk [vmem:[%s2040_s23 + $0x4] sm:$0xf] %vm1146_vm4, %v1340_v2  ;;  %1149 = vst.msk [vmem:[%s2040_s23 + $0x8] sm:$0xf] %vm1146_vm4, %v1341_v3  ;;  %v1351_v49 = vpack.c.bf16 %v998_v13, %v998_v13  ;;  %v1352_v54 = vpack.c.bf16 %v999_v33, %v999_v33  ;;  %v1353_v55 = vpack.c.bf16 %v1000_v19, %v1000_v19 }
 0x1f5   : > { %1150 = vst.msk [vmem:[%s2040_s23 + $0xc] sm:$0xf] %vm1146_vm4, %v1342_v8  ;;  %v1354_v47 = vpack.c.bf16 %v1001_v34, %v1001_v34  ;;  %1151 = vst.msk [vmem:[%s2040_s23 + $0x10] sm:$0xf] %vm1146_vm4, %v1343_v9  ;;  %v1355_v51 = vpack.c.bf16 %v1002_v25, %v1002_v25  ;;  %v1356_v58 = vpack.c.bf16 %v1003_v35, %v1003_v35 }
 0x1f6   : > { %1152 = vst.msk [vmem:[%s2040_s23 + $0x14] sm:$0xf] %vm1146_vm4, %v1344_v10  ;;  %1153 = vst.msk [vmem:[%s2040_s23 + $0x18] sm:$0xf] %vm1146_vm4, %v1345_v11  ;;  %v1357_v0 = vpack.c.bf16 %v1004_v31, %v1004_v31  ;;  %v1358_v6 = vpack.c.bf16 %v1005_v38, %v1005_v38  ;;  %v1359_v12 = vpack.c.bf16 %v1006_v39, %v1006_v39 }
 0x1f7   : > { %1154 = vst.msk [vmem:[%s2040_s23 + $0x1c] sm:$0xf] %vm1146_vm4, %v1346_v16  ;;  %1155 = vst.msk [vmem:[%s2040_s23 + $0x20] sm:$0xf] %vm1146_vm4, %v1347_v41  ;;  %v1360_v18 = vpack.c.bf16 %v1007_v40, %v1007_v40  ;;  %v1361_v24 = vpack.c.bf16 %v1008_v37, %v1008_v37  ;;  %v1362_v30 = vpack.c.bf16 %v1009_v43, %v1009_v43 }
 0x1f8   : > { %1156 = vst.msk [vmem:[%s2040_s23 + $0x24] sm:$0xf] %vm1146_vm4, %v1348_v44  ;;  %1157 = vst.msk [vmem:[%s2040_s23 + $0x28] sm:$0xf] %vm1146_vm4, %v1349_v45  ;;  %v1363_v36 = vpack.c.bf16 %v1010_v53, %v1010_v53  ;;  %v1364_v42 = vpack.c.bf16 %v1011_v61, %v1011_v61  ;;  %v1365_v50 = vpack.c.bf16 %v1012_v5, %v1012_v5 }
 0x1f9   : > { %1158 = vst.msk [vmem:[%s2040_s23 + $0x2c] sm:$0xf] %vm1146_vm4, %v1350_v46  ;;  %1159 = vst.msk [vmem:[%s2040_s23 + $0x30] sm:$0xf] %vm1146_vm4, %v1351_v49  ;;  %v1366_v60 = vpack.c.bf16 %v1013_v15, %v1013_v15  ;;  %v1367_v4 = vpack.c.bf16 %v1014_v56, %v1014_v56  ;;  %v1368_v14 = vpack.c.bf16 %v1015_v23, %v1015_v23 }
 0x1fa   : > { %1160 = vst.msk [vmem:[%s2040_s23 + $0x34] sm:$0xf] %vm1146_vm4, %v1352_v54  ;;  %1161 = vst.msk [vmem:[%s2040_s23 + $0x38] sm:$0xf] %vm1146_vm4, %v1353_v55  ;;  %v1369_v22 = vpack.c.bf16 %v1016_v57, %v1016_v57  ;;  %v1370_v48 = vpack.c.bf16 %v1017_v62, %v1017_v62 }
 0x1fb   : > { %1162 = vst.msk [vmem:[%s2040_s23 + $0x3c] sm:$0xf] %vm1146_vm4, %v1354_v47  ;;  %1163 = vst.msk [vmem:[%s2040_s23 + $0x40] sm:$0xf] %vm1146_vm4, %v1355_v51 }
 0x1fc   : > { %1164 = vst.msk [vmem:[%s2040_s23 + $0x44] sm:$0xf] %vm1146_vm4, %v1356_v58  ;;  %1165 = vst.msk [vmem:[%s2040_s23 + $0x48] sm:$0xf] %vm1146_vm4, %v1357_v0 }
 0x1fd   : > { %1166 = vst.msk [vmem:[%s2040_s23 + $0x4c] sm:$0xf] %vm1146_vm4, %v1358_v6  ;;  %1167 = vst.msk [vmem:[%s2040_s23 + $0x50] sm:$0xf] %vm1146_vm4, %v1359_v12 }
 0x1fe   : > { %1168 = vst.msk [vmem:[%s2040_s23 + $0x54] sm:$0xf] %vm1146_vm4, %v1360_v18  ;;  %1169 = vst.msk [vmem:[%s2040_s23 + $0x58] sm:$0xf] %vm1146_vm4, %v1361_v24 }
 0x1ff   : > { %1170 = vst.msk [vmem:[%s2040_s23 + $0x5c] sm:$0xf] %vm1146_vm4, %v1362_v30  ;;  %1171 = vst.msk [vmem:[%s2040_s23 + $0x60] sm:$0xf] %vm1146_vm4, %v1363_v36 }
 0x200   : > { %1172 = vst.msk [vmem:[%s2040_s23 + $0x64] sm:$0xf] %vm1146_vm4, %v1364_v42  ;;  %1173 = vst.msk [vmem:[%s2040_s23 + $0x68] sm:$0xf] %vm1146_vm4, %v1365_v50 }
 0x201   : > { %1174 = vst.msk [vmem:[%s2040_s23 + $0x6c] sm:$0xf] %vm1146_vm4, %v1366_v60  ;;  %1175 = vst.msk [vmem:[%s2040_s23 + $0x70] sm:$0xf] %vm1146_vm4, %v1367_v4 }
 0x202   : > { %1176 = vst.msk [vmem:[%s2040_s23 + $0x74] sm:$0xf] %vm1146_vm4, %v1368_v14  ;;  %1177 = vst.msk [vmem:[%s2040_s23 + $0x78] sm:$0xf] %vm1146_vm4, %v1369_v22 }
 0x203   : > { %1178 = vst.msk [vmem:[%s2040_s23 + $0x7c] sm:$0xf] %vm1146_vm4, %v1370_v48 }
 0x204 PF: > { %s14_s15 = sadd.s32 1, %s1467_s15  }
 0x205   : > { %p11_p4 = scmp.ge.s32.totalorder %s14_s15, 4  }
 0x207   :  { %13 = sbr.rel (!%p11_p4) target bundleno = 1 (0x1), region = 66 }

// kernel: stargan_encoder_forward.4
= control target key start
LH: loop header
LB: loop body
LE: loop exit
PB: predicated region body
PF: predicated region fallthrough
CT: control target
= control target key end

     0   :  { %s828_s15 = smov 0   ;;  %s937_s0 = inlined_call_operand.vmem [shape: bf16[2,64,256], index: 0, kind: input, shape index: {}]   ;;  %s938_s1 = inlined_call_operand.vmem [shape: bf16[256,32], index: 1, kind: input, shape index: {}]   ;;  %s939_s2 = inlined_call_operand.vmem [shape: f32[1,32], index: 2, kind: input, shape index: {}]   ;;  %s940_s3 = inlined_call_operand.vmem [shape: f32[1,32], index: 3, kind: input, shape index: {}]   ;;  %s941_s4 = inlined_call_operand.vmem [shape: bf16[2,64,32], index: 4, kind: output, shape index: {}]  }
   0x1 LB: > { %s646_s16 = sadd.s32 4294967295, %s801_s15   ;;  %p650_p0 = scmp.ge.s32.totalorder %s801_s15, 1  ;;  %s801_s15 = sphi %s828_s15, %s14_s15  }
   0x2   : > { %p162_p1 = scmp.lt.s32.totalorder %s801_s15, 3 }
   0x4   : > { %p163_p2 = pnand %p650_p0, %p162_p1 }
   0x5   : > { %v765_v0 = vld [vmem:[%s938_s1 + $0x40] sm:$0xff] (!%p163_p2)   ;;  %v767_v2 = vld [vmem:[%s938_s1 + $0x48] sm:$0xff] (!%p163_p2)   ;;  %p188_p3 = scmp.lt.s32.totalorder (!%p163_p2), %s646_s16, 1  ;;  %v769_v4 = vld [vmem:[%s938_s1 + $0x50] sm:$0xff] (!%p163_p2)   ;;  %vm440_vm0 = vcmask (!%p163_p2), 261120   ;;  %vm582_vm1 = vcmask (!%p163_p2), 257024  }
   0x6   : > { %166 = sbr.rel (%p163_p2) target bundleno = 348 (0x15c), region = 36  ;;  %v766_v1 = vld [vmem:[%s938_s1] sm:$0xff] (!%p163_p2)   ;;  %701 = vmatprep.subr.bf16.mxu0 (!%p163_p2), %v765_v0  ;;  %741 = vmatprep.subr.bf16.mxu1 (!%p163_p2), %v765_v0  ;;  %v768_v3 = vld [vmem:[%s938_s1 + $0x8] sm:$0xff] (!%p163_p2)   ;;  %v770_v5 = vld [vmem:[%s938_s1 + $0x10] sm:$0xff] (!%p163_p2)  }
   0x7   : > { %702 = vmatpush3.bf16.msra.mxu0 (!%p163_p2), %v766_v1  ;;  %749 = vmatpush3.bf16.msra.mxu1 (!%p163_p2), %v766_v1  ;;  %v771_v6 = vld [vmem:[%s938_s1 + $0x58] sm:$0xff] (!%p163_p2)   ;;  %v773_v8 = vld [vmem:[%s938_s1 + $0x60] sm:$0xff] (!%p163_p2)   ;;  %v775_v10 = vld [vmem:[%s938_s1 + $0x68] sm:$0xff] (!%p163_p2)  }
   0x8   : > { %703 = vmatprep.subr.bf16.mxu0 (!%p163_p2), %v767_v2  ;;  %742 = vmatprep.subr.bf16.mxu1 (!%p163_p2), %v767_v2  ;;  %v772_v7 = vld [vmem:[%s938_s1 + $0x18] sm:$0xff] (!%p163_p2)   ;;  %v774_v9 = vld [vmem:[%s938_s1 + $0x20] sm:$0xff] (!%p163_p2)   ;;  %v776_v13 = vld [vmem:[%s938_s1 + $0x28] sm:$0xff] (!%p163_p2)  }
   0x9   : > { %v777_v14 = vld [vmem:[%s938_s1 + $0x70] sm:$0xff] (!%p163_p2)   ;;  %v779_v16 = vld [vmem:[%s938_s1 + $0x78] sm:$0xff] (!%p163_p2)  }
   0xa   : > { %v778_v15 = vld [vmem:[%s938_s1 + $0x30] sm:$0xff] (!%p163_p2)   ;;  %v780_v17 = vld [vmem:[%s938_s1 + $0x38] sm:$0xff] (!%p163_p2)  }
   0xb   : > { %704 = vmatpush3.bf16.msra.mxu0 (!%p163_p2), %v768_v3  ;;  %750 = vmatpush3.bf16.msra.mxu1 (!%p163_p2), %v768_v3 }
   0xc   : > { %705 = vmatprep.subr.bf16.mxu0 (!%p163_p2), %v769_v4  ;;  %743 = vmatprep.subr.bf16.mxu1 (!%p163_p2), %v769_v4 }
   0xd   : > { %s943_s16 = smov (!%p188_p3, %s646_s16), 1 }
   0xe   : > { %s691_s7 = sshll.u32 %s943_s16, 6 }
   0xf   : > { %706 = vmatpush3.bf16.msra.mxu0 %v770_v5  ;;  %751 = vmatpush3.bf16.msra.mxu1 %v770_v5  ;;  %s869_s12 = scalar_lea.vmem %s937_s0, %s691_s7  ;;  %s692_s7 = sshll.u32 %s943_s16, 5 }
  0x10   : > { %707 = vmatprep.subr.bf16.mxu0 %v771_v6  ;;  %744 = vmatprep.subr.bf16.mxu1 %v771_v6  ;;  %v783_v11 = vld [vmem:[%s869_s12 + $0x4] ss:$8 sps:$4 sm:$0xff]   ;;  %v781_v18 = vld [vmem:[%s869_s12] ss:$8 sps:$4 sm:$0xff]   ;;  %v787_v20 = vld [vmem:[%s869_s12 + $0x14] ss:$8 sps:$4 sm:$0xff]   ;;  %s197_s10 = scalar_lea.vmem %s941_s4, %s692_s7 }
  0x11   : > { %v786_v12 = vld [vmem:[%s869_s12 + $0x24] ss:$8 sps:$4 sm:$0xff]   ;;  %407 = vmatprep.mubr.bf16.mxu0 %v783_v11  ;;  %v784_v19 = vld [vmem:[%s869_s12 + $0x20] ss:$8 sps:$4 sm:$0xff]   ;;  %v790_v21 = vld [vmem:[%s869_s12 + $0x34] ss:$8 sps:$4 sm:$0xff]  }
  0x12   : > { %423 = vmatprep.mubr.bf16.mxu1 %v786_v12  ;;  %v789_v22 = vld [vmem:[%s869_s12 + $0x10] ss:$8 sps:$4 sm:$0xff]  }
  0x13   : > { %708 = vmatpush3.bf16.msra.mxu0 %v772_v7  ;;  %752 = vmatpush3.bf16.msra.mxu1 %v772_v7  ;;  %v792_v23 = vld [vmem:[%s869_s12 + $0x30] ss:$8 sps:$4 sm:$0xff]  }
  0x14   : > { %709 = vmatprep.subr.bf16.mxu0 %v773_v8  ;;  %745 = vmatprep.subr.bf16.mxu1 %v773_v8 }
  0x17   : > { %710 = vmatpush3.bf16.msra.mxu0 %v774_v9  ;;  %753 = vmatpush3.bf16.msra.mxu1 %v774_v9 }
  0x18   : > { %711 = vmatprep.subr.bf16.mxu0 %v775_v10  ;;  %746 = vmatprep.subr.bf16.mxu1 %v775_v10 }
  0x1b   : > { %712 = vmatpush3.bf16.msra.mxu0 %v776_v13  ;;  %754 = vmatpush3.bf16.msra.mxu1 %v776_v13 }
  0x1c   : > { %713 = vmatprep.subr.bf16.mxu0 %v777_v14  ;;  %747 = vmatprep.subr.bf16.mxu1 %v777_v14 }
  0x1f   : > { %714 = vmatpush3.bf16.msra.mxu0 %v778_v15  ;;  %755 = vmatpush3.bf16.msra.mxu1 %v778_v15 }
  0x20   : > { %715 = vmatprep.subr.bf16.mxu0 %v779_v16  ;;  %748 = vmatprep.subr.bf16.mxu1 %v779_v16 }
  0x23   : > { %716 = vmatpush3.bf16.msra.mxu0 %v780_v17  ;;  %756 = vmatpush3.bf16.msra.mxu1 %v780_v17 }
  0x26   : > { %408 = vmatmul.mubr.bf16.vlgmr.msra.gmra.mrb[0].mxu0 %v781_v18  ;;  %424 = vmatmul.mubr.bf16.vlgmr.msra.gmra.mrb[0].mxu1 %v784_v19 }
  0x27   : > { %415 = vmatprep.mubr.bf16.mxu0 %v787_v20  ;;  %431 = vmatprep.mubr.bf16.mxu1 %v790_v21 }
  0x2e   : > { %416 = vmatmul.mubr.bf16.gmra.mrb[4].mxu0 %v789_v22  ;;  %432 = vmatmul.mubr.bf16.gmra.mrb[4].mxu1 %v792_v23 }
  0xf9   : > { %v717_v24 = vpop.f32.mrb[0].mxu0  ;;  %v729_v25 = vpop.f32.mrb[0].mxu1 }
  0xfa   : > { %v718_v26 = vpop.f32.mrb[1].mxu0  ;;  %v730_v27 = vpop.f32.mrb[1].mxu1 }
  0xfb   : > { %v719_v28 = vadd.f32 %v718_v26, %v717_v24  ;;  %v720_v29 = vpop.f32.mrb[2].mxu0  ;;  %v731_v30 = vadd.f32 %v730_v27, %v729_v25  ;;  %v732_v31 = vpop.f32.mrb[2].mxu1 }
  0xfc   : > { %v721_v32 = vpop.f32.mrb[3].mxu0  ;;  %v733_v33 = vpop.f32.mrb[3].mxu1 }
  0xfd   : > { %v722_v34 = vadd.f32 %v721_v32, %v720_v29  ;;  %v734_v35 = vadd.f32 %v733_v33, %v732_v31  ;;  %v441_v36 = vsel %vm440_vm0, %v719_v28, 0.0  ;;  %v448_v55 = vsel %vm440_vm0, %v731_v30, 0.0 }
  0xff   : > { %v442_v37 = vsel %vm440_vm0, %v722_v34, 0.0  ;;  %v450_v57 = vsel %vm440_vm0, %v734_v35, 0.0 }
 0x100   : > { %v443_v38 = vadd.f32 %v442_v37, %v441_v36 }
 0x101   : > { %v723_v39 = vpop.f32.mrb[4].mxu0  ;;  %v735_v40 = vpop.f32.mrb[4].mxu1 }
 0x102   : > { %v724_v41 = vpop.f32.mrb[5].mxu0  ;;  %v736_v42 = vpop.f32.mrb[5].mxu1 }
 0x103   : > { %v725_v43 = vadd.f32 %v724_v41, %v723_v39  ;;  %v726_v44 = vpop.f32.mrb[6].mxu0  ;;  %v737_v45 = vadd.f32 %v736_v42, %v735_v40  ;;  %v738_v46 = vpop.f32.mrb[6].mxu1 }
 0x104   : > { %v727_v47 = vpop.f32.mrb[7].mxu0  ;;  %v739_v48 = vpop.f32.mrb[7].mxu1 }
 0x105   : > { %v444_v49 = vsel %vm440_vm0, %v725_v43, 0.0  ;;  %v728_v50 = vadd.f32 %v727_v47, %v726_v44  ;;  %v740_v51 = vadd.f32 %v739_v48, %v738_v46  ;;  %v452_v58 = vsel %vm440_vm0, %v737_v45, 0.0  ;;  %v679_v46 = vld [vmem:[%s939_s2] ss:$0 sm:$0xff] }
 0x106   : > { %v445_v52 = vadd.f32 %v444_v49, %v443_v38 }
 0x107   : > { %v446_v53 = vsel %vm440_vm0, %v728_v50, 0.0  ;;  %v454_v61 = vsel %vm440_vm0, %v740_v51, 0.0 }
 0x108   : > { %v447_v54 = vadd.f32 %v446_v53, %v445_v52 }
 0x10a   : > { %v449_v56 = vadd.f32 %v448_v55, %v447_v54  ;;  %v680_v55 = vld [vmem:[%s940_s3] ss:$0 sm:$0xff] }
 0x10c   : > { %v451_v59 = vadd.f32 %v450_v57, %v449_v56 }
 0x10e   : > { %v453_v60 = vadd.f32 %v452_v58, %v451_v59 }
 0x110   : > { %v455_v62 = vadd.f32 %v454_v61, %v453_v60 }
 0x112   : > { %v456_v63 = vrot.slane %v455_v62, 4 }
 0x114   : > { %v457_v0 = vadd.f32 %v456_v63, %v455_v62 }
 0x116   : > { %v458_v1 = vrot.slane %v457_v0, 2 }
 0x118   : > { %v459_v2 = vadd.f32 %v458_v1, %v457_v0 }
 0x11a   : > { %v460_v3 = vrot.slane %v459_v2, 1 }
 0x11c   : > { %v461_v4 = vadd.f32 %v460_v3, %v459_v2 }
 0x11e   : > { %v463_v5 = vmul.f32 0.015625, %v461_v4 }
 0x120   : > { %v464_v6 = vsub.f32 %v719_v28, %v463_v5  ;;  %v465_v7 = vsub.f32 %v722_v34, %v463_v5  ;;  %v466_v8 = vsub.f32 %v725_v43, %v463_v5  ;;  %v467_v9 = vsub.f32 %v728_v50, %v463_v5 }
 0x121   : > { %v468_v10 = vsub.f32 %v731_v30, %v463_v5  ;;  %v469_v11 = vsub.f32 %v734_v35, %v463_v5  ;;  %v470_v12 = vsub.f32 %v737_v45, %v463_v5  ;;  %v471_v13 = vsub.f32 %v740_v51, %v463_v5 }
 0x122   : > { %v472_v14 = vmul.f32 %v464_v6, %v464_v6  ;;  %v473_v15 = vmul.f32 %v465_v7, %v465_v7  ;;  %v474_v16 = vmul.f32 %v466_v8, %v466_v8  ;;  %v475_v17 = vmul.f32 %v467_v9, %v467_v9 }
 0x123   : > { %v476_v21 = vmul.f32 %v468_v10, %v468_v10  ;;  %v477_v24 = vmul.f32 %v469_v11, %v469_v11  ;;  %v478_v27 = vmul.f32 %v470_v12, %v470_v12  ;;  %v479_v30 = vmul.f32 %v471_v13, %v471_v13 }
 0x124   : > { %v480_v18 = vsel %vm440_vm0, %v472_v14, 0.0  ;;  %v481_v19 = vsel %vm440_vm0, %v473_v15, 0.0  ;;  %v483_v22 = vsel %vm440_vm0, %v474_v16, 0.0  ;;  %v485_v25 = vsel %vm440_vm0, %v475_v17, 0.0 }
 0x125   : > { %v482_v20 = vadd.f32 %v481_v19, %v480_v18  ;;  %v487_v28 = vsel %vm440_vm0, %v476_v21, 0.0  ;;  %v489_v31 = vsel %vm440_vm0, %v477_v24, 0.0  ;;  %v491_v33 = vsel %vm440_vm0, %v478_v27, 0.0 }
 0x126   : > { %v493_v35 = vsel %vm440_vm0, %v479_v30, 0.0 }
 0x127   : > { %v484_v23 = vadd.f32 %v483_v22, %v482_v20 }
 0x129   : > { %v486_v26 = vadd.f32 %v485_v25, %v484_v23 }
 0x12b   : > { %v488_v29 = vadd.f32 %v487_v28, %v486_v26 }
 0x12d   : > { %v490_v32 = vadd.f32 %v489_v31, %v488_v29 }
 0x12f   : > { %v492_v34 = vadd.f32 %v491_v33, %v490_v32 }
 0x131   : > { %v494_v36 = vadd.f32 %v493_v35, %v492_v34 }
 0x133   : > { %v495_v37 = vrot.slane %v494_v36, 4 }
 0x135   : > { %v496_v38 = vadd.f32 %v495_v37, %v494_v36 }
 0x137   : > { %v497_v39 = vrot.slane %v496_v38, 2 }
 0x139   : > { %v498_v40 = vadd.f32 %v497_v39, %v496_v38 }
 0x13b   : > { %v499_v41 = vrot.slane %v498_v40, 1 }
 0x13d   : > { %v500_v42 = vadd.f32 %v499_v41, %v498_v40 }
 0x13f   : > { %v501_v43 = vmul.f32 0.015625, %v500_v42 }
 0x141   : > { %v502_v44 = vadd.f32 1e-05, %v501_v43 }
 0x143   : > { %793 = vrsqrt.f32 %v502_v44 }
 0x14d   : > { %v794_v45 = vpop.eup %793 }
 0x14e   : > { %v504_v47 = vmul.f32 %v794_v45, %v464_v6  ;;  %v505_v48 = vmul.f32 %v794_v45, %v465_v7  ;;  %v506_v49 = vmul.f32 %v794_v45, %v466_v8  ;;  %v507_v50 = vmul.f32 %v794_v45, %v467_v9 }
 0x14f   : > { %v508_v51 = vmul.f32 %v794_v45, %v468_v10  ;;  %v509_v52 = vmul.f32 %v794_v45, %v469_v11  ;;  %v510_v53 = vmul.f32 %v794_v45, %v470_v12  ;;  %v511_v54 = vmul.f32 %v794_v45, %v471_v13 }
 0x150   : > { %v519_v56 = vmul.f32 %v679_v46, %v504_v47  ;;  %v520_v57 = vmul.f32 %v679_v46, %v505_v48  ;;  %v521_v58 = vmul.f32 %v679_v46, %v506_v49  ;;  %v522_v59 = vmul.f32 %v679_v46, %v507_v50 }
 0x151   : > { %v523_v60 = vmul.f32 %v679_v46, %v508_v51  ;;  %v524_v61 = vmul.f32 %v679_v46, %v509_v52  ;;  %v525_v62 = vmul.f32 %v679_v46, %v510_v53  ;;  %v526_v63 = vmul.f32 %v679_v46, %v511_v54 }
 0x152   : > { %v534_v0 = vadd.f32 %v680_v55, %v519_v56  ;;  %v535_v1 = vadd.f32 %v680_v55, %v520_v57  ;;  %v536_v2 = vadd.f32 %v680_v55, %v521_v58  ;;  %v537_v3 = vadd.f32 %v680_v55, %v522_v59 }
 0x153   : > { %v538_v4 = vadd.f32 %v680_v55, %v523_v60  ;;  %v539_v5 = vadd.f32 %v680_v55, %v524_v61  ;;  %v540_v6 = vadd.f32 %v680_v55, %v525_v62  ;;  %v541_v7 = vadd.f32 %v680_v55, %v526_v63 }
 0x154   : > { %v542_v8 = vmax.f32 %v534_v0, 0.0  ;;  %v543_v9 = vmax.f32 %v535_v1, 0.0  ;;  %v544_v10 = vmax.f32 %v536_v2, 0.0  ;;  %v545_v11 = vmax.f32 %v537_v3, 0.0 }
 0x155   : > { %v546_v12 = vmax.f32 %v538_v4, 0.0  ;;  %v547_v13 = vmax.f32 %v539_v5, 0.0  ;;  %v548_v14 = vmax.f32 %v540_v6, 0.0  ;;  %v549_v15 = vmax.f32 %v541_v7, 0.0 }
 0x156   : > { %v693_v16 = vpack.c.bf16 %v542_v8, %v542_v8  ;;  %v694_v17 = vpack.c.bf16 %v543_v9, %v543_v9  ;;  %v695_v18 = vpack.c.bf16 %v544_v10, %v544_v10  ;;  %v696_v19 = vpack.c.bf16 %v545_v11, %v545_v11 }
 0x157   : > { %v697_v20 = vpack.c.bf16 %v546_v12, %v546_v12  ;;  %v698_v21 = vpack.c.bf16 %v547_v13, %v547_v13  ;;  %v699_v22 = vpack.c.bf16 %v548_v14, %v548_v14  ;;  %v700_v23 = vpack.c.bf16 %v549_v15, %v549_v15 }
 0x158   : > { %583 = vst.msk [vmem:[%s197_s10] sm:$0xf] %vm582_vm1, %v693_v16  ;;  %584 = vst.msk [vmem:[%s197_s10 + $0x4] sm:$0xf] %vm582_vm1, %v694_v17 }
 0x159   : > { %585 = vst.msk [vmem:[%s197_s10 + $0x8] sm:$0xf] %vm582_vm1, %v695_v18  ;;  %586 = vst.msk [vmem:[%s197_s10 + $0xc] sm:$0xf] %vm582_vm1, %v696_v19 }
 0x15a   : > { %587 = vst.msk [vmem:[%s197_s10 + $0x10] sm:$0xf] %vm582_vm1, %v697_v20  ;;  %588 = vst.msk [vmem:[%s197_s10 + $0x14] sm:$0xf] %vm582_vm1, %v698_v21 }
 0x15b   : > { %589 = vst.msk [vmem:[%s197_s10 + $0x18] sm:$0xf] %vm582_vm1, %v699_v22  ;;  %590 = vst.msk [vmem:[%s197_s10 + $0x1c] sm:$0xf] %vm582_vm1, %v700_v23 }
 0x15c PF: > { %s14_s15 = sadd.s32 1, %s801_s15  }
 0x15d   : > { %p11_p4 = scmp.ge.s32.totalorder %s14_s15, 4  }
 0x15f   :  { %13 = sbr.rel (!%p11_p4) target bundleno = 1 (0x1), region = 66 }

// kernel: stargan_encoder_forward.5
= control target key start
LH: loop header
LB: loop body
LE: loop exit
PB: predicated region body
PF: predicated region fallthrough
CT: control target
= control target key end

     0   :  { %vm451_vm0 = vcmask 261120   ;;  %s20641_s0 = inlined_call_operand.vmem [shape: bf16[32,512], index: 0, kind: input, shape index: {}]   ;;  %s20642_s1 = inlined_call_operand.vmem [shape: bf16[512,64], index: 1, kind: input, shape index: {}]   ;;  %s20643_s2 = inlined_call_operand.vmem [shape: f32[1,64], index: 2, kind: input, shape index: {}]   ;;  %s20644_s3 = inlined_call_operand.vmem [shape: f32[1,64], index: 3, kind: input, shape index: {}]   ;;  %s20645_s4 = inlined_call_operand.vmem [shape: bf16[9,32,32], index: 4, kind: input, shape index: {}]   ;;  %s20646_s5 = inlined_call_operand.vmem [shape: f32[32,32], index: 5, kind: input, shape index: {}]   ;;  %s20647_s6 = inlined_call_operand.vmem [shape: bf16[4,576,64], index: 6, kind: input, shape index: {}]   ;;  %s20648_s7 = inlined_call_operand.vmem [shape: f32[4,1,64], index: 7, kind: input, shape index: {}]   ;;  %s20649_s8 = inlined_call_operand.vmem [shape: f32[4,1,64], index: 8, kind: input, shape index: {}]   ;;  %s20650_s9 = inlined_call_operand.vmem [shape: bf16[4,576,64], index: 9, kind: input, shape index: {}]   ;;  %s20651_s10 = inlined_call_operand.vmem [shape: f32[4,1,64], index: 10, kind: input, shape index: {}]   ;;  %s20652_s11 = inlined_call_operand.vmem [shape: f32[4,1,64], index: 11, kind: input, shape index: {}]   ;;  %s20653_s12 = inlined_call_operand.hbm [shape: f32[32,64], index: 12, kind: output, shape index: {}]  }
   0x1   :  { %v16992_v0 = vld [vmem:[%s20642_s1 + $0x40] sm:$0xff]   ;;  %v16994_v2 = vld [vmem:[%s20642_s1 + $0x48] sm:$0xff]   ;;  %v16996_v4 = vld [vmem:[%s20642_s1 + $0x50] sm:$0xff]  }
   0x2   :  { %v16993_v1 = vld [vmem:[%s20642_s1] sm:$0xff]   ;;  %13973 = vmatprep.subr.bf16.mxu0 %v16992_v0  ;;  %v16995_v3 = vld [vmem:[%s20642_s1 + $0x8] sm:$0xff]   ;;  %v16997_v5 = vld [vmem:[%s20642_s1 + $0x10] sm:$0xff]  }
   0x3   :  { %13974 = vmatpush3.bf16.msra.mxu0 %v16993_v1  ;;  %v16998_v6 = vld [vmem:[%s20642_s1 + $0x58] sm:$0xff]   ;;  %v17000_v8 = vld [vmem:[%s20642_s1 + $0x60] sm:$0xff]   ;;  %v17002_v10 = vld [vmem:[%s20642_s1 + $0x68] sm:$0xff]  }
   0x4   :  { %13975 = vmatprep.subr.bf16.mxu0 %v16994_v2  ;;  %v16999_v7 = vld [vmem:[%s20642_s1 + $0x18] sm:$0xff]   ;;  %v17001_v9 = vld [vmem:[%s20642_s1 + $0x20] sm:$0xff]   ;;  %v17003_v12 = vld [vmem:[%s20642_s1 + $0x28] sm:$0xff]  }
   0x5   :  { %v17010_v11 = vld [vmem:[%s20641_s0 + $0x4] ss:$16 sps:$4 sm:$0xff]   ;;  %v17006_v15 = vld [vmem:[%s20642_s1 + $0x78] sm:$0xff]   ;;  %v17008_v18 = vld [vmem:[%s20641_s0] ss:$16 sps:$4 sm:$0xff]  }
   0x6   :  { %383 = vmatprep.mubr.bf16.mxu0 %v17010_v11  ;;  %v17004_v13 = vld [vmem:[%s20642_s1 + $0x70] sm:$0xff]   ;;  %v17007_v16 = vld [vmem:[%s20642_s1 + $0x38] sm:$0xff]   ;;  %v17011_v17 = vld [vmem:[%s20642_s1 + $0xc0] sm:$0xff]  }
   0x7   :  { %13976 = vmatpush3.bf16.msra.mxu0 %v16995_v3  ;;  %v17005_v14 = vld [vmem:[%s20642_s1 + $0x30] sm:$0xff]   ;;  %v17012_v19 = vld [vmem:[%s20642_s1 + $0x80] sm:$0xff]   ;;  %v17013_v21 = vld [vmem:[%s20642_s1 + $0xc8] sm:$0xff]  }
   0x8   :  { %13977 = vmatprep.subr.bf16.mxu0 %v16996_v4  ;;  %v17021_v20 = vld [vmem:[%s20641_s0 + $0x24] ss:$16 sps:$4 sm:$0xff]   ;;  %v17014_v22 = vld [vmem:[%s20642_s1 + $0x88] sm:$0xff]   ;;  %v17024_v24 = vld [vmem:[%s20641_s0 + $0x20] ss:$16 sps:$4 sm:$0xff]  }
   0x9   :  { %v17015_v23 = vld [vmem:[%s20642_s1 + $0xd0] sm:$0xff]   ;;  %v17032_v26 = vld [vmem:[%s20641_s0 + $0xc] ss:$16 sps:$4 sm:$0xff]   ;;  %v17019_v29 = vld [vmem:[%s20642_s1 + $0xe0] sm:$0xff]  }
   0xa   :  { %v17016_v25 = vld [vmem:[%s20642_s1 + $0x90] sm:$0xff]   ;;  %v17017_v27 = vld [vmem:[%s20642_s1 + $0xd8] sm:$0xff]   ;;  %v17020_v30 = vld [vmem:[%s20642_s1 + $0xa0] sm:$0xff]  }
   0xb   :  { %13978 = vmatpush3.bf16.msra.mxu0 %v16997_v5  ;;  %v17018_v28 = vld [vmem:[%s20642_s1 + $0x98] sm:$0xff]   ;;  %v17023_v31 = vld [vmem:[%s20642_s1 + $0xe8] sm:$0xff]   ;;  %v17026_v33 = vld [vmem:[%s20642_s1 + $0xf0] sm:$0xff]  }
   0xc   :  { %13979 = vmatprep.subr.bf16.mxu0 %v16998_v6  ;;  %v17025_v32 = vld [vmem:[%s20642_s1 + $0xa8] sm:$0xff]   ;;  %v17027_v34 = vld [vmem:[%s20642_s1 + $0xb0] sm:$0xff]   ;;  %v17028_v35 = vld [vmem:[%s20642_s1 + $0xf8] sm:$0xff]  }
   0xd   :  { %v17029_v36 = vld [vmem:[%s20642_s1 + $0xb8] sm:$0xff]   ;;  %v17699_v40 = vld [vmem:[%s20646_s5] sm:$0xff] }
   0xe   :  { %v17030_v37 = vld [vmem:[%s20641_s0 + $0x8] ss:$16 sps:$4 sm:$0xff]   ;;  %v17033_v38 = vld [vmem:[%s20641_s0 + $0x2c] ss:$16 sps:$4 sm:$0xff]   ;;  %14901 = vmatprep.mubr.msk.f32.mxu1 %vm451_vm0, %v17699_v40 }
   0xf   :  { %13980 = vmatpush3.bf16.msra.mxu0 %v16999_v7  ;;  %v17035_v39 = vld [vmem:[%s20641_s0 + $0x28] ss:$16 sps:$4 sm:$0xff]  }
  0x10   :  { %13981 = vmatprep.subr.bf16.mxu0 %v17000_v8 }
  0x13   :  { %13982 = vmatpush3.bf16.msra.mxu0 %v17001_v9 }
  0x14   :  { %13983 = vmatprep.subr.bf16.mxu0 %v17002_v10 }
  0x17   :  { %13984 = vmatpush3.bf16.msra.mxu0 %v17003_v12 }
  0x18   :  { %13985 = vmatprep.subr.bf16.mxu0 %v17004_v13 }
  0x1b   :  { %13986 = vmatpush3.bf16.msra.mxu0 %v17005_v14 }
  0x1c   :  { %13987 = vmatprep.subr.bf16.mxu0 %v17006_v15 }
  0x1f   :  { %13988 = vmatpush3.bf16.msra.mxu0 %v17007_v16 }
  0x20   :  { %14001 = vmatprep.subr.bf16.mxu0 %v17011_v17 }
  0x22   :  { %384 = vmatmul.mubr.bf16.vlgmr.msra.gmra.mrb[0].mxu0 %v17008_v18 }
  0x23   :  { %14002 = vmatpush3.bf16.msra.mxu0 %v17012_v19  ;;  %391 = vmatprep.mubr.bf16.mxu0 %v17021_v20 }
  0x24   :  { %14003 = vmatprep.subr.bf16.mxu0 %v17013_v21 }
  0x27   :  { %14004 = vmatpush3.bf16.msra.mxu0 %v17014_v22 }
  0x28   :  { %14005 = vmatprep.subr.bf16.mxu0 %v17015_v23 }
  0x2a   :  { %392 = vmatmul.mubr.bf16.gmra.mrb[4].mxu0 %v17024_v24 }
  0x2b   :  { %14006 = vmatpush3.bf16.msra.mxu0 %v17016_v25  ;;  %432 = vmatprep.mubr.bf16.mxu0 %v17032_v26 }
  0x2c   :  { %14007 = vmatprep.subr.bf16.mxu0 %v17017_v27 }
  0x2f   :  { %14008 = vmatpush3.bf16.msra.mxu0 %v17018_v28 }
  0x30   :  { %14009 = vmatprep.subr.bf16.mxu0 %v17019_v29 }
  0x33   :  { %14010 = vmatpush3.bf16.msra.mxu0 %v17020_v30 }
  0x34   :  { %14011 = vmatprep.subr.bf16.mxu0 %v17023_v31 }
  0x37   :  { %14012 = vmatpush3.bf16.msra.mxu0 %v17025_v32 }
  0x38   :  { %14013 = vmatprep.subr.bf16.mxu0 %v17026_v33 }
  0x3b   :  { %14014 = vmatpush3.bf16.msra.mxu0 %v17027_v34 }
  0x3c   :  { %14015 = vmatprep.subr.bf16.mxu0 %v17028_v35 }
  0x3f   :  { %14016 = vmatpush3.bf16.msra.mxu0 %v17029_v36 }
  0x42   :  { %433 = vmatmul.mubr.bf16.vlgmr.msra.gmra.mrb[8].mxu0 %v17030_v37 }
  0x43   :  { %440 = vmatprep.mubr.bf16.mxu0 %v17033_v38 }
  0x4a   :  { %441 = vmatmul.mubr.bf16.gmra.mrb[12].mxu0 %v17035_v39 }
  0x4b   :  { %17 = vsyncpa [#allocation3], 0  ;;  %v17706_v7 = vld [vmem:[%s20646_s5 + $0x8] sm:$0xff]  ;;  %v17711_v8 = vld [vmem:[%s20646_s5 + $0x10] sm:$0xff]  ;;  %vm915_vm1 = vcmask 523264   ;;  %s17508_s15 = smov [#allocation2]  }
  0x4c   :  { %v17720_v9 = vld [vmem:[%s20646_s5 + $0x18] sm:$0xff]  ;;  %v17735_v24 = vld [vmem:[%s20645_s4 + $0x10] sm:$0xff]   ;;  %v17742_v25 = vld [vmem:[%s20645_s4] sm:$0xff]   ;;  %s12762_s16 = sshll.u32 %s17508_s15, 4  ;;  %s12763_s16 = int_to_ptr.vmem [resolvable:$true] %s12762_s16 }
  0x4d   :  { %14925 = vmatprep.mubr.msk.bf16.mxu0 %vm451_vm0, %v17742_v25  ;;  %v12821_v35 = vld [vmem:[%s20643_s2] ss:$0 sm:$0xff]  ;;  %p17489_p1 = scmp.lt.s32.totalorder %s12763_s16, %s12763_s16 }
  0x4e   :  { %v12822_v38 = vld [vmem:[%s20644_s3] ss:$0 sm:$0xff] }
  0xf5   :  { %v13989_v41 = vpop.f32.mrb[0].mxu0 }
  0xf6   :  { %v13990_v42 = vpop.f32.mrb[1].mxu0 }
  0xf7   :  { %v13991_v43 = vadd.f32 %v13990_v42, %v13989_v41  ;;  %v13992_v44 = vpop.f32.mrb[2].mxu0 }
  0xf8   :  { %v13993_v45 = vpop.f32.mrb[3].mxu0 }
  0xf9   :  { %v13994_v46 = vadd.f32 %v13993_v45, %v13992_v44 }
  0xfd   :  { %v13995_v47 = vpop.f32.mrb[4].mxu0 }
  0xfe   :  { %v13996_v48 = vpop.f32.mrb[5].mxu0 }
  0xff   :  { %v13997_v49 = vadd.f32 %v13996_v48, %v13995_v47  ;;  %v13998_v50 = vpop.f32.mrb[6].mxu0 }
 0x100   :  { %v13999_v51 = vpop.f32.mrb[7].mxu0 }
 0x101   :  { %v14000_v52 = vadd.f32 %v13999_v51, %v13998_v50 }
 0x115   :  { %v14017_v53 = vpop.f32.mrb[8].mxu0 }
 0x116   :  { %v14018_v54 = vpop.f32.mrb[9].mxu0 }
 0x117   :  { %v14019_v55 = vadd.f32 %v14018_v54, %v14017_v53  ;;  %v14020_v56 = vpop.f32.mrb[10].mxu0 }
 0x118   :  { %v14021_v57 = vpop.f32.mrb[11].mxu0 }
 0x119   :  { %v435_v58 = vadd.f32 %v14019_v55, %v13991_v43  ;;  %v14022_v59 = vadd.f32 %v14021_v57, %v14020_v56 }
 0x11b   :  { %v438_v60 = vadd.f32 %v14022_v59, %v13994_v46  ;;  %v17054_v59 = vld [vmem:[%s20647_s6 + $0x20] sm:$0xff]  }
 0x11d   :  { %v14023_v61 = vpop.f32.mrb[12].mxu0  ;;  %v16585_v62 = vpack.c.bf16 %v438_v60, %v435_v58 }
 0x11e   :  { %v14024_v63 = vpop.f32.mrb[13].mxu0 }
 0x11f   :  { %v14025_v0 = vadd.f32 %v14024_v63, %v14023_v61  ;;  %v14026_v1 = vpop.f32.mrb[14].mxu0  ;;  %16586 = vmatprep.subr.bf16.mxu1 %v16585_v62  ;;  %v17793_v61 = vld [vmem:[%s20645_s4 + $0x8] sm:$0xff]  }
 0x120   :  { %v14027_v2 = vpop.f32.mrb[15].mxu0  ;;  %16588 = vmatpush3.bf16.msra.mxu1 %v16585_v62  ;;  %v17800_v62 = vld [vmem:[%s20645_s4 + $0x20] sm:$0xff]   ;;  %v17055_v63 = vld [vmem:[%s20647_s6 + $0x28] sm:$0xff]  }
 0x121   :  { %v443_v3 = vadd.f32 %v14025_v0, %v13997_v49  ;;  %v14028_v4 = vadd.f32 %v14027_v2, %v14026_v1  ;;  %v17056_v0 = vld [vmem:[%s20647_s6 + $0x30] sm:$0xff]   ;;  %v17820_v1 = vld [vmem:[%s20645_s4 + $0x28] sm:$0xff]  }
 0x122   :  { %v17826_v2 = vld [vmem:[%s20645_s4 + $0x30] sm:$0xff]  }
 0x123   :  { %v446_v5 = vadd.f32 %v14028_v4, %v14000_v52  ;;  %v17844_v4 = vld [vmem:[%s20645_s4 + $0x40] sm:$0xff]  }
 0x125   :  { %v16589_v6 = vpack.c.bf16 %v446_v5, %v443_v3 }
 0x127   :  { %16590 = vmatprep.subr.bf16.mxu1 %v16589_v6 }
 0x128   :  { %16592 = vmatpush3.bf16.msra.mxu1 %v16589_v6  ;;  %v17862_v6 = vld [vmem:[%s20645_s4 + $0x50] sm:$0xff]  }
 0x12b   :  { %14902 = vmatmul.mubr.msk.f32.vlgmr.msra.gmra.mrb[0].mxu1 %vm451_vm0, %v17706_v7 }
 0x12c   :  { %14904 = vmatprep.mubr.msk.f32.mxu1 %vm451_vm0, %v17711_v8 }
 0x12f   :  { %14905 = vmatmul.mubr.msk.f32.gmra.mrb[2].mxu1 %vm451_vm0, %v17720_v9 }
 0x130   :  { %14915 = vmatprep.mubr.msk.f32.mxu1 %vm451_vm0, %v17699_v40 }
 0x1fe   :  { %v14903_v10 = vpop.f32.mrb[0].mxu1 }
 0x1ff   :  { %v550_v11 = vsub.f32 %v438_v60, %v14903_v10  ;;  %v530_v12 = vpop.f32.mrb[1].mxu1  ;;  %v17788_v60 = vld [vmem:[%s20645_s4 + $0x18] sm:$0xff]  }
 0x200   :  { %v549_v13 = vsub.f32 %v435_v58, %v530_v12  ;;  %v17874_v10 = vld [vmem:[%s20645_s4 + $0x58] sm:$0xff]   ;;  %v17892_v12 = vld [vmem:[%s20645_s4 + $0x68] sm:$0xff]  }
 0x201   :  { %v554_v14 = vmul.f32 %v550_v11, %v550_v11 }
 0x202   :  { %v553_v15 = vmul.f32 %v549_v13, %v549_v13  ;;  %v14906_v16 = vpop.f32.mrb[2].mxu1 }
 0x203   :  { %v552_v17 = vsub.f32 %v446_v5, %v14906_v16  ;;  %v540_v18 = vpop.f32.mrb[3].mxu1  ;;  %v17856_v5 = vld [vmem:[%s20645_s4 + $0x48] sm:$0xff]  }
 0x204   :  { %v551_v19 = vsub.f32 %v443_v3, %v540_v18  ;;  %v16593_v20 = vpack.c.bf16 %v554_v14, %v553_v15  ;;  %v17838_v3 = vld [vmem:[%s20645_s4 + $0x38] sm:$0xff]   ;;  %v17916_v15 = vld [vmem:[%s20645_s4 + $0x80] sm:$0xff]   ;;  %v17928_v16 = vld [vmem:[%s20645_s4 + $0x88] sm:$0xff]  }
 0x205   :  { %v556_v21 = vmul.f32 %v552_v17, %v552_v17  ;;  %v17910_v14 = vld [vmem:[%s20645_s4 + $0x78] sm:$0xff]   ;;  %v17058_v18 = vld [vmem:[%s20647_s6] sm:$0xff]  }
 0x206   :  { %v555_v22 = vmul.f32 %v551_v19, %v551_v19  ;;  %16594 = vmatprep.subr.bf16.mxu1 %v16593_v20 }
 0x207   :  { %16596 = vmatpush3.bf16.msra.mxu1 %v16593_v20 }
 0x208   :  { %v16597_v23 = vpack.c.bf16 %v556_v21, %v555_v22 }
 0x20a   :  { %16598 = vmatprep.subr.bf16.mxu1 %v16597_v23 }
 0x20b   :  { %16600 = vmatpush3.bf16.msra.mxu1 %v16597_v23 }
 0x20e   :  { %14916 = vmatmul.mubr.msk.f32.vlgmr.msra.gmra.mrb[4].mxu1 %vm451_vm0, %v17706_v7 }
 0x20f   :  { %14918 = vmatprep.mubr.msk.f32.mxu1 %vm451_vm0, %v17711_v8 }
 0x212   :  { %14919 = vmatmul.mubr.msk.f32.gmra.mrb[6].mxu1 %vm451_vm0, %v17720_v9 }
 0x213   :  { %14933 = vmatprep.mubr.msk.bf16.mxu1 %vm451_vm0, %v17735_v24 }
 0x2e1   :  { %v14917_v26 = vpop.f32.mrb[4].mxu1 }
 0x2e2   :  { %v629_v27 = vadd.f32 1e-05, %v14917_v26  ;;  %v623_v28 = vpop.f32.mrb[5].mxu1 }
 0x2e3   :  { %v624_v29 = vadd.f32 1e-05, %v623_v28 }
 0x2e4   :  { %17342 = vrsqrt.f32 %v629_v27 }
 0x2e5   :  { %17344 = vrsqrt.f32 %v624_v29  ;;  %v14920_v30 = vpop.f32.mrb[6].mxu1 }
 0x2e6   :  { %v639_v31 = vadd.f32 1e-05, %v14920_v30  ;;  %v633_v32 = vpop.f32.mrb[7].mxu1 }
 0x2e7   :  { %v634_v33 = vadd.f32 1e-05, %v633_v32  ;;  %v17059_v32 = vld [vmem:[%s20647_s6 + $0x8] sm:$0xff]  }
 0x2e8   :  { %17346 = vrsqrt.f32 %v639_v31 }
 0x2e9   :  { %17348 = vrsqrt.f32 %v634_v33 }
 0x2ee   :  { %v17343_v34 = vpop.eup %17342 }
 0x2ef   :  { %v17345_v36 = vpop.eup %17344  ;;  %v647_v37 = vmul.f32 %v17343_v34, %v550_v11  ;;  %v17880_v11 = vld [vmem:[%s20645_s4 + $0x60] sm:$0xff]   ;;  %v17060_v34 = vld [vmem:[%s20647_s6 + $0x10] sm:$0xff]  }
 0x2f0   :  { %v646_v39 = vmul.f32 %v17345_v36, %v549_v13  ;;  %v17898_v13 = vld [vmem:[%s20645_s4 + $0x70] sm:$0xff]  }
 0x2f1   :  { %v657_v41 = vmul.f32 %v12821_v35, %v647_v37 }
 0x2f2   :  { %v17347_v42 = vpop.eup %17346  ;;  %v656_v43 = vmul.f32 %v12821_v35, %v646_v39 }
 0x2f3   :  { %v17349_v44 = vpop.eup %17348  ;;  %v17752_v45 = vadd.f32 %v12822_v38, %v657_v41  ;;  %v649_v46 = vmul.f32 %v17347_v42, %v552_v17  ;;  %v17057_v17 = vld [vmem:[%s20647_s6 + $0x38] sm:$0xff]  }
 0x2f4   :  { %v17754_v47 = vadd.f32 %v12822_v38, %v656_v43  ;;  %v648_v48 = vmul.f32 %v17349_v44, %v551_v19  ;;  %v17061_v41 = vld [vmem:[%s20647_s6 + $0x18] sm:$0xff]   ;;  %v17062_v43 = vld [vmem:[%s20647_s6 + $0x40] sm:$0xff]  }
 0x2f5   :  { %v671_v49 = vmax.f32 %v17752_v45, 0.0  ;;  %v659_v50 = vmul.f32 %v12821_v35, %v649_v46 }
 0x2f6   :  { %v670_v51 = vmax.f32 %v17754_v47, 0.0  ;;  %v658_v52 = vmul.f32 %v12821_v35, %v648_v48 }
 0x2f7   :  { %v17758_v53 = vadd.f32 %v12822_v38, %v659_v50 }
 0x2f8   :  { %v17764_v54 = vpack.c.bf16 %v671_v49, %v670_v51  ;;  %v17766_v55 = vadd.f32 %v12822_v38, %v658_v52 }
 0x2f9   :  { %v673_v56 = vmax.f32 %v17758_v53, 0.0  ;;  %v17126_v53 = vld [vmem:[%s20647_s6 + $0x140] sm:$0xff]  }
 0x2fa   :  { %v672_v57 = vmax.f32 %v17766_v55, 0.0  ;;  %14921 = vmatprep.subr.bf16.mxu0 %v17764_v54  ;;  %14929 = vmatprep.subr.bf16.mxu1 %v17764_v54  ;;  %v18508_v55 = vld [vmem:[%s20645_s4 + $0x10] sm:$0xff]  }
 0x2fb   :  { %14922 = vmatpush3.bf16.msra.mxu0 %v17764_v54  ;;  %14930 = vmatpush3.bf16.msra.mxu1 %v17764_v54 }
 0x2fc   :  { %v17778_v58 = vpack.c.bf16 %v673_v56, %v672_v57 }
 0x2fe   :  { %14923 = vmatprep.subr.bf16.mxu0 %v17778_v58  ;;  %14931 = vmatprep.subr.bf16.mxu1 %v17778_v58 }
 0x2ff   :  { %14924 = vmatpush3.bf16.msra.mxu0 %v17778_v58  ;;  %14932 = vmatpush3.bf16.msra.mxu1 %v17778_v58 }
 0x300   :  { %14961 = vmatprep.subr.bf16.mxu1 %v17764_v54  ;;  %14937 = vmatprep.subr.bf16.mxu0 %v17054_v59 }
 0x302   :  { %14934 = vmatmul.mubr.msk.bf16.vlgmr.msra.gmra.mrb[8].mxu1 %vm451_vm0, %v17788_v60  ;;  %14926 = vmatmul.mubr.msk.bf16.vlgmr.msra.gmra.mrb[16].mxu0 %vm451_vm0, %v17793_v61 }
 0x303   :  { %14962 = vmatpush3.bf16.msra.mxu1 %v17764_v54  ;;  %14965 = vmatprep.mubr.msk.bf16.mxu1 %vm451_vm0, %v17800_v62 }
 0x304   :  { %14963 = vmatprep.subr.bf16.mxu1 %v17778_v58  ;;  %14938 = vmatpush3.bf16.msra.mxu0 %v17054_v59  ;;  %v17064_v59 = vld [vmem:[%s20647_s6 + $0x50] sm:$0xff]  }
 0x305   :  { %14939 = vmatprep.subr.bf16.mxu0 %v17055_v63 }
 0x307   :  { %14964 = vmatpush3.bf16.msra.mxu1 %v17778_v58 }
 0x308   :  { %14981 = vmatprep.subr.bf16.mxu1 %v17764_v54  ;;  %14940 = vmatpush3.bf16.msra.mxu0 %v17055_v63 }
 0x309   :  { %14941 = vmatprep.subr.bf16.mxu0 %v17056_v0 }
 0x30a   :  { %14966 = vmatmul.mubr.msk.bf16.vlgmr.msra.gmra.mrb[12].mxu1 %vm451_vm0, %v17820_v1 }
 0x30b   :  { %14982 = vmatpush3.bf16.msra.mxu1 %v17764_v54  ;;  %14985 = vmatprep.mubr.msk.bf16.mxu1 %vm451_vm0, %v17826_v2 }
 0x30c   :  { %14983 = vmatprep.subr.bf16.mxu1 %v17778_v58  ;;  %14942 = vmatpush3.bf16.msra.mxu0 %v17056_v0 }
 0x30d   :  { %14943 = vmatprep.subr.bf16.mxu0 %v17057_v17 }
 0x30f   :  { %14984 = vmatpush3.bf16.msra.mxu1 %v17778_v58 }
 0x310   :  { %15001 = vmatprep.subr.bf16.mxu1 %v17764_v54  ;;  %14944 = vmatpush3.bf16.msra.mxu0 %v17057_v17 }
 0x311   :  { %14949 = vmatprep.subr.bf16.mxu0 %v17058_v18 }
 0x312   :  { %14986 = vmatmul.mubr.msk.bf16.vlgmr.msra.gmra.mrb[16].mxu1 %vm451_vm0, %v17838_v3 }
 0x313   :  { %15002 = vmatpush3.bf16.msra.mxu1 %v17764_v54  ;;  %15005 = vmatprep.mubr.msk.bf16.mxu1 %vm451_vm0, %v17844_v4 }
 0x314   :  { %15003 = vmatprep.subr.bf16.mxu1 %v17778_v58 }
 0x317   :  { %15004 = vmatpush3.bf16.msra.mxu1 %v17778_v58 }
 0x318   :  { %15021 = vmatprep.subr.bf16.mxu1 %v17764_v54 }
 0x31a   :  { %15006 = vmatmul.mubr.msk.bf16.vlgmr.msra.gmra.mrb[20].mxu1 %vm451_vm0, %v17856_v5 }
 0x31b   :  { %15022 = vmatpush3.bf16.msra.mxu1 %v17764_v54  ;;  %15025 = vmatprep.mubr.msk.bf16.mxu1 %vm451_vm0, %v17862_v6 }
 0x31c   :  { %15023 = vmatprep.subr.bf16.mxu1 %v17778_v58 }
 0x31f   :  { %15024 = vmatpush3.bf16.msra.mxu1 %v17778_v58 }
 0x320   :  { %15041 = vmatprep.subr.bf16.mxu1 %v17764_v54 }
 0x322   :  { %15026 = vmatmul.mubr.msk.bf16.vlgmr.msra.gmra.mrb[24].mxu1 %vm451_vm0, %v17874_v10 }
 0x323   :  { %15042 = vmatpush3.bf16.msra.mxu1 %v17764_v54  ;;  %15045 = vmatprep.mubr.msk.bf16.mxu1 %vm451_vm0, %v17880_v11 }
 0x324   :  { %15043 = vmatprep.subr.bf16.mxu1 %v17778_v58 }
 0x327   :  { %15044 = vmatpush3.bf16.msra.mxu1 %v17778_v58 }
 0x328   :  { %15061 = vmatprep.subr.bf16.mxu1 %v17764_v54 }
 0x32a   :  { %15046 = vmatmul.mubr.msk.bf16.vlgmr.msra.gmra.mrb[28].mxu1 %vm451_vm0, %v17892_v12 }
 0x32b   :  { %15062 = vmatpush3.bf16.msra.mxu1 %v17764_v54  ;;  %15065 = vmatprep.mubr.msk.bf16.mxu1 %vm451_vm0, %v17898_v13 }
 0x32c   :  { %15063 = vmatprep.subr.bf16.mxu1 %v17778_v58 }
 0x32f   :  { %15064 = vmatpush3.bf16.msra.mxu1 %v17778_v58 }
 0x330   :  { %15081 = vmatprep.subr.bf16.mxu1 %v17764_v54 }
 0x332   :  { %15066 = vmatmul.mubr.msk.bf16.vlgmr.msra.gmra.mrb[32].mxu1 %vm451_vm0, %v17910_v14 }
 0x333   :  { %15082 = vmatpush3.bf16.msra.mxu1 %v17764_v54  ;;  %15085 = vmatprep.mubr.msk.bf16.mxu1 %vm451_vm0, %v17916_v15  ;;  %v17063_v54 = vld [vmem:[%s20647_s6 + $0x48] sm:$0xff]  }
 0x334   :  { %15083 = vmatprep.subr.bf16.mxu1 %v17778_v58 }
 0x337   :  { %15084 = vmatpush3.bf16.msra.mxu1 %v17778_v58 }
 0x33a   :  { %15086 = vmatmul.mubr.msk.bf16.vlgmr.msra.gmra.mrb[36].mxu1 %vm451_vm0, %v17928_v16 }
 0x33b   :  { %15109 = vmatprep.mubr.msk.f32.mxu1 %vm451_vm0, %v17699_v40 }
 0x3d5   :  { %v14935_v19 = vpop.f32.mrb[8].mxu1  ;;  %v14927_v20 = vpop.f32.mrb[16].mxu0 }
 0x3d6   :  { %v874_v21 = vpop.f32.mrb[9].mxu1  ;;  %v802_v22 = vpop.f32.mrb[17].mxu0 }
 0x3d7   :  { %v14936_v23 = vpop.f32.mrb[10].mxu1  ;;  %v14928_v26 = vpop.f32.mrb[18].mxu0 }
 0x3d8   :  { %v890_v27 = vpack.c.bf16 %v14936_v23, %v14935_v19  ;;  %v877_v28 = vpop.f32.mrb[11].mxu1  ;;  %v818_v40 = vpack.c.bf16 %v14928_v26, %v14927_v20  ;;  %v805_v29 = vpop.f32.mrb[19].mxu0  ;;  %v17065_v20 = vld [vmem:[%s20647_s6 + $0x58] sm:$0xff]  }
 0x3d9   :  { %v889_v30 = vpack.c.bf16 %v877_v28, %v874_v21  ;;  %v817_v31 = vpack.c.bf16 %v805_v29, %v802_v22  ;;  %v17066_v22 = vld [vmem:[%s20647_s6 + $0x60] sm:$0xff]   ;;  %v17067_v29 = vld [vmem:[%s20647_s6 + $0x68] sm:$0xff]  }
 0x3db   :  { %14945 = vmatprep.mubr.msk.bf16.mxu0 %vm915_vm1, %v889_v30 }
 0x3dc   :  { %14946 = vmatmul.mubr.msk.bf16.vlgmr.msra.gmra.mrb[20].mxu0 %vm915_vm1, %v890_v27 }
 0x3dd   :  { %14950 = vmatpush3.bf16.msra.mxu0 %v17058_v18  ;;  %14957 = vmatprep.mubr.msk.bf16.mxu0 %vm915_vm1, %v817_v31  ;;  %v14967_v33 = vpop.f32.mrb[12].mxu1  ;;  %v17068_v31 = vld [vmem:[%s20647_s6 + $0x70] sm:$0xff]  }
 0x3de   :  { %14951 = vmatprep.subr.bf16.mxu0 %v17059_v32  ;;  %v1105_v35 = vpop.f32.mrb[13].mxu1 }
 0x3df   :  { %v14968_v36 = vpop.f32.mrb[14].mxu1 }
 0x3e0   :  { %v1121_v37 = vpack.c.bf16 %v14968_v36, %v14967_v33  ;;  %v1108_v38 = vpop.f32.mrb[15].mxu1 }
 0x3e1   :  { %14952 = vmatpush3.bf16.msra.mxu0 %v17059_v32  ;;  %v1120_v39 = vpack.c.bf16 %v1108_v38, %v1105_v35 }
 0x3e2   :  { %14953 = vmatprep.subr.bf16.mxu0 %v17060_v34 }
 0x3e5   :  { %14954 = vmatpush3.bf16.msra.mxu0 %v17060_v34  ;;  %v17953_v42 = vpop.f32.mrb[16].mxu1 }
 0x3e6   :  { %14955 = vmatprep.subr.bf16.mxu0 %v17061_v41  ;;  %v1260_v44 = vpop.f32.mrb[17].mxu1 }
 0x3e7   :  { %v14988_v46 = vpop.f32.mrb[18].mxu1 }
 0x3e8   :  { %v1276_v48 = vpack.c.bf16 %v14988_v46, %v17953_v42  ;;  %v1263_v50 = vpop.f32.mrb[19].mxu1 }
 0x3e9   :  { %14956 = vmatpush3.bf16.msra.mxu0 %v17061_v41  ;;  %v1275_v52 = vpack.c.bf16 %v1263_v50, %v1260_v44  ;;  %v17071_v50 = vld [vmem:[%s20647_s6 + $0x88] sm:$0xff]  }
 0x3ea   :  { %14969 = vmatprep.subr.bf16.mxu0 %v17062_v43 }
 0x3ec   :  { %14958 = vmatmul.mubr.msk.bf16.vlgmr.msra.gmra.mrb[20].mxu0 %vm915_vm1, %v818_v40 }
 0x3ed   :  { %14970 = vmatpush3.bf16.msra.mxu0 %v17062_v43  ;;  %14977 = vmatprep.mubr.msk.bf16.mxu0 %vm915_vm1, %v1120_v39  ;;  %v17964_v58 = vpop.f32.mrb[20].mxu1  ;;  %v17070_v39 = vld [vmem:[%s20647_s6 + $0x80] sm:$0xff]  }
 0x3ee   :  { %14971 = vmatprep.subr.bf16.mxu0 %v17063_v54  ;;  %v1415_v63 = vpop.f32.mrb[21].mxu1 }
 0x3ef   :  { %v17969_v0 = vpop.f32.mrb[22].mxu1 }
 0x3f0   :  { %v1431_v17 = vpack.c.bf16 %v17969_v0, %v17964_v58  ;;  %v1418_v18 = vpop.f32.mrb[23].mxu1  ;;  %v17078_v58 = vld [vmem:[%s20647_s6 + $0xc0] sm:$0xff]   ;;  %v17079_v0 = vld [vmem:[%s20647_s6 + $0xc8] sm:$0xff]  }
 0x3f1   :  { %14972 = vmatpush3.bf16.msra.mxu0 %v17063_v54  ;;  %v1430_v19 = vpack.c.bf16 %v1418_v18, %v1415_v63  ;;  %v17072_v54 = vld [vmem:[%s20647_s6 + $0x90] sm:$0xff]  }
 0x3f2   :  { %14973 = vmatprep.subr.bf16.mxu0 %v17064_v59 }
 0x3f5   :  { %14974 = vmatpush3.bf16.msra.mxu0 %v17064_v59  ;;  %v17976_v21 = vpop.f32.mrb[24].mxu1 }
 0x3f6   :  { %14975 = vmatprep.subr.bf16.mxu0 %v17065_v20  ;;  %v1570_v23 = vpop.f32.mrb[25].mxu1 }
 0x3f7   :  { %v17981_v26 = vpop.f32.mrb[26].mxu1 }
 0x3f8   :  { %v1586_v27 = vpack.c.bf16 %v17981_v26, %v17976_v21  ;;  %v1573_v28 = vpop.f32.mrb[27].mxu1  ;;  %v17082_v21 = vld [vmem:[%s20647_s6 + $0xe0] sm:$0xff]   ;;  %v17083_v26 = vld [vmem:[%s20647_s6 + $0xe8] sm:$0xff]  }
 0x3f9   :  { %14976 = vmatpush3.bf16.msra.mxu0 %v17065_v20  ;;  %v1585_v40 = vpack.c.bf16 %v1573_v28, %v1570_v23  ;;  %v17075_v23 = vld [vmem:[%s20647_s6 + $0xa8] sm:$0xff]   ;;  %v17076_v28 = vld [vmem:[%s20647_s6 + $0xb0] sm:$0xff]  }
 0x3fa   :  { %14989 = vmatprep.subr.bf16.mxu0 %v17066_v22 }
 0x3fc   :  { %14978 = vmatmul.mubr.msk.bf16.vlgmr.msra.gmra.mrb[20].mxu0 %vm915_vm1, %v1121_v37  ;;  %v17069_v37 = vld [vmem:[%s20647_s6 + $0x78] sm:$0xff]  }
 0x3fd   :  { %14990 = vmatpush3.bf16.msra.mxu0 %v17066_v22  ;;  %14997 = vmatprep.mubr.msk.bf16.mxu0 %vm915_vm1, %v1275_v52  ;;  %v17990_v30 = vpop.f32.mrb[28].mxu1 }
 0x3fe   :  { %14991 = vmatprep.subr.bf16.mxu0 %v17067_v29  ;;  %v1725_v32 = vpop.f32.mrb[29].mxu1 }
 0x3ff   :  { %v17995_v33 = vpop.f32.mrb[30].mxu1 }
 0x400   :  { %v1741_v34 = vpack.c.bf16 %v17995_v33, %v17990_v30  ;;  %v1728_v35 = vpop.f32.mrb[31].mxu1  ;;  %v17086_v30 = vld [vmem:[%s20647_s6 + $0x100] sm:$0xff]   ;;  %v17088_v33 = vld [vmem:[%s20647_s6 + $0x110] sm:$0xff]  }
 0x401   :  { %14992 = vmatpush3.bf16.msra.mxu0 %v17067_v29  ;;  %v1740_v36 = vpack.c.bf16 %v1728_v35, %v1725_v32  ;;  %v17077_v29 = vld [vmem:[%s20647_s6 + $0xb8] sm:$0xff]   ;;  %v17087_v32 = vld [vmem:[%s20647_s6 + $0x108] sm:$0xff]  }
 0x402   :  { %14993 = vmatprep.subr.bf16.mxu0 %v17068_v31 }
 0x405   :  { %14994 = vmatpush3.bf16.msra.mxu0 %v17068_v31  ;;  %v18002_v38 = vpop.f32.mrb[32].mxu1  ;;  %v17085_v31 = vld [vmem:[%s20647_s6 + $0xf8] sm:$0xff]  }
 0x406   :  { %14995 = vmatprep.subr.bf16.mxu0 %v17069_v37  ;;  %v1880_v41 = vpop.f32.mrb[33].mxu1 }
 0x407   :  { %v18007_v42 = vpop.f32.mrb[34].mxu1 }
 0x408   :  { %v1896_v43 = vpack.c.bf16 %v18007_v42, %v18002_v38  ;;  %v1883_v44 = vpop.f32.mrb[35].mxu1 }
 0x409   :  { %14996 = vmatpush3.bf16.msra.mxu0 %v17069_v37  ;;  %v1895_v46 = vpack.c.bf16 %v1883_v44, %v1880_v41 }
 0x40a   :  { %15009 = vmatprep.subr.bf16.mxu0 %v17070_v39 }
 0x40c   :  { %14998 = vmatmul.mubr.msk.bf16.vlgmr.msra.gmra.mrb[20].mxu0 %vm915_vm1, %v1276_v48  ;;  %v17073_v48 = vld [vmem:[%s20647_s6 + $0x98] sm:$0xff]  }
 0x40d   :  { %15010 = vmatpush3.bf16.msra.mxu0 %v17070_v39  ;;  %15017 = vmatprep.mubr.msk.bf16.mxu0 %vm915_vm1, %v1430_v19  ;;  %v18016_v52 = vpop.f32.mrb[36].mxu1  ;;  %v17074_v19 = vld [vmem:[%s20647_s6 + $0xa0] sm:$0xff]  }
 0x40e   :  { %15011 = vmatprep.subr.bf16.mxu0 %v17071_v50  ;;  %v2035_v59 = vpop.f32.mrb[37].mxu1 }
 0x40f   :  { %v18021_v63 = vpop.f32.mrb[38].mxu1 }
 0x410   :  { %v2051_v18 = vpack.c.bf16 %v18021_v63, %v18016_v52  ;;  %v2038_v20 = vpop.f32.mrb[39].mxu1 }
 0x411   :  { %15012 = vmatpush3.bf16.msra.mxu0 %v17071_v50  ;;  %v2050_v22 = vpack.c.bf16 %v2038_v20, %v2035_v59 }
 0x412   :  { %15013 = vmatprep.subr.bf16.mxu0 %v17072_v54 }
 0x415   :  { %15014 = vmatpush3.bf16.msra.mxu0 %v17072_v54 }
 0x416   :  { %15015 = vmatprep.subr.bf16.mxu0 %v17073_v48 }
 0x419   :  { %15016 = vmatpush3.bf16.msra.mxu0 %v17073_v48 }
 0x41a   :  { %15029 = vmatprep.subr.bf16.mxu0 %v17074_v19 }
 0x41c   :  { %15018 = vmatmul.mubr.msk.bf16.vlgmr.msra.gmra.mrb[20].mxu0 %vm915_vm1, %v1431_v17  ;;  %v17080_v17 = vld [vmem:[%s20647_s6 + $0xd0] sm:$0xff]  }
 0x41d   :  { %15030 = vmatpush3.bf16.msra.mxu0 %v17074_v19  ;;  %15037 = vmatprep.mubr.msk.bf16.mxu0 %vm915_vm1, %v1585_v40  ;;  %v17081_v40 = vld [vmem:[%s20647_s6 + $0xd8] sm:$0xff]  }
 0x41e   :  { %15031 = vmatprep.subr.bf16.mxu0 %v17075_v23 }
 0x421   :  { %15032 = vmatpush3.bf16.msra.mxu0 %v17075_v23 }
 0x422   :  { %15033 = vmatprep.subr.bf16.mxu0 %v17076_v28 }
 0x425   :  { %15034 = vmatpush3.bf16.msra.mxu0 %v17076_v28 }
 0x426   :  { %15035 = vmatprep.subr.bf16.mxu0 %v17077_v29 }
 0x429   :  { %15036 = vmatpush3.bf16.msra.mxu0 %v17077_v29 }
 0x42a   :  { %15049 = vmatprep.subr.bf16.mxu0 %v17078_v58 }
 0x42c   :  { %15038 = vmatmul.mubr.msk.bf16.vlgmr.msra.gmra.mrb[20].mxu0 %vm915_vm1, %v1586_v27  ;;  %v17084_v27 = vld [vmem:[%s20647_s6 + $0xf0] sm:$0xff]  }
 0x42d   :  { %15050 = vmatpush3.bf16.msra.mxu0 %v17078_v58  ;;  %15057 = vmatprep.mubr.msk.bf16.mxu0 %vm915_vm1, %v1740_v36 }
 0x42e   :  { %15051 = vmatprep.subr.bf16.mxu0 %v17079_v0 }
 0x431   :  { %15052 = vmatpush3.bf16.msra.mxu0 %v17079_v0 }
 0x432   :  { %15053 = vmatprep.subr.bf16.mxu0 %v17080_v17 }
 0x435   :  { %15054 = vmatpush3.bf16.msra.mxu0 %v17080_v17 }
 0x436   :  { %15055 = vmatprep.subr.bf16.mxu0 %v17081_v40 }
 0x439   :  { %15056 = vmatpush3.bf16.msra.mxu0 %v17081_v40 }
 0x43a   :  { %15069 = vmatprep.subr.bf16.mxu0 %v17082_v21 }
 0x43c   :  { %15058 = vmatmul.mubr.msk.bf16.vlgmr.msra.gmra.mrb[20].mxu0 %vm915_vm1, %v1741_v34  ;;  %v17089_v34 = vld [vmem:[%s20647_s6 + $0x118] sm:$0xff]  }
 0x43d   :  { %15070 = vmatpush3.bf16.msra.mxu0 %v17082_v21  ;;  %15077 = vmatprep.mubr.msk.bf16.mxu0 %vm915_vm1, %v1895_v46 }
 0x43e   :  { %15071 = vmatprep.subr.bf16.mxu0 %v17083_v26 }
 0x441   :  { %15072 = vmatpush3.bf16.msra.mxu0 %v17083_v26 }
 0x442   :  { %15073 = vmatprep.subr.bf16.mxu0 %v17084_v27 }
 0x445   :  { %15074 = vmatpush3.bf16.msra.mxu0 %v17084_v27 }
 0x446   :  { %15075 = vmatprep.subr.bf16.mxu0 %v17085_v31 }
 0x449   :  { %15076 = vmatpush3.bf16.msra.mxu0 %v17085_v31 }
 0x44a   :  { %15089 = vmatprep.subr.bf16.mxu0 %v17086_v30 }
 0x44c   :  { %15078 = vmatmul.mubr.msk.bf16.vlgmr.msra.gmra.mrb[20].mxu0 %vm915_vm1, %v1896_v43 }
 0x44d   :  { %15090 = vmatpush3.bf16.msra.mxu0 %v17086_v30  ;;  %15097 = vmatprep.mubr.msk.bf16.mxu0 %vm915_vm1, %v2050_v22 }
 0x44e   :  { %15091 = vmatprep.subr.bf16.mxu0 %v17087_v32 }
 0x451   :  { %15092 = vmatpush3.bf16.msra.mxu0 %v17087_v32 }
 0x452   :  { %15093 = vmatprep.subr.bf16.mxu0 %v17088_v33 }
 0x455   :  { %15094 = vmatpush3.bf16.msra.mxu0 %v17088_v33 }
 0x456   :  { %15095 = vmatprep.subr.bf16.mxu0 %v17089_v34 }
 0x459   :  { %15096 = vmatpush3.bf16.msra.mxu0 %v17089_v34 }
 0x45c   :  { %15098 = vmatmul.mubr.msk.bf16.vlgmr.msra.gmra.mrb[20].mxu0 %vm915_vm1, %v2051_v18 }
 0x45d   :  { %15193 = vmatprep.mubr.msk.bf16.mxu0 %vm451_vm0, %v17826_v2  ;;  %v18111_v2 = vld [vmem:[%s20646_s5] sm:$0xff] }
 0x52f   :  { %v15099_v35 = vpop.f32.mrb[20].mxu0 }
 0x530   :  { %v2116_v36 = vpop.f32.mrb[21].mxu0 }
 0x531   :  { %v15100_v37 = vpop.f32.mrb[22].mxu0 }
 0x532   :  { %v16605_v38 = vpack.c.bf16 %v15100_v37, %v15099_v35  ;;  %v2119_v39 = vpop.f32.mrb[23].mxu0 }
 0x533   :  { %v16601_v41 = vpack.c.bf16 %v2119_v39, %v2116_v36 }
 0x535   :  { %16602 = vmatprep.subr.bf16.mxu1 %v16601_v41 }
 0x536   :  { %16604 = vmatpush3.bf16.msra.mxu1 %v16601_v41 }
 0x537   :  { %16606 = vmatprep.subr.bf16.mxu1 %v16605_v38 }
 0x53a   :  { %16608 = vmatpush3.bf16.msra.mxu1 %v16605_v38 }
 0x53d   :  { %15110 = vmatmul.mubr.msk.f32.vlgmr.msra.gmra.mrb[40].mxu1 %vm451_vm0, %v17706_v7 }
 0x53e   :  { %15112 = vmatprep.mubr.msk.f32.mxu1 %vm451_vm0, %v17711_v8 }
 0x541   :  { %15113 = vmatmul.mubr.msk.f32.gmra.mrb[42].mxu1 %vm451_vm0, %v17720_v9 }
 0x542   :  { %15123 = vmatprep.mubr.msk.f32.mxu1 %vm451_vm0, %v18111_v2 }
 0x610   :  { %v15111_v42 = vpop.f32.mrb[40].mxu1 }
 0x611   :  { %v2223_v43 = vsub.f32 %v2119_v39, %v15111_v42  ;;  %v2203_v44 = vpop.f32.mrb[41].mxu1 }
 0x612   :  { %v2222_v46 = vsub.f32 %v2116_v36, %v2203_v44 }
 0x613   :  { %v2227_v50 = vmul.f32 %v2223_v43, %v2223_v43 }
 0x614   :  { %v2226_v52 = vmul.f32 %v2222_v46, %v2222_v46  ;;  %v15114_v54 = vpop.f32.mrb[42].mxu1 }
 0x615   :  { %v2225_v59 = vsub.f32 %v15100_v37, %v15114_v54  ;;  %v2213_v63 = vpop.f32.mrb[43].mxu1 }
 0x616   :  { %v2224_v18 = vsub.f32 %v15099_v35, %v2213_v63  ;;  %v16609_v20 = vpack.c.bf16 %v2227_v50, %v2226_v52 }
 0x617   :  { %v2229_v22 = vmul.f32 %v2225_v59, %v2225_v59 }
 0x618   :  { %v2228_v48 = vmul.f32 %v2224_v18, %v2224_v18  ;;  %16610 = vmatprep.subr.bf16.mxu1 %v16609_v20 }
 0x619   :  { %16612 = vmatpush3.bf16.msra.mxu1 %v16609_v20  ;;  %v17095_v20 = vld [vmem:[%s20650_s9 + $0x8] sm:$0xff]  }
 0x61a   :  { %v16613_v19 = vpack.c.bf16 %v2229_v22, %v2228_v48  ;;  %v17096_v22 = vld [vmem:[%s20650_s9 + $0x10] sm:$0xff]   ;;  %v17097_v48 = vld [vmem:[%s20650_s9 + $0x18] sm:$0xff]  }
 0x61c   :  { %16614 = vmatprep.subr.bf16.mxu1 %v16613_v19 }
 0x61d   :  { %16616 = vmatpush3.bf16.msra.mxu1 %v16613_v19  ;;  %v17098_v19 = vld [vmem:[%s20650_s9 + $0x40] sm:$0xff]  }
 0x620   :  { %15124 = vmatmul.mubr.msk.f32.vlgmr.msra.gmra.mrb[44].mxu1 %vm451_vm0, %v17706_v7 }
 0x621   :  { %15126 = vmatprep.mubr.msk.f32.mxu1 %vm451_vm0, %v17711_v8  ;;  %v12953_v8 = vld [vmem:[%s20648_s7] ss:$0 sm:$0xff] }
 0x624   :  { %15127 = vmatmul.mubr.msk.f32.gmra.mrb[46].mxu1 %vm451_vm0, %v17720_v9 }
 0x625   :  { %15133 = vmatprep.mubr.msk.bf16.mxu1 %vm451_vm0, %v17742_v25  ;;  %v12954_v25 = vld [vmem:[%s20649_s8] ss:$0 sm:$0xff] }
 0x6f3   :  { %v15125_v23 = vpop.f32.mrb[44].mxu1 }
 0x6f4   :  { %v2302_v28 = vadd.f32 1e-05, %v15125_v23  ;;  %v2296_v29 = vpop.f32.mrb[45].mxu1  ;;  %v17099_v23 = vld [vmem:[%s20650_s9 + $0x48] sm:$0xff]  }
 0x6f5   :  { %v2297_v58 = vadd.f32 1e-05, %v2296_v29  ;;  %v17102_v29 = vld [vmem:[%s20650_s9 + $0x60] sm:$0xff]  }
 0x6f6   :  { %17350 = vrsqrt.f32 %v2302_v28  ;;  %v17101_v28 = vld [vmem:[%s20650_s9 + $0x58] sm:$0xff]  }
 0x6f7   :  { %17352 = vrsqrt.f32 %v2297_v58  ;;  %v15128_v0 = vpop.f32.mrb[46].mxu1 }
 0x6f8   :  { %v2312_v17 = vadd.f32 1e-05, %v15128_v0  ;;  %v2306_v40 = vpop.f32.mrb[47].mxu1 }
 0x6f9   :  { %v2307_v21 = vadd.f32 1e-05, %v2306_v40 }
 0x6fa   :  { %17354 = vrsqrt.f32 %v2312_v17 }
 0x6fb   :  { %17356 = vrsqrt.f32 %v2307_v21 }
 0x700   :  { %v17351_v7 = vpop.eup %17350 }
 0x701   :  { %v17353_v9 = vpop.eup %17352  ;;  %v2320_v26 = vmul.f32 %v17351_v7, %v2223_v43 }
 0x702   :  { %v2319_v27 = vmul.f32 %v17353_v9, %v2222_v46 }
 0x703   :  { %v2330_v31 = vmul.f32 %v12953_v8, %v2320_v26 }
 0x704   :  { %v17355_v30 = vpop.eup %17354  ;;  %v2329_v32 = vmul.f32 %v12953_v8, %v2319_v27 }
 0x705   :  { %v17357_v33 = vpop.eup %17356  ;;  %v2340_v34 = vadd.f32 %v12954_v25, %v2330_v31  ;;  %v2322_v35 = vmul.f32 %v17355_v30, %v2225_v59  ;;  %v17090_v59 = vld [vmem:[%s20650_s9 + $0x20] sm:$0xff]  }
 0x706   :  { %v2339_v36 = vadd.f32 %v12954_v25, %v2329_v32  ;;  %v2321_v37 = vmul.f32 %v17357_v33, %v2224_v18 }
 0x707   :  { %v2344_v38 = vmax.f32 %v2340_v34, 0.0  ;;  %v2332_v39 = vmul.f32 %v12953_v8, %v2322_v35 }
 0x708   :  { %v2343_v41 = vmax.f32 %v2339_v36, 0.0  ;;  %v2331_v42 = vmul.f32 %v12953_v8, %v2321_v37 }
 0x709   :  { %v2342_v44 = vadd.f32 %v12954_v25, %v2332_v39 }
 0x70a   :  { %v18129_v50 = vpack.c.bf16 %v2344_v38, %v2343_v41  ;;  %v2341_v43 = vadd.f32 %v12954_v25, %v2331_v42 }
 0x70b   :  { %v2346_v52 = vmax.f32 %v2342_v44, 0.0 }
 0x70c   :  { %v2345_v54 = vmax.f32 %v2341_v43, 0.0  ;;  %15129 = vmatprep.subr.bf16.mxu1 %v18129_v50  ;;  %15189 = vmatprep.subr.bf16.mxu0 %v18129_v50 }
 0x70d   :  { %15130 = vmatpush3.bf16.msra.mxu1 %v18129_v50  ;;  %15190 = vmatpush3.bf16.msra.mxu0 %v18129_v50 }
 0x70e   :  { %v18135_v46 = vpack.c.bf16 %v2346_v52, %v2345_v54 }
 0x710   :  { %15131 = vmatprep.subr.bf16.mxu1 %v18135_v46  ;;  %15191 = vmatprep.subr.bf16.mxu0 %v18135_v46 }
 0x711   :  { %15132 = vmatpush3.bf16.msra.mxu1 %v18135_v46  ;;  %15192 = vmatpush3.bf16.msra.mxu0 %v18135_v46 }
 0x712   :  { %15137 = vmatprep.subr.bf16.mxu1 %v18129_v50  ;;  %15209 = vmatprep.subr.bf16.mxu0 %v18129_v50 }
 0x714   :  { %15134 = vmatmul.mubr.msk.bf16.vlgmr.msra.gmra.mrb[48].mxu1 %vm451_vm0, %v17793_v61  ;;  %15194 = vmatmul.mubr.msk.bf16.vlgmr.msra.gmra.mrb[24].mxu0 %vm451_vm0, %v17838_v3  ;;  %v17093_v61 = vld [vmem:[%s20650_s9 + $0x38] sm:$0xff]   ;;  %v17094_v3 = vld [vmem:[%s20650_s9] sm:$0xff]  }
 0x715   :  { %15138 = vmatpush3.bf16.msra.mxu1 %v18129_v50  ;;  %15210 = vmatpush3.bf16.msra.mxu0 %v18129_v50 }
 0x716   :  { %15139 = vmatprep.subr.bf16.mxu1 %v18135_v46  ;;  %15211 = vmatprep.subr.bf16.mxu0 %v18135_v46 }
 0x717   :  { %15141 = vmatprep.mubr.msk.bf16.mxu1 %vm451_vm0, %v17735_v24  ;;  %15213 = vmatprep.mubr.msk.bf16.mxu0 %vm451_vm0, %v17844_v4  ;;  %v17091_v24 = vld [vmem:[%s20650_s9 + $0x28] sm:$0xff]  }
 0x719   :  { %15140 = vmatpush3.bf16.msra.mxu1 %v18135_v46  ;;  %15212 = vmatpush3.bf16.msra.mxu0 %v18135_v46 }
 0x71a   :  { %15229 = vmatprep.subr.bf16.mxu0 %v18129_v50  ;;  %15145 = vmatprep.subr.bf16.mxu1 %v17090_v59 }
 0x71c   :  { %15142 = vmatmul.mubr.msk.bf16.vlgmr.msra.gmra.mrb[52].mxu1 %vm451_vm0, %v17788_v60  ;;  %15214 = vmatmul.mubr.msk.bf16.vlgmr.msra.gmra.mrb[28].mxu0 %vm451_vm0, %v17856_v5  ;;  %v17092_v60 = vld [vmem:[%s20650_s9 + $0x30] sm:$0xff]  }
 0x71d   :  { %15230 = vmatpush3.bf16.msra.mxu0 %v18129_v50  ;;  %15233 = vmatprep.mubr.msk.bf16.mxu0 %vm451_vm0, %v17862_v6 }
 0x71e   :  { %15231 = vmatprep.subr.bf16.mxu0 %v18135_v46  ;;  %15146 = vmatpush3.bf16.msra.mxu1 %v17090_v59 }
 0x71f   :  { %15147 = vmatprep.subr.bf16.mxu1 %v17091_v24 }
 0x721   :  { %15232 = vmatpush3.bf16.msra.mxu0 %v18135_v46 }
 0x722   :  { %15249 = vmatprep.subr.bf16.mxu0 %v18129_v50  ;;  %15148 = vmatpush3.bf16.msra.mxu1 %v17091_v24 }
 0x723   :  { %15149 = vmatprep.subr.bf16.mxu1 %v17092_v60 }
 0x724   :  { %15234 = vmatmul.mubr.msk.bf16.vlgmr.msra.gmra.mrb[32].mxu0 %vm451_vm0, %v17874_v10 }
 0x725   :  { %15250 = vmatpush3.bf16.msra.mxu0 %v18129_v50  ;;  %15253 = vmatprep.mubr.msk.bf16.mxu0 %vm451_vm0, %v17880_v11 }
 0x726   :  { %15251 = vmatprep.subr.bf16.mxu0 %v18135_v46  ;;  %15150 = vmatpush3.bf16.msra.mxu1 %v17092_v60 }
 0x727   :  { %15151 = vmatprep.subr.bf16.mxu1 %v17093_v61 }
 0x729   :  { %15252 = vmatpush3.bf16.msra.mxu0 %v18135_v46 }
 0x72a   :  { %15269 = vmatprep.subr.bf16.mxu0 %v18129_v50  ;;  %15152 = vmatpush3.bf16.msra.mxu1 %v17093_v61 }
 0x72b   :  { %15157 = vmatprep.subr.bf16.mxu1 %v17094_v3 }
 0x72c   :  { %15254 = vmatmul.mubr.msk.bf16.vlgmr.msra.gmra.mrb[36].mxu0 %vm451_vm0, %v17892_v12 }
 0x72d   :  { %15270 = vmatpush3.bf16.msra.mxu0 %v18129_v50  ;;  %15273 = vmatprep.mubr.msk.bf16.mxu0 %vm451_vm0, %v17898_v13 }
 0x72e   :  { %15271 = vmatprep.subr.bf16.mxu0 %v18135_v46 }
 0x731   :  { %15272 = vmatpush3.bf16.msra.mxu0 %v18135_v46 }
 0x732   :  { %15289 = vmatprep.subr.bf16.mxu0 %v18129_v50 }
 0x734   :  { %15274 = vmatmul.mubr.msk.bf16.vlgmr.msra.gmra.mrb[40].mxu0 %vm451_vm0, %v17910_v14 }
 0x735   :  { %15290 = vmatpush3.bf16.msra.mxu0 %v18129_v50  ;;  %15293 = vmatprep.mubr.msk.bf16.mxu0 %vm451_vm0, %v17916_v15 }
 0x736   :  { %15291 = vmatprep.subr.bf16.mxu0 %v18135_v46 }
 0x739   :  { %15292 = vmatpush3.bf16.msra.mxu0 %v18135_v46 }
 0x73c   :  { %15294 = vmatmul.mubr.msk.bf16.vlgmr.msra.gmra.mrb[44].mxu0 %vm451_vm0, %v17928_v16 }
 0x73d   :  { %15317 = vmatprep.mubr.msk.f32.mxu0 %vm451_vm0, %v18111_v2 }
 0x7e7   :  { %v15135_v4 = vpop.f32.mrb[48].mxu1 }
 0x7e8   :  { %v2455_v5 = vpop.f32.mrb[49].mxu1 }
 0x7e9   :  { %v15136_v6 = vpop.f32.mrb[50].mxu1 }
 0x7ea   :  { %v2471_v10 = vpack.c.bf16 %v15136_v6, %v15135_v4  ;;  %v2458_v11 = vpop.f32.mrb[51].mxu1 }
 0x7eb   :  { %v2470_v12 = vpack.c.bf16 %v2458_v11, %v2455_v5 }
 0x7ef   :  { %v15143_v13 = vpop.f32.mrb[52].mxu1 }
 0x7f0   :  { %v2506_v14 = vpop.f32.mrb[53].mxu1 }
 0x7f1   :  { %v15144_v15 = vpop.f32.mrb[54].mxu1 }
 0x7f2   :  { %v2522_v16 = vpack.c.bf16 %v15144_v15, %v15143_v13  ;;  %v2509_v63 = vpop.f32.mrb[55].mxu1  ;;  %v17104_v15 = vld [vmem:[%s20650_s9 + $0x70] sm:$0xff]  }
 0x7f3   :  { %v2521_v18 = vpack.c.bf16 %v2509_v63, %v2506_v14  ;;  %v17103_v14 = vld [vmem:[%s20650_s9 + $0x68] sm:$0xff]   ;;  %v17106_v63 = vld [vmem:[%s20650_s9 + $0x80] sm:$0xff]  }
 0x7f5   :  { %15153 = vmatprep.mubr.msk.bf16.mxu1 %vm915_vm1, %v2521_v18  ;;  %v17107_v18 = vld [vmem:[%s20650_s9 + $0x88] sm:$0xff]  }
 0x7f6   :  { %15154 = vmatmul.mubr.msk.bf16.vlgmr.msra.gmra.mrb[56].mxu1 %vm915_vm1, %v2522_v16  ;;  %v17105_v16 = vld [vmem:[%s20650_s9 + $0x78] sm:$0xff]  }
 0x7f7   :  { %15158 = vmatpush3.bf16.msra.mxu1 %v17094_v3  ;;  %15165 = vmatprep.mubr.msk.bf16.mxu1 %vm915_vm1, %v2470_v12 }
 0x7f8   :  { %15159 = vmatprep.subr.bf16.mxu1 %v17095_v20 }
 0x7fb   :  { %15160 = vmatpush3.bf16.msra.mxu1 %v17095_v20  ;;  %v17108_v20 = vld [vmem:[%s20650_s9 + $0x90] sm:$0xff]  }
 0x7fc   :  { %15161 = vmatprep.subr.bf16.mxu1 %v17096_v22 }
 0x7ff   :  { %15162 = vmatpush3.bf16.msra.mxu1 %v17096_v22  ;;  %v17109_v22 = vld [vmem:[%s20650_s9 + $0x98] sm:$0xff]  }
 0x800   :  { %15163 = vmatprep.subr.bf16.mxu1 %v17097_v48 }
 0x803   :  { %15164 = vmatpush3.bf16.msra.mxu1 %v17097_v48  ;;  %v17110_v48 = vld [vmem:[%s20650_s9 + $0xa0] sm:$0xff]  }
 0x804   :  { %15169 = vmatprep.subr.bf16.mxu1 %v18129_v50 }
 0x806   :  { %15166 = vmatmul.mubr.msk.bf16.vlgmr.msra.gmra.mrb[56].mxu1 %vm915_vm1, %v2471_v10 }
 0x807   :  { %15170 = vmatpush3.bf16.msra.mxu1 %v18129_v50  ;;  %15173 = vmatprep.mubr.msk.bf16.mxu1 %vm451_vm0, %v17800_v62  ;;  %v17100_v62 = vld [vmem:[%s20650_s9 + $0x50] sm:$0xff]  }
 0x808   :  { %15171 = vmatprep.subr.bf16.mxu1 %v18135_v46 }
 0x80b   :  { %15172 = vmatpush3.bf16.msra.mxu1 %v18135_v46 }
 0x80c   :  { %15177 = vmatprep.subr.bf16.mxu1 %v17098_v19 }
 0x80e   :  { %15174 = vmatmul.mubr.msk.bf16.vlgmr.msra.gmra.mrb[60].mxu1 %vm451_vm0, %v17820_v1  ;;  %v15195_v1 = vpop.f32.mrb[24].mxu0 }
 0x80f   :  { %15178 = vmatpush3.bf16.msra.mxu1 %v17098_v19  ;;  %v2849_v58 = vpop.f32.mrb[25].mxu0  ;;  %v17111_v19 = vld [vmem:[%s20650_s9 + $0xa8] sm:$0xff]  }
 0x810   :  { %15179 = vmatprep.subr.bf16.mxu1 %v17099_v23  ;;  %v15196_v0 = vpop.f32.mrb[26].mxu0 }
 0x811   :  { %v2865_v17 = vpack.c.bf16 %v15196_v0, %v15195_v1  ;;  %v2852_v40 = vpop.f32.mrb[27].mxu0  ;;  %v17116_v1 = vld [vmem:[%s20650_s9 + $0xd0] sm:$0xff]   ;;  %v17118_v0 = vld [vmem:[%s20650_s9 + $0xe0] sm:$0xff]  }
 0x812   :  { %v2864_v21 = vpack.c.bf16 %v2852_v40, %v2849_v58  ;;  %v18246_v7 = vpop.f32.mrb[28].mxu0  ;;  %v17117_v58 = vld [vmem:[%s20650_s9 + $0xd8] sm:$0xff]   ;;  %v17120_v40 = vld [vmem:[%s20650_s9 + $0xf0] sm:$0xff]  }
 0x813   :  { %15180 = vmatpush3.bf16.msra.mxu1 %v17099_v23  ;;  %v2983_v8 = vpop.f32.mrb[29].mxu0  ;;  %v17112_v23 = vld [vmem:[%s20650_s9 + $0xb0] sm:$0xff]  }
 0x814   :  { %15181 = vmatprep.subr.bf16.mxu1 %v17100_v62  ;;  %v18248_v9 = vpop.f32.mrb[30].mxu0 }
 0x815   :  { %v2999_v26 = vpack.c.bf16 %v18248_v9, %v18246_v7  ;;  %v2986_v25 = vpop.f32.mrb[31].mxu0  ;;  %v17122_v7 = vld [vmem:[%s20650_s9 + $0x100] sm:$0xff]   ;;  %v17124_v9 = vld [vmem:[%s20650_s9 + $0x110] sm:$0xff]  }
 0x816   :  { %v2998_v27 = vpack.c.bf16 %v2986_v25, %v2983_v8  ;;  %v18252_v31 = vpop.f32.mrb[32].mxu0  ;;  %v17123_v8 = vld [vmem:[%s20650_s9 + $0x108] sm:$0xff]   ;;  %v18404_v25 = vld [vmem:[%s20645_s4 + $0x20] sm:$0xff]  }
 0x817   :  { %15182 = vmatpush3.bf16.msra.mxu1 %v17100_v62  ;;  %v3117_v30 = vpop.f32.mrb[33].mxu0  ;;  %v17113_v62 = vld [vmem:[%s20650_s9 + $0xb8] sm:$0xff]  }
 0x818   :  { %15183 = vmatprep.subr.bf16.mxu1 %v17101_v28  ;;  %v18254_v32 = vpop.f32.mrb[34].mxu0 }
 0x819   :  { %v3133_v33 = vpack.c.bf16 %v18254_v32, %v18252_v31  ;;  %v3120_v34 = vpop.f32.mrb[35].mxu0 }
 0x81a   :  { %v3132_v35 = vpack.c.bf16 %v3120_v34, %v3117_v30  ;;  %v18258_v36 = vpop.f32.mrb[36].mxu0 }
 0x81b   :  { %15184 = vmatpush3.bf16.msra.mxu1 %v17101_v28  ;;  %v18260_v37 = vpop.f32.mrb[37].mxu0  ;;  %v17114_v28 = vld [vmem:[%s20650_s9 + $0xc0] sm:$0xff]  }
 0x81c   :  { %15197 = vmatprep.subr.bf16.mxu1 %v17102_v29  ;;  %v18262_v38 = vpop.f32.mrb[38].mxu0 }
 0x81d   :  { %v3267_v39 = vpack.c.bf16 %v18262_v38, %v18258_v36  ;;  %v18266_v41 = vpop.f32.mrb[39].mxu0  ;;  %v18418_v36 = vld [vmem:[%s20646_s5 + $0x10] sm:$0xff] }
 0x81e   :  { %v3266_v42 = vpack.c.bf16 %v18266_v41, %v18260_v37  ;;  %v18270_v44 = vpop.f32.mrb[40].mxu0  ;;  %v18425_v37 = vld [vmem:[%s20646_s5 + $0x18] sm:$0xff] }
 0x81f   :  { %v18272_v50 = vpop.f32.mrb[41].mxu0 }
 0x820   :  { %v18274_v43 = vpop.f32.mrb[42].mxu0 }
 0x821   :  { %v3401_v52 = vpack.c.bf16 %v18274_v43, %v18270_v44  ;;  %v18278_v54 = vpop.f32.mrb[43].mxu0 }
 0x822   :  { %v3400_v46 = vpack.c.bf16 %v18278_v54, %v18272_v50  ;;  %v18282_v59 = vpop.f32.mrb[44].mxu0 }
 0x823   :  { %v18284_v24 = vpop.f32.mrb[45].mxu0 }
 0x824   :  { %v18286_v60 = vpop.f32.mrb[46].mxu0 }
 0x825   :  { %v3535_v61 = vpack.c.bf16 %v18286_v60, %v18282_v59  ;;  %v18290_v3 = vpop.f32.mrb[47].mxu0 }
 0x826   :  { %v3534_v4 = vpack.c.bf16 %v18290_v3, %v18284_v24  ;;  %v18440_v3 = vld [vmem:[%s20645_s4] sm:$0xff]  }
 0x8e1   :  { %v15175_v5 = vpop.f32.mrb[60].mxu1 }
 0x8e2   :  { %v2715_v6 = vpop.f32.mrb[61].mxu1 }
 0x8e3   :  { %v15176_v10 = vpop.f32.mrb[62].mxu1 }
 0x8e4   :  { %v2731_v11 = vpack.c.bf16 %v15176_v10, %v15175_v5  ;;  %v2718_v12 = vpop.f32.mrb[63].mxu1 }
 0x8e5   :  { %v2730_v13 = vpack.c.bf16 %v2718_v12, %v2715_v6 }
 0x8e7   :  { %15185 = vmatprep.mubr.msk.bf16.mxu1 %vm915_vm1, %v2730_v13 }
 0x8e8   :  { %15186 = vmatmul.mubr.msk.bf16.vlgmr.msra.gmra.mrb[56].mxu1 %vm915_vm1, %v2731_v11 }
 0x8e9   :  { %15198 = vmatpush3.bf16.msra.mxu1 %v17102_v29  ;;  %15205 = vmatprep.mubr.msk.bf16.mxu1 %vm915_vm1, %v2864_v21  ;;  %v17115_v29 = vld [vmem:[%s20650_s9 + $0xc8] sm:$0xff]   ;;  %v17121_v21 = vld [vmem:[%s20650_s9 + $0xf8] sm:$0xff]  }
 0x8ea   :  { %15199 = vmatprep.subr.bf16.mxu1 %v17103_v14 }
 0x8ed   :  { %15200 = vmatpush3.bf16.msra.mxu1 %v17103_v14 }
 0x8ee   :  { %15201 = vmatprep.subr.bf16.mxu1 %v17104_v15 }
 0x8f1   :  { %15202 = vmatpush3.bf16.msra.mxu1 %v17104_v15 }
 0x8f2   :  { %15203 = vmatprep.subr.bf16.mxu1 %v17105_v16 }
 0x8f5   :  { %15204 = vmatpush3.bf16.msra.mxu1 %v17105_v16  ;;  %v13035_v16 = vld [vmem:[%s20651_s10] ss:$0 sm:$0xff] }
 0x8f6   :  { %15217 = vmatprep.subr.bf16.mxu1 %v17106_v63 }
 0x8f8   :  { %15206 = vmatmul.mubr.msk.bf16.vlgmr.msra.gmra.mrb[56].mxu1 %vm915_vm1, %v2865_v17  ;;  %v17119_v17 = vld [vmem:[%s20650_s9 + $0xe8] sm:$0xff]  }
 0x8f9   :  { %15218 = vmatpush3.bf16.msra.mxu1 %v17106_v63  ;;  %15225 = vmatprep.mubr.msk.bf16.mxu1 %vm915_vm1, %v2998_v27 }
 0x8fa   :  { %15219 = vmatprep.subr.bf16.mxu1 %v17107_v18 }
 0x8fd   :  { %15220 = vmatpush3.bf16.msra.mxu1 %v17107_v18 }
 0x8fe   :  { %15221 = vmatprep.subr.bf16.mxu1 %v17108_v20 }
 0x901   :  { %15222 = vmatpush3.bf16.msra.mxu1 %v17108_v20  ;;  %v13036_v20 = vld [vmem:[%s20652_s11] ss:$0 sm:$0xff] }
 0x902   :  { %15223 = vmatprep.subr.bf16.mxu1 %v17109_v22 }
 0x905   :  { %15224 = vmatpush3.bf16.msra.mxu1 %v17109_v22 }
 0x906   :  { %15237 = vmatprep.subr.bf16.mxu1 %v17110_v48 }
 0x908   :  { %15226 = vmatmul.mubr.msk.bf16.vlgmr.msra.gmra.mrb[56].mxu1 %vm915_vm1, %v2999_v26  ;;  %v17125_v26 = vld [vmem:[%s20650_s9 + $0x118] sm:$0xff]  }
 0x909   :  { %15238 = vmatpush3.bf16.msra.mxu1 %v17110_v48  ;;  %15245 = vmatprep.mubr.msk.bf16.mxu1 %vm915_vm1, %v3132_v35  ;;  %v18411_v35 = vld [vmem:[%s20646_s5 + $0x8] sm:$0xff] }
 0x90a   :  { %15239 = vmatprep.subr.bf16.mxu1 %v17111_v19 }
 0x90d   :  { %15240 = vmatpush3.bf16.msra.mxu1 %v17111_v19 }
 0x90e   :  { %15241 = vmatprep.subr.bf16.mxu1 %v17112_v23 }
 0x911   :  { %15242 = vmatpush3.bf16.msra.mxu1 %v17112_v23 }
 0x912   :  { %15243 = vmatprep.subr.bf16.mxu1 %v17113_v62 }
 0x915   :  { %15244 = vmatpush3.bf16.msra.mxu1 %v17113_v62 }
 0x916   :  { %15257 = vmatprep.subr.bf16.mxu1 %v17114_v28 }
 0x918   :  { %15246 = vmatmul.mubr.msk.bf16.vlgmr.msra.gmra.mrb[56].mxu1 %vm915_vm1, %v3133_v33 }
 0x919   :  { %15258 = vmatpush3.bf16.msra.mxu1 %v17114_v28  ;;  %15265 = vmatprep.mubr.msk.bf16.mxu1 %vm915_vm1, %v3266_v42 }
 0x91a   :  { %15259 = vmatprep.subr.bf16.mxu1 %v17115_v29 }
 0x91d   :  { %15260 = vmatpush3.bf16.msra.mxu1 %v17115_v29 }
 0x91e   :  { %15261 = vmatprep.subr.bf16.mxu1 %v17116_v1 }
 0x921   :  { %15262 = vmatpush3.bf16.msra.mxu1 %v17116_v1 }
 0x922   :  { %15263 = vmatprep.subr.bf16.mxu1 %v17117_v58 }
 0x925   :  { %15264 = vmatpush3.bf16.msra.mxu1 %v17117_v58 }
 0x926   :  { %15277 = vmatprep.subr.bf16.mxu1 %v17118_v0 }
 0x928   :  { %15266 = vmatmul.mubr.msk.bf16.vlgmr.msra.gmra.mrb[56].mxu1 %vm915_vm1, %v3267_v39 }
 0x929   :  { %15278 = vmatpush3.bf16.msra.mxu1 %v17118_v0  ;;  %15285 = vmatprep.mubr.msk.bf16.mxu1 %vm915_vm1, %v3400_v46 }
 0x92a   :  { %15279 = vmatprep.subr.bf16.mxu1 %v17119_v17 }
 0x92d   :  { %15280 = vmatpush3.bf16.msra.mxu1 %v17119_v17 }
 0x92e   :  { %15281 = vmatprep.subr.bf16.mxu1 %v17120_v40 }
 0x931   :  { %15282 = vmatpush3.bf16.msra.mxu1 %v17120_v40 }
 0x932   :  { %15283 = vmatprep.subr.bf16.mxu1 %v17121_v21 }
 0x935   :  { %15284 = vmatpush3.bf16.msra.mxu1 %v17121_v21 }
 0x936   :  { %15297 = vmatprep.subr.bf16.mxu1 %v17122_v7 }
 0x938   :  { %15286 = vmatmul.mubr.msk.bf16.vlgmr.msra.gmra.mrb[56].mxu1 %vm915_vm1, %v3401_v52 }
 0x939   :  { %15298 = vmatpush3.bf16.msra.mxu1 %v17122_v7  ;;  %15305 = vmatprep.mubr.msk.bf16.mxu1 %vm915_vm1, %v3534_v4 }
 0x93a   :  { %15299 = vmatprep.subr.bf16.mxu1 %v17123_v8 }
 0x93d   :  { %15300 = vmatpush3.bf16.msra.mxu1 %v17123_v8 }
 0x93e   :  { %15301 = vmatprep.subr.bf16.mxu1 %v17124_v9 }
 0x941   :  { %15302 = vmatpush3.bf16.msra.mxu1 %v17124_v9 }
 0x942   :  { %15303 = vmatprep.subr.bf16.mxu1 %v17125_v26 }
 0x945   :  { %15304 = vmatpush3.bf16.msra.mxu1 %v17125_v26 }
 0x948   :  { %15306 = vmatmul.mubr.msk.bf16.vlgmr.msra.gmra.mrb[56].mxu1 %vm915_vm1, %v3535_v61 }
 0x949   :  { %15381 = vmatprep.mubr.msk.bf16.mxu1 %vm451_vm0, %v18404_v25 }
 0xa1b   :  { %v15307_v27 = vpop.f32.mrb[56].mxu1 }
 0xa1c   :  { %v3600_v31 = vpop.f32.mrb[57].mxu1 }
 0xa1d   :  { %v15308_v30 = vpop.f32.mrb[58].mxu1 }
 0xa1e   :  { %v16621_v32 = vpack.c.bf16 %v15308_v30, %v15307_v27  ;;  %v3603_v33 = vpop.f32.mrb[59].mxu1 }
 0xa1f   :  { %v16617_v34 = vpack.c.bf16 %v3603_v33, %v3600_v31 }
 0xa21   :  { %16618 = vmatprep.subr.bf16.mxu0 %v16617_v34 }
 0xa22   :  { %16620 = vmatpush3.bf16.msra.mxu0 %v16617_v34  ;;  %v18576_v34 = vld [vmem:[%s20645_s4 + $0x60] sm:$0xff]  }
 0xa23   :  { %16622 = vmatprep.subr.bf16.mxu0 %v16621_v32 }
 0xa26   :  { %16624 = vmatpush3.bf16.msra.mxu0 %v16621_v32  ;;  %v18558_v32 = vld [vmem:[%s20645_s4 + $0x50] sm:$0xff]  }
 0xa29   :  { %15318 = vmatmul.mubr.msk.f32.vlgmr.msra.gmra.mrb[48].mxu0 %vm451_vm0, %v18411_v35 }
 0xa2a   :  { %15320 = vmatprep.mubr.msk.f32.mxu0 %vm451_vm0, %v18418_v36 }
 0xa2d   :  { %15321 = vmatmul.mubr.msk.f32.gmra.mrb[50].mxu0 %vm451_vm0, %v18425_v37 }
 0xa2e   :  { %15331 = vmatprep.mubr.msk.f32.mxu0 %vm451_vm0, %v18111_v2 }
 0xafc   :  { %v15319_v38 = vpop.f32.mrb[48].mxu0 }
 0xafd   :  { %v3707_v39 = vsub.f32 %v3603_v33, %v15319_v38  ;;  %v3687_v41 = vpop.f32.mrb[49].mxu0  ;;  %v18568_v33 = vld [vmem:[%s20645_s4 + $0x58] sm:$0xff]   ;;  %v18586_v38 = vld [vmem:[%s20645_s4 + $0x68] sm:$0xff]  }
 0xafe   :  { %v3706_v42 = vsub.f32 %v3600_v31, %v3687_v41  ;;  %v18540_v31 = vld [vmem:[%s20645_s4 + $0x40] sm:$0xff]   ;;  %v18604_v41 = vld [vmem:[%s20645_s4 + $0x78] sm:$0xff]  }
 0xaff   :  { %v3711_v44 = vmul.f32 %v3707_v39, %v3707_v39 }
 0xb00   :  { %v3710_v50 = vmul.f32 %v3706_v42, %v3706_v42  ;;  %v15322_v43 = vpop.f32.mrb[50].mxu0 }
 0xb01   :  { %v3709_v52 = vsub.f32 %v15308_v30, %v15322_v43  ;;  %v3697_v54 = vpop.f32.mrb[51].mxu0  ;;  %v18550_v30 = vld [vmem:[%s20645_s4 + $0x48] sm:$0xff]   ;;  %v17128_v43 = vld [vmem:[%s20647_s6 + $0x150] sm:$0xff]  }
 0xb02   :  { %v3708_v46 = vsub.f32 %v15307_v27, %v3697_v54  ;;  %v16625_v59 = vpack.c.bf16 %v3711_v44, %v3710_v50  ;;  %v18532_v27 = vld [vmem:[%s20645_s4 + $0x38] sm:$0xff]   ;;  %v18621_v44 = vld [vmem:[%s20645_s4 + $0x88] sm:$0xff]  }
 0xb03   :  { %v3713_v24 = vmul.f32 %v3709_v52, %v3709_v52  ;;  %v17127_v50 = vld [vmem:[%s20647_s6 + $0x148] sm:$0xff]  }
 0xb04   :  { %v3712_v60 = vmul.f32 %v3708_v46, %v3708_v46  ;;  %16626 = vmatprep.subr.bf16.mxu0 %v16625_v59 }
 0xb05   :  { %16628 = vmatpush3.bf16.msra.mxu0 %v16625_v59 }
 0xb06   :  { %v16629_v61 = vpack.c.bf16 %v3713_v24, %v3712_v60 }
 0xb08   :  { %16630 = vmatprep.subr.bf16.mxu0 %v16629_v61 }
 0xb09   :  { %16632 = vmatpush3.bf16.msra.mxu0 %v16629_v61 }
 0xb0c   :  { %15332 = vmatmul.mubr.msk.f32.vlgmr.msra.gmra.mrb[52].mxu0 %vm451_vm0, %v18411_v35 }
 0xb0d   :  { %15334 = vmatprep.mubr.msk.f32.mxu0 %vm451_vm0, %v18418_v36 }
 0xb10   :  { %15335 = vmatmul.mubr.msk.f32.gmra.mrb[54].mxu0 %vm451_vm0, %v18425_v37 }
 0xb11   :  { %15341 = vmatprep.mubr.msk.bf16.mxu0 %vm451_vm0, %v18440_v3 }
 0xbdf   :  { %v15333_v4 = vpop.f32.mrb[52].mxu0 }
 0xbe0   :  { %v3786_v5 = vadd.f32 1e-05, %v15333_v4  ;;  %v3780_v6 = vpop.f32.mrb[53].mxu0 }
 0xbe1   :  { %v3781_v10 = vadd.f32 1e-05, %v3780_v6 }
 0xbe2   :  { %17358 = vrsqrt.f32 %v3786_v5 }
 0xbe3   :  { %17360 = vrsqrt.f32 %v3781_v10  ;;  %v15336_v11 = vpop.f32.mrb[54].mxu0 }
 0xbe4   :  { %v3796_v12 = vadd.f32 1e-05, %v15336_v11  ;;  %v3790_v13 = vpop.f32.mrb[55].mxu0 }
 0xbe5   :  { %v3791_v14 = vadd.f32 1e-05, %v3790_v13 }
 0xbe6   :  { %17362 = vrsqrt.f32 %v3796_v12 }
 0xbe7   :  { %17364 = vrsqrt.f32 %v3791_v14 }
 0xbec   :  { %v17359_v15 = vpop.eup %17358 }
 0xbed   :  { %v17361_v63 = vpop.eup %17360  ;;  %v3804_v18 = vmul.f32 %v17359_v15, %v3707_v39  ;;  %v18594_v39 = vld [vmem:[%s20645_s4 + $0x70] sm:$0xff]  }
 0xbee   :  { %v3803_v22 = vmul.f32 %v17361_v63, %v3706_v42  ;;  %v18612_v42 = vld [vmem:[%s20645_s4 + $0x80] sm:$0xff]  }
 0xbef   :  { %v3814_v48 = vmul.f32 %v13035_v16, %v3804_v18 }
 0xbf0   :  { %v17363_v19 = vpop.eup %17362  ;;  %v3813_v23 = vmul.f32 %v13035_v16, %v3803_v22 }
 0xbf1   :  { %v17365_v62 = vpop.eup %17364  ;;  %v3824_v28 = vadd.f32 %v13036_v20, %v3814_v48  ;;  %v3806_v29 = vmul.f32 %v17363_v19, %v3709_v52  ;;  %v17129_v52 = vld [vmem:[%s20647_s6 + $0x158] sm:$0xff]  }
 0xbf2   :  { %v3823_v1 = vadd.f32 %v13036_v20, %v3813_v23  ;;  %v3805_v58 = vmul.f32 %v17365_v62, %v3708_v46 }
 0xbf3   :  { %v18452_v0 = vadd.f32 %v3824_v28, %v671_v49  ;;  %v3816_v17 = vmul.f32 %v13035_v16, %v3806_v29  ;;  %v18487_v49 = vld [vmem:[%s20645_s4 + $0x8] sm:$0xff]  }
 0xbf4   :  { %v18456_v40 = vadd.f32 %v3823_v1, %v670_v51  ;;  %v3815_v21 = vmul.f32 %v13035_v16, %v3805_v58  ;;  %v18494_v51 = vld [vmem:[%s20645_s4 + $0x28] sm:$0xff]   ;;  %v17132_v1 = vld [vmem:[%s20647_s6 + $0x130] sm:$0xff]  }
 0xbf5   :  { %v3826_v7 = vadd.f32 %v13036_v20, %v3816_v17  ;;  %v17131_v28 = vld [vmem:[%s20647_s6 + $0x128] sm:$0xff]  }
 0xbf6   :  { %v18460_v8 = vpack.c.bf16 %v18452_v0, %v18456_v40  ;;  %v3825_v9 = vadd.f32 %v13036_v20, %v3815_v21 }
 0xbf7   :  { %v18464_v26 = vadd.f32 %v3826_v7, %v673_v56  ;;  %v18515_v56 = vld [vmem:[%s20645_s4 + $0x30] sm:$0xff]  }
 0xbf8   :  { %v18468_v45 = vadd.f32 %v3825_v9, %v672_v57  ;;  %15337 = vmatprep.subr.bf16.mxu0 %v18460_v8  ;;  %15377 = vmatprep.subr.bf16.mxu1 %v18460_v8  ;;  %v18525_v57 = vld [vmem:[%s20645_s4 + $0x18] sm:$0xff]  }
 0xbf9   :  { %15338 = vmatpush3.bf16.msra.mxu0 %v18460_v8  ;;  %15378 = vmatpush3.bf16.msra.mxu1 %v18460_v8  ;;  %v17133_v9 = vld [vmem:[%s20647_s6 + $0x138] sm:$0xff]  }
 0xbfa   :  { %v18476_v47 = vpack.c.bf16 %v18464_v26, %v18468_v45 }
 0xbfc   :  { %15339 = vmatprep.subr.bf16.mxu0 %v18476_v47  ;;  %15379 = vmatprep.subr.bf16.mxu1 %v18476_v47 }
 0xbfd   :  { %15340 = vmatpush3.bf16.msra.mxu0 %v18476_v47  ;;  %15380 = vmatpush3.bf16.msra.mxu1 %v18476_v47 }
 0xbfe   :  { %15345 = vmatprep.subr.bf16.mxu0 %v18460_v8  ;;  %15397 = vmatprep.subr.bf16.mxu1 %v18460_v8 }
 0xc00   :  { %15342 = vmatmul.mubr.msk.bf16.vlgmr.msra.gmra.mrb[56].mxu0 %vm451_vm0, %v18487_v49  ;;  %15382 = vmatmul.mubr.msk.bf16.vlgmr.msra.gmra.mrb[64].mxu1 %vm451_vm0, %v18494_v51 }
 0xc01   :  { %15346 = vmatpush3.bf16.msra.mxu0 %v18460_v8  ;;  %15398 = vmatpush3.bf16.msra.mxu1 %v18460_v8 }
 0xc02   :  { %15347 = vmatprep.subr.bf16.mxu0 %v18476_v47  ;;  %15399 = vmatprep.subr.bf16.mxu1 %v18476_v47 }
 0xc03   :  { %15349 = vmatprep.mubr.msk.bf16.mxu0 %vm451_vm0, %v18508_v55  ;;  %15401 = vmatprep.mubr.msk.bf16.mxu1 %vm451_vm0, %v18515_v56 }
 0xc05   :  { %15348 = vmatpush3.bf16.msra.mxu0 %v18476_v47  ;;  %15400 = vmatpush3.bf16.msra.mxu1 %v18476_v47 }
 0xc06   :  { %15417 = vmatprep.subr.bf16.mxu1 %v18460_v8  ;;  %15353 = vmatprep.subr.bf16.mxu0 %v17126_v53 }
 0xc08   :  { %15350 = vmatmul.mubr.msk.bf16.vlgmr.msra.gmra.mrb[60].mxu0 %vm451_vm0, %v18525_v57  ;;  %15402 = vmatmul.mubr.msk.bf16.vlgmr.msra.gmra.mrb[68].mxu1 %vm451_vm0, %v18532_v27 }
 0xc09   :  { %15418 = vmatpush3.bf16.msra.mxu1 %v18460_v8  ;;  %15421 = vmatprep.mubr.msk.bf16.mxu1 %vm451_vm0, %v18540_v31 }
 0xc0a   :  { %15419 = vmatprep.subr.bf16.mxu1 %v18476_v47  ;;  %15354 = vmatpush3.bf16.msra.mxu0 %v17126_v53  ;;  %v17134_v53 = vld [vmem:[%s20647_s6 + $0x160] sm:$0xff]  }
 0xc0b   :  { %15355 = vmatprep.subr.bf16.mxu0 %v17127_v50 }
 0xc0d   :  { %15420 = vmatpush3.bf16.msra.mxu1 %v18476_v47 }
 0xc0e   :  { %15437 = vmatprep.subr.bf16.mxu1 %v18460_v8  ;;  %15356 = vmatpush3.bf16.msra.mxu0 %v17127_v50 }
 0xc0f   :  { %15357 = vmatprep.subr.bf16.mxu0 %v17128_v43 }
 0xc10   :  { %15422 = vmatmul.mubr.msk.bf16.vlgmr.msra.gmra.mrb[72].mxu1 %vm451_vm0, %v18550_v30 }
 0xc11   :  { %15438 = vmatpush3.bf16.msra.mxu1 %v18460_v8  ;;  %15441 = vmatprep.mubr.msk.bf16.mxu1 %vm451_vm0, %v18558_v32 }
 0xc12   :  { %15439 = vmatprep.subr.bf16.mxu1 %v18476_v47  ;;  %15358 = vmatpush3.bf16.msra.mxu0 %v17128_v43 }
 0xc13   :  { %15359 = vmatprep.subr.bf16.mxu0 %v17129_v52 }
 0xc15   :  { %15440 = vmatpush3.bf16.msra.mxu1 %v18476_v47 }
 0xc16   :  { %15457 = vmatprep.subr.bf16.mxu1 %v18460_v8  ;;  %15360 = vmatpush3.bf16.msra.mxu0 %v17129_v52 }
 0xc18   :  { %15442 = vmatmul.mubr.msk.bf16.vlgmr.msra.gmra.mrb[76].mxu1 %vm451_vm0, %v18568_v33 }
 0xc19   :  { %15458 = vmatpush3.bf16.msra.mxu1 %v18460_v8  ;;  %15461 = vmatprep.mubr.msk.bf16.mxu1 %vm451_vm0, %v18576_v34 }
 0xc1a   :  { %15459 = vmatprep.subr.bf16.mxu1 %v18476_v47 }
 0xc1d   :  { %15460 = vmatpush3.bf16.msra.mxu1 %v18476_v47 }
 0xc1e   :  { %15477 = vmatprep.subr.bf16.mxu1 %v18460_v8 }
 0xc20   :  { %15462 = vmatmul.mubr.msk.bf16.vlgmr.msra.gmra.mrb[80].mxu1 %vm451_vm0, %v18586_v38 }
 0xc21   :  { %15478 = vmatpush3.bf16.msra.mxu1 %v18460_v8  ;;  %15481 = vmatprep.mubr.msk.bf16.mxu1 %vm451_vm0, %v18594_v39 }
 0xc22   :  { %15479 = vmatprep.subr.bf16.mxu1 %v18476_v47 }
 0xc25   :  { %15480 = vmatpush3.bf16.msra.mxu1 %v18476_v47 }
 0xc26   :  { %15497 = vmatprep.subr.bf16.mxu1 %v18460_v8 }
 0xc28   :  { %15482 = vmatmul.mubr.msk.bf16.vlgmr.msra.gmra.mrb[84].mxu1 %vm451_vm0, %v18604_v41 }
 0xc29   :  { %15498 = vmatpush3.bf16.msra.mxu1 %v18460_v8  ;;  %15501 = vmatprep.mubr.msk.bf16.mxu1 %vm451_vm0, %v18612_v42 }
 0xc2a   :  { %15499 = vmatprep.subr.bf16.mxu1 %v18476_v47 }
 0xc2d   :  { %15500 = vmatpush3.bf16.msra.mxu1 %v18476_v47 }
 0xc30   :  { %15502 = vmatmul.mubr.msk.bf16.vlgmr.msra.gmra.mrb[88].mxu1 %vm451_vm0, %v18621_v44 }
 0xc31   :  { %15525 = vmatprep.mubr.msk.f32.mxu1 %vm451_vm0, %v18111_v2  ;;  %v17130_v2 = vld [vmem:[%s20647_s6 + $0x120] sm:$0xff]  }
 0xc32   :  { %15365 = vmatprep.subr.bf16.mxu0 %v17130_v2 }
 0xcd3   :  { %v15343_v54 = vpop.f32.mrb[56].mxu0  ;;  %v18639_v46 = vpop.f32.mrb[64].mxu1 }
 0xcd4   :  { %v3940_v59 = vpop.f32.mrb[57].mxu0  ;;  %v4200_v24 = vpop.f32.mrb[65].mxu1 }
 0xcd5   :  { %v15344_v60 = vpop.f32.mrb[58].mxu0  ;;  %v18641_v61 = vpop.f32.mrb[66].mxu1 }
 0xcd6   :  { %v3956_v4 = vpack.c.bf16 %v15344_v60, %v15343_v54  ;;  %v3943_v5 = vpop.f32.mrb[59].mxu0  ;;  %v4216_v6 = vpack.c.bf16 %v18641_v61, %v18639_v46  ;;  %v4203_v10 = vpop.f32.mrb[67].mxu1  ;;  %v17136_v60 = vld [vmem:[%s20647_s6 + $0x170] sm:$0xff]  }
 0xcd7   :  { %v3955_v11 = vpack.c.bf16 %v3943_v5, %v3940_v59  ;;  %v4215_v12 = vpack.c.bf16 %v4203_v10, %v4200_v24  ;;  %v17135_v59 = vld [vmem:[%s20647_s6 + $0x168] sm:$0xff]  }
 0xcdb   :  { %v15351_v13 = vpop.f32.mrb[60].mxu0  ;;  %v18645_v14 = vpop.f32.mrb[68].mxu1 }
 0xcdc   :  { %v3991_v15 = vpop.f32.mrb[61].mxu0  ;;  %v18647_v16 = vpop.f32.mrb[69].mxu1 }
 0xcdd   :  { %v15352_v63 = vpop.f32.mrb[62].mxu0  ;;  %v18649_v18 = vpop.f32.mrb[70].mxu1 }
 0xcde   :  { %v4007_v20 = vpack.c.bf16 %v15352_v63, %v15351_v13  ;;  %v3994_v22 = vpop.f32.mrb[63].mxu0  ;;  %v4350_v48 = vpack.c.bf16 %v18649_v18, %v18645_v14  ;;  %v4337_v19 = vpop.f32.mrb[71].mxu1  ;;  %v17146_v14 = vld [vmem:[%s20647_s6 + $0x1c0] sm:$0xff]   ;;  %v17147_v18 = vld [vmem:[%s20647_s6 + $0x1c8] sm:$0xff]  }
 0xcdf   :  { %v4006_v23 = vpack.c.bf16 %v3994_v22, %v3991_v15  ;;  %v4349_v62 = vpack.c.bf16 %v4337_v19, %v18647_v16  ;;  %v17138_v16 = vld [vmem:[%s20647_s6 + $0x180] sm:$0xff]  }
 0xce1   :  { %15361 = vmatprep.mubr.msk.bf16.mxu0 %vm915_vm1, %v4006_v23 }
 0xce2   :  { %15362 = vmatmul.mubr.msk.bf16.vlgmr.msra.gmra.mrb[64].mxu0 %vm915_vm1, %v4007_v20 }
 0xce3   :  { %15366 = vmatpush3.bf16.msra.mxu0 %v17130_v2  ;;  %15373 = vmatprep.mubr.msk.bf16.mxu0 %vm915_vm1, %v3955_v11  ;;  %v18660_v29 = vpop.f32.mrb[72].mxu1 }
 0xce4   :  { %15367 = vmatprep.subr.bf16.mxu0 %v17131_v28  ;;  %v18665_v58 = vpop.f32.mrb[73].mxu1 }
 0xce5   :  { %v18667_v17 = vpop.f32.mrb[74].mxu1 }
 0xce6   :  { %v4484_v21 = vpack.c.bf16 %v18667_v17, %v18660_v29  ;;  %v18671_v7 = vpop.f32.mrb[75].mxu1  ;;  %v17150_v29 = vld [vmem:[%s20647_s6 + $0x1e0] sm:$0xff]   ;;  %v17151_v17 = vld [vmem:[%s20647_s6 + $0x1e8] sm:$0xff]  }
 0xce7   :  { %15368 = vmatpush3.bf16.msra.mxu0 %v17131_v28  ;;  %v4483_v8 = vpack.c.bf16 %v18671_v7, %v18665_v58  ;;  %v17139_v28 = vld [vmem:[%s20647_s6 + $0x188] sm:$0xff]   ;;  %v17149_v58 = vld [vmem:[%s20647_s6 + $0x1d8] sm:$0xff]  }
 0xce8   :  { %15369 = vmatprep.subr.bf16.mxu0 %v17132_v1  ;;  %v17153_v7 = vld [vmem:[%s20647_s6 + $0x1f8] sm:$0xff]  }
 0xceb   :  { %15370 = vmatpush3.bf16.msra.mxu0 %v17132_v1  ;;  %v18678_v47 = vpop.f32.mrb[76].mxu1 }
 0xcec   :  { %15371 = vmatprep.subr.bf16.mxu0 %v17133_v9  ;;  %v18683_v50 = vpop.f32.mrb[77].mxu1 }
 0xced   :  { %v18685_v43 = vpop.f32.mrb[78].mxu1 }
 0xcee   :  { %v4618_v52 = vpack.c.bf16 %v18685_v43, %v18678_v47  ;;  %v18689_v2 = vpop.f32.mrb[79].mxu1  ;;  %v17155_v47 = vld [vmem:[%s20647_s6 + $0x208] sm:$0xff]   ;;  %v17157_v43 = vld [vmem:[%s20647_s6 + $0x218] sm:$0xff]  }
 0xcef   :  { %15372 = vmatpush3.bf16.msra.mxu0 %v17133_v9  ;;  %v4617_v54 = vpack.c.bf16 %v18689_v2, %v18683_v50  ;;  %v17140_v9 = vld [vmem:[%s20647_s6 + $0x190] sm:$0xff]   ;;  %v17159_v2 = vld [vmem:[%s20647_s6 + $0x228] sm:$0xff]  }
 0xcf0   :  { %15385 = vmatprep.subr.bf16.mxu0 %v17134_v53  ;;  %v17156_v50 = vld [vmem:[%s20647_s6 + $0x210] sm:$0xff]  }
 0xcf2   :  { %15374 = vmatmul.mubr.msk.bf16.vlgmr.msra.gmra.mrb[64].mxu0 %vm915_vm1, %v3956_v4 }
 0xcf3   :  { %15386 = vmatpush3.bf16.msra.mxu0 %v17134_v53  ;;  %15393 = vmatprep.mubr.msk.bf16.mxu0 %vm915_vm1, %v4215_v12  ;;  %v18698_v24 = vpop.f32.mrb[80].mxu1  ;;  %v17137_v12 = vld [vmem:[%s20647_s6 + $0x178] sm:$0xff]  }
 0xcf4   :  { %15387 = vmatprep.subr.bf16.mxu0 %v17135_v59  ;;  %v18703_v5 = vpop.f32.mrb[81].mxu1 }
 0xcf5   :  { %v18705_v10 = vpop.f32.mrb[82].mxu1 }
 0xcf6   :  { %v4752_v11 = vpack.c.bf16 %v18705_v10, %v18698_v24  ;;  %v18709_v13 = vpop.f32.mrb[83].mxu1  ;;  %v17161_v24 = vld [vmem:[%s20647_s6 + $0x238] sm:$0xff]  }
 0xcf7   :  { %15388 = vmatpush3.bf16.msra.mxu0 %v17135_v59  ;;  %v4751_v4 = vpack.c.bf16 %v18709_v13, %v18703_v5 }
 0xcf8   :  { %15389 = vmatprep.subr.bf16.mxu0 %v17136_v60 }
 0xcfb   :  { %15390 = vmatpush3.bf16.msra.mxu0 %v17136_v60  ;;  %v18716_v15 = vpop.f32.mrb[84].mxu1 }
 0xcfc   :  { %15391 = vmatprep.subr.bf16.mxu0 %v17137_v12  ;;  %v18721_v63 = vpop.f32.mrb[85].mxu1 }
 0xcfd   :  { %v18723_v20 = vpop.f32.mrb[86].mxu1 }
 0xcfe   :  { %v4886_v22 = vpack.c.bf16 %v18723_v20, %v18716_v15  ;;  %v18727_v19 = vpop.f32.mrb[87].mxu1 }
 0xcff   :  { %15392 = vmatpush3.bf16.msra.mxu0 %v17137_v12  ;;  %v4885_v23 = vpack.c.bf16 %v18727_v19, %v18721_v63  ;;  %v17143_v12 = vld [vmem:[%s20647_s6 + $0x1a8] sm:$0xff]  }
 0xd00   :  { %15405 = vmatprep.subr.bf16.mxu0 %v17138_v16 }
 0xd02   :  { %15394 = vmatmul.mubr.msk.bf16.vlgmr.msra.gmra.mrb[64].mxu0 %vm915_vm1, %v4216_v6  ;;  %v17141_v6 = vld [vmem:[%s20647_s6 + $0x198] sm:$0xff]  }
 0xd03   :  { %15406 = vmatpush3.bf16.msra.mxu0 %v17138_v16  ;;  %15413 = vmatprep.mubr.msk.bf16.mxu0 %vm915_vm1, %v4349_v62  ;;  %v18739_v1 = vpop.f32.mrb[88].mxu1  ;;  %v17142_v62 = vld [vmem:[%s20647_s6 + $0x1a0] sm:$0xff]   ;;  %v17144_v16 = vld [vmem:[%s20647_s6 + $0x1b0] sm:$0xff]  }
 0xd04   :  { %15407 = vmatprep.subr.bf16.mxu0 %v17139_v28  ;;  %v18744_v53 = vpop.f32.mrb[89].mxu1 }
 0xd05   :  { %v18746_v59 = vpop.f32.mrb[90].mxu1 }
 0xd06   :  { %v5020_v60 = vpack.c.bf16 %v18746_v59, %v18739_v1  ;;  %v18750_v46 = vpop.f32.mrb[91].mxu1 }
 0xd07   :  { %15408 = vmatpush3.bf16.msra.mxu0 %v17139_v28  ;;  %v5019_v61 = vpack.c.bf16 %v18750_v46, %v18744_v53  ;;  %v17145_v28 = vld [vmem:[%s20647_s6 + $0x1b8] sm:$0xff]  }
 0xd08   :  { %15409 = vmatprep.subr.bf16.mxu0 %v17140_v9 }
 0xd0b   :  { %15410 = vmatpush3.bf16.msra.mxu0 %v17140_v9 }
 0xd0c   :  { %15411 = vmatprep.subr.bf16.mxu0 %v17141_v6 }
 0xd0f   :  { %15412 = vmatpush3.bf16.msra.mxu0 %v17141_v6 }
 0xd10   :  { %15425 = vmatprep.subr.bf16.mxu0 %v17142_v62 }
 0xd12   :  { %15414 = vmatmul.mubr.msk.bf16.vlgmr.msra.gmra.mrb[64].mxu0 %vm915_vm1, %v4350_v48  ;;  %v17148_v48 = vld [vmem:[%s20647_s6 + $0x1d0] sm:$0xff]  }
 0xd13   :  { %15426 = vmatpush3.bf16.msra.mxu0 %v17142_v62  ;;  %15433 = vmatprep.mubr.msk.bf16.mxu0 %vm915_vm1, %v4483_v8  ;;  %v17154_v8 = vld [vmem:[%s20647_s6 + $0x200] sm:$0xff]  }
 0xd14   :  { %15427 = vmatprep.subr.bf16.mxu0 %v17143_v12 }
 0xd17   :  { %15428 = vmatpush3.bf16.msra.mxu0 %v17143_v12 }
 0xd18   :  { %15429 = vmatprep.subr.bf16.mxu0 %v17144_v16 }
 0xd1b   :  { %15430 = vmatpush3.bf16.msra.mxu0 %v17144_v16 }
 0xd1c   :  { %15431 = vmatprep.subr.bf16.mxu0 %v17145_v28 }
 0xd1f   :  { %15432 = vmatpush3.bf16.msra.mxu0 %v17145_v28 }
 0xd20   :  { %15445 = vmatprep.subr.bf16.mxu0 %v17146_v14 }
 0xd22   :  { %15434 = vmatmul.mubr.msk.bf16.vlgmr.msra.gmra.mrb[64].mxu0 %vm915_vm1, %v4484_v21  ;;  %v17152_v21 = vld [vmem:[%s20647_s6 + $0x1f0] sm:$0xff]  }
 0xd23   :  { %15446 = vmatpush3.bf16.msra.mxu0 %v17146_v14  ;;  %15453 = vmatprep.mubr.msk.bf16.mxu0 %vm915_vm1, %v4617_v54  ;;  %v17160_v54 = vld [vmem:[%s20647_s6 + $0x230] sm:$0xff]  }
 0xd24   :  { %15447 = vmatprep.subr.bf16.mxu0 %v17147_v18 }
 0xd27   :  { %15448 = vmatpush3.bf16.msra.mxu0 %v17147_v18 }
 0xd28   :  { %15449 = vmatprep.subr.bf16.mxu0 %v17148_v48 }
 0xd2b   :  { %15450 = vmatpush3.bf16.msra.mxu0 %v17148_v48 }
 0xd2c   :  { %15451 = vmatprep.subr.bf16.mxu0 %v17149_v58 }
 0xd2f   :  { %15452 = vmatpush3.bf16.msra.mxu0 %v17149_v58 }
 0xd30   :  { %15465 = vmatprep.subr.bf16.mxu0 %v17150_v29 }
 0xd32   :  { %15454 = vmatmul.mubr.msk.bf16.vlgmr.msra.gmra.mrb[64].mxu0 %vm915_vm1, %v4618_v52  ;;  %v17158_v52 = vld [vmem:[%s20647_s6 + $0x220] sm:$0xff]  }
 0xd33   :  { %15466 = vmatpush3.bf16.msra.mxu0 %v17150_v29  ;;  %15473 = vmatprep.mubr.msk.bf16.mxu0 %vm915_vm1, %v4751_v4 }
 0xd34   :  { %15467 = vmatprep.subr.bf16.mxu0 %v17151_v17 }
 0xd37   :  { %15468 = vmatpush3.bf16.msra.mxu0 %v17151_v17 }
 0xd38   :  { %15469 = vmatprep.subr.bf16.mxu0 %v17152_v21 }
 0xd3b   :  { %15470 = vmatpush3.bf16.msra.mxu0 %v17152_v21 }
 0xd3c   :  { %15471 = vmatprep.subr.bf16.mxu0 %v17153_v7 }
 0xd3f   :  { %15472 = vmatpush3.bf16.msra.mxu0 %v17153_v7 }
 0xd40   :  { %15485 = vmatprep.subr.bf16.mxu0 %v17154_v8 }
 0xd42   :  { %15474 = vmatmul.mubr.msk.bf16.vlgmr.msra.gmra.mrb[64].mxu0 %vm915_vm1, %v4752_v11 }
 0xd43   :  { %15486 = vmatpush3.bf16.msra.mxu0 %v17154_v8  ;;  %15493 = vmatprep.mubr.msk.bf16.mxu0 %vm915_vm1, %v4885_v23 }
 0xd44   :  { %15487 = vmatprep.subr.bf16.mxu0 %v17155_v47 }
 0xd47   :  { %15488 = vmatpush3.bf16.msra.mxu0 %v17155_v47 }
 0xd48   :  { %15489 = vmatprep.subr.bf16.mxu0 %v17156_v50 }
 0xd4b   :  { %15490 = vmatpush3.bf16.msra.mxu0 %v17156_v50 }
 0xd4c   :  { %15491 = vmatprep.subr.bf16.mxu0 %v17157_v43 }
 0xd4f   :  { %15492 = vmatpush3.bf16.msra.mxu0 %v17157_v43 }
 0xd50   :  { %15505 = vmatprep.subr.bf16.mxu0 %v17158_v52 }
 0xd52   :  { %15494 = vmatmul.mubr.msk.bf16.vlgmr.msra.gmra.mrb[64].mxu0 %vm915_vm1, %v4886_v22 }
 0xd53   :  { %15506 = vmatpush3.bf16.msra.mxu0 %v17158_v52  ;;  %15513 = vmatprep.mubr.msk.bf16.mxu0 %vm915_vm1, %v5019_v61 }
 0xd54   :  { %15507 = vmatprep.subr.bf16.mxu0 %v17159_v2 }
 0xd57   :  { %15508 = vmatpush3.bf16.msra.mxu0 %v17159_v2 }
 0xd58   :  { %15509 = vmatprep.subr.bf16.mxu0 %v17160_v54 }
 0xd5b   :  { %15510 = vmatpush3.bf16.msra.mxu0 %v17160_v54 }
 0xd5c   :  { %15511 = vmatprep.subr.bf16.mxu0 %v17161_v24 }
 0xd5f   :  { %15512 = vmatpush3.bf16.msra.mxu0 %v17161_v24 }
 0xd62   :  { %15514 = vmatmul.mubr.msk.bf16.vlgmr.msra.gmra.mrb[64].mxu0 %vm915_vm1, %v5020_v60 }
 0xd63   :  { %15609 = vmatprep.mubr.msk.bf16.mxu0 %vm451_vm0, %v18515_v56  ;;  %v18872_v56 = vld [vmem:[%s20646_s5] sm:$0xff] }
 0xe35   :  { %v15515_v5 = vpop.f32.mrb[64].mxu0 }
 0xe36   :  { %v5085_v10 = vpop.f32.mrb[65].mxu0 }
 0xe37   :  { %v15516_v11 = vpop.f32.mrb[66].mxu0 }
 0xe38   :  { %v16637_v13 = vpack.c.bf16 %v15516_v11, %v15515_v5  ;;  %v5088_v4 = vpop.f32.mrb[67].mxu0 }
 0xe39   :  { %v16633_v15 = vpack.c.bf16 %v5088_v4, %v5085_v10 }
 0xe3b   :  { %16634 = vmatprep.subr.bf16.mxu1 %v16633_v15 }
 0xe3c   :  { %16636 = vmatpush3.bf16.msra.mxu1 %v16633_v15 }
 0xe3d   :  { %16638 = vmatprep.subr.bf16.mxu1 %v16637_v13 }
 0xe40   :  { %16640 = vmatpush3.bf16.msra.mxu1 %v16637_v13 }
 0xe43   :  { %15526 = vmatmul.mubr.msk.f32.vlgmr.msra.gmra.mrb[92].mxu1 %vm451_vm0, %v18411_v35 }
 0xe44   :  { %15528 = vmatprep.mubr.msk.f32.mxu1 %vm451_vm0, %v18418_v36 }
 0xe47   :  { %15529 = vmatmul.mubr.msk.f32.gmra.mrb[94].mxu1 %vm451_vm0, %v18425_v37 }
 0xe48   :  { %15539 = vmatprep.mubr.msk.f32.mxu1 %vm451_vm0, %v18872_v56 }
 0xf16   :  { %v15527_v63 = vpop.f32.mrb[92].mxu1 }
 0xf17   :  { %v5194_v20 = vsub.f32 %v5088_v4, %v15527_v63  ;;  %v5174_v22 = vpop.f32.mrb[93].mxu1 }
 0xf18   :  { %v5193_v19 = vsub.f32 %v5085_v10, %v5174_v22 }
 0xf19   :  { %v5198_v23 = vmul.f32 %v5194_v20, %v5194_v20 }
 0xf1a   :  { %v5197_v1 = vmul.f32 %v5193_v19, %v5193_v19  ;;  %v15530_v9 = vpop.f32.mrb[94].mxu1 }
 0xf1b   :  { %v5196_v53 = vsub.f32 %v15516_v11, %v15530_v9  ;;  %v5184_v59 = vpop.f32.mrb[95].mxu1  ;;  %v17167_v9 = vld [vmem:[%s20650_s9 + $0x128] sm:$0xff]  }
 0xf1c   :  { %v5195_v60 = vsub.f32 %v15515_v5, %v5184_v59  ;;  %v16641_v46 = vpack.c.bf16 %v5198_v23, %v5197_v1  ;;  %v17169_v59 = vld [vmem:[%s20650_s9 + $0x138] sm:$0xff]  }
 0xf1d   :  { %v5200_v61 = vmul.f32 %v5196_v53, %v5196_v53 }
 0xf1e   :  { %v5199_v6 = vmul.f32 %v5195_v60, %v5195_v60  ;;  %16642 = vmatprep.subr.bf16.mxu1 %v16641_v46 }
 0xf1f   :  { %16644 = vmatpush3.bf16.msra.mxu1 %v16641_v46  ;;  %v17171_v46 = vld [vmem:[%s20650_s9 + $0x168] sm:$0xff]  }
 0xf20   :  { %v16645_v62 = vpack.c.bf16 %v5200_v61, %v5199_v6  ;;  %v17173_v61 = vld [vmem:[%s20650_s9 + $0x178] sm:$0xff]   ;;  %v17174_v6 = vld [vmem:[%s20650_s9 + $0x180] sm:$0xff]  }
 0xf22   :  { %16646 = vmatprep.subr.bf16.mxu1 %v16645_v62 }
 0xf23   :  { %16648 = vmatpush3.bf16.msra.mxu1 %v16645_v62 }
 0xf26   :  { %15540 = vmatmul.mubr.msk.f32.vlgmr.msra.gmra.mrb[96].mxu1 %vm451_vm0, %v18411_v35 }
 0xf27   :  { %15542 = vmatprep.mubr.msk.f32.mxu1 %vm451_vm0, %v18418_v36  ;;  %v13191_v36 = vld [vmem:[%s20648_s7 + $0x1] ss:$0 sm:$0xff] }
 0xf2a   :  { %15543 = vmatmul.mubr.msk.f32.gmra.mrb[98].mxu1 %vm451_vm0, %v18425_v37 }
 0xf2b   :  { %15549 = vmatprep.mubr.msk.bf16.mxu1 %vm451_vm0, %v18440_v3  ;;  %v13192_v3 = vld [vmem:[%s20649_s8 + $0x1] ss:$0 sm:$0xff] }
 0xff9   :  { %v15541_v12 = vpop.f32.mrb[96].mxu1 }
 0xffa   :  { %v5273_v16 = vadd.f32 1e-05, %v15541_v12  ;;  %v5267_v28 = vpop.f32.mrb[97].mxu1 }
 0xffb   :  { %v5268_v14 = vadd.f32 1e-05, %v5267_v28 }
 0xffc   :  { %17366 = vrsqrt.f32 %v5273_v16 }
 0xffd   :  { %17368 = vrsqrt.f32 %v5268_v14  ;;  %v15544_v18 = vpop.f32.mrb[98].mxu1 }
 0xffe   :  { %v5283_v48 = vadd.f32 1e-05, %v15544_v18  ;;  %v5277_v58 = vpop.f32.mrb[99].mxu1 }
 0xfff   :  { %v5278_v29 = vadd.f32 1e-05, %v5277_v58 }
0x1000   :  { %17370 = vrsqrt.f32 %v5283_v48 }
0x1001   :  { %17372 = vrsqrt.f32 %v5278_v29 }
0x1006   :  { %v17367_v35 = vpop.eup %17366 }
0x1007   :  { %v17369_v37 = vpop.eup %17368  ;;  %v5291_v17 = vmul.f32 %v17367_v35, %v5194_v20 }
0x1008   :  { %v5290_v21 = vmul.f32 %v17369_v37, %v5193_v19  ;;  %v17162_v19 = vld [vmem:[%s20650_s9 + $0x140] sm:$0xff]  }
0x1009   :  { %v5301_v7 = vmul.f32 %v13191_v36, %v5291_v17 }
0x100a   :  { %v17371_v8 = vpop.eup %17370  ;;  %v5300_v47 = vmul.f32 %v13191_v36, %v5290_v21 }
0x100b   :  { %v17373_v50 = vpop.eup %17372  ;;  %v5311_v43 = vadd.f32 %v13192_v3, %v5301_v7  ;;  %v5293_v52 = vmul.f32 %v17371_v8, %v5196_v53  ;;  %v17168_v53 = vld [vmem:[%s20650_s9 + $0x130] sm:$0xff]  }
0x100c   :  { %v5310_v2 = vadd.f32 %v13192_v3, %v5300_v47  ;;  %v5292_v54 = vmul.f32 %v17373_v50, %v5195_v60  ;;  %v17170_v60 = vld [vmem:[%s20650_s9 + $0x160] sm:$0xff]  }
0x100d   :  { %v5315_v24 = vmax.f32 %v5311_v43, 0.0  ;;  %v5303_v5 = vmul.f32 %v13191_v36, %v5293_v52 }
0x100e   :  { %v5314_v10 = vmax.f32 %v5310_v2, 0.0  ;;  %v5302_v11 = vmul.f32 %v13191_v36, %v5292_v54 }
0x100f   :  { %v5313_v13 = vadd.f32 %v13192_v3, %v5303_v5 }
0x1010   :  { %v18890_v4 = vpack.c.bf16 %v5315_v24, %v5314_v10  ;;  %v5312_v15 = vadd.f32 %v13192_v3, %v5302_v11 }
0x1011   :  { %v5317_v63 = vmax.f32 %v5313_v13, 0.0 }
0x1012   :  { %v5316_v20 = vmax.f32 %v5312_v15, 0.0  ;;  %15545 = vmatprep.subr.bf16.mxu1 %v18890_v4  ;;  %15605 = vmatprep.subr.bf16.mxu0 %v18890_v4 }
0x1013   :  { %15546 = vmatpush3.bf16.msra.mxu1 %v18890_v4  ;;  %15606 = vmatpush3.bf16.msra.mxu0 %v18890_v4 }
0x1014   :  { %v18896_v22 = vpack.c.bf16 %v5317_v63, %v5316_v20 }
0x1016   :  { %15547 = vmatprep.subr.bf16.mxu1 %v18896_v22  ;;  %15607 = vmatprep.subr.bf16.mxu0 %v18896_v22 }
0x1017   :  { %15548 = vmatpush3.bf16.msra.mxu1 %v18896_v22  ;;  %15608 = vmatpush3.bf16.msra.mxu0 %v18896_v22 }
0x1018   :  { %15553 = vmatprep.subr.bf16.mxu1 %v18890_v4  ;;  %15625 = vmatprep.subr.bf16.mxu0 %v18890_v4 }
0x101a   :  { %15550 = vmatmul.mubr.msk.bf16.vlgmr.msra.gmra.mrb[100].mxu1 %vm451_vm0, %v18487_v49  ;;  %15610 = vmatmul.mubr.msk.bf16.vlgmr.msra.gmra.mrb[68].mxu0 %vm451_vm0, %v18532_v27  ;;  %v17163_v49 = vld [vmem:[%s20650_s9 + $0x148] sm:$0xff]   ;;  %v17166_v27 = vld [vmem:[%s20650_s9 + $0x120] sm:$0xff]  }
0x101b   :  { %15554 = vmatpush3.bf16.msra.mxu1 %v18890_v4  ;;  %15626 = vmatpush3.bf16.msra.mxu0 %v18890_v4 }
0x101c   :  { %15555 = vmatprep.subr.bf16.mxu1 %v18896_v22  ;;  %15627 = vmatprep.subr.bf16.mxu0 %v18896_v22 }
0x101d   :  { %15557 = vmatprep.mubr.msk.bf16.mxu1 %vm451_vm0, %v18508_v55  ;;  %15629 = vmatprep.mubr.msk.bf16.mxu0 %vm451_vm0, %v18540_v31  ;;  %v17164_v55 = vld [vmem:[%s20650_s9 + $0x150] sm:$0xff]  }
0x101f   :  { %15556 = vmatpush3.bf16.msra.mxu1 %v18896_v22  ;;  %15628 = vmatpush3.bf16.msra.mxu0 %v18896_v22 }
0x1020   :  { %15645 = vmatprep.subr.bf16.mxu0 %v18890_v4  ;;  %15561 = vmatprep.subr.bf16.mxu1 %v17162_v19 }
0x1022   :  { %15558 = vmatmul.mubr.msk.bf16.vlgmr.msra.gmra.mrb[104].mxu1 %vm451_vm0, %v18525_v57  ;;  %15630 = vmatmul.mubr.msk.bf16.vlgmr.msra.gmra.mrb[72].mxu0 %vm451_vm0, %v18550_v30  ;;  %v17165_v57 = vld [vmem:[%s20650_s9 + $0x158] sm:$0xff]  }
0x1023   :  { %15646 = vmatpush3.bf16.msra.mxu0 %v18890_v4  ;;  %15649 = vmatprep.mubr.msk.bf16.mxu0 %vm451_vm0, %v18558_v32 }
0x1024   :  { %15647 = vmatprep.subr.bf16.mxu0 %v18896_v22  ;;  %15562 = vmatpush3.bf16.msra.mxu1 %v17162_v19 }
0x1025   :  { %15563 = vmatprep.subr.bf16.mxu1 %v17163_v49 }
0x1027   :  { %15648 = vmatpush3.bf16.msra.mxu0 %v18896_v22 }
0x1028   :  { %15665 = vmatprep.subr.bf16.mxu0 %v18890_v4  ;;  %15564 = vmatpush3.bf16.msra.mxu1 %v17163_v49 }
0x1029   :  { %15565 = vmatprep.subr.bf16.mxu1 %v17164_v55 }
0x102a   :  { %15650 = vmatmul.mubr.msk.bf16.vlgmr.msra.gmra.mrb[76].mxu0 %vm451_vm0, %v18568_v33 }
0x102b   :  { %15666 = vmatpush3.bf16.msra.mxu0 %v18890_v4  ;;  %15669 = vmatprep.mubr.msk.bf16.mxu0 %vm451_vm0, %v18576_v34 }
0x102c   :  { %15667 = vmatprep.subr.bf16.mxu0 %v18896_v22  ;;  %15566 = vmatpush3.bf16.msra.mxu1 %v17164_v55 }
0x102d   :  { %15567 = vmatprep.subr.bf16.mxu1 %v17165_v57 }
0x102f   :  { %15668 = vmatpush3.bf16.msra.mxu0 %v18896_v22 }
0x1030   :  { %15685 = vmatprep.subr.bf16.mxu0 %v18890_v4  ;;  %15568 = vmatpush3.bf16.msra.mxu1 %v17165_v57 }
0x1031   :  { %15573 = vmatprep.subr.bf16.mxu1 %v17166_v27 }
0x1032   :  { %15670 = vmatmul.mubr.msk.bf16.vlgmr.msra.gmra.mrb[80].mxu0 %vm451_vm0, %v18586_v38 }
0x1033   :  { %15686 = vmatpush3.bf16.msra.mxu0 %v18890_v4  ;;  %15689 = vmatprep.mubr.msk.bf16.mxu0 %vm451_vm0, %v18594_v39 }
0x1034   :  { %15687 = vmatprep.subr.bf16.mxu0 %v18896_v22 }
0x1037   :  { %15688 = vmatpush3.bf16.msra.mxu0 %v18896_v22 }
0x1038   :  { %15705 = vmatprep.subr.bf16.mxu0 %v18890_v4 }
0x103a   :  { %15690 = vmatmul.mubr.msk.bf16.vlgmr.msra.gmra.mrb[84].mxu0 %vm451_vm0, %v18604_v41 }
0x103b   :  { %15706 = vmatpush3.bf16.msra.mxu0 %v18890_v4  ;;  %15709 = vmatprep.mubr.msk.bf16.mxu0 %vm451_vm0, %v18612_v42 }
0x103c   :  { %15707 = vmatprep.subr.bf16.mxu0 %v18896_v22 }
0x103f   :  { %15708 = vmatpush3.bf16.msra.mxu0 %v18896_v22 }
0x1042   :  { %15710 = vmatmul.mubr.msk.bf16.vlgmr.msra.gmra.mrb[88].mxu0 %vm451_vm0, %v18621_v44 }
0x1043   :  { %15733 = vmatprep.mubr.msk.f32.mxu0 %vm451_vm0, %v18872_v56 }
0x10ed   :  { %v15551_v31 = vpop.f32.mrb[100].mxu1 }
0x10ee   :  { %v5427_v30 = vpop.f32.mrb[101].mxu1 }
0x10ef   :  { %v15552_v32 = vpop.f32.mrb[102].mxu1 }
0x10f0   :  { %v5443_v33 = vpack.c.bf16 %v15552_v32, %v15551_v31  ;;  %v5430_v34 = vpop.f32.mrb[103].mxu1 }
0x10f1   :  { %v5442_v38 = vpack.c.bf16 %v5430_v34, %v5427_v30  ;;  %v17176_v34 = vld [vmem:[%s20650_s9 + $0x190] sm:$0xff]  }
0x10f5   :  { %v15559_v39 = vpop.f32.mrb[104].mxu1 }
0x10f6   :  { %v5478_v41 = vpop.f32.mrb[105].mxu1 }
0x10f7   :  { %v15560_v42 = vpop.f32.mrb[106].mxu1 }
0x10f8   :  { %v5494_v44 = vpack.c.bf16 %v15560_v42, %v15559_v39  ;;  %v5481_v23 = vpop.f32.mrb[107].mxu1  ;;  %v17178_v39 = vld [vmem:[%s20650_s9 + $0x1a0] sm:$0xff]   ;;  %v17180_v42 = vld [vmem:[%s20650_s9 + $0x1b0] sm:$0xff]  }
0x10f9   :  { %v5493_v1 = vpack.c.bf16 %v5481_v23, %v5478_v41  ;;  %v17179_v41 = vld [vmem:[%s20650_s9 + $0x1a8] sm:$0xff]   ;;  %v17182_v23 = vld [vmem:[%s20650_s9 + $0x1c0] sm:$0xff]  }
0x10fb   :  { %15569 = vmatprep.mubr.msk.bf16.mxu1 %vm915_vm1, %v5493_v1  ;;  %v17183_v1 = vld [vmem:[%s20650_s9 + $0x1c8] sm:$0xff]  }
0x10fc   :  { %15570 = vmatmul.mubr.msk.bf16.vlgmr.msra.gmra.mrb[108].mxu1 %vm915_vm1, %v5494_v44  ;;  %v17181_v44 = vld [vmem:[%s20650_s9 + $0x1b8] sm:$0xff]  }
0x10fd   :  { %15574 = vmatpush3.bf16.msra.mxu1 %v17166_v27  ;;  %15581 = vmatprep.mubr.msk.bf16.mxu1 %vm915_vm1, %v5442_v38  ;;  %v17177_v38 = vld [vmem:[%s20650_s9 + $0x198] sm:$0xff]  }
0x10fe   :  { %15575 = vmatprep.subr.bf16.mxu1 %v17167_v9 }
0x1101   :  { %15576 = vmatpush3.bf16.msra.mxu1 %v17167_v9  ;;  %v17184_v9 = vld [vmem:[%s20650_s9 + $0x1d0] sm:$0xff]  }
0x1102   :  { %15577 = vmatprep.subr.bf16.mxu1 %v17168_v53 }
0x1105   :  { %15578 = vmatpush3.bf16.msra.mxu1 %v17168_v53  ;;  %v17185_v53 = vld [vmem:[%s20650_s9 + $0x1d8] sm:$0xff]  }
0x1106   :  { %15579 = vmatprep.subr.bf16.mxu1 %v17169_v59 }
0x1109   :  { %15580 = vmatpush3.bf16.msra.mxu1 %v17169_v59  ;;  %v17186_v59 = vld [vmem:[%s20650_s9 + $0x1e0] sm:$0xff]  }
0x110a   :  { %15585 = vmatprep.subr.bf16.mxu1 %v18890_v4 }
0x110c   :  { %15582 = vmatmul.mubr.msk.bf16.vlgmr.msra.gmra.mrb[108].mxu1 %vm915_vm1, %v5443_v33  ;;  %v17175_v33 = vld [vmem:[%s20650_s9 + $0x188] sm:$0xff]  }
0x110d   :  { %15586 = vmatpush3.bf16.msra.mxu1 %v18890_v4  ;;  %15589 = vmatprep.mubr.msk.bf16.mxu1 %vm451_vm0, %v18404_v25  ;;  %v17172_v25 = vld [vmem:[%s20650_s9 + $0x170] sm:$0xff]  }
0x110e   :  { %15587 = vmatprep.subr.bf16.mxu1 %v18896_v22 }
0x1111   :  { %15588 = vmatpush3.bf16.msra.mxu1 %v18896_v22 }
0x1112   :  { %15593 = vmatprep.subr.bf16.mxu1 %v17170_v60 }
0x1114   :  { %15590 = vmatmul.mubr.msk.bf16.vlgmr.msra.gmra.mrb[112].mxu1 %vm451_vm0, %v18494_v51  ;;  %v15611_v51 = vpop.f32.mrb[68].mxu0 }
0x1115   :  { %15594 = vmatpush3.bf16.msra.mxu1 %v17170_v60  ;;  %v5821_v62 = vpop.f32.mrb[69].mxu0  ;;  %v17187_v60 = vld [vmem:[%s20650_s9 + $0x1e8] sm:$0xff]  }
0x1116   :  { %15595 = vmatprep.subr.bf16.mxu1 %v17171_v46  ;;  %v15612_v12 = vpop.f32.mrb[70].mxu0 }
0x1117   :  { %v5837_v16 = vpack.c.bf16 %v15612_v12, %v15611_v51  ;;  %v5824_v28 = vpop.f32.mrb[71].mxu0  ;;  %v17192_v51 = vld [vmem:[%s20650_s9 + $0x210] sm:$0xff]   ;;  %v17194_v12 = vld [vmem:[%s20650_s9 + $0x220] sm:$0xff]  }
0x1118   :  { %v5836_v14 = vpack.c.bf16 %v5824_v28, %v5821_v62  ;;  %v19007_v18 = vpop.f32.mrb[72].mxu0  ;;  %v17193_v62 = vld [vmem:[%s20650_s9 + $0x218] sm:$0xff]   ;;  %v17196_v28 = vld [vmem:[%s20650_s9 + $0x230] sm:$0xff]  }
0x1119   :  { %15596 = vmatpush3.bf16.msra.mxu1 %v17171_v46  ;;  %v5955_v48 = vpop.f32.mrb[73].mxu0  ;;  %v17188_v46 = vld [vmem:[%s20650_s9 + $0x1f0] sm:$0xff]  }
0x111a   :  { %15597 = vmatprep.subr.bf16.mxu1 %v17172_v25  ;;  %v19009_v58 = vpop.f32.mrb[74].mxu0 }
0x111b   :  { %v5971_v29 = vpack.c.bf16 %v19009_v58, %v19007_v18  ;;  %v5958_v35 = vpop.f32.mrb[75].mxu0  ;;  %v19165_v18 = vld [vmem:[%s20645_s4 + $0x30] sm:$0xff]  }
0x111c   :  { %v5970_v36 = vpack.c.bf16 %v5958_v35, %v5955_v48  ;;  %v19013_v37 = vpop.f32.mrb[76].mxu0 }
0x111d   :  { %15598 = vmatpush3.bf16.msra.mxu1 %v17172_v25  ;;  %v6089_v17 = vpop.f32.mrb[77].mxu0  ;;  %v17189_v25 = vld [vmem:[%s20650_s9 + $0x1f8] sm:$0xff]  }
0x111e   :  { %15599 = vmatprep.subr.bf16.mxu1 %v17173_v61  ;;  %v19015_v3 = vpop.f32.mrb[78].mxu0 }
0x111f   :  { %v6105_v21 = vpack.c.bf16 %v19015_v3, %v19013_v37  ;;  %v6092_v7 = vpop.f32.mrb[79].mxu0  ;;  %v19179_v3 = vld [vmem:[%s20646_s5 + $0x10] sm:$0xff] }
0x1120   :  { %v6104_v8 = vpack.c.bf16 %v6092_v7, %v6089_v17  ;;  %v19019_v47 = vpop.f32.mrb[80].mxu0  ;;  %v19172_v17 = vld [vmem:[%s20646_s5 + $0x8] sm:$0xff] }
0x1121   :  { %15600 = vmatpush3.bf16.msra.mxu1 %v17173_v61  ;;  %v19021_v50 = vpop.f32.mrb[81].mxu0  ;;  %v17190_v61 = vld [vmem:[%s20650_s9 + $0x200] sm:$0xff]  }
0x1122   :  { %15613 = vmatprep.subr.bf16.mxu1 %v17174_v6  ;;  %v19023_v43 = vpop.f32.mrb[82].mxu0 }
0x1123   :  { %v6239_v52 = vpack.c.bf16 %v19023_v43, %v19019_v47  ;;  %v19027_v2 = vpop.f32.mrb[83].mxu0 }
0x1124   :  { %v6238_v54 = vpack.c.bf16 %v19027_v2, %v19021_v50  ;;  %v19031_v24 = vpop.f32.mrb[84].mxu0 }
0x1125   :  { %v19033_v5 = vpop.f32.mrb[85].mxu0 }
0x1126   :  { %v19035_v10 = vpop.f32.mrb[86].mxu0 }
0x1127   :  { %v6373_v11 = vpack.c.bf16 %v19035_v10, %v19031_v24  ;;  %v19039_v13 = vpop.f32.mrb[87].mxu0 }
0x1128   :  { %v6372_v4 = vpack.c.bf16 %v19039_v13, %v19033_v5  ;;  %v19043_v15 = vpop.f32.mrb[88].mxu0 }
0x1129   :  { %v19045_v63 = vpop.f32.mrb[89].mxu0 }
0x112a   :  { %v19047_v20 = vpop.f32.mrb[90].mxu0 }
0x112b   :  { %v6507_v22 = vpack.c.bf16 %v19047_v20, %v19043_v15  ;;  %v19051_v19 = vpop.f32.mrb[91].mxu0  ;;  %v19201_v15 = vld [vmem:[%s20645_s4] sm:$0xff]  }
0x112c   :  { %v6506_v49 = vpack.c.bf16 %v19051_v19, %v19045_v63 }
0x11e7   :  { %v15591_v55 = vpop.f32.mrb[112].mxu1 }
0x11e8   :  { %v5687_v57 = vpop.f32.mrb[113].mxu1 }
0x11e9   :  { %v15592_v27 = vpop.f32.mrb[114].mxu1 }
0x11ea   :  { %v5703_v31 = vpack.c.bf16 %v15592_v27, %v15591_v55  ;;  %v5690_v30 = vpop.f32.mrb[115].mxu1 }
0x11eb   :  { %v5702_v32 = vpack.c.bf16 %v5690_v30, %v5687_v57  ;;  %v13347_v30 = vld [vmem:[%s20651_s10 + $0x1] ss:$0 sm:$0xff] }
0x11ed   :  { %15601 = vmatprep.mubr.msk.bf16.mxu1 %vm915_vm1, %v5702_v32 }
0x11ee   :  { %15602 = vmatmul.mubr.msk.bf16.vlgmr.msra.gmra.mrb[108].mxu1 %vm915_vm1, %v5703_v31 }
0x11ef   :  { %15614 = vmatpush3.bf16.msra.mxu1 %v17174_v6  ;;  %15621 = vmatprep.mubr.msk.bf16.mxu1 %vm915_vm1, %v5836_v14  ;;  %v17191_v6 = vld [vmem:[%s20650_s9 + $0x208] sm:$0xff]   ;;  %v17197_v14 = vld [vmem:[%s20650_s9 + $0x238] sm:$0xff]  }
0x11f0   :  { %15615 = vmatprep.subr.bf16.mxu1 %v17175_v33 }
0x11f3   :  { %15616 = vmatpush3.bf16.msra.mxu1 %v17175_v33 }
0x11f4   :  { %15617 = vmatprep.subr.bf16.mxu1 %v17176_v34 }
0x11f7   :  { %15618 = vmatpush3.bf16.msra.mxu1 %v17176_v34  ;;  %v13348_v34 = vld [vmem:[%s20652_s11 + $0x1] ss:$0 sm:$0xff] }
0x11f8   :  { %15619 = vmatprep.subr.bf16.mxu1 %v17177_v38 }
0x11fb   :  { %15620 = vmatpush3.bf16.msra.mxu1 %v17177_v38 }
0x11fc   :  { %15633 = vmatprep.subr.bf16.mxu1 %v17178_v39 }
0x11fe   :  { %15622 = vmatmul.mubr.msk.bf16.vlgmr.msra.gmra.mrb[108].mxu1 %vm915_vm1, %v5837_v16  ;;  %v17195_v16 = vld [vmem:[%s20650_s9 + $0x228] sm:$0xff]  }
0x11ff   :  { %15634 = vmatpush3.bf16.msra.mxu1 %v17178_v39  ;;  %15641 = vmatprep.mubr.msk.bf16.mxu1 %vm915_vm1, %v5970_v36 }
0x1200   :  { %15635 = vmatprep.subr.bf16.mxu1 %v17179_v41 }
0x1203   :  { %15636 = vmatpush3.bf16.msra.mxu1 %v17179_v41 }
0x1204   :  { %15637 = vmatprep.subr.bf16.mxu1 %v17180_v42 }
0x1207   :  { %15638 = vmatpush3.bf16.msra.mxu1 %v17180_v42 }
0x1208   :  { %15639 = vmatprep.subr.bf16.mxu1 %v17181_v44 }
0x120b   :  { %15640 = vmatpush3.bf16.msra.mxu1 %v17181_v44 }
0x120c   :  { %15653 = vmatprep.subr.bf16.mxu1 %v17182_v23 }
0x120e   :  { %15642 = vmatmul.mubr.msk.bf16.vlgmr.msra.gmra.mrb[108].mxu1 %vm915_vm1, %v5971_v29 }
0x120f   :  { %15654 = vmatpush3.bf16.msra.mxu1 %v17182_v23  ;;  %15661 = vmatprep.mubr.msk.bf16.mxu1 %vm915_vm1, %v6104_v8 }
0x1210   :  { %15655 = vmatprep.subr.bf16.mxu1 %v17183_v1 }
0x1213   :  { %15656 = vmatpush3.bf16.msra.mxu1 %v17183_v1 }
0x1214   :  { %15657 = vmatprep.subr.bf16.mxu1 %v17184_v9 }
0x1217   :  { %15658 = vmatpush3.bf16.msra.mxu1 %v17184_v9 }
0x1218   :  { %15659 = vmatprep.subr.bf16.mxu1 %v17185_v53 }
0x121b   :  { %15660 = vmatpush3.bf16.msra.mxu1 %v17185_v53 }
0x121c   :  { %15673 = vmatprep.subr.bf16.mxu1 %v17186_v59 }
0x121e   :  { %15662 = vmatmul.mubr.msk.bf16.vlgmr.msra.gmra.mrb[108].mxu1 %vm915_vm1, %v6105_v21  ;;  %v19186_v21 = vld [vmem:[%s20646_s5 + $0x18] sm:$0xff] }
0x121f   :  { %15674 = vmatpush3.bf16.msra.mxu1 %v17186_v59  ;;  %15681 = vmatprep.mubr.msk.bf16.mxu1 %vm915_vm1, %v6238_v54 }
0x1220   :  { %15675 = vmatprep.subr.bf16.mxu1 %v17187_v60 }
0x1223   :  { %15676 = vmatpush3.bf16.msra.mxu1 %v17187_v60 }
0x1224   :  { %15677 = vmatprep.subr.bf16.mxu1 %v17188_v46 }
0x1227   :  { %15678 = vmatpush3.bf16.msra.mxu1 %v17188_v46 }
0x1228   :  { %15679 = vmatprep.subr.bf16.mxu1 %v17189_v25 }
0x122b   :  { %15680 = vmatpush3.bf16.msra.mxu1 %v17189_v25 }
0x122c   :  { %15693 = vmatprep.subr.bf16.mxu1 %v17190_v61 }
0x122e   :  { %15682 = vmatmul.mubr.msk.bf16.vlgmr.msra.gmra.mrb[108].mxu1 %vm915_vm1, %v6239_v52 }
0x122f   :  { %15694 = vmatpush3.bf16.msra.mxu1 %v17190_v61  ;;  %15701 = vmatprep.mubr.msk.bf16.mxu1 %vm915_vm1, %v6372_v4 }
0x1230   :  { %15695 = vmatprep.subr.bf16.mxu1 %v17191_v6 }
0x1233   :  { %15696 = vmatpush3.bf16.msra.mxu1 %v17191_v6 }
0x1234   :  { %15697 = vmatprep.subr.bf16.mxu1 %v17192_v51 }
0x1237   :  { %15698 = vmatpush3.bf16.msra.mxu1 %v17192_v51 }
0x1238   :  { %15699 = vmatprep.subr.bf16.mxu1 %v17193_v62 }
0x123b   :  { %15700 = vmatpush3.bf16.msra.mxu1 %v17193_v62 }
0x123c   :  { %15713 = vmatprep.subr.bf16.mxu1 %v17194_v12 }
0x123e   :  { %15702 = vmatmul.mubr.msk.bf16.vlgmr.msra.gmra.mrb[108].mxu1 %vm915_vm1, %v6373_v11 }
0x123f   :  { %15714 = vmatpush3.bf16.msra.mxu1 %v17194_v12  ;;  %15721 = vmatprep.mubr.msk.bf16.mxu1 %vm915_vm1, %v6506_v49 }
0x1240   :  { %15715 = vmatprep.subr.bf16.mxu1 %v17195_v16 }
0x1243   :  { %15716 = vmatpush3.bf16.msra.mxu1 %v17195_v16  ;;  %v19265_v16 = vld [vmem:[%s20645_s4 + $0x10] sm:$0xff]  }
0x1244   :  { %15717 = vmatprep.subr.bf16.mxu1 %v17196_v28 }
0x1247   :  { %15718 = vmatpush3.bf16.msra.mxu1 %v17196_v28  ;;  %v19272_v28 = vld [vmem:[%s20645_s4 + $0x40] sm:$0xff]  }
0x1248   :  { %15719 = vmatprep.subr.bf16.mxu1 %v17197_v14 }
0x124b   :  { %15720 = vmatpush3.bf16.msra.mxu1 %v17197_v14  ;;  %v19282_v14 = vld [vmem:[%s20645_s4 + $0x18] sm:$0xff]  }
0x124e   :  { %15722 = vmatmul.mubr.msk.bf16.vlgmr.msra.gmra.mrb[108].mxu1 %vm915_vm1, %v6507_v22 }
0x124f   :  { %15817 = vmatprep.mubr.msk.bf16.mxu1 %vm451_vm0, %v19165_v18 }
0x1321   :  { %v15723_v48 = vpop.f32.mrb[108].mxu1 }
0x1322   :  { %v6572_v58 = vpop.f32.mrb[109].mxu1 }
0x1323   :  { %v15724_v29 = vpop.f32.mrb[110].mxu1 }
0x1324   :  { %v16653_v35 = vpack.c.bf16 %v15724_v29, %v15723_v48  ;;  %v6575_v36 = vpop.f32.mrb[111].mxu1 }
0x1325   :  { %v16649_v37 = vpack.c.bf16 %v6575_v36, %v6572_v58 }
0x1327   :  { %16650 = vmatprep.subr.bf16.mxu0 %v16649_v37 }
0x1328   :  { %16652 = vmatpush3.bf16.msra.mxu0 %v16649_v37  ;;  %v19333_v37 = vld [vmem:[%s20645_s4 + $0x70] sm:$0xff]  }
0x1329   :  { %16654 = vmatprep.subr.bf16.mxu0 %v16653_v35 }
0x132c   :  { %16656 = vmatpush3.bf16.msra.mxu0 %v16653_v35  ;;  %v19315_v35 = vld [vmem:[%s20645_s4 + $0x60] sm:$0xff]  }
0x132f   :  { %15734 = vmatmul.mubr.msk.f32.vlgmr.msra.gmra.mrb[92].mxu0 %vm451_vm0, %v19172_v17 }
0x1330   :  { %15736 = vmatprep.mubr.msk.f32.mxu0 %vm451_vm0, %v19179_v3 }
0x1333   :  { %15737 = vmatmul.mubr.msk.f32.gmra.mrb[94].mxu0 %vm451_vm0, %v19186_v21 }
0x1334   :  { %15747 = vmatprep.mubr.msk.f32.mxu0 %vm451_vm0, %v18872_v56 }
0x1402   :  { %v15735_v7 = vpop.f32.mrb[92].mxu0 }
0x1403   :  { %v6681_v8 = vsub.f32 %v6575_v36, %v15735_v7  ;;  %v6661_v47 = vpop.f32.mrb[93].mxu0  ;;  %v19325_v36 = vld [vmem:[%s20645_s4 + $0x68] sm:$0xff]   ;;  %v19343_v7 = vld [vmem:[%s20645_s4 + $0x78] sm:$0xff]  }
0x1404   :  { %v6680_v50 = vsub.f32 %v6572_v58, %v6661_v47  ;;  %v19297_v58 = vld [vmem:[%s20645_s4 + $0x50] sm:$0xff]   ;;  %v19360_v47 = vld [vmem:[%s20645_s4 + $0x88] sm:$0xff]  }
0x1405   :  { %v6685_v43 = vmul.f32 %v6681_v8, %v6681_v8 }
0x1406   :  { %v6684_v52 = vmul.f32 %v6680_v50, %v6680_v50  ;;  %v15738_v2 = vpop.f32.mrb[94].mxu0 }
0x1407   :  { %v6683_v54 = vsub.f32 %v15724_v29, %v15738_v2  ;;  %v6671_v24 = vpop.f32.mrb[95].mxu0  ;;  %v19307_v29 = vld [vmem:[%s20645_s4 + $0x58] sm:$0xff]  }
0x1408   :  { %v6682_v5 = vsub.f32 %v15723_v48, %v6671_v24  ;;  %v16657_v10 = vpack.c.bf16 %v6685_v43, %v6684_v52  ;;  %v19289_v48 = vld [vmem:[%s20645_s4 + $0x48] sm:$0xff]   ;;  %v17200_v43 = vld [vmem:[%s20647_s6 + $0x270] sm:$0xff]   ;;  %v17201_v52 = vld [vmem:[%s20647_s6 + $0x278] sm:$0xff]  }
0x1409   :  { %v6687_v11 = vmul.f32 %v6683_v54, %v6683_v54 }
0x140a   :  { %v6686_v13 = vmul.f32 %v6682_v5, %v6682_v5  ;;  %16658 = vmatprep.subr.bf16.mxu0 %v16657_v10 }
0x140b   :  { %16660 = vmatpush3.bf16.msra.mxu0 %v16657_v10 }
0x140c   :  { %v16661_v4 = vpack.c.bf16 %v6687_v11, %v6686_v13 }
0x140e   :  { %16662 = vmatprep.subr.bf16.mxu0 %v16661_v4 }
0x140f   :  { %16664 = vmatpush3.bf16.msra.mxu0 %v16661_v4 }
0x1412   :  { %15748 = vmatmul.mubr.msk.f32.vlgmr.msra.gmra.mrb[96].mxu0 %vm451_vm0, %v19172_v17 }
0x1413   :  { %15750 = vmatprep.mubr.msk.f32.mxu0 %vm451_vm0, %v19179_v3 }
0x1416   :  { %15751 = vmatmul.mubr.msk.f32.gmra.mrb[98].mxu0 %vm451_vm0, %v19186_v21 }
0x1417   :  { %15757 = vmatprep.mubr.msk.bf16.mxu0 %vm451_vm0, %v19201_v15 }
0x14e5   :  { %v15749_v63 = vpop.f32.mrb[96].mxu0 }
0x14e6   :  { %v6760_v20 = vadd.f32 1e-05, %v15749_v63  ;;  %v6754_v22 = vpop.f32.mrb[97].mxu0 }
0x14e7   :  { %v6755_v19 = vadd.f32 1e-05, %v6754_v22 }
0x14e8   :  { %17374 = vrsqrt.f32 %v6760_v20 }
0x14e9   :  { %17376 = vrsqrt.f32 %v6755_v19  ;;  %v15752_v49 = vpop.f32.mrb[98].mxu0 }
0x14ea   :  { %v6770_v55 = vadd.f32 1e-05, %v15752_v49  ;;  %v6764_v57 = vpop.f32.mrb[99].mxu0  ;;  %v17203_v49 = vld [vmem:[%s20647_s6 + $0x248] sm:$0xff]  }
0x14eb   :  { %v6765_v27 = vadd.f32 1e-05, %v6764_v57  ;;  %v17205_v57 = vld [vmem:[%s20647_s6 + $0x258] sm:$0xff]  }
0x14ec   :  { %17378 = vrsqrt.f32 %v6770_v55  ;;  %v17204_v55 = vld [vmem:[%s20647_s6 + $0x250] sm:$0xff]  }
0x14ed   :  { %17380 = vrsqrt.f32 %v6765_v27  ;;  %v19396_v27 = vld [vmem:[%s20645_s4 + $0x20] sm:$0xff]  }
0x14f2   :  { %v17375_v31 = vpop.eup %17374 }
0x14f3   :  { %v17377_v32 = vpop.eup %17376  ;;  %v6778_v33 = vmul.f32 %v17375_v31, %v6681_v8  ;;  %v19351_v8 = vld [vmem:[%s20645_s4 + $0x80] sm:$0xff]  }
0x14f4   :  { %v6777_v38 = vmul.f32 %v17377_v32, %v6680_v50  ;;  %v17199_v50 = vld [vmem:[%s20647_s6 + $0x268] sm:$0xff]   ;;  %v17206_v31 = vld [vmem:[%s20647_s6 + $0x280] sm:$0xff]  }
0x14f5   :  { %v6788_v39 = vmul.f32 %v13347_v30, %v6778_v33  ;;  %v19411_v32 = vld [vmem:[%s20645_s4 + $0x28] sm:$0xff]   ;;  %v17208_v33 = vld [vmem:[%s20647_s6 + $0x290] sm:$0xff]  }
0x14f6   :  { %v17379_v41 = vpop.eup %17378  ;;  %v6787_v42 = vmul.f32 %v13347_v30, %v6777_v38  ;;  %v17210_v38 = vld [vmem:[%s20647_s6 + $0x2a0] sm:$0xff]  }
0x14f7   :  { %v17381_v44 = vpop.eup %17380  ;;  %v6798_v23 = vadd.f32 %v13348_v34, %v6788_v39  ;;  %v6780_v1 = vmul.f32 %v17379_v41, %v6683_v54 }
0x14f8   :  { %v6797_v9 = vadd.f32 %v13348_v34, %v6787_v42  ;;  %v6779_v53 = vmul.f32 %v17381_v44, %v6682_v5 }
0x14f9   :  { %v19212_v59 = vadd.f32 %v6798_v23, %v18452_v0  ;;  %v6790_v60 = vmul.f32 %v13347_v30, %v6780_v1 }
0x14fa   :  { %v19215_v46 = vadd.f32 %v6797_v9, %v18456_v40  ;;  %v6789_v25 = vmul.f32 %v13347_v30, %v6779_v53  ;;  %v19244_v40 = vld [vmem:[%s20645_s4 + $0x8] sm:$0xff]  }
0x14fb   :  { %v6800_v61 = vadd.f32 %v13348_v34, %v6790_v60  ;;  %v17207_v30 = vld [vmem:[%s20647_s6 + $0x288] sm:$0xff]  }
0x14fc   :  { %v19219_v6 = vpack.c.bf16 %v19212_v59, %v19215_v46  ;;  %v6799_v51 = vadd.f32 %v13348_v34, %v6789_v25  ;;  %v17209_v34 = vld [vmem:[%s20647_s6 + $0x298] sm:$0xff]  }
0x14fd   :  { %v19222_v62 = vadd.f32 %v6800_v61, %v18464_v26  ;;  %v19251_v26 = vld [vmem:[%s20645_s4 + $0x38] sm:$0xff]  }
0x14fe   :  { %v19225_v12 = vadd.f32 %v6799_v51, %v18468_v45  ;;  %15753 = vmatprep.subr.bf16.mxu0 %v19219_v6  ;;  %15813 = vmatprep.subr.bf16.mxu1 %v19219_v6  ;;  %v17198_v45 = vld [vmem:[%s20647_s6 + $0x260] sm:$0xff]  }
0x14ff   :  { %15754 = vmatpush3.bf16.msra.mxu0 %v19219_v6  ;;  %15814 = vmatpush3.bf16.msra.mxu1 %v19219_v6 }
0x1500   :  { %v19233_v0 = vpack.c.bf16 %v19222_v62, %v19225_v12 }
0x1502   :  { %15755 = vmatprep.subr.bf16.mxu0 %v19233_v0  ;;  %15815 = vmatprep.subr.bf16.mxu1 %v19233_v0 }
0x1503   :  { %15756 = vmatpush3.bf16.msra.mxu0 %v19233_v0  ;;  %15816 = vmatpush3.bf16.msra.mxu1 %v19233_v0 }
0x1504   :  { %15761 = vmatprep.subr.bf16.mxu0 %v19219_v6  ;;  %15833 = vmatprep.subr.bf16.mxu1 %v19219_v6 }
0x1506   :  { %15758 = vmatmul.mubr.msk.bf16.vlgmr.msra.gmra.mrb[100].mxu0 %vm451_vm0, %v19244_v40  ;;  %15818 = vmatmul.mubr.msk.bf16.vlgmr.msra.gmra.mrb[116].mxu1 %vm451_vm0, %v19251_v26 }
0x1507   :  { %15762 = vmatpush3.bf16.msra.mxu0 %v19219_v6  ;;  %15834 = vmatpush3.bf16.msra.mxu1 %v19219_v6 }
0x1508   :  { %15763 = vmatprep.subr.bf16.mxu0 %v19233_v0  ;;  %15835 = vmatprep.subr.bf16.mxu1 %v19233_v0 }
0x1509   :  { %15765 = vmatprep.mubr.msk.bf16.mxu0 %vm451_vm0, %v19265_v16  ;;  %15837 = vmatprep.mubr.msk.bf16.mxu1 %vm451_vm0, %v19272_v28 }
0x150b   :  { %15764 = vmatpush3.bf16.msra.mxu0 %v19233_v0  ;;  %15836 = vmatpush3.bf16.msra.mxu1 %v19233_v0 }
0x150c   :  { %15853 = vmatprep.subr.bf16.mxu1 %v19219_v6  ;;  %15769 = vmatprep.subr.bf16.mxu0 %v17198_v45 }
0x150e   :  { %15766 = vmatmul.mubr.msk.bf16.vlgmr.msra.gmra.mrb[104].mxu0 %vm451_vm0, %v19282_v14  ;;  %15838 = vmatmul.mubr.msk.bf16.vlgmr.msra.gmra.mrb[120].mxu1 %vm451_vm0, %v19289_v48 }
0x150f   :  { %15854 = vmatpush3.bf16.msra.mxu1 %v19219_v6  ;;  %15857 = vmatprep.mubr.msk.bf16.mxu1 %vm451_vm0, %v19297_v58 }
0x1510   :  { %15855 = vmatprep.subr.bf16.mxu1 %v19233_v0  ;;  %15770 = vmatpush3.bf16.msra.mxu0 %v17198_v45 }
0x1511   :  { %15771 = vmatprep.subr.bf16.mxu0 %v17199_v50 }
0x1513   :  { %15856 = vmatpush3.bf16.msra.mxu1 %v19233_v0 }
0x1514   :  { %15873 = vmatprep.subr.bf16.mxu1 %v19219_v6  ;;  %15772 = vmatpush3.bf16.msra.mxu0 %v17199_v50 }
0x1515   :  { %15773 = vmatprep.subr.bf16.mxu0 %v17200_v43 }
0x1516   :  { %15858 = vmatmul.mubr.msk.bf16.vlgmr.msra.gmra.mrb[124].mxu1 %vm451_vm0, %v19307_v29 }
0x1517   :  { %15874 = vmatpush3.bf16.msra.mxu1 %v19219_v6  ;;  %15877 = vmatprep.mubr.msk.bf16.mxu1 %vm451_vm0, %v19315_v35 }
0x1518   :  { %15875 = vmatprep.subr.bf16.mxu1 %v19233_v0  ;;  %15774 = vmatpush3.bf16.msra.mxu0 %v17200_v43 }
0x1519   :  { %15775 = vmatprep.subr.bf16.mxu0 %v17201_v52 }
0x151b   :  { %15876 = vmatpush3.bf16.msra.mxu1 %v19233_v0 }
0x151c   :  { %15893 = vmatprep.subr.bf16.mxu1 %v19219_v6  ;;  %15776 = vmatpush3.bf16.msra.mxu0 %v17201_v52 }
0x151e   :  { %15878 = vmatmul.mubr.msk.bf16.vlgmr.msra.gmra.mrb[128].mxu1 %vm451_vm0, %v19325_v36 }
0x151f   :  { %15894 = vmatpush3.bf16.msra.mxu1 %v19219_v6  ;;  %15897 = vmatprep.mubr.msk.bf16.mxu1 %vm451_vm0, %v19333_v37 }
0x1520   :  { %15895 = vmatprep.subr.bf16.mxu1 %v19233_v0 }
0x1523   :  { %15896 = vmatpush3.bf16.msra.mxu1 %v19233_v0 }
0x1524   :  { %15913 = vmatprep.subr.bf16.mxu1 %v19219_v6 }
0x1526   :  { %15898 = vmatmul.mubr.msk.bf16.vlgmr.msra.gmra.mrb[132].mxu1 %vm451_vm0, %v19343_v7 }
0x1527   :  { %15914 = vmatpush3.bf16.msra.mxu1 %v19219_v6  ;;  %15917 = vmatprep.mubr.msk.bf16.mxu1 %vm451_vm0, %v19351_v8 }
0x1528   :  { %15915 = vmatprep.subr.bf16.mxu1 %v19233_v0 }
0x152b   :  { %15916 = vmatpush3.bf16.msra.mxu1 %v19233_v0 }
0x152e   :  { %15918 = vmatmul.mubr.msk.bf16.vlgmr.msra.gmra.mrb[136].mxu1 %vm451_vm0, %v19360_v47 }
0x152f   :  { %15941 = vmatprep.mubr.msk.f32.mxu1 %vm451_vm0, %v18872_v56  ;;  %v17202_v56 = vld [vmem:[%s20647_s6 + $0x240] sm:$0xff]  }
0x1530   :  { %15781 = vmatprep.subr.bf16.mxu0 %v17202_v56 }
0x15d9   :  { %v15759_v2 = vpop.f32.mrb[100].mxu0  ;;  %v15819_v39 = vpop.f32.mrb[116].mxu1 }
0x15da   :  { %v6914_v54 = vpop.f32.mrb[101].mxu0  ;;  %v7308_v41 = vpop.f32.mrb[117].mxu1 }
0x15db   :  { %v15760_v24 = vpop.f32.mrb[102].mxu0  ;;  %v15820_v42 = vpop.f32.mrb[118].mxu1 }
0x15dc   :  { %v6930_v5 = vpack.c.bf16 %v15760_v24, %v15759_v2  ;;  %v6917_v10 = vpop.f32.mrb[103].mxu0  ;;  %v7324_v44 = vpack.c.bf16 %v15820_v42, %v15819_v39  ;;  %v7311_v23 = vpop.f32.mrb[119].mxu1 }
0x15dd   :  { %v6929_v11 = vpack.c.bf16 %v6917_v10, %v6914_v54  ;;  %v7323_v1 = vpack.c.bf16 %v7311_v23, %v7308_v41 }
0x15e1   :  { %v15767_v13 = vpop.f32.mrb[104].mxu0  ;;  %v19424_v9 = vpop.f32.mrb[120].mxu1 }
0x15e2   :  { %v6965_v4 = vpop.f32.mrb[105].mxu0  ;;  %v7442_v53 = vpop.f32.mrb[121].mxu1 }
0x15e3   :  { %v15768_v63 = vpop.f32.mrb[106].mxu0  ;;  %v19426_v60 = vpop.f32.mrb[122].mxu1 }
0x15e4   :  { %v6981_v20 = vpack.c.bf16 %v15768_v63, %v15767_v13  ;;  %v6968_v22 = vpop.f32.mrb[107].mxu0  ;;  %v7458_v25 = vpack.c.bf16 %v19426_v60, %v19424_v9  ;;  %v7445_v61 = vpop.f32.mrb[123].mxu1  ;;  %v17222_v9 = vld [vmem:[%s20647_s6 + $0x300] sm:$0xff]   ;;  %v17223_v60 = vld [vmem:[%s20647_s6 + $0x308] sm:$0xff]  }
0x15e5   :  { %v6980_v19 = vpack.c.bf16 %v6968_v22, %v6965_v4 }
0x15e7   :  { %15777 = vmatprep.mubr.msk.bf16.mxu0 %vm915_vm1, %v6980_v19 }
0x15e8   :  { %15778 = vmatmul.mubr.msk.bf16.vlgmr.msra.gmra.mrb[108].mxu0 %vm915_vm1, %v6981_v20 }
0x15e9   :  { %15782 = vmatpush3.bf16.msra.mxu0 %v17202_v56  ;;  %15789 = vmatprep.mubr.msk.bf16.mxu0 %vm915_vm1, %v6929_v11  ;;  %v19430_v51 = vpop.f32.mrb[124].mxu1 }
0x15ea   :  { %15783 = vmatprep.subr.bf16.mxu0 %v17203_v49 }
0x15ed   :  { %15784 = vmatpush3.bf16.msra.mxu0 %v17203_v49 }
0x15ee   :  { %15785 = vmatprep.subr.bf16.mxu0 %v17204_v55 }
0x15f1   :  { %15786 = vmatpush3.bf16.msra.mxu0 %v17204_v55 }
0x15f2   :  { %15787 = vmatprep.subr.bf16.mxu0 %v17205_v57 }
0x15f5   :  { %15788 = vmatpush3.bf16.msra.mxu0 %v17205_v57 }
0x15f6   :  { %15793 = vmatprep.subr.bf16.mxu0 %v19219_v6 }
0x15f8   :  { %15790 = vmatmul.mubr.msk.bf16.vlgmr.msra.gmra.mrb[108].mxu0 %vm915_vm1, %v6930_v5 }
0x15f9   :  { %15794 = vmatpush3.bf16.msra.mxu0 %v19219_v6  ;;  %15797 = vmatprep.mubr.msk.bf16.mxu0 %vm451_vm0, %v19396_v27  ;;  %v7457_v6 = vpack.c.bf16 %v7445_v61, %v7442_v53  ;;  %v17211_v53 = vld [vmem:[%s20647_s6 + $0x2a8] sm:$0xff]   ;;  %v17212_v61 = vld [vmem:[%s20647_s6 + $0x2b0] sm:$0xff]  }
0x15fa   :  { %15795 = vmatprep.subr.bf16.mxu0 %v19233_v0 }
0x15fd   :  { %15796 = vmatpush3.bf16.msra.mxu0 %v19233_v0  ;;  %v7576_v0 = vpop.f32.mrb[125].mxu1 }
0x15fe   :  { %15801 = vmatprep.subr.bf16.mxu0 %v17206_v31  ;;  %v19432_v45 = vpop.f32.mrb[126].mxu1 }
0x15ff   :  { %v7592_v50 = vpack.c.bf16 %v19432_v45, %v19430_v51  ;;  %v7579_v43 = vpop.f32.mrb[127].mxu1  ;;  %v17226_v51 = vld [vmem:[%s20647_s6 + $0x320] sm:$0xff]   ;;  %v17227_v45 = vld [vmem:[%s20647_s6 + $0x328] sm:$0xff]  }
0x1600   :  { %15798 = vmatmul.mubr.msk.bf16.vlgmr.msra.gmra.mrb[112].mxu0 %vm451_vm0, %v19411_v32  ;;  %v7591_v52 = vpack.c.bf16 %v7579_v43, %v7576_v0  ;;  %v19436_v56 = vpop.f32.mrb[128].mxu1  ;;  %v17213_v0 = vld [vmem:[%s20647_s6 + $0x2b8] sm:$0xff]   ;;  %v17214_v43 = vld [vmem:[%s20647_s6 + $0x2c0] sm:$0xff]  }
0x1601   :  { %15802 = vmatpush3.bf16.msra.mxu0 %v17206_v31  ;;  %v19438_v2 = vpop.f32.mrb[129].mxu1 }
0x1602   :  { %15803 = vmatprep.subr.bf16.mxu0 %v17207_v30  ;;  %v19440_v54 = vpop.f32.mrb[130].mxu1 }
0x1603   :  { %v7726_v24 = vpack.c.bf16 %v19440_v54, %v19436_v56  ;;  %v19444_v5 = vpop.f32.mrb[131].mxu1  ;;  %v17230_v56 = vld [vmem:[%s20647_s6 + $0x340] sm:$0xff]   ;;  %v17231_v54 = vld [vmem:[%s20647_s6 + $0x348] sm:$0xff]  }
0x1604   :  { %v7725_v10 = vpack.c.bf16 %v19444_v5, %v19438_v2  ;;  %v19448_v11 = vpop.f32.mrb[132].mxu1  ;;  %v17229_v2 = vld [vmem:[%s20647_s6 + $0x338] sm:$0xff]  }
0x1605   :  { %15804 = vmatpush3.bf16.msra.mxu0 %v17207_v30  ;;  %v19450_v13 = vpop.f32.mrb[133].mxu1  ;;  %v17233_v5 = vld [vmem:[%s20647_s6 + $0x358] sm:$0xff]  }
0x1606   :  { %15805 = vmatprep.subr.bf16.mxu0 %v17208_v33  ;;  %v19452_v4 = vpop.f32.mrb[134].mxu1 }
0x1607   :  { %v7860_v63 = vpack.c.bf16 %v19452_v4, %v19448_v11  ;;  %v19456_v20 = vpop.f32.mrb[135].mxu1 }
0x1608   :  { %v7859_v22 = vpack.c.bf16 %v19456_v20, %v19450_v13  ;;  %v19460_v19 = vpop.f32.mrb[136].mxu1 }
0x1609   :  { %15806 = vmatpush3.bf16.msra.mxu0 %v17208_v33  ;;  %v19462_v49 = vpop.f32.mrb[137].mxu1 }
0x160a   :  { %15807 = vmatprep.subr.bf16.mxu0 %v17209_v34  ;;  %v19464_v55 = vpop.f32.mrb[138].mxu1 }
0x160b   :  { %v7994_v57 = vpack.c.bf16 %v19464_v55, %v19460_v19  ;;  %v19468_v31 = vpop.f32.mrb[139].mxu1 }
0x160c   :  { %v7993_v30 = vpack.c.bf16 %v19468_v31, %v19462_v49 }
0x160d   :  { %15808 = vmatpush3.bf16.msra.mxu0 %v17209_v34 }
0x160e   :  { %15821 = vmatprep.subr.bf16.mxu0 %v17210_v38 }
0x16d3   :  { %v15799_v33 = vpop.f32.mrb[112].mxu0 }
0x16d4   :  { %v7174_v34 = vpop.f32.mrb[113].mxu0 }
0x16d5   :  { %v15800_v39 = vpop.f32.mrb[114].mxu0 }
0x16d6   :  { %v7190_v41 = vpack.c.bf16 %v15800_v39, %v15799_v33  ;;  %v7177_v42 = vpop.f32.mrb[115].mxu0  ;;  %v17217_v33 = vld [vmem:[%s20647_s6 + $0x2d8] sm:$0xff]  }
0x16d7   :  { %v7189_v23 = vpack.c.bf16 %v7177_v42, %v7174_v34  ;;  %v17220_v34 = vld [vmem:[%s20647_s6 + $0x2f0] sm:$0xff]   ;;  %v17221_v39 = vld [vmem:[%s20647_s6 + $0x2f8] sm:$0xff]  }
0x16d9   :  { %15809 = vmatprep.mubr.msk.bf16.mxu0 %vm915_vm1, %v7189_v23 }
0x16da   :  { %15810 = vmatmul.mubr.msk.bf16.vlgmr.msra.gmra.mrb[108].mxu0 %vm915_vm1, %v7190_v41 }
0x16db   :  { %15822 = vmatpush3.bf16.msra.mxu0 %v17210_v38  ;;  %15829 = vmatprep.mubr.msk.bf16.mxu0 %vm915_vm1, %v7323_v1  ;;  %v17215_v38 = vld [vmem:[%s20647_s6 + $0x2c8] sm:$0xff]   ;;  %v17216_v1 = vld [vmem:[%s20647_s6 + $0x2d0] sm:$0xff]  }
0x16dc   :  { %15823 = vmatprep.subr.bf16.mxu0 %v17211_v53 }
0x16df   :  { %15824 = vmatpush3.bf16.msra.mxu0 %v17211_v53 }
0x16e0   :  { %15825 = vmatprep.subr.bf16.mxu0 %v17212_v61 }
0x16e3   :  { %15826 = vmatpush3.bf16.msra.mxu0 %v17212_v61 }
0x16e4   :  { %15827 = vmatprep.subr.bf16.mxu0 %v17213_v0 }
0x16e7   :  { %15828 = vmatpush3.bf16.msra.mxu0 %v17213_v0 }
0x16e8   :  { %15841 = vmatprep.subr.bf16.mxu0 %v17214_v43 }
0x16ea   :  { %15830 = vmatmul.mubr.msk.bf16.vlgmr.msra.gmra.mrb[108].mxu0 %vm915_vm1, %v7324_v44  ;;  %v17218_v44 = vld [vmem:[%s20647_s6 + $0x2e0] sm:$0xff]  }
0x16eb   :  { %15842 = vmatpush3.bf16.msra.mxu0 %v17214_v43  ;;  %15849 = vmatprep.mubr.msk.bf16.mxu0 %vm915_vm1, %v7457_v6  ;;  %v17219_v6 = vld [vmem:[%s20647_s6 + $0x2e8] sm:$0xff]  }
0x16ec   :  { %15843 = vmatprep.subr.bf16.mxu0 %v17215_v38 }
0x16ef   :  { %15844 = vmatpush3.bf16.msra.mxu0 %v17215_v38 }
0x16f0   :  { %15845 = vmatprep.subr.bf16.mxu0 %v17216_v1 }
0x16f3   :  { %15846 = vmatpush3.bf16.msra.mxu0 %v17216_v1 }
0x16f4   :  { %15847 = vmatprep.subr.bf16.mxu0 %v17217_v33 }
0x16f7   :  { %15848 = vmatpush3.bf16.msra.mxu0 %v17217_v33 }
0x16f8   :  { %15861 = vmatprep.subr.bf16.mxu0 %v17218_v44 }
0x16fa   :  { %15850 = vmatmul.mubr.msk.bf16.vlgmr.msra.gmra.mrb[108].mxu0 %vm915_vm1, %v7458_v25  ;;  %v17224_v25 = vld [vmem:[%s20647_s6 + $0x310] sm:$0xff]  }
0x16fb   :  { %15862 = vmatpush3.bf16.msra.mxu0 %v17218_v44  ;;  %15869 = vmatprep.mubr.msk.bf16.mxu0 %vm915_vm1, %v7591_v52  ;;  %v17225_v52 = vld [vmem:[%s20647_s6 + $0x318] sm:$0xff]  }
0x16fc   :  { %15863 = vmatprep.subr.bf16.mxu0 %v17219_v6 }
0x16ff   :  { %15864 = vmatpush3.bf16.msra.mxu0 %v17219_v6 }
0x1700   :  { %15865 = vmatprep.subr.bf16.mxu0 %v17220_v34 }
0x1703   :  { %15866 = vmatpush3.bf16.msra.mxu0 %v17220_v34 }
0x1704   :  { %15867 = vmatprep.subr.bf16.mxu0 %v17221_v39 }
0x1707   :  { %15868 = vmatpush3.bf16.msra.mxu0 %v17221_v39 }
0x1708   :  { %15881 = vmatprep.subr.bf16.mxu0 %v17222_v9 }
0x170a   :  { %15870 = vmatmul.mubr.msk.bf16.vlgmr.msra.gmra.mrb[108].mxu0 %vm915_vm1, %v7592_v50  ;;  %v17228_v50 = vld [vmem:[%s20647_s6 + $0x330] sm:$0xff]  }
0x170b   :  { %15882 = vmatpush3.bf16.msra.mxu0 %v17222_v9  ;;  %15889 = vmatprep.mubr.msk.bf16.mxu0 %vm915_vm1, %v7725_v10 }
0x170c   :  { %15883 = vmatprep.subr.bf16.mxu0 %v17223_v60 }
0x170f   :  { %15884 = vmatpush3.bf16.msra.mxu0 %v17223_v60 }
0x1710   :  { %15885 = vmatprep.subr.bf16.mxu0 %v17224_v25 }
0x1713   :  { %15886 = vmatpush3.bf16.msra.mxu0 %v17224_v25 }
0x1714   :  { %15887 = vmatprep.subr.bf16.mxu0 %v17225_v52 }
0x1717   :  { %15888 = vmatpush3.bf16.msra.mxu0 %v17225_v52 }
0x1718   :  { %15901 = vmatprep.subr.bf16.mxu0 %v17226_v51 }
0x171a   :  { %15890 = vmatmul.mubr.msk.bf16.vlgmr.msra.gmra.mrb[108].mxu0 %vm915_vm1, %v7726_v24  ;;  %v17232_v24 = vld [vmem:[%s20647_s6 + $0x350] sm:$0xff]  }
0x171b   :  { %15902 = vmatpush3.bf16.msra.mxu0 %v17226_v51  ;;  %15909 = vmatprep.mubr.msk.bf16.mxu0 %vm915_vm1, %v7859_v22 }
0x171c   :  { %15903 = vmatprep.subr.bf16.mxu0 %v17227_v45 }
0x171f   :  { %15904 = vmatpush3.bf16.msra.mxu0 %v17227_v45 }
0x1720   :  { %15905 = vmatprep.subr.bf16.mxu0 %v17228_v50 }
0x1723   :  { %15906 = vmatpush3.bf16.msra.mxu0 %v17228_v50 }
0x1724   :  { %15907 = vmatprep.subr.bf16.mxu0 %v17229_v2 }
0x1727   :  { %15908 = vmatpush3.bf16.msra.mxu0 %v17229_v2 }
0x1728   :  { %15921 = vmatprep.subr.bf16.mxu0 %v17230_v56 }
0x172a   :  { %15910 = vmatmul.mubr.msk.bf16.vlgmr.msra.gmra.mrb[108].mxu0 %vm915_vm1, %v7860_v63 }
0x172b   :  { %15922 = vmatpush3.bf16.msra.mxu0 %v17230_v56  ;;  %15929 = vmatprep.mubr.msk.bf16.mxu0 %vm915_vm1, %v7993_v30 }
0x172c   :  { %15923 = vmatprep.subr.bf16.mxu0 %v17231_v54 }
0x172f   :  { %15924 = vmatpush3.bf16.msra.mxu0 %v17231_v54 }
0x1730   :  { %15925 = vmatprep.subr.bf16.mxu0 %v17232_v24 }
0x1733   :  { %15926 = vmatpush3.bf16.msra.mxu0 %v17232_v24 }
0x1734   :  { %15927 = vmatprep.subr.bf16.mxu0 %v17233_v5 }
0x1737   :  { %15928 = vmatpush3.bf16.msra.mxu0 %v17233_v5 }
0x173a   :  { %15930 = vmatmul.mubr.msk.bf16.vlgmr.msra.gmra.mrb[108].mxu0 %vm915_vm1, %v7994_v57 }
0x173b   :  { %16025 = vmatprep.mubr.msk.bf16.mxu0 %vm451_vm0, %v19165_v18  ;;  %v19590_v18 = vld [vmem:[%s20646_s5] sm:$0xff] }
0x180d   :  { %v15931_v10 = vpop.f32.mrb[108].mxu0 }
0x180e   :  { %v8059_v11 = vpop.f32.mrb[109].mxu0 }
0x180f   :  { %v15932_v13 = vpop.f32.mrb[110].mxu0 }
0x1810   :  { %v16669_v4 = vpack.c.bf16 %v15932_v13, %v15931_v10  ;;  %v8062_v63 = vpop.f32.mrb[111].mxu0 }
0x1811   :  { %v16665_v20 = vpack.c.bf16 %v8062_v63, %v8059_v11 }
0x1813   :  { %16666 = vmatprep.subr.bf16.mxu1 %v16665_v20 }
0x1814   :  { %16668 = vmatpush3.bf16.msra.mxu1 %v16665_v20 }
0x1815   :  { %16670 = vmatprep.subr.bf16.mxu1 %v16669_v4 }
0x1818   :  { %16672 = vmatpush3.bf16.msra.mxu1 %v16669_v4 }
0x181b   :  { %15942 = vmatmul.mubr.msk.f32.vlgmr.msra.gmra.mrb[140].mxu1 %vm451_vm0, %v19172_v17 }
0x181c   :  { %15944 = vmatprep.mubr.msk.f32.mxu1 %vm451_vm0, %v19179_v3 }
0x181f   :  { %15945 = vmatmul.mubr.msk.f32.gmra.mrb[142].mxu1 %vm451_vm0, %v19186_v21 }
0x1820   :  { %15955 = vmatprep.mubr.msk.f32.mxu1 %vm451_vm0, %v19590_v18 }
0x18ee   :  { %v15943_v22 = vpop.f32.mrb[140].mxu1 }
0x18ef   :  { %v8168_v19 = vsub.f32 %v8062_v63, %v15943_v22  ;;  %v8148_v49 = vpop.f32.mrb[141].mxu1 }
0x18f0   :  { %v8167_v55 = vsub.f32 %v8059_v11, %v8148_v49 }
0x18f1   :  { %v8172_v57 = vmul.f32 %v8168_v19, %v8168_v19 }
0x18f2   :  { %v8171_v31 = vmul.f32 %v8167_v55, %v8167_v55  ;;  %v15946_v30 = vpop.f32.mrb[142].mxu1 }
0x18f3   :  { %v8170_v41 = vsub.f32 %v15932_v13, %v15946_v30  ;;  %v8158_v42 = vpop.f32.mrb[143].mxu1  ;;  %v17239_v30 = vld [vmem:[%s20650_s9 + $0x248] sm:$0xff]  }
0x18f4   :  { %v8169_v23 = vsub.f32 %v15931_v10, %v8158_v42  ;;  %v16673_v53 = vpack.c.bf16 %v8172_v57, %v8171_v31  ;;  %v17241_v42 = vld [vmem:[%s20650_s9 + $0x258] sm:$0xff]  }
0x18f5   :  { %v8174_v61 = vmul.f32 %v8170_v41, %v8170_v41 }
0x18f6   :  { %v8173_v0 = vmul.f32 %v8169_v23, %v8169_v23  ;;  %16674 = vmatprep.subr.bf16.mxu1 %v16673_v53 }
0x18f7   :  { %16676 = vmatpush3.bf16.msra.mxu1 %v16673_v53  ;;  %v17243_v53 = vld [vmem:[%s20650_s9 + $0x288] sm:$0xff]  }
0x18f8   :  { %v16677_v43 = vpack.c.bf16 %v8174_v61, %v8173_v0  ;;  %v17245_v61 = vld [vmem:[%s20650_s9 + $0x298] sm:$0xff]   ;;  %v17246_v0 = vld [vmem:[%s20650_s9 + $0x2a0] sm:$0xff]  }
0x18fa   :  { %16678 = vmatprep.subr.bf16.mxu1 %v16677_v43 }
0x18fb   :  { %16680 = vmatpush3.bf16.msra.mxu1 %v16677_v43 }
0x18fe   :  { %15956 = vmatmul.mubr.msk.f32.vlgmr.msra.gmra.mrb[144].mxu1 %vm451_vm0, %v19172_v17 }
0x18ff   :  { %15958 = vmatprep.mubr.msk.f32.mxu1 %vm451_vm0, %v19179_v3  ;;  %v13503_v3 = vld [vmem:[%s20648_s7 + $0x2] ss:$0 sm:$0xff] }
0x1902   :  { %15959 = vmatmul.mubr.msk.f32.gmra.mrb[146].mxu1 %vm451_vm0, %v19186_v21 }
0x1903   :  { %15965 = vmatprep.mubr.msk.bf16.mxu1 %vm451_vm0, %v19201_v15  ;;  %v13504_v15 = vld [vmem:[%s20649_s8 + $0x2] ss:$0 sm:$0xff] }
0x19d1   :  { %v15957_v38 = vpop.f32.mrb[144].mxu1 }
0x19d2   :  { %v8247_v1 = vadd.f32 1e-05, %v15957_v38  ;;  %v8241_v33 = vpop.f32.mrb[145].mxu1 }
0x19d3   :  { %v8242_v44 = vadd.f32 1e-05, %v8241_v33 }
0x19d4   :  { %17382 = vrsqrt.f32 %v8247_v1 }
0x19d5   :  { %17384 = vrsqrt.f32 %v8242_v44  ;;  %v15960_v6 = vpop.f32.mrb[146].mxu1 }
0x19d6   :  { %v8257_v34 = vadd.f32 1e-05, %v15960_v6  ;;  %v8251_v39 = vpop.f32.mrb[147].mxu1 }
0x19d7   :  { %v8252_v9 = vadd.f32 1e-05, %v8251_v39 }
0x19d8   :  { %17386 = vrsqrt.f32 %v8257_v34 }
0x19d9   :  { %17388 = vrsqrt.f32 %v8252_v9 }
0x19de   :  { %v17383_v17 = vpop.eup %17382 }
0x19df   :  { %v17385_v21 = vpop.eup %17384  ;;  %v8265_v60 = vmul.f32 %v17383_v17, %v8168_v19 }
0x19e0   :  { %v8264_v25 = vmul.f32 %v17385_v21, %v8167_v55  ;;  %v17234_v55 = vld [vmem:[%s20650_s9 + $0x260] sm:$0xff]  }
0x19e1   :  { %v8275_v52 = vmul.f32 %v13503_v3, %v8265_v60 }
0x19e2   :  { %v17387_v51 = vpop.eup %17386  ;;  %v8274_v45 = vmul.f32 %v13503_v3, %v8264_v25 }
0x19e3   :  { %v17389_v50 = vpop.eup %17388  ;;  %v8285_v2 = vadd.f32 %v13504_v15, %v8275_v52  ;;  %v8267_v56 = vmul.f32 %v17387_v51, %v8170_v41  ;;  %v17240_v41 = vld [vmem:[%s20650_s9 + $0x250] sm:$0xff]  }
0x19e4   :  { %v8284_v54 = vadd.f32 %v13504_v15, %v8274_v45  ;;  %v8266_v24 = vmul.f32 %v17389_v50, %v8169_v23  ;;  %v17242_v23 = vld [vmem:[%s20650_s9 + $0x280] sm:$0xff]  }
0x19e5   :  { %v8289_v5 = vmax.f32 %v8285_v2, 0.0  ;;  %v8277_v10 = vmul.f32 %v13503_v3, %v8267_v56 }
0x19e6   :  { %v8288_v11 = vmax.f32 %v8284_v54, 0.0  ;;  %v8276_v13 = vmul.f32 %v13503_v3, %v8266_v24 }
0x19e7   :  { %v8287_v4 = vadd.f32 %v13504_v15, %v8277_v10 }
0x19e8   :  { %v19608_v63 = vpack.c.bf16 %v8289_v5, %v8288_v11  ;;  %v8286_v20 = vadd.f32 %v13504_v15, %v8276_v13 }
0x19e9   :  { %v8291_v22 = vmax.f32 %v8287_v4, 0.0 }
0x19ea   :  { %v8290_v19 = vmax.f32 %v8286_v20, 0.0  ;;  %15961 = vmatprep.subr.bf16.mxu1 %v19608_v63  ;;  %16021 = vmatprep.subr.bf16.mxu0 %v19608_v63 }
0x19eb   :  { %15962 = vmatpush3.bf16.msra.mxu1 %v19608_v63  ;;  %16022 = vmatpush3.bf16.msra.mxu0 %v19608_v63 }
0x19ec   :  { %v19614_v49 = vpack.c.bf16 %v8291_v22, %v8290_v19 }
0x19ee   :  { %15963 = vmatprep.subr.bf16.mxu1 %v19614_v49  ;;  %16023 = vmatprep.subr.bf16.mxu0 %v19614_v49 }
0x19ef   :  { %15964 = vmatpush3.bf16.msra.mxu1 %v19614_v49  ;;  %16024 = vmatpush3.bf16.msra.mxu0 %v19614_v49 }
0x19f0   :  { %15969 = vmatprep.subr.bf16.mxu1 %v19608_v63  ;;  %16041 = vmatprep.subr.bf16.mxu0 %v19608_v63 }
0x19f2   :  { %15966 = vmatmul.mubr.msk.bf16.vlgmr.msra.gmra.mrb[148].mxu1 %vm451_vm0, %v19244_v40  ;;  %16026 = vmatmul.mubr.msk.bf16.vlgmr.msra.gmra.mrb[116].mxu0 %vm451_vm0, %v19251_v26  ;;  %v17235_v40 = vld [vmem:[%s20650_s9 + $0x268] sm:$0xff]   ;;  %v17236_v26 = vld [vmem:[%s20650_s9 + $0x270] sm:$0xff]  }
0x19f3   :  { %15970 = vmatpush3.bf16.msra.mxu1 %v19608_v63  ;;  %16042 = vmatpush3.bf16.msra.mxu0 %v19608_v63 }
0x19f4   :  { %15971 = vmatprep.subr.bf16.mxu1 %v19614_v49  ;;  %16043 = vmatprep.subr.bf16.mxu0 %v19614_v49 }
0x19f5   :  { %15973 = vmatprep.mubr.msk.bf16.mxu1 %vm451_vm0, %v19265_v16  ;;  %16045 = vmatprep.mubr.msk.bf16.mxu0 %vm451_vm0, %v19272_v28  ;;  %v17237_v16 = vld [vmem:[%s20650_s9 + $0x278] sm:$0xff]   ;;  %v17238_v28 = vld [vmem:[%s20650_s9 + $0x240] sm:$0xff]  }
0x19f7   :  { %15972 = vmatpush3.bf16.msra.mxu1 %v19614_v49  ;;  %16044 = vmatpush3.bf16.msra.mxu0 %v19614_v49 }
0x19f8   :  { %16061 = vmatprep.subr.bf16.mxu0 %v19608_v63  ;;  %15977 = vmatprep.subr.bf16.mxu1 %v17234_v55 }
0x19fa   :  { %15974 = vmatmul.mubr.msk.bf16.vlgmr.msra.gmra.mrb[152].mxu1 %vm451_vm0, %v19282_v14  ;;  %16046 = vmatmul.mubr.msk.bf16.vlgmr.msra.gmra.mrb[120].mxu0 %vm451_vm0, %v19289_v48 }
0x19fb   :  { %16062 = vmatpush3.bf16.msra.mxu0 %v19608_v63  ;;  %16065 = vmatprep.mubr.msk.bf16.mxu0 %vm451_vm0, %v19297_v58 }
0x19fc   :  { %16063 = vmatprep.subr.bf16.mxu0 %v19614_v49  ;;  %15978 = vmatpush3.bf16.msra.mxu1 %v17234_v55 }
0x19fd   :  { %15979 = vmatprep.subr.bf16.mxu1 %v17235_v40 }
0x19ff   :  { %16064 = vmatpush3.bf16.msra.mxu0 %v19614_v49 }
0x1a00   :  { %16081 = vmatprep.subr.bf16.mxu0 %v19608_v63  ;;  %15980 = vmatpush3.bf16.msra.mxu1 %v17235_v40 }
0x1a01   :  { %15981 = vmatprep.subr.bf16.mxu1 %v17236_v26 }
0x1a02   :  { %16066 = vmatmul.mubr.msk.bf16.vlgmr.msra.gmra.mrb[124].mxu0 %vm451_vm0, %v19307_v29 }
0x1a03   :  { %16082 = vmatpush3.bf16.msra.mxu0 %v19608_v63  ;;  %16085 = vmatprep.mubr.msk.bf16.mxu0 %vm451_vm0, %v19315_v35 }
0x1a04   :  { %16083 = vmatprep.subr.bf16.mxu0 %v19614_v49  ;;  %15982 = vmatpush3.bf16.msra.mxu1 %v17236_v26 }
0x1a05   :  { %15983 = vmatprep.subr.bf16.mxu1 %v17237_v16 }
0x1a07   :  { %16084 = vmatpush3.bf16.msra.mxu0 %v19614_v49 }
0x1a08   :  { %16101 = vmatprep.subr.bf16.mxu0 %v19608_v63  ;;  %15984 = vmatpush3.bf16.msra.mxu1 %v17237_v16 }
0x1a09   :  { %15989 = vmatprep.subr.bf16.mxu1 %v17238_v28 }
0x1a0a   :  { %16086 = vmatmul.mubr.msk.bf16.vlgmr.msra.gmra.mrb[128].mxu0 %vm451_vm0, %v19325_v36 }
0x1a0b   :  { %16102 = vmatpush3.bf16.msra.mxu0 %v19608_v63  ;;  %16105 = vmatprep.mubr.msk.bf16.mxu0 %vm451_vm0, %v19333_v37 }
0x1a0c   :  { %16103 = vmatprep.subr.bf16.mxu0 %v19614_v49 }
0x1a0f   :  { %16104 = vmatpush3.bf16.msra.mxu0 %v19614_v49 }
0x1a10   :  { %16121 = vmatprep.subr.bf16.mxu0 %v19608_v63 }
0x1a12   :  { %16106 = vmatmul.mubr.msk.bf16.vlgmr.msra.gmra.mrb[132].mxu0 %vm451_vm0, %v19343_v7 }
0x1a13   :  { %16122 = vmatpush3.bf16.msra.mxu0 %v19608_v63  ;;  %16125 = vmatprep.mubr.msk.bf16.mxu0 %vm451_vm0, %v19351_v8 }
0x1a14   :  { %16123 = vmatprep.subr.bf16.mxu0 %v19614_v49 }
0x1a17   :  { %16124 = vmatpush3.bf16.msra.mxu0 %v19614_v49 }
0x1a1a   :  { %16126 = vmatmul.mubr.msk.bf16.vlgmr.msra.gmra.mrb[136].mxu0 %vm451_vm0, %v19360_v47 }
0x1a1b   :  { %16149 = vmatprep.mubr.msk.f32.mxu0 %vm451_vm0, %v19590_v18 }
0x1ac5   :  { %v15967_v14 = vpop.f32.mrb[148].mxu1 }
0x1ac6   :  { %v8401_v48 = vpop.f32.mrb[149].mxu1 }
0x1ac7   :  { %v15968_v58 = vpop.f32.mrb[150].mxu1 }
0x1ac8   :  { %v8417_v29 = vpack.c.bf16 %v15968_v58, %v15967_v14  ;;  %v8404_v35 = vpop.f32.mrb[151].mxu1 }
0x1ac9   :  { %v8416_v36 = vpack.c.bf16 %v8404_v35, %v8401_v48  ;;  %v17248_v35 = vld [vmem:[%s20650_s9 + $0x2b0] sm:$0xff]  }
0x1acd   :  { %v15975_v37 = vpop.f32.mrb[152].mxu1 }
0x1ace   :  { %v8452_v7 = vpop.f32.mrb[153].mxu1 }
0x1acf   :  { %v15976_v8 = vpop.f32.mrb[154].mxu1 }
0x1ad0   :  { %v8468_v47 = vpack.c.bf16 %v15976_v8, %v15975_v37  ;;  %v8455_v57 = vpop.f32.mrb[155].mxu1  ;;  %v17250_v37 = vld [vmem:[%s20650_s9 + $0x2c0] sm:$0xff]   ;;  %v17252_v8 = vld [vmem:[%s20650_s9 + $0x2d0] sm:$0xff]  }
0x1ad1   :  { %v8467_v31 = vpack.c.bf16 %v8455_v57, %v8452_v7  ;;  %v17251_v7 = vld [vmem:[%s20650_s9 + $0x2c8] sm:$0xff]   ;;  %v17254_v57 = vld [vmem:[%s20650_s9 + $0x2e0] sm:$0xff]  }
0x1ad3   :  { %15985 = vmatprep.mubr.msk.bf16.mxu1 %vm915_vm1, %v8467_v31  ;;  %v17255_v31 = vld [vmem:[%s20650_s9 + $0x2e8] sm:$0xff]  }
0x1ad4   :  { %15986 = vmatmul.mubr.msk.bf16.vlgmr.msra.gmra.mrb[156].mxu1 %vm915_vm1, %v8468_v47  ;;  %v17253_v47 = vld [vmem:[%s20650_s9 + $0x2d8] sm:$0xff]  }
0x1ad5   :  { %15990 = vmatpush3.bf16.msra.mxu1 %v17238_v28  ;;  %15997 = vmatprep.mubr.msk.bf16.mxu1 %vm915_vm1, %v8416_v36  ;;  %v17249_v36 = vld [vmem:[%s20650_s9 + $0x2b8] sm:$0xff]  }
0x1ad6   :  { %15991 = vmatprep.subr.bf16.mxu1 %v17239_v30 }
0x1ad9   :  { %15992 = vmatpush3.bf16.msra.mxu1 %v17239_v30  ;;  %v17256_v30 = vld [vmem:[%s20650_s9 + $0x2f0] sm:$0xff]  }
0x1ada   :  { %15993 = vmatprep.subr.bf16.mxu1 %v17240_v41 }
0x1add   :  { %15994 = vmatpush3.bf16.msra.mxu1 %v17240_v41  ;;  %v17257_v41 = vld [vmem:[%s20650_s9 + $0x2f8] sm:$0xff]  }
0x1ade   :  { %15995 = vmatprep.subr.bf16.mxu1 %v17241_v42 }
0x1ae1   :  { %15996 = vmatpush3.bf16.msra.mxu1 %v17241_v42  ;;  %v17258_v42 = vld [vmem:[%s20650_s9 + $0x300] sm:$0xff]  }
0x1ae2   :  { %16001 = vmatprep.subr.bf16.mxu1 %v19608_v63 }
0x1ae4   :  { %15998 = vmatmul.mubr.msk.bf16.vlgmr.msra.gmra.mrb[156].mxu1 %vm915_vm1, %v8417_v29  ;;  %v17247_v29 = vld [vmem:[%s20650_s9 + $0x2a8] sm:$0xff]  }
0x1ae5   :  { %16002 = vmatpush3.bf16.msra.mxu1 %v19608_v63  ;;  %16005 = vmatprep.mubr.msk.bf16.mxu1 %vm451_vm0, %v19396_v27  ;;  %v17244_v27 = vld [vmem:[%s20650_s9 + $0x290] sm:$0xff]  }
0x1ae6   :  { %16003 = vmatprep.subr.bf16.mxu1 %v19614_v49 }
0x1ae9   :  { %16004 = vmatpush3.bf16.msra.mxu1 %v19614_v49 }
0x1aea   :  { %16009 = vmatprep.subr.bf16.mxu1 %v17242_v23 }
0x1aec   :  { %16006 = vmatmul.mubr.msk.bf16.vlgmr.msra.gmra.mrb[160].mxu1 %vm451_vm0, %v19411_v32  ;;  %v16027_v32 = vpop.f32.mrb[116].mxu0 }
0x1aed   :  { %16010 = vmatpush3.bf16.msra.mxu1 %v17242_v23  ;;  %v8795_v43 = vpop.f32.mrb[117].mxu0  ;;  %v17259_v23 = vld [vmem:[%s20650_s9 + $0x308] sm:$0xff]  }
0x1aee   :  { %16011 = vmatprep.subr.bf16.mxu1 %v17243_v53  ;;  %v16028_v38 = vpop.f32.mrb[118].mxu0 }
0x1aef   :  { %v8811_v1 = vpack.c.bf16 %v16028_v38, %v16027_v32  ;;  %v8798_v33 = vpop.f32.mrb[119].mxu0  ;;  %v17264_v32 = vld [vmem:[%s20650_s9 + $0x330] sm:$0xff]   ;;  %v17266_v38 = vld [vmem:[%s20650_s9 + $0x340] sm:$0xff]  }
0x1af0   :  { %v8810_v44 = vpack.c.bf16 %v8798_v33, %v8795_v43  ;;  %v19725_v6 = vpop.f32.mrb[120].mxu0  ;;  %v17265_v43 = vld [vmem:[%s20650_s9 + $0x338] sm:$0xff]   ;;  %v17268_v33 = vld [vmem:[%s20650_s9 + $0x350] sm:$0xff]  }
0x1af1   :  { %16012 = vmatpush3.bf16.msra.mxu1 %v17243_v53  ;;  %v8929_v34 = vpop.f32.mrb[121].mxu0  ;;  %v17260_v53 = vld [vmem:[%s20650_s9 + $0x310] sm:$0xff]  }
0x1af2   :  { %16013 = vmatprep.subr.bf16.mxu1 %v17244_v27  ;;  %v19727_v39 = vpop.f32.mrb[122].mxu0 }
0x1af3   :  { %v8945_v9 = vpack.c.bf16 %v19727_v39, %v19725_v6  ;;  %v8932_v17 = vpop.f32.mrb[123].mxu0  ;;  %v19883_v6 = vld [vmem:[%s20645_s4 + $0x30] sm:$0xff]  }
0x1af4   :  { %v8944_v3 = vpack.c.bf16 %v8932_v17, %v8929_v34  ;;  %v19731_v21 = vpop.f32.mrb[124].mxu0 }
0x1af5   :  { %16014 = vmatpush3.bf16.msra.mxu1 %v17244_v27  ;;  %v9063_v60 = vpop.f32.mrb[125].mxu0  ;;  %v17261_v27 = vld [vmem:[%s20650_s9 + $0x318] sm:$0xff]  }
0x1af6   :  { %16015 = vmatprep.subr.bf16.mxu1 %v17245_v61  ;;  %v19733_v15 = vpop.f32.mrb[126].mxu0 }
0x1af7   :  { %v9079_v25 = vpack.c.bf16 %v19733_v15, %v19731_v21  ;;  %v9066_v52 = vpop.f32.mrb[127].mxu0  ;;  %v19897_v15 = vld [vmem:[%s20646_s5 + $0x10] sm:$0xff] }
0x1af8   :  { %v9078_v51 = vpack.c.bf16 %v9066_v52, %v9063_v60  ;;  %v19737_v45 = vpop.f32.mrb[128].mxu0  ;;  %v19890_v60 = vld [vmem:[%s20646_s5 + $0x8] sm:$0xff] }
0x1af9   :  { %16016 = vmatpush3.bf16.msra.mxu1 %v17245_v61  ;;  %v19739_v50 = vpop.f32.mrb[129].mxu0  ;;  %v17262_v61 = vld [vmem:[%s20650_s9 + $0x320] sm:$0xff]  }
0x1afa   :  { %16029 = vmatprep.subr.bf16.mxu1 %v17246_v0  ;;  %v19741_v2 = vpop.f32.mrb[130].mxu0 }
0x1afb   :  { %v9213_v56 = vpack.c.bf16 %v19741_v2, %v19737_v45  ;;  %v19745_v54 = vpop.f32.mrb[131].mxu0 }
0x1afc   :  { %v9212_v24 = vpack.c.bf16 %v19745_v54, %v19739_v50  ;;  %v19749_v5 = vpop.f32.mrb[132].mxu0 }
0x1afd   :  { %v19751_v10 = vpop.f32.mrb[133].mxu0 }
0x1afe   :  { %v19753_v11 = vpop.f32.mrb[134].mxu0 }
0x1aff   :  { %v9347_v13 = vpack.c.bf16 %v19753_v11, %v19749_v5  ;;  %v19757_v4 = vpop.f32.mrb[135].mxu0 }
0x1b00   :  { %v9346_v63 = vpack.c.bf16 %v19757_v4, %v19751_v10  ;;  %v19761_v20 = vpop.f32.mrb[136].mxu0 }
0x1b01   :  { %v19763_v22 = vpop.f32.mrb[137].mxu0 }
0x1b02   :  { %v19765_v19 = vpop.f32.mrb[138].mxu0 }
0x1b03   :  { %v9481_v49 = vpack.c.bf16 %v19765_v19, %v19761_v20  ;;  %v19769_v55 = vpop.f32.mrb[139].mxu0  ;;  %v19919_v20 = vld [vmem:[%s20645_s4] sm:$0xff]  }
0x1b04   :  { %v9480_v40 = vpack.c.bf16 %v19769_v55, %v19763_v22 }
0x1bbf   :  { %v16007_v26 = vpop.f32.mrb[160].mxu1 }
0x1bc0   :  { %v8661_v16 = vpop.f32.mrb[161].mxu1 }
0x1bc1   :  { %v16008_v28 = vpop.f32.mrb[162].mxu1 }
0x1bc2   :  { %v8677_v14 = vpack.c.bf16 %v16008_v28, %v16007_v26  ;;  %v8664_v48 = vpop.f32.mrb[163].mxu1 }
0x1bc3   :  { %v8676_v58 = vpack.c.bf16 %v8664_v48, %v8661_v16  ;;  %v13659_v48 = vld [vmem:[%s20651_s10 + $0x2] ss:$0 sm:$0xff] }
0x1bc5   :  { %16017 = vmatprep.mubr.msk.bf16.mxu1 %vm915_vm1, %v8676_v58 }
0x1bc6   :  { %16018 = vmatmul.mubr.msk.bf16.vlgmr.msra.gmra.mrb[156].mxu1 %vm915_vm1, %v8677_v14 }
0x1bc7   :  { %16030 = vmatpush3.bf16.msra.mxu1 %v17246_v0  ;;  %16037 = vmatprep.mubr.msk.bf16.mxu1 %vm915_vm1, %v8810_v44  ;;  %v17263_v0 = vld [vmem:[%s20650_s9 + $0x328] sm:$0xff]   ;;  %v17269_v44 = vld [vmem:[%s20650_s9 + $0x358] sm:$0xff]  }
0x1bc8   :  { %16031 = vmatprep.subr.bf16.mxu1 %v17247_v29 }
0x1bcb   :  { %16032 = vmatpush3.bf16.msra.mxu1 %v17247_v29 }
0x1bcc   :  { %16033 = vmatprep.subr.bf16.mxu1 %v17248_v35 }
0x1bcf   :  { %16034 = vmatpush3.bf16.msra.mxu1 %v17248_v35  ;;  %v13660_v35 = vld [vmem:[%s20652_s11 + $0x2] ss:$0 sm:$0xff] }
0x1bd0   :  { %16035 = vmatprep.subr.bf16.mxu1 %v17249_v36 }
0x1bd3   :  { %16036 = vmatpush3.bf16.msra.mxu1 %v17249_v36 }
0x1bd4   :  { %16049 = vmatprep.subr.bf16.mxu1 %v17250_v37 }
0x1bd6   :  { %16038 = vmatmul.mubr.msk.bf16.vlgmr.msra.gmra.mrb[156].mxu1 %vm915_vm1, %v8811_v1  ;;  %v17267_v1 = vld [vmem:[%s20650_s9 + $0x348] sm:$0xff]  }
0x1bd7   :  { %16050 = vmatpush3.bf16.msra.mxu1 %v17250_v37  ;;  %16057 = vmatprep.mubr.msk.bf16.mxu1 %vm915_vm1, %v8944_v3 }
0x1bd8   :  { %16051 = vmatprep.subr.bf16.mxu1 %v17251_v7 }
0x1bdb   :  { %16052 = vmatpush3.bf16.msra.mxu1 %v17251_v7 }
0x1bdc   :  { %16053 = vmatprep.subr.bf16.mxu1 %v17252_v8 }
0x1bdf   :  { %16054 = vmatpush3.bf16.msra.mxu1 %v17252_v8 }
0x1be0   :  { %16055 = vmatprep.subr.bf16.mxu1 %v17253_v47 }
0x1be3   :  { %16056 = vmatpush3.bf16.msra.mxu1 %v17253_v47 }
0x1be4   :  { %16069 = vmatprep.subr.bf16.mxu1 %v17254_v57 }
0x1be6   :  { %16058 = vmatmul.mubr.msk.bf16.vlgmr.msra.gmra.mrb[156].mxu1 %vm915_vm1, %v8945_v9 }
0x1be7   :  { %16070 = vmatpush3.bf16.msra.mxu1 %v17254_v57  ;;  %16077 = vmatprep.mubr.msk.bf16.mxu1 %vm915_vm1, %v9078_v51 }
0x1be8   :  { %16071 = vmatprep.subr.bf16.mxu1 %v17255_v31 }
0x1beb   :  { %16072 = vmatpush3.bf16.msra.mxu1 %v17255_v31 }
0x1bec   :  { %16073 = vmatprep.subr.bf16.mxu1 %v17256_v30 }
0x1bef   :  { %16074 = vmatpush3.bf16.msra.mxu1 %v17256_v30 }
0x1bf0   :  { %16075 = vmatprep.subr.bf16.mxu1 %v17257_v41 }
0x1bf3   :  { %16076 = vmatpush3.bf16.msra.mxu1 %v17257_v41 }
0x1bf4   :  { %16089 = vmatprep.subr.bf16.mxu1 %v17258_v42 }
0x1bf6   :  { %16078 = vmatmul.mubr.msk.bf16.vlgmr.msra.gmra.mrb[156].mxu1 %vm915_vm1, %v9079_v25  ;;  %v19904_v25 = vld [vmem:[%s20646_s5 + $0x18] sm:$0xff] }
0x1bf7   :  { %16090 = vmatpush3.bf16.msra.mxu1 %v17258_v42  ;;  %16097 = vmatprep.mubr.msk.bf16.mxu1 %vm915_vm1, %v9212_v24 }
0x1bf8   :  { %16091 = vmatprep.subr.bf16.mxu1 %v17259_v23 }
0x1bfb   :  { %16092 = vmatpush3.bf16.msra.mxu1 %v17259_v23 }
0x1bfc   :  { %16093 = vmatprep.subr.bf16.mxu1 %v17260_v53 }
0x1bff   :  { %16094 = vmatpush3.bf16.msra.mxu1 %v17260_v53 }
0x1c00   :  { %16095 = vmatprep.subr.bf16.mxu1 %v17261_v27 }
0x1c03   :  { %16096 = vmatpush3.bf16.msra.mxu1 %v17261_v27 }
0x1c04   :  { %16109 = vmatprep.subr.bf16.mxu1 %v17262_v61 }
0x1c06   :  { %16098 = vmatmul.mubr.msk.bf16.vlgmr.msra.gmra.mrb[156].mxu1 %vm915_vm1, %v9213_v56 }
0x1c07   :  { %16110 = vmatpush3.bf16.msra.mxu1 %v17262_v61  ;;  %16117 = vmatprep.mubr.msk.bf16.mxu1 %vm915_vm1, %v9346_v63 }
0x1c08   :  { %16111 = vmatprep.subr.bf16.mxu1 %v17263_v0 }
0x1c0b   :  { %16112 = vmatpush3.bf16.msra.mxu1 %v17263_v0 }
0x1c0c   :  { %16113 = vmatprep.subr.bf16.mxu1 %v17264_v32 }
0x1c0f   :  { %16114 = vmatpush3.bf16.msra.mxu1 %v17264_v32 }
0x1c10   :  { %16115 = vmatprep.subr.bf16.mxu1 %v17265_v43 }
0x1c13   :  { %16116 = vmatpush3.bf16.msra.mxu1 %v17265_v43 }
0x1c14   :  { %16129 = vmatprep.subr.bf16.mxu1 %v17266_v38 }
0x1c16   :  { %16118 = vmatmul.mubr.msk.bf16.vlgmr.msra.gmra.mrb[156].mxu1 %vm915_vm1, %v9347_v13 }
0x1c17   :  { %16130 = vmatpush3.bf16.msra.mxu1 %v17266_v38  ;;  %16137 = vmatprep.mubr.msk.bf16.mxu1 %vm915_vm1, %v9480_v40 }
0x1c18   :  { %16131 = vmatprep.subr.bf16.mxu1 %v17267_v1 }
0x1c1b   :  { %16132 = vmatpush3.bf16.msra.mxu1 %v17267_v1  ;;  %v19983_v1 = vld [vmem:[%s20645_s4 + $0x10] sm:$0xff]  }
0x1c1c   :  { %16133 = vmatprep.subr.bf16.mxu1 %v17268_v33 }
0x1c1f   :  { %16134 = vmatpush3.bf16.msra.mxu1 %v17268_v33  ;;  %v19990_v33 = vld [vmem:[%s20645_s4 + $0x40] sm:$0xff]  }
0x1c20   :  { %16135 = vmatprep.subr.bf16.mxu1 %v17269_v44 }
0x1c23   :  { %16136 = vmatpush3.bf16.msra.mxu1 %v17269_v44  ;;  %v20000_v44 = vld [vmem:[%s20645_s4 + $0x18] sm:$0xff]  }
0x1c26   :  { %16138 = vmatmul.mubr.msk.bf16.vlgmr.msra.gmra.mrb[156].mxu1 %vm915_vm1, %v9481_v49 }
0x1c27   :  { %16233 = vmatprep.mubr.msk.bf16.mxu1 %vm451_vm0, %v19883_v6 }
0x1cf9   :  { %v16139_v34 = vpop.f32.mrb[156].mxu1 }
0x1cfa   :  { %v9546_v39 = vpop.f32.mrb[157].mxu1 }
0x1cfb   :  { %v16140_v9 = vpop.f32.mrb[158].mxu1 }
0x1cfc   :  { %v16685_v17 = vpack.c.bf16 %v16140_v9, %v16139_v34  ;;  %v9549_v3 = vpop.f32.mrb[159].mxu1 }
0x1cfd   :  { %v16681_v21 = vpack.c.bf16 %v9549_v3, %v9546_v39 }
0x1cff   :  { %16682 = vmatprep.subr.bf16.mxu0 %v16681_v21 }
0x1d00   :  { %16684 = vmatpush3.bf16.msra.mxu0 %v16681_v21  ;;  %v20051_v21 = vld [vmem:[%s20645_s4 + $0x70] sm:$0xff]  }
0x1d01   :  { %16686 = vmatprep.subr.bf16.mxu0 %v16685_v17 }
0x1d04   :  { %16688 = vmatpush3.bf16.msra.mxu0 %v16685_v17  ;;  %v20033_v17 = vld [vmem:[%s20645_s4 + $0x60] sm:$0xff]  }
0x1d07   :  { %16150 = vmatmul.mubr.msk.f32.vlgmr.msra.gmra.mrb[140].mxu0 %vm451_vm0, %v19890_v60 }
0x1d08   :  { %16152 = vmatprep.mubr.msk.f32.mxu0 %vm451_vm0, %v19897_v15 }
0x1d0b   :  { %16153 = vmatmul.mubr.msk.f32.gmra.mrb[142].mxu0 %vm451_vm0, %v19904_v25 }
0x1d0c   :  { %16163 = vmatprep.mubr.msk.f32.mxu0 %vm451_vm0, %v19590_v18 }
0x1dda   :  { %v16151_v52 = vpop.f32.mrb[140].mxu0 }
0x1ddb   :  { %v9655_v51 = vsub.f32 %v9549_v3, %v16151_v52  ;;  %v9635_v45 = vpop.f32.mrb[141].mxu0  ;;  %v20043_v3 = vld [vmem:[%s20645_s4 + $0x68] sm:$0xff]   ;;  %v20061_v52 = vld [vmem:[%s20645_s4 + $0x78] sm:$0xff]  }
0x1ddc   :  { %v9654_v50 = vsub.f32 %v9546_v39, %v9635_v45  ;;  %v20015_v39 = vld [vmem:[%s20645_s4 + $0x50] sm:$0xff]   ;;  %v20078_v45 = vld [vmem:[%s20645_s4 + $0x88] sm:$0xff]  }
0x1ddd   :  { %v9659_v2 = vmul.f32 %v9655_v51, %v9655_v51 }
0x1dde   :  { %v9658_v56 = vmul.f32 %v9654_v50, %v9654_v50  ;;  %v16154_v54 = vpop.f32.mrb[142].mxu0 }
0x1ddf   :  { %v9657_v24 = vsub.f32 %v16140_v9, %v16154_v54  ;;  %v9645_v5 = vpop.f32.mrb[143].mxu0  ;;  %v20025_v9 = vld [vmem:[%s20645_s4 + $0x58] sm:$0xff]  }
0x1de0   :  { %v9656_v10 = vsub.f32 %v16139_v34, %v9645_v5  ;;  %v16689_v11 = vpack.c.bf16 %v9659_v2, %v9658_v56  ;;  %v20007_v34 = vld [vmem:[%s20645_s4 + $0x48] sm:$0xff]   ;;  %v17272_v2 = vld [vmem:[%s20647_s6 + $0x390] sm:$0xff]   ;;  %v17273_v56 = vld [vmem:[%s20647_s6 + $0x398] sm:$0xff]  }
0x1de1   :  { %v9661_v13 = vmul.f32 %v9657_v24, %v9657_v24 }
0x1de2   :  { %v9660_v4 = vmul.f32 %v9656_v10, %v9656_v10  ;;  %16690 = vmatprep.subr.bf16.mxu0 %v16689_v11 }
0x1de3   :  { %16692 = vmatpush3.bf16.msra.mxu0 %v16689_v11 }
0x1de4   :  { %v16693_v63 = vpack.c.bf16 %v9661_v13, %v9660_v4 }
0x1de6   :  { %16694 = vmatprep.subr.bf16.mxu0 %v16693_v63 }
0x1de7   :  { %16696 = vmatpush3.bf16.msra.mxu0 %v16693_v63 }
0x1dea   :  { %16164 = vmatmul.mubr.msk.f32.vlgmr.msra.gmra.mrb[144].mxu0 %vm451_vm0, %v19890_v60 }
0x1deb   :  { %16166 = vmatprep.mubr.msk.f32.mxu0 %vm451_vm0, %v19897_v15 }
0x1dee   :  { %16167 = vmatmul.mubr.msk.f32.gmra.mrb[146].mxu0 %vm451_vm0, %v19904_v25 }
0x1def   :  { %16173 = vmatprep.mubr.msk.bf16.mxu0 %vm451_vm0, %v19919_v20 }
0x1ebd   :  { %v16165_v22 = vpop.f32.mrb[144].mxu0 }
0x1ebe   :  { %v9734_v19 = vadd.f32 1e-05, %v16165_v22  ;;  %v9728_v49 = vpop.f32.mrb[145].mxu0 }
0x1ebf   :  { %v9729_v55 = vadd.f32 1e-05, %v9728_v49 }
0x1ec0   :  { %17390 = vrsqrt.f32 %v9734_v19 }
0x1ec1   :  { %17392 = vrsqrt.f32 %v9729_v55  ;;  %v16168_v40 = vpop.f32.mrb[146].mxu0 }
0x1ec2   :  { %v9744_v26 = vadd.f32 1e-05, %v16168_v40  ;;  %v9738_v16 = vpop.f32.mrb[147].mxu0  ;;  %v17275_v40 = vld [vmem:[%s20647_s6 + $0x368] sm:$0xff]  }
0x1ec3   :  { %v9739_v28 = vadd.f32 1e-05, %v9738_v16  ;;  %v17277_v16 = vld [vmem:[%s20647_s6 + $0x378] sm:$0xff]  }
0x1ec4   :  { %17394 = vrsqrt.f32 %v9744_v26  ;;  %v17276_v26 = vld [vmem:[%s20647_s6 + $0x370] sm:$0xff]  }
0x1ec5   :  { %17396 = vrsqrt.f32 %v9739_v28  ;;  %v20114_v28 = vld [vmem:[%s20645_s4 + $0x20] sm:$0xff]  }
0x1eca   :  { %v17391_v14 = vpop.eup %17390 }
0x1ecb   :  { %v17393_v58 = vpop.eup %17392  ;;  %v9752_v29 = vmul.f32 %v17391_v14, %v9655_v51  ;;  %v20069_v51 = vld [vmem:[%s20645_s4 + $0x80] sm:$0xff]  }
0x1ecc   :  { %v9751_v36 = vmul.f32 %v17393_v58, %v9654_v50  ;;  %v17271_v50 = vld [vmem:[%s20647_s6 + $0x388] sm:$0xff]   ;;  %v17278_v14 = vld [vmem:[%s20647_s6 + $0x3a0] sm:$0xff]  }
0x1ecd   :  { %v9762_v37 = vmul.f32 %v13659_v48, %v9752_v29  ;;  %v20129_v58 = vld [vmem:[%s20645_s4 + $0x28] sm:$0xff]   ;;  %v17280_v29 = vld [vmem:[%s20647_s6 + $0x3b0] sm:$0xff]  }
0x1ece   :  { %v17395_v7 = vpop.eup %17394  ;;  %v9761_v8 = vmul.f32 %v13659_v48, %v9751_v36  ;;  %v17282_v36 = vld [vmem:[%s20647_s6 + $0x3c0] sm:$0xff]  }
0x1ecf   :  { %v17397_v47 = vpop.eup %17396  ;;  %v9772_v57 = vadd.f32 %v13660_v35, %v9762_v37  ;;  %v9754_v31 = vmul.f32 %v17395_v7, %v9657_v24 }
0x1ed0   :  { %v9771_v30 = vadd.f32 %v13660_v35, %v9761_v8  ;;  %v9753_v41 = vmul.f32 %v17397_v47, %v9656_v10 }
0x1ed1   :  { %v19930_v42 = vadd.f32 %v9772_v57, %v19212_v59  ;;  %v9764_v23 = vmul.f32 %v13659_v48, %v9754_v31 }
0x1ed2   :  { %v19933_v53 = vadd.f32 %v9771_v30, %v19215_v46  ;;  %v9763_v27 = vmul.f32 %v13659_v48, %v9753_v41  ;;  %v19962_v46 = vld [vmem:[%s20645_s4 + $0x8] sm:$0xff]  }
0x1ed3   :  { %v9774_v61 = vadd.f32 %v13660_v35, %v9764_v23  ;;  %v17279_v48 = vld [vmem:[%s20647_s6 + $0x3a8] sm:$0xff]  }
0x1ed4   :  { %v19937_v0 = vpack.c.bf16 %v19930_v42, %v19933_v53  ;;  %v9773_v32 = vadd.f32 %v13660_v35, %v9763_v27  ;;  %v17281_v35 = vld [vmem:[%s20647_s6 + $0x3b8] sm:$0xff]  }
0x1ed5   :  { %v19940_v43 = vadd.f32 %v9774_v61, %v19222_v62  ;;  %v19969_v62 = vld [vmem:[%s20645_s4 + $0x38] sm:$0xff]  }
0x1ed6   :  { %v19943_v38 = vadd.f32 %v9773_v32, %v19225_v12  ;;  %16169 = vmatprep.subr.bf16.mxu0 %v19937_v0  ;;  %16229 = vmatprep.subr.bf16.mxu1 %v19937_v0  ;;  %v17270_v12 = vld [vmem:[%s20647_s6 + $0x380] sm:$0xff]  }
0x1ed7   :  { %16170 = vmatpush3.bf16.msra.mxu0 %v19937_v0  ;;  %16230 = vmatpush3.bf16.msra.mxu1 %v19937_v0 }
0x1ed8   :  { %v19951_v59 = vpack.c.bf16 %v19940_v43, %v19943_v38 }
0x1eda   :  { %16171 = vmatprep.subr.bf16.mxu0 %v19951_v59  ;;  %16231 = vmatprep.subr.bf16.mxu1 %v19951_v59 }
0x1edb   :  { %16172 = vmatpush3.bf16.msra.mxu0 %v19951_v59  ;;  %16232 = vmatpush3.bf16.msra.mxu1 %v19951_v59 }
0x1edc   :  { %16177 = vmatprep.subr.bf16.mxu0 %v19937_v0  ;;  %16249 = vmatprep.subr.bf16.mxu1 %v19937_v0 }
0x1ede   :  { %16174 = vmatmul.mubr.msk.bf16.vlgmr.msra.gmra.mrb[148].mxu0 %vm451_vm0, %v19962_v46  ;;  %16234 = vmatmul.mubr.msk.bf16.vlgmr.msra.gmra.mrb[164].mxu1 %vm451_vm0, %v19969_v62 }
0x1edf   :  { %16178 = vmatpush3.bf16.msra.mxu0 %v19937_v0  ;;  %16250 = vmatpush3.bf16.msra.mxu1 %v19937_v0 }
0x1ee0   :  { %16179 = vmatprep.subr.bf16.mxu0 %v19951_v59  ;;  %16251 = vmatprep.subr.bf16.mxu1 %v19951_v59 }
0x1ee1   :  { %16181 = vmatprep.mubr.msk.bf16.mxu0 %vm451_vm0, %v19983_v1  ;;  %16253 = vmatprep.mubr.msk.bf16.mxu1 %vm451_vm0, %v19990_v33 }
0x1ee3   :  { %16180 = vmatpush3.bf16.msra.mxu0 %v19951_v59  ;;  %16252 = vmatpush3.bf16.msra.mxu1 %v19951_v59 }
0x1ee4   :  { %16269 = vmatprep.subr.bf16.mxu1 %v19937_v0  ;;  %16185 = vmatprep.subr.bf16.mxu0 %v17270_v12 }
0x1ee6   :  { %16182 = vmatmul.mubr.msk.bf16.vlgmr.msra.gmra.mrb[152].mxu0 %vm451_vm0, %v20000_v44  ;;  %16254 = vmatmul.mubr.msk.bf16.vlgmr.msra.gmra.mrb[168].mxu1 %vm451_vm0, %v20007_v34 }
0x1ee7   :  { %16270 = vmatpush3.bf16.msra.mxu1 %v19937_v0  ;;  %16273 = vmatprep.mubr.msk.bf16.mxu1 %vm451_vm0, %v20015_v39 }
0x1ee8   :  { %16271 = vmatprep.subr.bf16.mxu1 %v19951_v59  ;;  %16186 = vmatpush3.bf16.msra.mxu0 %v17270_v12 }
0x1ee9   :  { %16187 = vmatprep.subr.bf16.mxu0 %v17271_v50 }
0x1eeb   :  { %16272 = vmatpush3.bf16.msra.mxu1 %v19951_v59 }
0x1eec   :  { %16289 = vmatprep.subr.bf16.mxu1 %v19937_v0  ;;  %16188 = vmatpush3.bf16.msra.mxu0 %v17271_v50 }
0x1eed   :  { %16189 = vmatprep.subr.bf16.mxu0 %v17272_v2 }
0x1eee   :  { %16274 = vmatmul.mubr.msk.bf16.vlgmr.msra.gmra.mrb[172].mxu1 %vm451_vm0, %v20025_v9 }
0x1eef   :  { %16290 = vmatpush3.bf16.msra.mxu1 %v19937_v0  ;;  %16293 = vmatprep.mubr.msk.bf16.mxu1 %vm451_vm0, %v20033_v17 }
0x1ef0   :  { %16291 = vmatprep.subr.bf16.mxu1 %v19951_v59  ;;  %16190 = vmatpush3.bf16.msra.mxu0 %v17272_v2 }
0x1ef1   :  { %16191 = vmatprep.subr.bf16.mxu0 %v17273_v56 }
0x1ef3   :  { %16292 = vmatpush3.bf16.msra.mxu1 %v19951_v59 }
0x1ef4   :  { %16309 = vmatprep.subr.bf16.mxu1 %v19937_v0  ;;  %16192 = vmatpush3.bf16.msra.mxu0 %v17273_v56 }
0x1ef6   :  { %16294 = vmatmul.mubr.msk.bf16.vlgmr.msra.gmra.mrb[176].mxu1 %vm451_vm0, %v20043_v3 }
0x1ef7   :  { %16310 = vmatpush3.bf16.msra.mxu1 %v19937_v0  ;;  %16313 = vmatprep.mubr.msk.bf16.mxu1 %vm451_vm0, %v20051_v21 }
0x1ef8   :  { %16311 = vmatprep.subr.bf16.mxu1 %v19951_v59 }
0x1efb   :  { %16312 = vmatpush3.bf16.msra.mxu1 %v19951_v59 }
0x1efc   :  { %16329 = vmatprep.subr.bf16.mxu1 %v19937_v0 }
0x1efe   :  { %16314 = vmatmul.mubr.msk.bf16.vlgmr.msra.gmra.mrb[180].mxu1 %vm451_vm0, %v20061_v52 }
0x1eff   :  { %16330 = vmatpush3.bf16.msra.mxu1 %v19937_v0  ;;  %16333 = vmatprep.mubr.msk.bf16.mxu1 %vm451_vm0, %v20069_v51 }
0x1f00   :  { %16331 = vmatprep.subr.bf16.mxu1 %v19951_v59 }
0x1f03   :  { %16332 = vmatpush3.bf16.msra.mxu1 %v19951_v59 }
0x1f06   :  { %16334 = vmatmul.mubr.msk.bf16.vlgmr.msra.gmra.mrb[184].mxu1 %vm451_vm0, %v20078_v45 }
0x1f07   :  { %16357 = vmatprep.mubr.msk.f32.mxu1 %vm451_vm0, %v19590_v18  ;;  %v17274_v18 = vld [vmem:[%s20647_s6 + $0x360] sm:$0xff]  }
0x1f08   :  { %16197 = vmatprep.subr.bf16.mxu0 %v17274_v18 }
0x1fb1   :  { %v16175_v54 = vpop.f32.mrb[148].mxu0  ;;  %v16235_v37 = vpop.f32.mrb[164].mxu1 }
0x1fb2   :  { %v9888_v24 = vpop.f32.mrb[149].mxu0  ;;  %v10282_v7 = vpop.f32.mrb[165].mxu1 }
0x1fb3   :  { %v16176_v5 = vpop.f32.mrb[150].mxu0  ;;  %v16236_v8 = vpop.f32.mrb[166].mxu1 }
0x1fb4   :  { %v9904_v10 = vpack.c.bf16 %v16176_v5, %v16175_v54  ;;  %v9891_v11 = vpop.f32.mrb[151].mxu0  ;;  %v10298_v47 = vpack.c.bf16 %v16236_v8, %v16235_v37  ;;  %v10285_v57 = vpop.f32.mrb[167].mxu1 }
0x1fb5   :  { %v9903_v13 = vpack.c.bf16 %v9891_v11, %v9888_v24  ;;  %v10297_v31 = vpack.c.bf16 %v10285_v57, %v10282_v7 }
0x1fb9   :  { %v16183_v4 = vpop.f32.mrb[152].mxu0  ;;  %v20142_v30 = vpop.f32.mrb[168].mxu1 }
0x1fba   :  { %v9939_v63 = vpop.f32.mrb[153].mxu0  ;;  %v10416_v41 = vpop.f32.mrb[169].mxu1 }
0x1fbb   :  { %v16184_v22 = vpop.f32.mrb[154].mxu0  ;;  %v20144_v23 = vpop.f32.mrb[170].mxu1 }
0x1fbc   :  { %v9955_v19 = vpack.c.bf16 %v16184_v22, %v16183_v4  ;;  %v9942_v49 = vpop.f32.mrb[155].mxu0  ;;  %v10432_v27 = vpack.c.bf16 %v20144_v23, %v20142_v30  ;;  %v10419_v61 = vpop.f32.mrb[171].mxu1  ;;  %v17294_v30 = vld [vmem:[%s20647_s6 + $0x420] sm:$0xff]   ;;  %v17295_v23 = vld [vmem:[%s20647_s6 + $0x428] sm:$0xff]  }
0x1fbd   :  { %v9954_v55 = vpack.c.bf16 %v9942_v49, %v9939_v63 }
0x1fbf   :  { %16193 = vmatprep.mubr.msk.bf16.mxu0 %vm915_vm1, %v9954_v55 }
0x1fc0   :  { %16194 = vmatmul.mubr.msk.bf16.vlgmr.msra.gmra.mrb[156].mxu0 %vm915_vm1, %v9955_v19 }
0x1fc1   :  { %16198 = vmatpush3.bf16.msra.mxu0 %v17274_v18  ;;  %16205 = vmatprep.mubr.msk.bf16.mxu0 %vm915_vm1, %v9903_v13  ;;  %v20148_v32 = vpop.f32.mrb[172].mxu1 }
0x1fc2   :  { %16199 = vmatprep.subr.bf16.mxu0 %v17275_v40 }
0x1fc5   :  { %16200 = vmatpush3.bf16.msra.mxu0 %v17275_v40 }
0x1fc6   :  { %16201 = vmatprep.subr.bf16.mxu0 %v17276_v26 }
0x1fc9   :  { %16202 = vmatpush3.bf16.msra.mxu0 %v17276_v26 }
0x1fca   :  { %16203 = vmatprep.subr.bf16.mxu0 %v17277_v16 }
0x1fcd   :  { %16204 = vmatpush3.bf16.msra.mxu0 %v17277_v16 }
0x1fce   :  { %16209 = vmatprep.subr.bf16.mxu0 %v19937_v0 }
0x1fd0   :  { %16206 = vmatmul.mubr.msk.bf16.vlgmr.msra.gmra.mrb[156].mxu0 %vm915_vm1, %v9904_v10 }
0x1fd1   :  { %16210 = vmatpush3.bf16.msra.mxu0 %v19937_v0  ;;  %16213 = vmatprep.mubr.msk.bf16.mxu0 %vm451_vm0, %v20114_v28  ;;  %v10431_v0 = vpack.c.bf16 %v10419_v61, %v10416_v41  ;;  %v17283_v41 = vld [vmem:[%s20647_s6 + $0x3c8] sm:$0xff]   ;;  %v17284_v61 = vld [vmem:[%s20647_s6 + $0x3d0] sm:$0xff]  }
0x1fd2   :  { %16211 = vmatprep.subr.bf16.mxu0 %v19951_v59 }
0x1fd5   :  { %16212 = vmatpush3.bf16.msra.mxu0 %v19951_v59  ;;  %v10550_v59 = vpop.f32.mrb[173].mxu1 }
0x1fd6   :  { %16217 = vmatprep.subr.bf16.mxu0 %v17278_v14  ;;  %v20150_v12 = vpop.f32.mrb[174].mxu1 }
0x1fd7   :  { %v10566_v50 = vpack.c.bf16 %v20150_v12, %v20148_v32  ;;  %v10553_v2 = vpop.f32.mrb[175].mxu1  ;;  %v17298_v32 = vld [vmem:[%s20647_s6 + $0x440] sm:$0xff]   ;;  %v17299_v12 = vld [vmem:[%s20647_s6 + $0x448] sm:$0xff]  }
0x1fd8   :  { %16214 = vmatmul.mubr.msk.bf16.vlgmr.msra.gmra.mrb[160].mxu0 %vm451_vm0, %v20129_v58  ;;  %v10565_v56 = vpack.c.bf16 %v10553_v2, %v10550_v59  ;;  %v20154_v18 = vpop.f32.mrb[176].mxu1  ;;  %v17285_v59 = vld [vmem:[%s20647_s6 + $0x3d8] sm:$0xff]   ;;  %v17286_v2 = vld [vmem:[%s20647_s6 + $0x3e0] sm:$0xff]  }
0x1fd9   :  { %16218 = vmatpush3.bf16.msra.mxu0 %v17278_v14  ;;  %v20156_v54 = vpop.f32.mrb[177].mxu1 }
0x1fda   :  { %16219 = vmatprep.subr.bf16.mxu0 %v17279_v48  ;;  %v20158_v24 = vpop.f32.mrb[178].mxu1 }
0x1fdb   :  { %v10700_v5 = vpack.c.bf16 %v20158_v24, %v20154_v18  ;;  %v20162_v10 = vpop.f32.mrb[179].mxu1  ;;  %v17302_v18 = vld [vmem:[%s20647_s6 + $0x460] sm:$0xff]   ;;  %v17303_v24 = vld [vmem:[%s20647_s6 + $0x468] sm:$0xff]  }
0x1fdc   :  { %v10699_v11 = vpack.c.bf16 %v20162_v10, %v20156_v54  ;;  %v20166_v13 = vpop.f32.mrb[180].mxu1  ;;  %v17301_v54 = vld [vmem:[%s20647_s6 + $0x458] sm:$0xff]  }
0x1fdd   :  { %16220 = vmatpush3.bf16.msra.mxu0 %v17279_v48  ;;  %v20168_v4 = vpop.f32.mrb[181].mxu1  ;;  %v17305_v10 = vld [vmem:[%s20647_s6 + $0x478] sm:$0xff]  }
0x1fde   :  { %16221 = vmatprep.subr.bf16.mxu0 %v17280_v29  ;;  %v20170_v63 = vpop.f32.mrb[182].mxu1 }
0x1fdf   :  { %v10834_v22 = vpack.c.bf16 %v20170_v63, %v20166_v13  ;;  %v20174_v19 = vpop.f32.mrb[183].mxu1 }
0x1fe0   :  { %v10833_v49 = vpack.c.bf16 %v20174_v19, %v20168_v4  ;;  %v20178_v55 = vpop.f32.mrb[184].mxu1 }
0x1fe1   :  { %16222 = vmatpush3.bf16.msra.mxu0 %v17280_v29  ;;  %v20180_v40 = vpop.f32.mrb[185].mxu1 }
0x1fe2   :  { %16223 = vmatprep.subr.bf16.mxu0 %v17281_v35  ;;  %v20182_v26 = vpop.f32.mrb[186].mxu1 }
0x1fe3   :  { %v10968_v16 = vpack.c.bf16 %v20182_v26, %v20178_v55  ;;  %v20186_v14 = vpop.f32.mrb[187].mxu1 }
0x1fe4   :  { %v10967_v48 = vpack.c.bf16 %v20186_v14, %v20180_v40 }
0x1fe5   :  { %16224 = vmatpush3.bf16.msra.mxu0 %v17281_v35 }
0x1fe6   :  { %16237 = vmatprep.subr.bf16.mxu0 %v17282_v36 }
0x20ab   :  { %v16215_v29 = vpop.f32.mrb[160].mxu0 }
0x20ac   :  { %v10148_v35 = vpop.f32.mrb[161].mxu0 }
0x20ad   :  { %v16216_v37 = vpop.f32.mrb[162].mxu0 }
0x20ae   :  { %v10164_v7 = vpack.c.bf16 %v16216_v37, %v16215_v29  ;;  %v10151_v8 = vpop.f32.mrb[163].mxu0  ;;  %v17289_v29 = vld [vmem:[%s20647_s6 + $0x3f8] sm:$0xff]  }
0x20af   :  { %v10163_v57 = vpack.c.bf16 %v10151_v8, %v10148_v35  ;;  %v17292_v35 = vld [vmem:[%s20647_s6 + $0x410] sm:$0xff]   ;;  %v17293_v37 = vld [vmem:[%s20647_s6 + $0x418] sm:$0xff]  }
0x20b1   :  { %16225 = vmatprep.mubr.msk.bf16.mxu0 %vm915_vm1, %v10163_v57 }
0x20b2   :  { %16226 = vmatmul.mubr.msk.bf16.vlgmr.msra.gmra.mrb[156].mxu0 %vm915_vm1, %v10164_v7 }
0x20b3   :  { %16238 = vmatpush3.bf16.msra.mxu0 %v17282_v36  ;;  %16245 = vmatprep.mubr.msk.bf16.mxu0 %vm915_vm1, %v10297_v31  ;;  %v17287_v36 = vld [vmem:[%s20647_s6 + $0x3e8] sm:$0xff]   ;;  %v17288_v31 = vld [vmem:[%s20647_s6 + $0x3f0] sm:$0xff]  }
0x20b4   :  { %16239 = vmatprep.subr.bf16.mxu0 %v17283_v41 }
0x20b7   :  { %16240 = vmatpush3.bf16.msra.mxu0 %v17283_v41 }
0x20b8   :  { %16241 = vmatprep.subr.bf16.mxu0 %v17284_v61 }
0x20bb   :  { %16242 = vmatpush3.bf16.msra.mxu0 %v17284_v61 }
0x20bc   :  { %16243 = vmatprep.subr.bf16.mxu0 %v17285_v59 }
0x20bf   :  { %16244 = vmatpush3.bf16.msra.mxu0 %v17285_v59 }
0x20c0   :  { %16257 = vmatprep.subr.bf16.mxu0 %v17286_v2 }
0x20c2   :  { %16246 = vmatmul.mubr.msk.bf16.vlgmr.msra.gmra.mrb[156].mxu0 %vm915_vm1, %v10298_v47  ;;  %v17290_v47 = vld [vmem:[%s20647_s6 + $0x400] sm:$0xff]  }
0x20c3   :  { %16258 = vmatpush3.bf16.msra.mxu0 %v17286_v2  ;;  %16265 = vmatprep.mubr.msk.bf16.mxu0 %vm915_vm1, %v10431_v0  ;;  %v17291_v0 = vld [vmem:[%s20647_s6 + $0x408] sm:$0xff]  }
0x20c4   :  { %16259 = vmatprep.subr.bf16.mxu0 %v17287_v36 }
0x20c7   :  { %16260 = vmatpush3.bf16.msra.mxu0 %v17287_v36 }
0x20c8   :  { %16261 = vmatprep.subr.bf16.mxu0 %v17288_v31 }
0x20cb   :  { %16262 = vmatpush3.bf16.msra.mxu0 %v17288_v31 }
0x20cc   :  { %16263 = vmatprep.subr.bf16.mxu0 %v17289_v29 }
0x20cf   :  { %16264 = vmatpush3.bf16.msra.mxu0 %v17289_v29 }
0x20d0   :  { %16277 = vmatprep.subr.bf16.mxu0 %v17290_v47 }
0x20d2   :  { %16266 = vmatmul.mubr.msk.bf16.vlgmr.msra.gmra.mrb[156].mxu0 %vm915_vm1, %v10432_v27  ;;  %v17296_v27 = vld [vmem:[%s20647_s6 + $0x430] sm:$0xff]  }
0x20d3   :  { %16278 = vmatpush3.bf16.msra.mxu0 %v17290_v47  ;;  %16285 = vmatprep.mubr.msk.bf16.mxu0 %vm915_vm1, %v10565_v56  ;;  %v17297_v56 = vld [vmem:[%s20647_s6 + $0x438] sm:$0xff]  }
0x20d4   :  { %16279 = vmatprep.subr.bf16.mxu0 %v17291_v0 }
0x20d7   :  { %16280 = vmatpush3.bf16.msra.mxu0 %v17291_v0 }
0x20d8   :  { %16281 = vmatprep.subr.bf16.mxu0 %v17292_v35 }
0x20db   :  { %16282 = vmatpush3.bf16.msra.mxu0 %v17292_v35 }
0x20dc   :  { %16283 = vmatprep.subr.bf16.mxu0 %v17293_v37 }
0x20df   :  { %16284 = vmatpush3.bf16.msra.mxu0 %v17293_v37 }
0x20e0   :  { %16297 = vmatprep.subr.bf16.mxu0 %v17294_v30 }
0x20e2   :  { %16286 = vmatmul.mubr.msk.bf16.vlgmr.msra.gmra.mrb[156].mxu0 %vm915_vm1, %v10566_v50  ;;  %v17300_v50 = vld [vmem:[%s20647_s6 + $0x450] sm:$0xff]  }
0x20e3   :  { %16298 = vmatpush3.bf16.msra.mxu0 %v17294_v30  ;;  %16305 = vmatprep.mubr.msk.bf16.mxu0 %vm915_vm1, %v10699_v11 }
0x20e4   :  { %16299 = vmatprep.subr.bf16.mxu0 %v17295_v23 }
0x20e7   :  { %16300 = vmatpush3.bf16.msra.mxu0 %v17295_v23 }
0x20e8   :  { %16301 = vmatprep.subr.bf16.mxu0 %v17296_v27 }
0x20eb   :  { %16302 = vmatpush3.bf16.msra.mxu0 %v17296_v27 }
0x20ec   :  { %16303 = vmatprep.subr.bf16.mxu0 %v17297_v56 }
0x20ef   :  { %16304 = vmatpush3.bf16.msra.mxu0 %v17297_v56 }
0x20f0   :  { %16317 = vmatprep.subr.bf16.mxu0 %v17298_v32 }
0x20f2   :  { %16306 = vmatmul.mubr.msk.bf16.vlgmr.msra.gmra.mrb[156].mxu0 %vm915_vm1, %v10700_v5  ;;  %v17304_v5 = vld [vmem:[%s20647_s6 + $0x470] sm:$0xff]  }
0x20f3   :  { %16318 = vmatpush3.bf16.msra.mxu0 %v17298_v32  ;;  %16325 = vmatprep.mubr.msk.bf16.mxu0 %vm915_vm1, %v10833_v49 }
0x20f4   :  { %16319 = vmatprep.subr.bf16.mxu0 %v17299_v12 }
0x20f7   :  { %16320 = vmatpush3.bf16.msra.mxu0 %v17299_v12 }
0x20f8   :  { %16321 = vmatprep.subr.bf16.mxu0 %v17300_v50 }
0x20fb   :  { %16322 = vmatpush3.bf16.msra.mxu0 %v17300_v50 }
0x20fc   :  { %16323 = vmatprep.subr.bf16.mxu0 %v17301_v54 }
0x20ff   :  { %16324 = vmatpush3.bf16.msra.mxu0 %v17301_v54 }
0x2100   :  { %16337 = vmatprep.subr.bf16.mxu0 %v17302_v18 }
0x2102   :  { %16326 = vmatmul.mubr.msk.bf16.vlgmr.msra.gmra.mrb[156].mxu0 %vm915_vm1, %v10834_v22 }
0x2103   :  { %16338 = vmatpush3.bf16.msra.mxu0 %v17302_v18  ;;  %16345 = vmatprep.mubr.msk.bf16.mxu0 %vm915_vm1, %v10967_v48 }
0x2104   :  { %16339 = vmatprep.subr.bf16.mxu0 %v17303_v24 }
0x2107   :  { %16340 = vmatpush3.bf16.msra.mxu0 %v17303_v24 }
0x2108   :  { %16341 = vmatprep.subr.bf16.mxu0 %v17304_v5 }
0x210b   :  { %16342 = vmatpush3.bf16.msra.mxu0 %v17304_v5 }
0x210c   :  { %16343 = vmatprep.subr.bf16.mxu0 %v17305_v10 }
0x210f   :  { %16344 = vmatpush3.bf16.msra.mxu0 %v17305_v10 }
0x2112   :  { %16346 = vmatmul.mubr.msk.bf16.vlgmr.msra.gmra.mrb[156].mxu0 %vm915_vm1, %v10968_v16 }
0x2113   :  { %16441 = vmatprep.mubr.msk.bf16.mxu0 %vm451_vm0, %v19883_v6  ;;  %v20308_v6 = vld [vmem:[%s20646_s5] sm:$0xff] }
0x21e5   :  { %v16347_v11 = vpop.f32.mrb[156].mxu0 }
0x21e6   :  { %v11033_v13 = vpop.f32.mrb[157].mxu0 }
0x21e7   :  { %v16348_v4 = vpop.f32.mrb[158].mxu0 }
0x21e8   :  { %v16701_v63 = vpack.c.bf16 %v16348_v4, %v16347_v11  ;;  %v11036_v22 = vpop.f32.mrb[159].mxu0 }
0x21e9   :  { %v16697_v19 = vpack.c.bf16 %v11036_v22, %v11033_v13 }
0x21eb   :  { %16698 = vmatprep.subr.bf16.mxu1 %v16697_v19 }
0x21ec   :  { %16700 = vmatpush3.bf16.msra.mxu1 %v16697_v19 }
0x21ed   :  { %16702 = vmatprep.subr.bf16.mxu1 %v16701_v63 }
0x21f0   :  { %16704 = vmatpush3.bf16.msra.mxu1 %v16701_v63 }
0x21f3   :  { %16358 = vmatmul.mubr.msk.f32.vlgmr.msra.gmra.mrb[188].mxu1 %vm451_vm0, %v19890_v60 }
0x21f4   :  { %16360 = vmatprep.mubr.msk.f32.mxu1 %vm451_vm0, %v19897_v15 }
0x21f7   :  { %16361 = vmatmul.mubr.msk.f32.gmra.mrb[190].mxu1 %vm451_vm0, %v19904_v25 }
0x21f8   :  { %16371 = vmatprep.mubr.msk.f32.mxu1 %vm451_vm0, %v20308_v6 }
0x22c6   :  { %v16359_v49 = vpop.f32.mrb[188].mxu1 }
0x22c7   :  { %v11142_v55 = vsub.f32 %v11036_v22, %v16359_v49  ;;  %v11122_v40 = vpop.f32.mrb[189].mxu1 }
0x22c8   :  { %v11141_v26 = vsub.f32 %v11033_v13, %v11122_v40 }
0x22c9   :  { %v11146_v16 = vmul.f32 %v11142_v55, %v11142_v55 }
0x22ca   :  { %v11145_v14 = vmul.f32 %v11141_v26, %v11141_v26  ;;  %v16362_v48 = vpop.f32.mrb[190].mxu1 }
0x22cb   :  { %v11144_v7 = vsub.f32 %v16348_v4, %v16362_v48  ;;  %v11132_v8 = vpop.f32.mrb[191].mxu1  ;;  %v17311_v48 = vld [vmem:[%s20650_s9 + $0x368] sm:$0xff]  }
0x22cc   :  { %v11143_v57 = vsub.f32 %v16347_v11, %v11132_v8  ;;  %v16705_v41 = vpack.c.bf16 %v11146_v16, %v11145_v14  ;;  %v17313_v8 = vld [vmem:[%s20650_s9 + $0x378] sm:$0xff]  }
0x22cd   :  { %v11148_v61 = vmul.f32 %v11144_v7, %v11144_v7 }
0x22ce   :  { %v11147_v59 = vmul.f32 %v11143_v57, %v11143_v57  ;;  %16706 = vmatprep.subr.bf16.mxu1 %v16705_v41 }
0x22cf   :  { %16708 = vmatpush3.bf16.msra.mxu1 %v16705_v41  ;;  %v17315_v41 = vld [vmem:[%s20650_s9 + $0x3a8] sm:$0xff]  }
0x22d0   :  { %v16709_v2 = vpack.c.bf16 %v11148_v61, %v11147_v59  ;;  %v17317_v61 = vld [vmem:[%s20650_s9 + $0x3b8] sm:$0xff]   ;;  %v17318_v59 = vld [vmem:[%s20650_s9 + $0x3c0] sm:$0xff]  }
0x22d2   :  { %16710 = vmatprep.subr.bf16.mxu1 %v16709_v2 }
0x22d3   :  { %16712 = vmatpush3.bf16.msra.mxu1 %v16709_v2 }
0x22d6   :  { %16372 = vmatmul.mubr.msk.f32.vlgmr.msra.gmra.mrb[192].mxu1 %vm451_vm0, %v19890_v60 }
0x22d7   :  { %16374 = vmatprep.mubr.msk.f32.mxu1 %vm451_vm0, %v19897_v15  ;;  %v13815_v15 = vld [vmem:[%s20648_s7 + $0x3] ss:$0 sm:$0xff] }
0x22da   :  { %16375 = vmatmul.mubr.msk.f32.gmra.mrb[194].mxu1 %vm451_vm0, %v19904_v25 }
0x22db   :  { %16381 = vmatprep.mubr.msk.bf16.mxu1 %vm451_vm0, %v19919_v20  ;;  %v13816_v20 = vld [vmem:[%s20649_s8 + $0x3] ss:$0 sm:$0xff] }
0x23a9   :  { %v16373_v36 = vpop.f32.mrb[192].mxu1 }
0x23aa   :  { %v11221_v31 = vadd.f32 1e-05, %v16373_v36  ;;  %v11215_v29 = vpop.f32.mrb[193].mxu1 }
0x23ab   :  { %v11216_v47 = vadd.f32 1e-05, %v11215_v29 }
0x23ac   :  { %17398 = vrsqrt.f32 %v11221_v31 }
0x23ad   :  { %17400 = vrsqrt.f32 %v11216_v47  ;;  %v16376_v0 = vpop.f32.mrb[194].mxu1 }
0x23ae   :  { %v11231_v35 = vadd.f32 1e-05, %v16376_v0  ;;  %v11225_v37 = vpop.f32.mrb[195].mxu1 }
0x23af   :  { %v11226_v30 = vadd.f32 1e-05, %v11225_v37 }
0x23b0   :  { %17402 = vrsqrt.f32 %v11231_v35 }
0x23b1   :  { %17404 = vrsqrt.f32 %v11226_v30 }
0x23b6   :  { %v17399_v60 = vpop.eup %17398 }
0x23b7   :  { %v17401_v25 = vpop.eup %17400  ;;  %v11239_v23 = vmul.f32 %v17399_v60, %v11142_v55 }
0x23b8   :  { %v11238_v27 = vmul.f32 %v17401_v25, %v11141_v26  ;;  %v17306_v26 = vld [vmem:[%s20650_s9 + $0x380] sm:$0xff]  }
0x23b9   :  { %v11249_v56 = vmul.f32 %v13815_v15, %v11239_v23 }
0x23ba   :  { %v17403_v32 = vpop.eup %17402  ;;  %v11248_v12 = vmul.f32 %v13815_v15, %v11238_v27 }
0x23bb   :  { %v17405_v50 = vpop.eup %17404  ;;  %v11259_v54 = vadd.f32 %v13816_v20, %v11249_v56  ;;  %v11241_v18 = vmul.f32 %v17403_v32, %v11144_v7  ;;  %v17312_v7 = vld [vmem:[%s20650_s9 + $0x370] sm:$0xff]  }
0x23bc   :  { %v11258_v24 = vadd.f32 %v13816_v20, %v11248_v12  ;;  %v11240_v5 = vmul.f32 %v17405_v50, %v11143_v57  ;;  %v17314_v57 = vld [vmem:[%s20650_s9 + $0x3a0] sm:$0xff]  }
0x23bd   :  { %v11263_v10 = vmax.f32 %v11259_v54, 0.0  ;;  %v11251_v11 = vmul.f32 %v13815_v15, %v11241_v18 }
0x23be   :  { %v11262_v13 = vmax.f32 %v11258_v24, 0.0  ;;  %v11250_v4 = vmul.f32 %v13815_v15, %v11240_v5 }
0x23bf   :  { %v11261_v63 = vadd.f32 %v13816_v20, %v11251_v11 }
0x23c0   :  { %v20326_v22 = vpack.c.bf16 %v11263_v10, %v11262_v13  ;;  %v11260_v19 = vadd.f32 %v13816_v20, %v11250_v4 }
0x23c1   :  { %v11265_v49 = vmax.f32 %v11261_v63, 0.0 }
0x23c2   :  { %v11264_v55 = vmax.f32 %v11260_v19, 0.0  ;;  %16377 = vmatprep.subr.bf16.mxu1 %v20326_v22  ;;  %16437 = vmatprep.subr.bf16.mxu0 %v20326_v22 }
0x23c3   :  { %16378 = vmatpush3.bf16.msra.mxu1 %v20326_v22  ;;  %16438 = vmatpush3.bf16.msra.mxu0 %v20326_v22 }
0x23c4   :  { %v20332_v40 = vpack.c.bf16 %v11265_v49, %v11264_v55 }
0x23c6   :  { %16379 = vmatprep.subr.bf16.mxu1 %v20332_v40  ;;  %16439 = vmatprep.subr.bf16.mxu0 %v20332_v40 }
0x23c7   :  { %16380 = vmatpush3.bf16.msra.mxu1 %v20332_v40  ;;  %16440 = vmatpush3.bf16.msra.mxu0 %v20332_v40 }
0x23c8   :  { %16385 = vmatprep.subr.bf16.mxu1 %v20326_v22  ;;  %16457 = vmatprep.subr.bf16.mxu0 %v20326_v22 }
0x23ca   :  { %16382 = vmatmul.mubr.msk.bf16.vlgmr.msra.gmra.mrb[196].mxu1 %vm451_vm0, %v19962_v46  ;;  %16442 = vmatmul.mubr.msk.bf16.vlgmr.msra.gmra.mrb[164].mxu0 %vm451_vm0, %v19969_v62  ;;  %v17307_v46 = vld [vmem:[%s20650_s9 + $0x388] sm:$0xff]   ;;  %v17308_v62 = vld [vmem:[%s20650_s9 + $0x390] sm:$0xff]  }
0x23cb   :  { %16386 = vmatpush3.bf16.msra.mxu1 %v20326_v22  ;;  %16458 = vmatpush3.bf16.msra.mxu0 %v20326_v22 }
0x23cc   :  { %16387 = vmatprep.subr.bf16.mxu1 %v20332_v40  ;;  %16459 = vmatprep.subr.bf16.mxu0 %v20332_v40 }
0x23cd   :  { %16389 = vmatprep.mubr.msk.bf16.mxu1 %vm451_vm0, %v19983_v1  ;;  %16461 = vmatprep.mubr.msk.bf16.mxu0 %vm451_vm0, %v19990_v33  ;;  %v17309_v1 = vld [vmem:[%s20650_s9 + $0x398] sm:$0xff]   ;;  %v17310_v33 = vld [vmem:[%s20650_s9 + $0x360] sm:$0xff]  }
0x23cf   :  { %16388 = vmatpush3.bf16.msra.mxu1 %v20332_v40  ;;  %16460 = vmatpush3.bf16.msra.mxu0 %v20332_v40 }
0x23d0   :  { %16477 = vmatprep.subr.bf16.mxu0 %v20326_v22  ;;  %16393 = vmatprep.subr.bf16.mxu1 %v17306_v26 }
0x23d2   :  { %16390 = vmatmul.mubr.msk.bf16.vlgmr.msra.gmra.mrb[200].mxu1 %vm451_vm0, %v20000_v44  ;;  %16462 = vmatmul.mubr.msk.bf16.vlgmr.msra.gmra.mrb[168].mxu0 %vm451_vm0, %v20007_v34 }
0x23d3   :  { %16478 = vmatpush3.bf16.msra.mxu0 %v20326_v22  ;;  %16481 = vmatprep.mubr.msk.bf16.mxu0 %vm451_vm0, %v20015_v39 }
0x23d4   :  { %16479 = vmatprep.subr.bf16.mxu0 %v20332_v40  ;;  %16394 = vmatpush3.bf16.msra.mxu1 %v17306_v26 }
0x23d5   :  { %16395 = vmatprep.subr.bf16.mxu1 %v17307_v46 }
0x23d7   :  { %16480 = vmatpush3.bf16.msra.mxu0 %v20332_v40 }
0x23d8   :  { %16497 = vmatprep.subr.bf16.mxu0 %v20326_v22  ;;  %16396 = vmatpush3.bf16.msra.mxu1 %v17307_v46 }
0x23d9   :  { %16397 = vmatprep.subr.bf16.mxu1 %v17308_v62 }
0x23da   :  { %16482 = vmatmul.mubr.msk.bf16.vlgmr.msra.gmra.mrb[172].mxu0 %vm451_vm0, %v20025_v9 }
0x23db   :  { %16498 = vmatpush3.bf16.msra.mxu0 %v20326_v22  ;;  %16501 = vmatprep.mubr.msk.bf16.mxu0 %vm451_vm0, %v20033_v17 }
0x23dc   :  { %16499 = vmatprep.subr.bf16.mxu0 %v20332_v40  ;;  %16398 = vmatpush3.bf16.msra.mxu1 %v17308_v62 }
0x23dd   :  { %16399 = vmatprep.subr.bf16.mxu1 %v17309_v1 }
0x23df   :  { %16500 = vmatpush3.bf16.msra.mxu0 %v20332_v40 }
0x23e0   :  { %16517 = vmatprep.subr.bf16.mxu0 %v20326_v22  ;;  %16400 = vmatpush3.bf16.msra.mxu1 %v17309_v1 }
0x23e1   :  { %16405 = vmatprep.subr.bf16.mxu1 %v17310_v33 }
0x23e2   :  { %16502 = vmatmul.mubr.msk.bf16.vlgmr.msra.gmra.mrb[176].mxu0 %vm451_vm0, %v20043_v3 }
0x23e3   :  { %16518 = vmatpush3.bf16.msra.mxu0 %v20326_v22  ;;  %16521 = vmatprep.mubr.msk.bf16.mxu0 %vm451_vm0, %v20051_v21 }
0x23e4   :  { %16519 = vmatprep.subr.bf16.mxu0 %v20332_v40 }
0x23e7   :  { %16520 = vmatpush3.bf16.msra.mxu0 %v20332_v40 }
0x23e8   :  { %16537 = vmatprep.subr.bf16.mxu0 %v20326_v22 }
0x23ea   :  { %16522 = vmatmul.mubr.msk.bf16.vlgmr.msra.gmra.mrb[180].mxu0 %vm451_vm0, %v20061_v52 }
0x23eb   :  { %16538 = vmatpush3.bf16.msra.mxu0 %v20326_v22  ;;  %16541 = vmatprep.mubr.msk.bf16.mxu0 %vm451_vm0, %v20069_v51 }
0x23ec   :  { %16539 = vmatprep.subr.bf16.mxu0 %v20332_v40 }
0x23ef   :  { %16540 = vmatpush3.bf16.msra.mxu0 %v20332_v40 }
0x23f2   :  { %16542 = vmatmul.mubr.msk.bf16.vlgmr.msra.gmra.mrb[184].mxu0 %vm451_vm0, %v20078_v45 }
0x23f3   :  { %16565 = vmatprep.mubr.msk.f32.mxu0 %vm451_vm0, %v20308_v6 }
0x249d   :  { %v16383_v44 = vpop.f32.mrb[196].mxu1 }
0x249e   :  { %v11375_v34 = vpop.f32.mrb[197].mxu1 }
0x249f   :  { %v16384_v39 = vpop.f32.mrb[198].mxu1 }
0x24a0   :  { %v11391_v9 = vpack.c.bf16 %v16384_v39, %v16383_v44  ;;  %v11378_v17 = vpop.f32.mrb[199].mxu1 }
0x24a1   :  { %v11390_v3 = vpack.c.bf16 %v11378_v17, %v11375_v34  ;;  %v17320_v17 = vld [vmem:[%s20650_s9 + $0x3d0] sm:$0xff]  }
0x24a5   :  { %v16391_v21 = vpop.f32.mrb[200].mxu1 }
0x24a6   :  { %v11426_v52 = vpop.f32.mrb[201].mxu1 }
0x24a7   :  { %v16392_v51 = vpop.f32.mrb[202].mxu1 }
0x24a8   :  { %v11442_v45 = vpack.c.bf16 %v16392_v51, %v16391_v21  ;;  %v11429_v16 = vpop.f32.mrb[203].mxu1  ;;  %v17322_v21 = vld [vmem:[%s20650_s9 + $0x3e0] sm:$0xff]   ;;  %v17324_v51 = vld [vmem:[%s20650_s9 + $0x3f0] sm:$0xff]  }
0x24a9   :  { %v11441_v14 = vpack.c.bf16 %v11429_v16, %v11426_v52  ;;  %v17323_v52 = vld [vmem:[%s20650_s9 + $0x3e8] sm:$0xff]   ;;  %v17326_v16 = vld [vmem:[%s20650_s9 + $0x400] sm:$0xff]  }
0x24ab   :  { %16401 = vmatprep.mubr.msk.bf16.mxu1 %vm915_vm1, %v11441_v14  ;;  %v17327_v14 = vld [vmem:[%s20650_s9 + $0x408] sm:$0xff]  }
0x24ac   :  { %16402 = vmatmul.mubr.msk.bf16.vlgmr.msra.gmra.mrb[204].mxu1 %vm915_vm1, %v11442_v45  ;;  %v17325_v45 = vld [vmem:[%s20650_s9 + $0x3f8] sm:$0xff]  }
0x24ad   :  { %16406 = vmatpush3.bf16.msra.mxu1 %v17310_v33  ;;  %16413 = vmatprep.mubr.msk.bf16.mxu1 %vm915_vm1, %v11390_v3  ;;  %v17321_v3 = vld [vmem:[%s20650_s9 + $0x3d8] sm:$0xff]  }
0x24ae   :  { %16407 = vmatprep.subr.bf16.mxu1 %v17311_v48 }
0x24b1   :  { %16408 = vmatpush3.bf16.msra.mxu1 %v17311_v48  ;;  %v17328_v48 = vld [vmem:[%s20650_s9 + $0x410] sm:$0xff]  }
0x24b2   :  { %16409 = vmatprep.subr.bf16.mxu1 %v17312_v7 }
0x24b5   :  { %16410 = vmatpush3.bf16.msra.mxu1 %v17312_v7  ;;  %v17329_v7 = vld [vmem:[%s20650_s9 + $0x418] sm:$0xff]  }
0x24b6   :  { %16411 = vmatprep.subr.bf16.mxu1 %v17313_v8 }
0x24b9   :  { %16412 = vmatpush3.bf16.msra.mxu1 %v17313_v8  ;;  %v17330_v8 = vld [vmem:[%s20650_s9 + $0x420] sm:$0xff]  }
0x24ba   :  { %16417 = vmatprep.subr.bf16.mxu1 %v20326_v22 }
0x24bc   :  { %16414 = vmatmul.mubr.msk.bf16.vlgmr.msra.gmra.mrb[204].mxu1 %vm915_vm1, %v11391_v9  ;;  %v17319_v9 = vld [vmem:[%s20650_s9 + $0x3c8] sm:$0xff]  }
0x24bd   :  { %16418 = vmatpush3.bf16.msra.mxu1 %v20326_v22  ;;  %16421 = vmatprep.mubr.msk.bf16.mxu1 %vm451_vm0, %v20114_v28  ;;  %v17316_v28 = vld [vmem:[%s20650_s9 + $0x3b0] sm:$0xff]  }
0x24be   :  { %16419 = vmatprep.subr.bf16.mxu1 %v20332_v40 }
0x24c1   :  { %16420 = vmatpush3.bf16.msra.mxu1 %v20332_v40 }
0x24c2   :  { %16425 = vmatprep.subr.bf16.mxu1 %v17314_v57 }
0x24c4   :  { %16422 = vmatmul.mubr.msk.bf16.vlgmr.msra.gmra.mrb[208].mxu1 %vm451_vm0, %v20129_v58  ;;  %v16443_v58 = vpop.f32.mrb[164].mxu0 }
0x24c5   :  { %16426 = vmatpush3.bf16.msra.mxu1 %v17314_v57  ;;  %v11769_v2 = vpop.f32.mrb[165].mxu0  ;;  %v17331_v57 = vld [vmem:[%s20650_s9 + $0x428] sm:$0xff]  }
0x24c6   :  { %16427 = vmatprep.subr.bf16.mxu1 %v17315_v41  ;;  %v16444_v36 = vpop.f32.mrb[166].mxu0 }
0x24c7   :  { %v11785_v31 = vpack.c.bf16 %v16444_v36, %v16443_v58  ;;  %v11772_v29 = vpop.f32.mrb[167].mxu0  ;;  %v17336_v58 = vld [vmem:[%s20650_s9 + $0x450] sm:$0xff]   ;;  %v17338_v36 = vld [vmem:[%s20650_s9 + $0x460] sm:$0xff]  }
0x24c8   :  { %v11784_v47 = vpack.c.bf16 %v11772_v29, %v11769_v2  ;;  %v20443_v0 = vpop.f32.mrb[168].mxu0  ;;  %v17337_v2 = vld [vmem:[%s20650_s9 + $0x458] sm:$0xff]   ;;  %v17340_v29 = vld [vmem:[%s20650_s9 + $0x470] sm:$0xff]  }
0x24c9   :  { %16428 = vmatpush3.bf16.msra.mxu1 %v17315_v41  ;;  %v11903_v35 = vpop.f32.mrb[169].mxu0  ;;  %v17332_v41 = vld [vmem:[%s20650_s9 + $0x430] sm:$0xff]  }
0x24ca   :  { %16429 = vmatprep.subr.bf16.mxu1 %v17316_v28  ;;  %v20445_v37 = vpop.f32.mrb[170].mxu0 }
0x24cb   :  { %v11919_v30 = vpack.c.bf16 %v20445_v37, %v20443_v0  ;;  %v11906_v60 = vpop.f32.mrb[171].mxu0  ;;  %v17481_v0 = vld [vmem:[%s20646_s5 + $0x10] sm:$0xff] }
0x24cc   :  { %v11918_v15 = vpack.c.bf16 %v11906_v60, %v11903_v35  ;;  %v20449_v25 = vpop.f32.mrb[172].mxu0 }
0x24cd   :  { %16430 = vmatpush3.bf16.msra.mxu1 %v17316_v28  ;;  %v12037_v23 = vpop.f32.mrb[173].mxu0  ;;  %v17333_v28 = vld [vmem:[%s20650_s9 + $0x438] sm:$0xff]  }
0x24ce   :  { %16431 = vmatprep.subr.bf16.mxu1 %v17317_v61  ;;  %v20451_v20 = vpop.f32.mrb[174].mxu0 }
0x24cf   :  { %v12053_v27 = vpack.c.bf16 %v20451_v20, %v20449_v25  ;;  %v12040_v56 = vpop.f32.mrb[175].mxu0  ;;  %v17483_v20 = vld [vmem:[%s20646_s5 + $0x18] sm:$0xff] }
0x24d0   :  { %v12052_v32 = vpack.c.bf16 %v12040_v56, %v12037_v23  ;;  %v20455_v12 = vpop.f32.mrb[176].mxu0  ;;  %v17482_v23 = vld [vmem:[%s20646_s5 + $0x8] sm:$0xff] }
0x24d1   :  { %16432 = vmatpush3.bf16.msra.mxu1 %v17317_v61  ;;  %v20457_v50 = vpop.f32.mrb[177].mxu0  ;;  %v17334_v61 = vld [vmem:[%s20650_s9 + $0x440] sm:$0xff]  }
0x24d2   :  { %16445 = vmatprep.subr.bf16.mxu1 %v17318_v59  ;;  %v20459_v54 = vpop.f32.mrb[178].mxu0 }
0x24d3   :  { %v12187_v18 = vpack.c.bf16 %v20459_v54, %v20455_v12  ;;  %v20463_v24 = vpop.f32.mrb[179].mxu0 }
0x24d4   :  { %v12186_v5 = vpack.c.bf16 %v20463_v24, %v20457_v50  ;;  %v20467_v10 = vpop.f32.mrb[180].mxu0 }
0x24d5   :  { %v20469_v11 = vpop.f32.mrb[181].mxu0 }
0x24d6   :  { %v20471_v13 = vpop.f32.mrb[182].mxu0 }
0x24d7   :  { %v12321_v4 = vpack.c.bf16 %v20471_v13, %v20467_v10  ;;  %v20475_v63 = vpop.f32.mrb[183].mxu0 }
0x24d8   :  { %v12320_v22 = vpack.c.bf16 %v20475_v63, %v20469_v11  ;;  %v20479_v19 = vpop.f32.mrb[184].mxu0 }
0x24d9   :  { %v20481_v49 = vpop.f32.mrb[185].mxu0 }
0x24da   :  { %v20483_v55 = vpop.f32.mrb[186].mxu0 }
0x24db   :  { %v12455_v40 = vpack.c.bf16 %v20483_v55, %v20479_v19  ;;  %v20487_v26 = vpop.f32.mrb[187].mxu0 }
0x24dc   :  { %v12454_v46 = vpack.c.bf16 %v20487_v26, %v20481_v49 }
0x2597   :  { %v16423_v62 = vpop.f32.mrb[208].mxu1 }
0x2598   :  { %v11635_v1 = vpop.f32.mrb[209].mxu1 }
0x2599   :  { %v16424_v33 = vpop.f32.mrb[210].mxu1 }
0x259a   :  { %v11651_v44 = vpack.c.bf16 %v16424_v33, %v16423_v62  ;;  %v11638_v34 = vpop.f32.mrb[211].mxu1 }
0x259b   :  { %v11650_v39 = vpack.c.bf16 %v11638_v34, %v11635_v1  ;;  %v13971_v1 = vld [vmem:[%s20651_s10 + $0x3] ss:$0 sm:$0xff]  ;;  %s17484_s10 = scalar_lea.vmem %s12763_s16, 512 }
0x259c   :  { %p17485_p0 = scmp.ne.s32.totalorder %s12763_s16, %s17484_s10  ;;  %p17490_p2 = scmp.lt.s32.totalorder %s17484_s10, %s17484_s10 }
0x259d   :  { %16433 = vmatprep.mubr.msk.bf16.mxu1 %vm915_vm1, %v11650_v39  ;;  %v13972_v39 = vld [vmem:[%s20652_s11 + $0x3] ss:$0 sm:$0xff] }
0x259e   :  { %16434 = vmatmul.mubr.msk.bf16.vlgmr.msra.gmra.mrb[204].mxu1 %vm915_vm1, %v11651_v44  ;;  %p17491_p3 = por %p17490_p2, %p17489_p1 }
0x259f   :  { %16446 = vmatpush3.bf16.msra.mxu1 %v17318_v59  ;;  %16453 = vmatprep.mubr.msk.bf16.mxu1 %vm915_vm1, %v11784_v47  ;;  %v17335_v59 = vld [vmem:[%s20650_s9 + $0x448] sm:$0xff]   ;;  %v17341_v47 = vld [vmem:[%s20650_s9 + $0x478] sm:$0xff]  }
0x25a0   :  { %16447 = vmatprep.subr.bf16.mxu1 %v17319_v9  ;;  %p17492_p4 = pnand %p17491_p3, %p17485_p0 }
0x25a3   :  { %16448 = vmatpush3.bf16.msra.mxu1 %v17319_v9 }
0x25a4   :  { %16449 = vmatprep.subr.bf16.mxu1 %v17320_v17 }
0x25a7   :  { %16450 = vmatpush3.bf16.msra.mxu1 %v17320_v17 }
0x25a8   :  { %16451 = vmatprep.subr.bf16.mxu1 %v17321_v3 }
0x25ab   :  { %16452 = vmatpush3.bf16.msra.mxu1 %v17321_v3 }
0x25ac   :  { %16465 = vmatprep.subr.bf16.mxu1 %v17322_v21 }
0x25ae   :  { %16454 = vmatmul.mubr.msk.bf16.vlgmr.msra.gmra.mrb[204].mxu1 %vm915_vm1, %v11785_v31  ;;  %v17339_v31 = vld [vmem:[%s20650_s9 + $0x468] sm:$0xff]  }
0x25af   :  { %16466 = vmatpush3.bf16.msra.mxu1 %v17322_v21  ;;  %16473 = vmatprep.mubr.msk.bf16.mxu1 %vm915_vm1, %v11918_v15 }
0x25b0   :  { %16467 = vmatprep.subr.bf16.mxu1 %v17323_v52 }
0x25b3   :  { %16468 = vmatpush3.bf16.msra.mxu1 %v17323_v52 }
0x25b4   :  { %16469 = vmatprep.subr.bf16.mxu1 %v17324_v51 }
0x25b7   :  { %16470 = vmatpush3.bf16.msra.mxu1 %v17324_v51 }
0x25b8   :  { %16471 = vmatprep.subr.bf16.mxu1 %v17325_v45 }
0x25bb   :  { %16472 = vmatpush3.bf16.msra.mxu1 %v17325_v45 }
0x25bc   :  { %16485 = vmatprep.subr.bf16.mxu1 %v17326_v16 }
0x25be   :  { %16474 = vmatmul.mubr.msk.bf16.vlgmr.msra.gmra.mrb[204].mxu1 %vm915_vm1, %v11919_v30 }
0x25bf   :  { %16486 = vmatpush3.bf16.msra.mxu1 %v17326_v16  ;;  %16493 = vmatprep.mubr.msk.bf16.mxu1 %vm915_vm1, %v12052_v32 }
0x25c0   :  { %16487 = vmatprep.subr.bf16.mxu1 %v17327_v14 }
0x25c3   :  { %16488 = vmatpush3.bf16.msra.mxu1 %v17327_v14 }
0x25c4   :  { %16489 = vmatprep.subr.bf16.mxu1 %v17328_v48 }
0x25c7   :  { %16490 = vmatpush3.bf16.msra.mxu1 %v17328_v48 }
0x25c8   :  { %16491 = vmatprep.subr.bf16.mxu1 %v17329_v7 }
0x25cb   :  { %16492 = vmatpush3.bf16.msra.mxu1 %v17329_v7 }
0x25cc   :  { %16505 = vmatprep.subr.bf16.mxu1 %v17330_v8 }
0x25ce   :  { %16494 = vmatmul.mubr.msk.bf16.vlgmr.msra.gmra.mrb[204].mxu1 %vm915_vm1, %v12053_v27 }
0x25cf   :  { %16506 = vmatpush3.bf16.msra.mxu1 %v17330_v8  ;;  %16513 = vmatprep.mubr.msk.bf16.mxu1 %vm915_vm1, %v12186_v5 }
0x25d0   :  { %16507 = vmatprep.subr.bf16.mxu1 %v17331_v57 }
0x25d3   :  { %16508 = vmatpush3.bf16.msra.mxu1 %v17331_v57 }
0x25d4   :  { %16509 = vmatprep.subr.bf16.mxu1 %v17332_v41 }
0x25d7   :  { %16510 = vmatpush3.bf16.msra.mxu1 %v17332_v41 }
0x25d8   :  { %16511 = vmatprep.subr.bf16.mxu1 %v17333_v28 }
0x25db   :  { %16512 = vmatpush3.bf16.msra.mxu1 %v17333_v28 }
0x25dc   :  { %16525 = vmatprep.subr.bf16.mxu1 %v17334_v61 }
0x25de   :  { %16514 = vmatmul.mubr.msk.bf16.vlgmr.msra.gmra.mrb[204].mxu1 %vm915_vm1, %v12187_v18 }
0x25df   :  { %16526 = vmatpush3.bf16.msra.mxu1 %v17334_v61  ;;  %16533 = vmatprep.mubr.msk.bf16.mxu1 %vm915_vm1, %v12320_v22 }
0x25e0   :  { %16527 = vmatprep.subr.bf16.mxu1 %v17335_v59 }
0x25e3   :  { %16528 = vmatpush3.bf16.msra.mxu1 %v17335_v59 }
0x25e4   :  { %16529 = vmatprep.subr.bf16.mxu1 %v17336_v58 }
0x25e7   :  { %16530 = vmatpush3.bf16.msra.mxu1 %v17336_v58 }
0x25e8   :  { %16531 = vmatprep.subr.bf16.mxu1 %v17337_v2 }
0x25eb   :  { %16532 = vmatpush3.bf16.msra.mxu1 %v17337_v2 }
0x25ec   :  { %16545 = vmatprep.subr.bf16.mxu1 %v17338_v36 }
0x25ee   :  { %16534 = vmatmul.mubr.msk.bf16.vlgmr.msra.gmra.mrb[204].mxu1 %vm915_vm1, %v12321_v4 }
0x25ef   :  { %16546 = vmatpush3.bf16.msra.mxu1 %v17338_v36  ;;  %16553 = vmatprep.mubr.msk.bf16.mxu1 %vm915_vm1, %v12454_v46 }
0x25f0   :  { %16547 = vmatprep.subr.bf16.mxu1 %v17339_v31 }
0x25f3   :  { %16548 = vmatpush3.bf16.msra.mxu1 %v17339_v31 }
0x25f4   :  { %16549 = vmatprep.subr.bf16.mxu1 %v17340_v29 }
0x25f7   :  { %16550 = vmatpush3.bf16.msra.mxu1 %v17340_v29 }
0x25f8   :  { %16551 = vmatprep.subr.bf16.mxu1 %v17341_v47 }
0x25fb   :  { %16552 = vmatpush3.bf16.msra.mxu1 %v17341_v47 }
0x25fe   :  { %16554 = vmatmul.mubr.msk.bf16.vlgmr.msra.gmra.mrb[204].mxu1 %vm915_vm1, %v12455_v40 }
0x25ff   :  { %16582 = vmatprep.mubr.msk.f32.mxu1 %vm451_vm0, %v17481_v0 }
0x26d1   :  { %v16555_v35 = vpop.f32.mrb[204].mxu1 }
0x26d2   :  { %v12520_v37 = vpop.f32.mrb[205].mxu1 }
0x26d3   :  { %v16556_v30 = vpop.f32.mrb[206].mxu1 }
0x26d4   :  { %v16717_v60 = vpack.c.bf16 %v16556_v30, %v16555_v35  ;;  %v12523_v15 = vpop.f32.mrb[207].mxu1 }
0x26d5   :  { %v16713_v25 = vpack.c.bf16 %v12523_v15, %v12520_v37 }
0x26d7   :  { %16714 = vmatprep.subr.bf16.mxu0 %v16713_v25 }
0x26d8   :  { %16716 = vmatpush3.bf16.msra.mxu0 %v16713_v25 }
0x26d9   :  { %16718 = vmatprep.subr.bf16.mxu0 %v16717_v60 }
0x26dc   :  { %16720 = vmatpush3.bf16.msra.mxu0 %v16717_v60 }
0x26df   :  { %16566 = vmatmul.mubr.msk.f32.vlgmr.msra.gmra.mrb[188].mxu0 %vm451_vm0, %v17482_v23 }
0x26e0   :  { %16568 = vmatprep.mubr.msk.f32.mxu0 %vm451_vm0, %v17481_v0 }
0x26e3   :  { %16569 = vmatmul.mubr.msk.f32.gmra.mrb[190].mxu0 %vm451_vm0, %v17483_v20 }
0x26e4   :  { %16579 = vmatprep.mubr.msk.f32.mxu0 %vm451_vm0, %v20308_v6 }
0x27b2   :  { %v16567_v27 = vpop.f32.mrb[188].mxu0 }
0x27b3   :  { %v12629_v56 = vsub.f32 %v12523_v15, %v16567_v27  ;;  %v12609_v32 = vpop.f32.mrb[189].mxu0 }
0x27b4   :  { %v12628_v12 = vsub.f32 %v12520_v37, %v12609_v32 }
0x27b5   :  { %v12633_v50 = vmul.f32 %v12629_v56, %v12629_v56 }
0x27b6   :  { %v12632_v54 = vmul.f32 %v12628_v12, %v12628_v12  ;;  %v16570_v18 = vpop.f32.mrb[190].mxu0 }
0x27b7   :  { %v12631_v24 = vsub.f32 %v16556_v30, %v16570_v18  ;;  %v12619_v5 = vpop.f32.mrb[191].mxu0 }
0x27b8   :  { %v16721_v10 = vpack.c.bf16 %v12633_v50, %v12632_v54  ;;  %v12630_v11 = vsub.f32 %v16555_v35, %v12619_v5 }
0x27b9   :  { %v12635_v13 = vmul.f32 %v12631_v24, %v12631_v24 }
0x27ba   :  { %v12634_v4 = vmul.f32 %v12630_v11, %v12630_v11  ;;  %16722 = vmatprep.subr.bf16.mxu0 %v16721_v10  ;;  %16729 = vmatprep.subr.bf16.mxu1 %v16721_v10 }
0x27bb   :  { %16724 = vmatpush3.bf16.msra.mxu0 %v16721_v10  ;;  %16731 = vmatpush3.bf16.msra.mxu1 %v16721_v10 }
0x27bc   :  { %v16725_v63 = vpack.c.bf16 %v12635_v13, %v12634_v4 }
0x27be   :  { %16726 = vmatprep.subr.bf16.mxu0 %v16725_v63  ;;  %16730 = vmatprep.subr.bf16.mxu1 %v16725_v63 }
0x27bf   :  { %16728 = vmatpush3.bf16.msra.mxu0 %v16725_v63  ;;  %16732 = vmatpush3.bf16.msra.mxu1 %v16725_v63 }
0x27c2   :  { %16580 = vmatmul.mubr.msk.f32.vlgmr.msra.gmra.mrb[192].mxu0 %vm451_vm0, %v17482_v23  ;;  %16583 = vmatmul.mubr.msk.f32.vlgmr.msra.gmra.mrb[212].mxu1 %vm451_vm0, %v17483_v20 }
0x2895   :  { %v16581_v6 = vpop.f32.mrb[192].mxu0  ;;  %v16584_v22 = vpop.f32.mrb[212].mxu1 }
0x2896   :  { %v12708_v19 = vadd.f32 1e-05, %v16581_v6  ;;  %v12718_v49 = vadd.f32 1e-05, %v16584_v22  ;;  %v12702_v55 = vpop.f32.mrb[193].mxu0  ;;  %v12712_v40 = vpop.f32.mrb[213].mxu1 }
0x2897   :  { %v12703_v26 = vadd.f32 1e-05, %v12702_v55  ;;  %v12713_v46 = vadd.f32 1e-05, %v12712_v40 }
0x2898   :  { %17406 = vrsqrt.f32 %v12708_v19 }
0x2899   :  { %17408 = vrsqrt.f32 %v12718_v49 }
0x289a   :  { %17410 = vrsqrt.f32 %v12703_v26 }
0x289b   :  { %17412 = vrsqrt.f32 %v12713_v46 }
0x28a2   :  { %v17407_v62 = vpop.eup %17406 }
0x28a3   :  { %v17409_v33 = vpop.eup %17408  ;;  %v12726_v44 = vmul.f32 %v17407_v62, %v12629_v56 }
0x28a4   :  { %v17411_v34 = vpop.eup %17410  ;;  %v12728_v9 = vmul.f32 %v17409_v33, %v12631_v24 }
0x28a5   :  { %v17413_v17 = vpop.eup %17412  ;;  %v12736_v3 = vmul.f32 %v13971_v1, %v12726_v44  ;;  %v12725_v21 = vmul.f32 %v17411_v34, %v12628_v12 }
0x28a6   :  { %v12738_v52 = vmul.f32 %v13971_v1, %v12728_v9  ;;  %v12727_v51 = vmul.f32 %v17413_v17, %v12630_v11 }
0x28a7   :  { %v12746_v45 = vadd.f32 %v13972_v39, %v12736_v3  ;;  %v12735_v16 = vmul.f32 %v13971_v1, %v12725_v21 }
0x28a8   :  { %v12748_v14 = vadd.f32 %v13972_v39, %v12738_v52  ;;  %v12737_v48 = vmul.f32 %v13971_v1, %v12727_v51 }
0x28a9   :  { %v12745_v7 = vadd.f32 %v13972_v39, %v12735_v16  ;;  %v12750_v8 = vadd.f32 %v12746_v45, %v19930_v42 }
0x28aa   :  { %v12747_v57 = vadd.f32 %v13972_v39, %v12737_v48  ;;  %v12752_v41 = vadd.f32 %v12748_v14, %v19940_v43 }
0x28ab   :  { %v12749_v28 = vadd.f32 %v12745_v7, %v19933_v53  ;;  %12754 = vst.msk [vmem:[#allocation2 + $0x8] sm:$0xff] %vm915_vm1, %v12750_v8 }
0x28ac   :  { %v12751_v61 = vadd.f32 %v12747_v57, %v19943_v38  ;;  %12756 = vst.msk [vmem:[#allocation2 + $0x18] sm:$0xff] %vm915_vm1, %v12752_v41 }
0x28ad   :  { %12753 = vst.msk [vmem:[#allocation2] sm:$0xff] %vm915_vm1, %v12749_v28 }
0x28ae   :  { %12755 = vst.msk [vmem:[#allocation2 + $0x10] sm:$0xff] %vm915_vm1, %v12751_v61 }
0x28af   :  { %17495 = shalt.err (!%p17492_p4)
}
0x28b0   :  { %s17496_s18 = scalar_lea.hbm %s20653_s12, 512 }
0x28b1   :  { %p17497_p5 = scmp.ne.s32.totalorder %s20653_s12, %s17496_s18  ;;  %p17500_p6 = scmp.lt.u32.totalorder %s17496_s18, %s20653_s12 }
0x28b3   :  { %p17502_p7 = pnand %p17500_p6, %p17497_p5 }
0x28b5   :  { %17505 = shalt.err (!%p17502_p7)
}
0x28b6   :  { %s17509_s23 = smov 128   ;;  %s17510_s24 = smov 8  }
0x28b7   :  { %12768 = dma.vmem_to_hbm [thread:$0]  %s12763_s16, 512, %s20653_s12, [#allocation3], %s17509_s23, %s17509_s23, %s17510_s24  }
0x28b8   :  { %17506 = dma.done.wait [#allocation3], 512  }
0x28b9   :  { %17507 = vsyncadd [#allocation3], 4294966784 }
0x28ba   :  { %12772 = vsyncpa [#allocation3], 1 }

</bundles_post_ra>
